<compile_context>
chip_gen: v6e
topology: v6e:2x2x1
jax: 0.10.0
libtpu: 0.0.40
codegen_flags: <defaults>
</compile_context>

<pallas_src>
import functools

import jax
import jax.numpy as jnp
from jax.experimental import pallas as pl
from jax.experimental.pallas import tpu as pltpu


def _round_up(x, m):
    return ((x + m - 1) // m) * m


def _godel_decoder_kernel(h0_ref, scale_ref, emb_ref, w1_ref, b1_ref,
                          w2_ref, b2_ref, lnw_ref, lnb_ref,
                          out_ref, h_state, *, inv_hidden, chunk):
    c = pl.program_id(0)

    # Initialize the carried state once, at the first grid step.
    @pl.when(c == 0)
    def _():
        h_state[...] = h0_ref[...]

    # Hoist loop-invariant loads out of the step loop.
    emb = emb_ref[...]
    w1 = w1_ref[...]
    b1 = b1_ref[...]
    w2 = w2_ref[...]
    b2 = b2_ref[...]
    lnw = lnw_ref[...]
    lnb = lnb_ref[...]
    s_pad = b2.shape[-1]

    def step(t, h):
        # LayerNorm over the real hidden columns.  Padded h columns are
        # exactly 0, so sum(h)/H and sum(h*h)/H - mean^2 are the real-column
        # statistics (no lane mask needed); padded lnw/lnb columns are 0 so
        # the padded columns of hn stay 0.
        mean = jnp.sum(h, axis=-1, keepdims=True) * inv_hidden
        var = jnp.sum(h * h, axis=-1, keepdims=True) * inv_hidden - mean * mean
        hn = (h - mean) * jax.lax.rsqrt(var + 1e-5) * lnw + lnb

        # Classifier: Linear -> ReLU -> Linear (lane-dense, f32 MXU accum).
        # TODO(synk): cast hn/z and w1/w2 to bf16 on v6e/v7x once shapes are
        # production sized (kept f32 here so the autoregressive argmax
        # trajectory matches the f32 reference exactly).
        z = jnp.dot(hn, w1, preferred_element_type=jnp.float32) + b1
        z = jnp.maximum(z, 0.0)
        logits = jnp.dot(z, w2, preferred_element_type=jnp.float32) + b2

        out_ref[t] = logits                               # (Bp, Sp) lane-dense store

        # Greedy token: first-index argmax kept as a one-hot row selector.
        # Padded symbol columns carry a -1e30 bias so they are never the max.
        iota = jax.lax.broadcasted_iota(jnp.int32, logits.shape, 1)
        maxv = jnp.max(logits, axis=-1, keepdims=True)
        idx = jnp.min(jnp.where(logits == maxv, iota, s_pad), axis=-1,
                      keepdims=True)
        onehot = (iota == idx).astype(jnp.float32)        # (Bp, Sp)

        # h <- h - emb[tok] * scale[p]  (one-hot @ emb gather; exact in f32
        # and cheap at padded toy sizes).
        e = jnp.dot(onehot, emb, preferred_element_type=jnp.float32)
        return h - e * scale_ref[t]                       # scale_ref[t]: (1, Hp)

    h_state[...] = jax.lax.fori_loop(0, chunk, step, h_state[...],
                                     unroll=min(chunk, 8))


def godel_decode(h, params, max_len):
    B, H = h.shape
    S = params["emb"].shape[0]
    Bp = _round_up(max(B, 8), 8)
    Hp = _round_up(H, 128)
    Sp = _round_up(S, 128)
    f32 = jnp.float32

    # Merge decode steps into chunks: one grid step runs `chunk` serial steps
    # and writes a (chunk, Bp, Sp) logit block (kept <= ~4 MiB so the
    # double-buffered output writeback stays well inside VMEM).
    bytes_per_row = Bp * Sp * 4
    chunk = max(1, min(max_len, (4 << 20) // bytes_per_row))
    n_chunks = -(-max_len // chunk)
    L_pad = n_chunks * chunk

    def pad2(a, rows, cols):
        a = a.astype(f32)
        return jnp.pad(a, ((0, rows - a.shape[0]), (0, cols - a.shape[1])))

    def pad_row(a, cols, fill=0.0):
        a = a.astype(f32)[None, :]
        return jnp.pad(a, ((0, 0), (0, cols - a.shape[1])),
                       constant_values=fill)

    h0 = pad2(h, Bp, Hp)
    emb = pad2(params["emb"], Sp, Hp)
    w1 = pad2(params["w1"].T, Hp, Hp)                     # (Hp, Hp)
    b1 = pad_row(params["b1"], Hp)
    w2 = pad2(params["w2"].T, Hp, Sp)                     # (Hp, Sp)
    b2 = pad_row(params["b2"], Sp, fill=-1e30)            # pad cols never win argmax
    lnw = pad_row(params["ln_w"], Hp)
    lnb = pad_row(params["ln_b"], Hp)

    # gamma**p via cumulative product (no per-step pow on the serial critical
    # path); extra rows for L padding are computed but sliced off.
    gamma = params["gamma"].astype(f32)
    gamma_rows = jnp.concatenate(
        [jnp.ones((1, H), f32), jnp.tile(gamma[None, :], (L_pad - 1, 1))],
        axis=0)
    gpow = jnp.cumprod(gamma_rows, axis=0)                # (L_pad, H)
    steps = jnp.arange(L_pad, dtype=f32)[:, None]
    scale_tab = (params["g"].astype(f32)[None, :] * gpow
                 + steps * params["lin"].astype(f32)[None, :]
                 + params["b"].astype(f32)[None, :])      # (L_pad, H)
    scale_tab = jnp.pad(scale_tab, ((0, 0), (0, Hp - H)))[:, None, :]  # (L_pad,1,Hp)

    kernel = functools.partial(_godel_decoder_kernel,
                               inv_hidden=1.0 / H, chunk=chunk)

    flops_step = 2 * Bp * Hp * (Hp + 2 * Sp) + 12 * Bp * Hp
    cost = pl.CostEstimate(
        flops=int(L_pad * flops_step),
        transcendentals=int(L_pad * Bp),
        bytes_accessed=int(4 * (Bp * Hp + Sp * Hp + Hp * Hp + Hp * Sp
                                + 3 * Hp + Sp + L_pad * Hp
                                + L_pad * Bp * Sp)),
    )

    operands = (h0, scale_tab, emb, w1, b1, w2, b2, lnw, lnb)

    def build(single_buffer):
        def inv_spec(shape):
            idx_map = lambda c: (0,) * len(shape)
            if single_buffer:
                # Constant index map => re-fetch never happens; single-buffer
                # to avoid doubling the VMEM footprint of the weights.
                return pl.BlockSpec(shape, idx_map,
                                    pipeline_mode=pl.Buffered(1))
            return pl.BlockSpec(shape, idx_map)

        grid_spec = pltpu.PrefetchScalarGridSpec(
            num_scalar_prefetch=0,
            grid=(n_chunks,),
            in_specs=[
                inv_spec((Bp, Hp)),                              # h0 (init only)
                pl.BlockSpec((chunk, 1, Hp), lambda c: (c, 0, 0)),  # scale rows
                inv_spec((Sp, Hp)),                              # embedding table
                inv_spec((Hp, Hp)),                              # w1 (pre-transposed)
                inv_spec((1, Hp)),                               # b1
                inv_spec((Hp, Sp)),                              # w2 (pre-transposed)
                inv_spec((1, Sp)),                               # b2 (pad = -1e30)
                inv_spec((1, Hp)),                               # layernorm weight
                inv_spec((1, Hp)),                               # layernorm bias
            ],
            out_specs=pl.BlockSpec((chunk, Bp, Sp), lambda c: (c, 0, 0)),
            scratch_shapes=[pltpu.VMEM((Bp, Hp), jnp.float32)],  # carried state h
        )
        return pl.pallas_call(
            kernel,
            out_shape=jax.ShapeDtypeStruct((L_pad, Bp, Sp), jnp.float32),
            grid_spec=grid_spec,
            compiler_params=pltpu.CompilerParams(
                dimension_semantics=("arbitrary",)),  # serial recurrence over chunks
            cost_estimate=cost,
        )

    try:
        out_padded = build(single_buffer=True)(*operands)
    except Exception:
        # Fallback if pipeline_mode=pl.Buffered(1) is not supported by this
        # jax build; identical numerics, default double-buffering.
        out_padded = build(single_buffer=False)(*operands)

    return out_padded[:max_len, :B, :S]


def godel_decode_reference(h, params, max_len):
    """Pure-JAX mirror of the PyTorch forward (x=None path)."""
    logits = []
    for p in range(max_len):
        scale = params["g"] * params["gamma"] ** p + p * params["lin"] + params["b"]
        mean = h.mean(-1, keepdims=True)
        var = ((h - mean) ** 2).mean(-1, keepdims=True)
        hn = (h - mean) / jnp.sqrt(var + 1e-5) * params["ln_w"] + params["ln_b"]
        z = jnp.maximum(hn @ params["w1"].T + params["b1"], 0.0)
        l = z @ params["w2"].T + params["b2"]
        logits.append(l)
        tok = jnp.argmax(l, axis=-1)
        h = h - params["emb"][tok] * scale
    # torch.stack(logits, dim=-2).transpose(0, 1) -> (L, B, S)
    return jnp.transpose(jnp.stack(logits, axis=-2), (1, 0, 2))


def init_params(key, hidden_size, n_symbols):
    ks = jax.random.split(key, 5)
    return {
        "emb":  jax.random.normal(ks[0], (n_symbols, hidden_size), jnp.float32) * 0.1,
        "w1":   jax.random.normal(ks[1], (hidden_size, hidden_size), jnp.float32) * 0.1,
        "b1":   jax.random.normal(ks[2], (hidden_size,), jnp.float32) * 0.01,
        "w2":   jax.random.normal(ks[3], (n_symbols, hidden_size), jnp.float32) * 0.1,
        "b2":   jax.random.normal(ks[4], (n_symbols,), jnp.float32) * 0.01,
        "ln_w": jnp.ones((hidden_size,), jnp.float32),
        "ln_b": jnp.zeros((hidden_size,), jnp.float32),
        "gamma": jnp.full((hidden_size,), 0.9, jnp.float32),
        "g":    jnp.ones((hidden_size,), jnp.float32),
        "b":    jnp.zeros((hidden_size,), jnp.float32),
        "lin":  jnp.full((hidden_size,), 0.1, jnp.float32),
    }


if __name__ == "__main__":
    B, H, S, L = 4, 32, 16, 8   # batch, hidden_size, n_symbols, max_len

    key = jax.random.PRNGKey(0)
    k_h, k_p = jax.random.split(key)
    params = init_params(k_p, H, S)
    h0 = jax.random.normal(k_h, (B, H), jnp.float32)

    out = godel_decode(h0, params, L)
    out = jax.block_until_ready(out)

    ref = godel_decode_reference(h0, params, L)
    assert out.shape == (L, B, S), out.shape
    assert jnp.allclose(out, ref, atol=1e-3, rtol=1e-3), "mismatch vs reference"

    print("KERNEL_OK")
</pallas_src>

<mosaic_0001>
module attributes {stable_mosaic.version = 11 : i64} {
  func.func @_godel_decoder_kernel(%arg0: i32, %arg1: memref<8x128xf32, #tpu.memory_space<vmem>>, %arg2: memref<8x1x128xf32, #tpu.memory_space<vmem>>, %arg3: memref<128x128xf32, #tpu.memory_space<vmem>>, %arg4: memref<128x128xf32, #tpu.memory_space<vmem>>, %arg5: memref<1x128xf32, #tpu.memory_space<vmem>>, %arg6: memref<128x128xf32, #tpu.memory_space<vmem>>, %arg7: memref<1x128xf32, #tpu.memory_space<vmem>>, %arg8: memref<1x128xf32, #tpu.memory_space<vmem>>, %arg9: memref<1x128xf32, #tpu.memory_space<vmem>>, %arg10: memref<8x8x128xf32, #tpu.memory_space<vmem>>, %arg11: memref<8x128xf32, #tpu.memory_space<vmem>>) attributes {dimension_semantics = [#tpu.dimension_semantics<arbitrary>], iteration_bounds = array<i64: 1>, scalar_prefetch = 0 : i64, scratch_operands = 1 : i64, tpu.core_type = #tpu.core_type<tc>, window_params = [{pipeline_mode = #tpu.pipeline_mode<synchronous>, transform_indices = @transform_0, window_bounds = array<i64: 8, 128>}, {transform_indices = @transform_1, window_bounds = array<i64: 8, 1, 128>}, {pipeline_mode = #tpu.pipeline_mode<synchronous>, transform_indices = @transform_2, window_bounds = array<i64: 128, 128>}, {pipeline_mode = #tpu.pipeline_mode<synchronous>, transform_indices = @transform_3, window_bounds = array<i64: 128, 128>}, {pipeline_mode = #tpu.pipeline_mode<synchronous>, transform_indices = @transform_4, window_bounds = array<i64: 1, 128>}, {pipeline_mode = #tpu.pipeline_mode<synchronous>, transform_indices = @transform_5, window_bounds = array<i64: 128, 128>}, {pipeline_mode = #tpu.pipeline_mode<synchronous>, transform_indices = @transform_6, window_bounds = array<i64: 1, 128>}, {pipeline_mode = #tpu.pipeline_mode<synchronous>, transform_indices = @transform_7, window_bounds = array<i64: 1, 128>}, {pipeline_mode = #tpu.pipeline_mode<synchronous>, transform_indices = @transform_8, window_bounds = array<i64: 1, 128>}, {transform_indices = @transform_9, window_bounds = array<i64: 8, 8, 128>}]} {
    %c0_i32 = arith.constant 0 : i32
    %0 = arith.cmpi eq, %arg0, %c0_i32 : i32
    %1 = arith.extui %0 : i1 to i32
    %c0_i32_0 = arith.constant 0 : i32
    %2 = arith.cmpi ne, %1, %c0_i32_0 : i32
    scf.if %2 {
      %c0_145 = arith.constant 0 : index
      %c0_146 = arith.constant 0 : index
      %444 = vector.load %arg1[%c0_145, %c0_146] : memref<8x128xf32, #tpu.memory_space<vmem>>, vector<8x128xf32>
      %c0_147 = arith.constant 0 : index
      %c0_148 = arith.constant 0 : index
      %445 = vector.load %arg11[%c0_147, %c0_148] : memref<8x128xf32, #tpu.memory_space<vmem>>, vector<8x128xf32>
      tpu.vector_store %arg11[%c0_147, %c0_148], %444 {strides = array<i32>} : memref<8x128xf32, #tpu.memory_space<vmem>>, vector<8x128xf32>,
    } else {
    }
    %c0 = arith.constant 0 : index
    %c0_1 = arith.constant 0 : index
    %3 = vector.load %arg3[%c0, %c0_1] : memref<128x128xf32, #tpu.memory_space<vmem>>, vector<128x128xf32>
    %c0_2 = arith.constant 0 : index
    %c0_3 = arith.constant 0 : index
    %4 = vector.load %arg4[%c0_2, %c0_3] : memref<128x128xf32, #tpu.memory_space<vmem>>, vector<128x128xf32>
    %c0_4 = arith.constant 0 : index
    %c0_5 = arith.constant 0 : index
    %5 = vector.load %arg5[%c0_4, %c0_5] : memref<1x128xf32, #tpu.memory_space<vmem>>, vector<1x128xf32>
    %c0_6 = arith.constant 0 : index
    %c0_7 = arith.constant 0 : index
    %6 = vector.load %arg6[%c0_6, %c0_7] : memref<128x128xf32, #tpu.memory_space<vmem>>, vector<128x128xf32>
    %c0_8 = arith.constant 0 : index
    %c0_9 = arith.constant 0 : index
    %7 = vector.load %arg7[%c0_8, %c0_9] : memref<1x128xf32, #tpu.memory_space<vmem>>, vector<1x128xf32>
    %c0_10 = arith.constant 0 : index
    %c0_11 = arith.constant 0 : index
    %8 = vector.load %arg8[%c0_10, %c0_11] : memref<1x128xf32, #tpu.memory_space<vmem>>, vector<1x128xf32>
    %c0_12 = arith.constant 0 : index
    %c0_13 = arith.constant 0 : index
    %9 = vector.load %arg9[%c0_12, %c0_13] : memref<1x128xf32, #tpu.memory_space<vmem>>, vector<1x128xf32>
    %c0_14 = arith.constant 0 : index
    %c0_15 = arith.constant 0 : index
    %10 = vector.load %arg11[%c0_14, %c0_15] : memref<8x128xf32, #tpu.memory_space<vmem>>, vector<8x128xf32>
    %c0_i32_16 = arith.constant 0 : i32
    %cst = arith.constant dense<0.000000e+00> : vector<8xf32>
    %11 = vector.multi_reduction <add>, %10, %cst [1] : vector<8x128xf32> to vector<8xf32>
    %12 = vector.shape_cast %11 : vector<8xf32> to vector<8x1xf32>
    %cst_17 = arith.constant 3.125000e-02 : f32
    %13 = vector.broadcast %cst_17 : f32 to vector<8x1xf32>
    %14 = arith.mulf %12, %13 : vector<8x1xf32>
    %15 = arith.mulf %10, %10 : vector<8x128xf32>
    %cst_18 = arith.constant dense<0.000000e+00> : vector<8xf32>
    %16 = vector.multi_reduction <add>, %15, %cst_18 [1] : vector<8x128xf32> to vector<8xf32>
    %17 = vector.shape_cast %16 : vector<8xf32> to vector<8x1xf32>
    %cst_19 = arith.constant 3.125000e-02 : f32
    %18 = vector.broadcast %cst_19 : f32 to vector<8x1xf32>
    %19 = arith.mulf %17, %18 : vector<8x1xf32>
    %20 = arith.mulf %14, %14 : vector<8x1xf32>
    %21 = arith.subf %19, %20 : vector<8x1xf32>
    %22 = vector.broadcast %14 : vector<8x1xf32> to vector<8x128xf32>
    %23 = arith.subf %10, %22 : vector<8x128xf32>
    %cst_20 = arith.constant 9.99999974E-6 : f32
    %24 = vector.broadcast %cst_20 : f32 to vector<8x1xf32>
    %25 = arith.addf %21, %24 : vector<8x1xf32>
    %26 = math.rsqrt %25 : vector<8x1xf32>
    %27 = vector.broadcast %26 : vector<8x1xf32> to vector<8x128xf32>
    %28 = arith.mulf %23, %27 : vector<8x128xf32>
    %29 = vector.broadcast %8 : vector<1x128xf32> to vector<8x128xf32>
    %30 = arith.mulf %28, %29 : vector<8x128xf32>
    %31 = vector.broadcast %9 : vector<1x128xf32> to vector<8x128xf32>
    %32 = arith.addf %30, %31 : vector<8x128xf32>
    %cst_21 = arith.constant dense<0.000000e+00> : vector<8x128xf32>
    %33 = tpu.matmul %32, %4, %cst_21 {dimension_numbers = #tpu.dot_dimension_numbers<[1], [0], [0], [1], [0, 0, 1, 1], [], []>} : vector<8x128xf32>, vector<128x128xf32>, vector<8x128xf32> -> vector<8x128xf32>
    %34 = vector.broadcast %5 : vector<1x128xf32> to vector<8x128xf32>
    %35 = arith.addf %33, %34 : vector<8x128xf32>
    %cst_22 = arith.constant 0.000000e+00 : f32
    %36 = vector.broadcast %cst_22 : f32 to vector<8x128xf32>
    %37 = arith.maximumf %35, %36 : vector<8x128xf32>
    %cst_23 = arith.constant dense<0.000000e+00> : vector<8x128xf32>
    %38 = tpu.matmul %37, %6, %cst_23 {dimension_numbers = #tpu.dot_dimension_numbers<[1], [0], [0], [1], [0, 0, 1, 1], [], []>} : vector<8x128xf32>, vector<128x128xf32>, vector<8x128xf32> -> vector<8x128xf32>
    %39 = vector.broadcast %7 : vector<1x128xf32> to vector<8x128xf32>
    %40 = arith.addf %38, %39 : vector<8x128xf32>
    %41 = arith.index_cast %c0_i32_16 : i32 to index
    %c0_24 = arith.constant 0 : index
    %c0_25 = arith.constant 0 : index
    %42 = vector.load %arg10[%41, %c0_24, %c0_25] : memref<8x8x128xf32, #tpu.memory_space<vmem>>, vector<1x8x128xf32>
    %43 = vector.shape_cast %42 : vector<1x8x128xf32> to vector<8x128xf32>
    %44 = vector.shape_cast %40 : vector<8x128xf32> to vector<1x8x128xf32>
    tpu.vector_store %arg10[%41, %c0_24, %c0_25], %44 {strides = array<i32>} : memref<8x8x128xf32, #tpu.memory_space<vmem>>, vector<1x8x128xf32>,
    %45 = tpu.iota {dimensions = array<i32: 1>} : vector<8x128xi32>
    %cst_26 = arith.constant dense<0xFF800000> : vector<8xf32>
    %46 = vector.multi_reduction <maximumf>, %40, %cst_26 [1] : vector<8x128xf32> to vector<8xf32>
    %47 = vector.shape_cast %46 : vector<8xf32> to vector<8x1xf32>
    %48 = vector.broadcast %47 : vector<8x1xf32> to vector<8x128xf32>
    %49 = arith.cmpf oeq, %40, %48 : vector<8x128xf32>
    %c128_i32 = arith.constant 128 : i32
    %50 = vector.broadcast %c128_i32 : i32 to vector<8x128xi32>
    %51 = arith.select %49, %45, %50 : vector<8x128xi1>, vector<8x128xi32>
    %cst_27 = arith.constant dense<2147483647> : vector<8xi32>
    %52 = vector.multi_reduction <minsi>, %51, %cst_27 [1] : vector<8x128xi32> to vector<8xi32>
    %53 = vector.shape_cast %52 : vector<8xi32> to vector<8x1xi32>
    %54 = vector.broadcast %53 : vector<8x1xi32> to vector<8x128xi32>
    %55 = arith.cmpi eq, %45, %54 : vector<8x128xi32>
    %56 = arith.extui %55 : vector<8x128xi1> to vector<8x128xi32>
    %57 = arith.sitofp %56 : vector<8x128xi32> to vector<8x128xf32>
    %cst_28 = arith.constant dense<0.000000e+00> : vector<8x128xf32>
    %58 = tpu.matmul %57, %3, %cst_28 {dimension_numbers = #tpu.dot_dimension_numbers<[1], [0], [0], [1], [0, 0, 1, 1], [], []>} : vector<8x128xf32>, vector<128x128xf32>, vector<8x128xf32> -> vector<8x128xf32>
    %59 = arith.index_cast %c0_i32_16 : i32 to index
    %c0_29 = arith.constant 0 : index
    %c0_30 = arith.constant 0 : index
    %60 = vector.load %arg2[%59, %c0_29, %c0_30] : memref<8x1x128xf32, #tpu.memory_space<vmem>>, vector<1x1x128xf32>
    %61 = vector.shape_cast %60 : vector<1x1x128xf32> to vector<1x128xf32>
    %62 = vector.broadcast %61 : vector<1x128xf32> to vector<8x128xf32>
    %63 = arith.mulf %58, %62 : vector<8x128xf32>
    %64 = arith.subf %10, %63 : vector<8x128xf32>
    %c1_i32 = arith.constant 1 : i32
    %cst_31 = arith.constant dense<0.000000e+00> : vector<8xf32>
    %65 = vector.multi_reduction <add>, %64, %cst_31 [1] : vector<8x128xf32> to vector<8xf32>
    %66 = vector.shape_cast %65 : vector<8xf32> to vector<8x1xf32>
    %cst_32 = arith.constant 3.125000e-02 : f32
    %67 = vector.broadcast %cst_32 : f32 to vector<8x1xf32>
    %68 = arith.mulf %66, %67 : vector<8x1xf32>
    %69 = arith.mulf %64, %64 : vector<8x128xf32>
    %cst_33 = arith.constant dense<0.000000e+00> : vector<8xf32>
    %70 = vector.multi_reduction <add>, %69, %cst_33 [1] : vector<8x128xf32> to vector<8xf32>
    %71 = vector.shape_cast %70 : vector<8xf32> to vector<8x1xf32>
    %cst_34 = arith.constant 3.125000e-02 : f32
    %72 = vector.broadcast %cst_34 : f32 to vector<8x1xf32>
    %73 = arith.mulf %71, %72 : vector<8x1xf32>
    %74 = arith.mulf %68, %68 : vector<8x1xf32>
    %75 = arith.subf %73, %74 : vector<8x1xf32>
    %76 = vector.broadcast %68 : vector<8x1xf32> to vector<8x128xf32>
    %77 = arith.subf %64, %76 : vector<8x128xf32>
    %cst_35 = arith.constant 9.99999974E-6 : f32
    %78 = vector.broadcast %cst_35 : f32 to vector<8x1xf32>
    %79 = arith.addf %75, %78 : vector<8x1xf32>
    %80 = math.rsqrt %79 : vector<8x1xf32>
    %81 = vector.broadcast %80 : vector<8x1xf32> to vector<8x128xf32>
    %82 = arith.mulf %77, %81 : vector<8x128xf32>
    %83 = vector.broadcast %8 : vector<1x128xf32> to vector<8x128xf32>
    %84 = arith.mulf %82, %83 : vector<8x128xf32>
    %85 = vector.broadcast %9 : vector<1x128xf32> to vector<8x128xf32>
    %86 = arith.addf %84, %85 : vector<8x128xf32>
    %cst_36 = arith.constant dense<0.000000e+00> : vector<8x128xf32>
    %87 = tpu.matmul %86, %4, %cst_36 {dimension_numbers = #tpu.dot_dimension_numbers<[1], [0], [0], [1], [0, 0, 1, 1], [], []>} : vector<8x128xf32>, vector<128x128xf32>, vector<8x128xf32> -> vector<8x128xf32>
    %88 = vector.broadcast %5 : vector<1x128xf32> to vector<8x128xf32>
    %89 = arith.addf %87, %88 : vector<8x128xf32>
    %cst_37 = arith.constant 0.000000e+00 : f32
    %90 = vector.broadcast %cst_37 : f32 to vector<8x128xf32>
    %91 = arith.maximumf %89, %90 : vector<8x128xf32>
    %cst_38 = arith.constant dense<0.000000e+00> : vector<8x128xf32>
    %92 = tpu.matmul %91, %6, %cst_38 {dimension_numbers = #tpu.dot_dimension_numbers<[1], [0], [0], [1], [0, 0, 1, 1], [], []>} : vector<8x128xf32>, vector<128x128xf32>, vector<8x128xf32> -> vector<8x128xf32>
    %93 = vector.broadcast %7 : vector<1x128xf32> to vector<8x128xf32>
    %94 = arith.addf %92, %93 : vector<8x128xf32>
    %95 = arith.index_cast %c1_i32 : i32 to index
    %c0_39 = arith.constant 0 : index
    %c0_40 = arith.constant 0 : index
    %96 = vector.load %arg10[%95, %c0_39, %c0_40] : memref<8x8x128xf32, #tpu.memory_space<vmem>>, vector<1x8x128xf32>
    %97 = vector.shape_cast %96 : vector<1x8x128xf32> to vector<8x128xf32>
    %98 = vector.shape_cast %94 : vector<8x128xf32> to vector<1x8x128xf32>
    tpu.vector_store %arg10[%95, %c0_39, %c0_40], %98 {strides = array<i32>} : memref<8x8x128xf32, #tpu.memory_space<vmem>>, vector<1x8x128xf32>,
    %99 = tpu.iota {dimensions = array<i32: 1>} : vector<8x128xi32>
    %cst_41 = arith.constant dense<0xFF800000> : vector<8xf32>
    %100 = vector.multi_reduction <maximumf>, %94, %cst_41 [1] : vector<8x128xf32> to vector<8xf32>
    %101 = vector.shape_cast %100 : vector<8xf32> to vector<8x1xf32>
    %102 = vector.broadcast %101 : vector<8x1xf32> to vector<8x128xf32>
    %103 = arith.cmpf oeq, %94, %102 : vector<8x128xf32>
    %c128_i32_42 = arith.constant 128 : i32
    %104 = vector.broadcast %c128_i32_42 : i32 to vector<8x128xi32>
    %105 = arith.select %103, %99, %104 : vector<8x128xi1>, vector<8x128xi32>
    %cst_43 = arith.constant dense<2147483647> : vector<8xi32>
    %106 = vector.multi_reduction <minsi>, %105, %cst_43 [1] : vector<8x128xi32> to vector<8xi32>
    %107 = vector.shape_cast %106 : vector<8xi32> to vector<8x1xi32>
    %108 = vector.broadcast %107 : vector<8x1xi32> to vector<8x128xi32>
    %109 = arith.cmpi eq, %99, %108 : vector<8x128xi32>
    %110 = arith.extui %109 : vector<8x128xi1> to vector<8x128xi32>
    %111 = arith.sitofp %110 : vector<8x128xi32> to vector<8x128xf32>
    %cst_44 = arith.constant dense<0.000000e+00> : vector<8x128xf32>
    %112 = tpu.matmul %111, %3, %cst_44 {dimension_numbers = #tpu.dot_dimension_numbers<[1], [0], [0], [1], [0, 0, 1, 1], [], []>} : vector<8x128xf32>, vector<128x128xf32>, vector<8x128xf32> -> vector<8x128xf32>
    %113 = arith.index_cast %c1_i32 : i32 to index
    %c0_45 = arith.constant 0 : index
    %c0_46 = arith.constant 0 : index
    %114 = vector.load %arg2[%113, %c0_45, %c0_46] : memref<8x1x128xf32, #tpu.memory_space<vmem>>, vector<1x1x128xf32>
    %115 = vector.shape_cast %114 : vector<1x1x128xf32> to vector<1x128xf32>
    %116 = vector.broadcast %115 : vector<1x128xf32> to vector<8x128xf32>
    %117 = arith.mulf %112, %116 : vector<8x128xf32>
    %118 = arith.subf %64, %117 : vector<8x128xf32>
    %c2_i32 = arith.constant 2 : i32
    %cst_47 = arith.constant dense<0.000000e+00> : vector<8xf32>
    %119 = vector.multi_reduction <add>, %118, %cst_47 [1] : vector<8x128xf32> to vector<8xf32>
    %120 = vector.shape_cast %119 : vector<8xf32> to vector<8x1xf32>
    %cst_48 = arith.constant 3.125000e-02 : f32
    %121 = vector.broadcast %cst_48 : f32 to vector<8x1xf32>
    %122 = arith.mulf %120, %121 : vector<8x1xf32>
    %123 = arith.mulf %118, %118 : vector<8x128xf32>
    %cst_49 = arith.constant dense<0.000000e+00> : vector<8xf32>
    %124 = vector.multi_reduction <add>, %123, %cst_49 [1] : vector<8x128xf32> to vector<8xf32>
    %125 = vector.shape_cast %124 : vector<8xf32> to vector<8x1xf32>
    %cst_50 = arith.constant 3.125000e-02 : f32
    %126 = vector.broadcast %cst_50 : f32 to vector<8x1xf32>
    %127 = arith.mulf %125, %126 : vector<8x1xf32>
    %128 = arith.mulf %122, %122 : vector<8x1xf32>
    %129 = arith.subf %127, %128 : vector<8x1xf32>
    %130 = vector.broadcast %122 : vector<8x1xf32> to vector<8x128xf32>
    %131 = arith.subf %118, %130 : vector<8x128xf32>
    %cst_51 = arith.constant 9.99999974E-6 : f32
    %132 = vector.broadcast %cst_51 : f32 to vector<8x1xf32>
    %133 = arith.addf %129, %132 : vector<8x1xf32>
    %134 = math.rsqrt %133 : vector<8x1xf32>
    %135 = vector.broadcast %134 : vector<8x1xf32> to vector<8x128xf32>
    %136 = arith.mulf %131, %135 : vector<8x128xf32>
    %137 = vector.broadcast %8 : vector<1x128xf32> to vector<8x128xf32>
    %138 = arith.mulf %136, %137 : vector<8x128xf32>
    %139 = vector.broadcast %9 : vector<1x128xf32> to vector<8x128xf32>
    %140 = arith.addf %138, %139 : vector<8x128xf32>
    %cst_52 = arith.constant dense<0.000000e+00> : vector<8x128xf32>
    %141 = tpu.matmul %140, %4, %cst_52 {dimension_numbers = #tpu.dot_dimension_numbers<[1], [0], [0], [1], [0, 0, 1, 1], [], []>} : vector<8x128xf32>, vector<128x128xf32>, vector<8x128xf32> -> vector<8x128xf32>
    %142 = vector.broadcast %5 : vector<1x128xf32> to vector<8x128xf32>
    %143 = arith.addf %141, %142 : vector<8x128xf32>
    %cst_53 = arith.constant 0.000000e+00 : f32
    %144 = vector.broadcast %cst_53 : f32 to vector<8x128xf32>
    %145 = arith.maximumf %143, %144 : vector<8x128xf32>
    %cst_54 = arith.constant dense<0.000000e+00> : vector<8x128xf32>
    %146 = tpu.matmul %145, %6, %cst_54 {dimension_numbers = #tpu.dot_dimension_numbers<[1], [0], [0], [1], [0, 0, 1, 1], [], []>} : vector<8x128xf32>, vector<128x128xf32>, vector<8x128xf32> -> vector<8x128xf32>
    %147 = vector.broadcast %7 : vector<1x128xf32> to vector<8x128xf32>
    %148 = arith.addf %146, %147 : vector<8x128xf32>
    %149 = arith.index_cast %c2_i32 : i32 to index
    %c0_55 = arith.constant 0 : index
    %c0_56 = arith.constant 0 : index
    %150 = vector.load %arg10[%149, %c0_55, %c0_56] : memref<8x8x128xf32, #tpu.memory_space<vmem>>, vector<1x8x128xf32>
    %151 = vector.shape_cast %150 : vector<1x8x128xf32> to vector<8x128xf32>
    %152 = vector.shape_cast %148 : vector<8x128xf32> to vector<1x8x128xf32>
    tpu.vector_store %arg10[%149, %c0_55, %c0_56], %152 {strides = array<i32>} : memref<8x8x128xf32, #tpu.memory_space<vmem>>, vector<1x8x128xf32>,
    %153 = tpu.iota {dimensions = array<i32: 1>} : vector<8x128xi32>
    %cst_57 = arith.constant dense<0xFF800000> : vector<8xf32>
    %154 = vector.multi_reduction <maximumf>, %148, %cst_57 [1] : vector<8x128xf32> to vector<8xf32>
    %155 = vector.shape_cast %154 : vector<8xf32> to vector<8x1xf32>
    %156 = vector.broadcast %155 : vector<8x1xf32> to vector<8x128xf32>
    %157 = arith.cmpf oeq, %148, %156 : vector<8x128xf32>
    %c128_i32_58 = arith.constant 128 : i32
    %158 = vector.broadcast %c128_i32_58 : i32 to vector<8x128xi32>
    %159 = arith.select %157, %153, %158 : vector<8x128xi1>, vector<8x128xi32>
    %cst_59 = arith.constant dense<2147483647> : vector<8xi32>
    %160 = vector.multi_reduction <minsi>, %159, %cst_59 [1] : vector<8x128xi32> to vector<8xi32>
    %161 = vector.shape_cast %160 : vector<8xi32> to vector<8x1xi32>
    %162 = vector.broadcast %161 : vector<8x1xi32> to vector<8x128xi32>
    %163 = arith.cmpi eq, %153, %162 : vector<8x128xi32>
    %164 = arith.extui %163 : vector<8x128xi1> to vector<8x128xi32>
    %165 = arith.sitofp %164 : vector<8x128xi32> to vector<8x128xf32>
    %cst_60 = arith.constant dense<0.000000e+00> : vector<8x128xf32>
    %166 = tpu.matmul %165, %3, %cst_60 {dimension_numbers = #tpu.dot_dimension_numbers<[1], [0], [0], [1], [0, 0, 1, 1], [], []>} : vector<8x128xf32>, vector<128x128xf32>, vector<8x128xf32> -> vector<8x128xf32>
    %167 = arith.index_cast %c2_i32 : i32 to index
    %c0_61 = arith.constant 0 : index
    %c0_62 = arith.constant 0 : index
    %168 = vector.load %arg2[%167, %c0_61, %c0_62] : memref<8x1x128xf32, #tpu.memory_space<vmem>>, vector<1x1x128xf32>
    %169 = vector.shape_cast %168 : vector<1x1x128xf32> to vector<1x128xf32>
    %170 = vector.broadcast %169 : vector<1x128xf32> to vector<8x128xf32>
    %171 = arith.mulf %166, %170 : vector<8x128xf32>
    %172 = arith.subf %118, %171 : vector<8x128xf32>
    %c3_i32 = arith.constant 3 : i32
    %cst_63 = arith.constant dense<0.000000e+00> : vector<8xf32>
    %173 = vector.multi_reduction <add>, %172, %cst_63 [1] : vector<8x128xf32> to vector<8xf32>
    %174 = vector.shape_cast %173 : vector<8xf32> to vector<8x1xf32>
    %cst_64 = arith.constant 3.125000e-02 : f32
    %175 = vector.broadcast %cst_64 : f32 to vector<8x1xf32>
    %176 = arith.mulf %174, %175 : vector<8x1xf32>
    %177 = arith.mulf %172, %172 : vector<8x128xf32>
    %cst_65 = arith.constant dense<0.000000e+00> : vector<8xf32>
    %178 = vector.multi_reduction <add>, %177, %cst_65 [1] : vector<8x128xf32> to vector<8xf32>
    %179 = vector.shape_cast %178 : vector<8xf32> to vector<8x1xf32>
    %cst_66 = arith.constant 3.125000e-02 : f32
    %180 = vector.broadcast %cst_66 : f32 to vector<8x1xf32>
    %181 = arith.mulf %179, %180 : vector<8x1xf32>
    %182 = arith.mulf %176, %176 : vector<8x1xf32>
    %183 = arith.subf %181, %182 : vector<8x1xf32>
    %184 = vector.broadcast %176 : vector<8x1xf32> to vector<8x128xf32>
    %185 = arith.subf %172, %184 : vector<8x128xf32>
    %cst_67 = arith.constant 9.99999974E-6 : f32
    %186 = vector.broadcast %cst_67 : f32 to vector<8x1xf32>
    %187 = arith.addf %183, %186 : vector<8x1xf32>
    %188 = math.rsqrt %187 : vector<8x1xf32>
    %189 = vector.broadcast %188 : vector<8x1xf32> to vector<8x128xf32>
    %190 = arith.mulf %185, %189 : vector<8x128xf32>
    %191 = vector.broadcast %8 : vector<1x128xf32> to vector<8x128xf32>
    %192 = arith.mulf %190, %191 : vector<8x128xf32>
    %193 = vector.broadcast %9 : vector<1x128xf32> to vector<8x128xf32>
    %194 = arith.addf %192, %193 : vector<8x128xf32>
    %cst_68 = arith.constant dense<0.000000e+00> : vector<8x128xf32>
    %195 = tpu.matmul %194, %4, %cst_68 {dimension_numbers = #tpu.dot_dimension_numbers<[1], [0], [0], [1], [0, 0, 1, 1], [], []>} : vector<8x128xf32>, vector<128x128xf32>, vector<8x128xf32> -> vector<8x128xf32>
    %196 = vector.broadcast %5 : vector<1x128xf32> to vector<8x128xf32>
    %197 = arith.addf %195, %196 : vector<8x128xf32>
    %cst_69 = arith.constant 0.000000e+00 : f32
    %198 = vector.broadcast %cst_69 : f32 to vector<8x128xf32>
    %199 = arith.maximumf %197, %198 : vector<8x128xf32>
    %cst_70 = arith.constant dense<0.000000e+00> : vector<8x128xf32>
    %200 = tpu.matmul %199, %6, %cst_70 {dimension_numbers = #tpu.dot_dimension_numbers<[1], [0], [0], [1], [0, 0, 1, 1], [], []>} : vector<8x128xf32>, vector<128x128xf32>, vector<8x128xf32> -> vector<8x128xf32>
    %201 = vector.broadcast %7 : vector<1x128xf32> to vector<8x128xf32>
    %202 = arith.addf %200, %201 : vector<8x128xf32>
    %203 = arith.index_cast %c3_i32 : i32 to index
    %c0_71 = arith.constant 0 : index
    %c0_72 = arith.constant 0 : index
    %204 = vector.load %arg10[%203, %c0_71, %c0_72] : memref<8x8x128xf32, #tpu.memory_space<vmem>>, vector<1x8x128xf32>
    %205 = vector.shape_cast %204 : vector<1x8x128xf32> to vector<8x128xf32>
    %206 = vector.shape_cast %202 : vector<8x128xf32> to vector<1x8x128xf32>
    tpu.vector_store %arg10[%203, %c0_71, %c0_72], %206 {strides = array<i32>} : memref<8x8x128xf32, #tpu.memory_space<vmem>>, vector<1x8x128xf32>,
    %207 = tpu.iota {dimensions = array<i32: 1>} : vector<8x128xi32>
    %cst_73 = arith.constant dense<0xFF800000> : vector<8xf32>
    %208 = vector.multi_reduction <maximumf>, %202, %cst_73 [1] : vector<8x128xf32> to vector<8xf32>
    %209 = vector.shape_cast %208 : vector<8xf32> to vector<8x1xf32>
    %210 = vector.broadcast %209 : vector<8x1xf32> to vector<8x128xf32>
    %211 = arith.cmpf oeq, %202, %210 : vector<8x128xf32>
    %c128_i32_74 = arith.constant 128 : i32
    %212 = vector.broadcast %c128_i32_74 : i32 to vector<8x128xi32>
    %213 = arith.select %211, %207, %212 : vector<8x128xi1>, vector<8x128xi32>
    %cst_75 = arith.constant dense<2147483647> : vector<8xi32>
    %214 = vector.multi_reduction <minsi>, %213, %cst_75 [1] : vector<8x128xi32> to vector<8xi32>
    %215 = vector.shape_cast %214 : vector<8xi32> to vector<8x1xi32>
    %216 = vector.broadcast %215 : vector<8x1xi32> to vector<8x128xi32>
    %217 = arith.cmpi eq, %207, %216 : vector<8x128xi32>
    %218 = arith.extui %217 : vector<8x128xi1> to vector<8x128xi32>
    %219 = arith.sitofp %218 : vector<8x128xi32> to vector<8x128xf32>
    %cst_76 = arith.constant dense<0.000000e+00> : vector<8x128xf32>
    %220 = tpu.matmul %219, %3, %cst_76 {dimension_numbers = #tpu.dot_dimension_numbers<[1], [0], [0], [1], [0, 0, 1, 1], [], []>} : vector<8x128xf32>, vector<128x128xf32>, vector<8x128xf32> -> vector<8x128xf32>
    %221 = arith.index_cast %c3_i32 : i32 to index
    %c0_77 = arith.constant 0 : index
    %c0_78 = arith.constant 0 : index
    %222 = vector.load %arg2[%221, %c0_77, %c0_78] : memref<8x1x128xf32, #tpu.memory_space<vmem>>, vector<1x1x128xf32>
    %223 = vector.shape_cast %222 : vector<1x1x128xf32> to vector<1x128xf32>
    %224 = vector.broadcast %223 : vector<1x128xf32> to vector<8x128xf32>
    %225 = arith.mulf %220, %224 : vector<8x128xf32>
    %226 = arith.subf %172, %225 : vector<8x128xf32>
    %c4_i32 = arith.constant 4 : i32
    %cst_79 = arith.constant dense<0.000000e+00> : vector<8xf32>
    %227 = vector.multi_reduction <add>, %226, %cst_79 [1] : vector<8x128xf32> to vector<8xf32>
    %228 = vector.shape_cast %227 : vector<8xf32> to vector<8x1xf32>
    %cst_80 = arith.constant 3.125000e-02 : f32
    %229 = vector.broadcast %cst_80 : f32 to vector<8x1xf32>
    %230 = arith.mulf %228, %229 : vector<8x1xf32>
    %231 = arith.mulf %226, %226 : vector<8x128xf32>
    %cst_81 = arith.constant dense<0.000000e+00> : vector<8xf32>
    %232 = vector.multi_reduction <add>, %231, %cst_81 [1] : vector<8x128xf32> to vector<8xf32>
    %233 = vector.shape_cast %232 : vector<8xf32> to vector<8x1xf32>
    %cst_82 = arith.constant 3.125000e-02 : f32
    %234 = vector.broadcast %cst_82 : f32 to vector<8x1xf32>
    %235 = arith.mulf %233, %234 : vector<8x1xf32>
    %236 = arith.mulf %230, %230 : vector<8x1xf32>
    %237 = arith.subf %235, %236 : vector<8x1xf32>
    %238 = vector.broadcast %230 : vector<8x1xf32> to vector<8x128xf32>
    %239 = arith.subf %226, %238 : vector<8x128xf32>
    %cst_83 = arith.constant 9.99999974E-6 : f32
    %240 = vector.broadcast %cst_83 : f32 to vector<8x1xf32>
    %241 = arith.addf %237, %240 : vector<8x1xf32>
    %242 = math.rsqrt %241 : vector<8x1xf32>
    %243 = vector.broadcast %242 : vector<8x1xf32> to vector<8x128xf32>
    %244 = arith.mulf %239, %243 : vector<8x128xf32>
    %245 = vector.broadcast %8 : vector<1x128xf32> to vector<8x128xf32>
    %246 = arith.mulf %244, %245 : vector<8x128xf32>
    %247 = vector.broadcast %9 : vector<1x128xf32> to vector<8x128xf32>
    %248 = arith.addf %246, %247 : vector<8x128xf32>
    %cst_84 = arith.constant dense<0.000000e+00> : vector<8x128xf32>
    %249 = tpu.matmul %248, %4, %cst_84 {dimension_numbers = #tpu.dot_dimension_numbers<[1], [0], [0], [1], [0, 0, 1, 1], [], []>} : vector<8x128xf32>, vector<128x128xf32>, vector<8x128xf32> -> vector<8x128xf32>
    %250 = vector.broadcast %5 : vector<1x128xf32> to vector<8x128xf32>
    %251 = arith.addf %249, %250 : vector<8x128xf32>
    %cst_85 = arith.constant 0.000000e+00 : f32
    %252 = vector.broadcast %cst_85 : f32 to vector<8x128xf32>
    %253 = arith.maximumf %251, %252 : vector<8x128xf32>
    %cst_86 = arith.constant dense<0.000000e+00> : vector<8x128xf32>
    %254 = tpu.matmul %253, %6, %cst_86 {dimension_numbers = #tpu.dot_dimension_numbers<[1], [0], [0], [1], [0, 0, 1, 1], [], []>} : vector<8x128xf32>, vector<128x128xf32>, vector<8x128xf32> -> vector<8x128xf32>
    %255 = vector.broadcast %7 : vector<1x128xf32> to vector<8x128xf32>
    %256 = arith.addf %254, %255 : vector<8x128xf32>
    %257 = arith.index_cast %c4_i32 : i32 to index
    %c0_87 = arith.constant 0 : index
    %c0_88 = arith.constant 0 : index
    %258 = vector.load %arg10[%257, %c0_87, %c0_88] : memref<8x8x128xf32, #tpu.memory_space<vmem>>, vector<1x8x128xf32>
    %259 = vector.shape_cast %258 : vector<1x8x128xf32> to vector<8x128xf32>
    %260 = vector.shape_cast %256 : vector<8x128xf32> to vector<1x8x128xf32>
    tpu.vector_store %arg10[%257, %c0_87, %c0_88], %260 {strides = array<i32>} : memref<8x8x128xf32, #tpu.memory_space<vmem>>, vector<1x8x128xf32>,
    %261 = tpu.iota {dimensions = array<i32: 1>} : vector<8x128xi32>
    %cst_89 = arith.constant dense<0xFF800000> : vector<8xf32>
    %262 = vector.multi_reduction <maximumf>, %256, %cst_89 [1] : vector<8x128xf32> to vector<8xf32>
    %263 = vector.shape_cast %262 : vector<8xf32> to vector<8x1xf32>
    %264 = vector.broadcast %263 : vector<8x1xf32> to vector<8x128xf32>
    %265 = arith.cmpf oeq, %256, %264 : vector<8x128xf32>
    %c128_i32_90 = arith.constant 128 : i32
    %266 = vector.broadcast %c128_i32_90 : i32 to vector<8x128xi32>
    %267 = arith.select %265, %261, %266 : vector<8x128xi1>, vector<8x128xi32>
    %cst_91 = arith.constant dense<2147483647> : vector<8xi32>
    %268 = vector.multi_reduction <minsi>, %267, %cst_91 [1] : vector<8x128xi32> to vector<8xi32>
    %269 = vector.shape_cast %268 : vector<8xi32> to vector<8x1xi32>
    %270 = vector.broadcast %269 : vector<8x1xi32> to vector<8x128xi32>
    %271 = arith.cmpi eq, %261, %270 : vector<8x128xi32>
    %272 = arith.extui %271 : vector<8x128xi1> to vector<8x128xi32>
    %273 = arith.sitofp %272 : vector<8x128xi32> to vector<8x128xf32>
    %cst_92 = arith.constant dense<0.000000e+00> : vector<8x128xf32>
    %274 = tpu.matmul %273, %3, %cst_92 {dimension_numbers = #tpu.dot_dimension_numbers<[1], [0], [0], [1], [0, 0, 1, 1], [], []>} : vector<8x128xf32>, vector<128x128xf32>, vector<8x128xf32> -> vector<8x128xf32>
    %275 = arith.index_cast %c4_i32 : i32 to index
    %c0_93 = arith.constant 0 : index
    %c0_94 = arith.constant 0 : index
    %276 = vector.load %arg2[%275, %c0_93, %c0_94] : memref<8x1x128xf32, #tpu.memory_space<vmem>>, vector<1x1x128xf32>
    %277 = vector.shape_cast %276 : vector<1x1x128xf32> to vector<1x128xf32>
    %278 = vector.broadcast %277 : vector<1x128xf32> to vector<8x128xf32>
    %279 = arith.mulf %274, %278 : vector<8x128xf32>
    %280 = arith.subf %226, %279 : vector<8x128xf32>
    %c5_i32 = arith.constant 5 : i32
    %cst_95 = arith.constant dense<0.000000e+00> : vector<8xf32>
    %281 = vector.multi_reduction <add>, %280, %cst_95 [1] : vector<8x128xf32> to vector<8xf32>
    %282 = vector.shape_cast %281 : vector<8xf32> to vector<8x1xf32>
    %cst_96 = arith.constant 3.125000e-02 : f32
    %283 = vector.broadcast %cst_96 : f32 to vector<8x1xf32>
    %284 = arith.mulf %282, %283 : vector<8x1xf32>
    %285 = arith.mulf %280, %280 : vector<8x128xf32>
    %cst_97 = arith.constant dense<0.000000e+00> : vector<8xf32>
    %286 = vector.multi_reduction <add>, %285, %cst_97 [1] : vector<8x128xf32> to vector<8xf32>
    %287 = vector.shape_cast %286 : vector<8xf32> to vector<8x1xf32>
    %cst_98 = arith.constant 3.125000e-02 : f32
    %288 = vector.broadcast %cst_98 : f32 to vector<8x1xf32>
    %289 = arith.mulf %287, %288 : vector<8x1xf32>
    %290 = arith.mulf %284, %284 : vector<8x1xf32>
    %291 = arith.subf %289, %290 : vector<8x1xf32>
    %292 = vector.broadcast %284 : vector<8x1xf32> to vector<8x128xf32>
    %293 = arith.subf %280, %292 : vector<8x128xf32>
    %cst_99 = arith.constant 9.99999974E-6 : f32
    %294 = vector.broadcast %cst_99 : f32 to vector<8x1xf32>
    %295 = arith.addf %291, %294 : vector<8x1xf32>
    %296 = math.rsqrt %295 : vector<8x1xf32>
    %297 = vector.broadcast %296 : vector<8x1xf32> to vector<8x128xf32>
    %298 = arith.mulf %293, %297 : vector<8x128xf32>
    %299 = vector.broadcast %8 : vector<1x128xf32> to vector<8x128xf32>
    %300 = arith.mulf %298, %299 : vector<8x128xf32>
    %301 = vector.broadcast %9 : vector<1x128xf32> to vector<8x128xf32>
    %302 = arith.addf %300, %301 : vector<8x128xf32>
    %cst_100 = arith.constant dense<0.000000e+00> : vector<8x128xf32>
    %303 = tpu.matmul %302, %4, %cst_100 {dimension_numbers = #tpu.dot_dimension_numbers<[1], [0], [0], [1], [0, 0, 1, 1], [], []>} : vector<8x128xf32>, vector<128x128xf32>, vector<8x128xf32> -> vector<8x128xf32>
    %304 = vector.broadcast %5 : vector<1x128xf32> to vector<8x128xf32>
    %305 = arith.addf %303, %304 : vector<8x128xf32>
    %cst_101 = arith.constant 0.000000e+00 : f32
    %306 = vector.broadcast %cst_101 : f32 to vector<8x128xf32>
    %307 = arith.maximumf %305, %306 : vector<8x128xf32>
    %cst_102 = arith.constant dense<0.000000e+00> : vector<8x128xf32>
    %308 = tpu.matmul %307, %6, %cst_102 {dimension_numbers = #tpu.dot_dimension_numbers<[1], [0], [0], [1], [0, 0, 1, 1], [], []>} : vector<8x128xf32>, vector<128x128xf32>, vector<8x128xf32> -> vector<8x128xf32>
    %309 = vector.broadcast %7 : vector<1x128xf32> to vector<8x128xf32>
    %310 = arith.addf %308, %309 : vector<8x128xf32>
    %311 = arith.index_cast %c5_i32 : i32 to index
    %c0_103 = arith.constant 0 : index
    %c0_104 = arith.constant 0 : index
    %312 = vector.load %arg10[%311, %c0_103, %c0_104] : memref<8x8x128xf32, #tpu.memory_space<vmem>>, vector<1x8x128xf32>
    %313 = vector.shape_cast %312 : vector<1x8x128xf32> to vector<8x128xf32>
    %314 = vector.shape_cast %310 : vector<8x128xf32> to vector<1x8x128xf32>
    tpu.vector_store %arg10[%311, %c0_103, %c0_104], %314 {strides = array<i32>} : memref<8x8x128xf32, #tpu.memory_space<vmem>>, vector<1x8x128xf32>,
    %315 = tpu.iota {dimensions = array<i32: 1>} : vector<8x128xi32>
    %cst_105 = arith.constant dense<0xFF800000> : vector<8xf32>
    %316 = vector.multi_reduction <maximumf>, %310, %cst_105 [1] : vector<8x128xf32> to vector<8xf32>
    %317 = vector.shape_cast %316 : vector<8xf32> to vector<8x1xf32>
    %318 = vector.broadcast %317 : vector<8x1xf32> to vector<8x128xf32>
    %319 = arith.cmpf oeq, %310, %318 : vector<8x128xf32>
    %c128_i32_106 = arith.constant 128 : i32
    %320 = vector.broadcast %c128_i32_106 : i32 to vector<8x128xi32>
    %321 = arith.select %319, %315, %320 : vector<8x128xi1>, vector<8x128xi32>
    %cst_107 = arith.constant dense<2147483647> : vector<8xi32>
    %322 = vector.multi_reduction <minsi>, %321, %cst_107 [1] : vector<8x128xi32> to vector<8xi32>
    %323 = vector.shape_cast %322 : vector<8xi32> to vector<8x1xi32>
    %324 = vector.broadcast %323 : vector<8x1xi32> to vector<8x128xi32>
    %325 = arith.cmpi eq, %315, %324 : vector<8x128xi32>
    %326 = arith.extui %325 : vector<8x128xi1> to vector<8x128xi32>
    %327 = arith.sitofp %326 : vector<8x128xi32> to vector<8x128xf32>
    %cst_108 = arith.constant dense<0.000000e+00> : vector<8x128xf32>
    %328 = tpu.matmul %327, %3, %cst_108 {dimension_numbers = #tpu.dot_dimension_numbers<[1], [0], [0], [1], [0, 0, 1, 1], [], []>} : vector<8x128xf32>, vector<128x128xf32>, vector<8x128xf32> -> vector<8x128xf32>
    %329 = arith.index_cast %c5_i32 : i32 to index
    %c0_109 = arith.constant 0 : index
    %c0_110 = arith.constant 0 : index
    %330 = vector.load %arg2[%329, %c0_109, %c0_110] : memref<8x1x128xf32, #tpu.memory_space<vmem>>, vector<1x1x128xf32>
    %331 = vector.shape_cast %330 : vector<1x1x128xf32> to vector<1x128xf32>
    %332 = vector.broadcast %331 : vector<1x128xf32> to vector<8x128xf32>
    %333 = arith.mulf %328, %332 : vector<8x128xf32>
    %334 = arith.subf %280, %333 : vector<8x128xf32>
    %c6_i32 = arith.constant 6 : i32
    %cst_111 = arith.constant dense<0.000000e+00> : vector<8xf32>
    %335 = vector.multi_reduction <add>, %334, %cst_111 [1] : vector<8x128xf32> to vector<8xf32>
    %336 = vector.shape_cast %335 : vector<8xf32> to vector<8x1xf32>
    %cst_112 = arith.constant 3.125000e-02 : f32
    %337 = vector.broadcast %cst_112 : f32 to vector<8x1xf32>
    %338 = arith.mulf %336, %337 : vector<8x1xf32>
    %339 = arith.mulf %334, %334 : vector<8x128xf32>
    %cst_113 = arith.constant dense<0.000000e+00> : vector<8xf32>
    %340 = vector.multi_reduction <add>, %339, %cst_113 [1] : vector<8x128xf32> to vector<8xf32>
    %341 = vector.shape_cast %340 : vector<8xf32> to vector<8x1xf32>
    %cst_114 = arith.constant 3.125000e-02 : f32
    %342 = vector.broadcast %cst_114 : f32 to vector<8x1xf32>
    %343 = arith.mulf %341, %342 : vector<8x1xf32>
    %344 = arith.mulf %338, %338 : vector<8x1xf32>
    %345 = arith.subf %343, %344 : vector<8x1xf32>
    %346 = vector.broadcast %338 : vector<8x1xf32> to vector<8x128xf32>
    %347 = arith.subf %334, %346 : vector<8x128xf32>
    %cst_115 = arith.constant 9.99999974E-6 : f32
    %348 = vector.broadcast %cst_115 : f32 to vector<8x1xf32>
    %349 = arith.addf %345, %348 : vector<8x1xf32>
    %350 = math.rsqrt %349 : vector<8x1xf32>
    %351 = vector.broadcast %350 : vector<8x1xf32> to vector<8x128xf32>
    %352 = arith.mulf %347, %351 : vector<8x128xf32>
    %353 = vector.broadcast %8 : vector<1x128xf32> to vector<8x128xf32>
    %354 = arith.mulf %352, %353 : vector<8x128xf32>
    %355 = vector.broadcast %9 : vector<1x128xf32> to vector<8x128xf32>
    %356 = arith.addf %354, %355 : vector<8x128xf32>
    %cst_116 = arith.constant dense<0.000000e+00> : vector<8x128xf32>
    %357 = tpu.matmul %356, %4, %cst_116 {dimension_numbers = #tpu.dot_dimension_numbers<[1], [0], [0], [1], [0, 0, 1, 1], [], []>} : vector<8x128xf32>, vector<128x128xf32>, vector<8x128xf32> -> vector<8x128xf32>
    %358 = vector.broadcast %5 : vector<1x128xf32> to vector<8x128xf32>
    %359 = arith.addf %357, %358 : vector<8x128xf32>
    %cst_117 = arith.constant 0.000000e+00 : f32
    %360 = vector.broadcast %cst_117 : f32 to vector<8x128xf32>
    %361 = arith.maximumf %359, %360 : vector<8x128xf32>
    %cst_118 = arith.constant dense<0.000000e+00> : vector<8x128xf32>
    %362 = tpu.matmul %361, %6, %cst_118 {dimension_numbers = #tpu.dot_dimension_numbers<[1], [0], [0], [1], [0, 0, 1, 1], [], []>} : vector<8x128xf32>, vector<128x128xf32>, vector<8x128xf32> -> vector<8x128xf32>
    %363 = vector.broadcast %7 : vector<1x128xf32> to vector<8x128xf32>
    %364 = arith.addf %362, %363 : vector<8x128xf32>
    %365 = arith.index_cast %c6_i32 : i32 to index
    %c0_119 = arith.constant 0 : index
    %c0_120 = arith.constant 0 : index
    %366 = vector.load %arg10[%365, %c0_119, %c0_120] : memref<8x8x128xf32, #tpu.memory_space<vmem>>, vector<1x8x128xf32>
    %367 = vector.shape_cast %366 : vector<1x8x128xf32> to vector<8x128xf32>
    %368 = vector.shape_cast %364 : vector<8x128xf32> to vector<1x8x128xf32>
    tpu.vector_store %arg10[%365, %c0_119, %c0_120], %368 {strides = array<i32>} : memref<8x8x128xf32, #tpu.memory_space<vmem>>, vector<1x8x128xf32>,
    %369 = tpu.iota {dimensions = array<i32: 1>} : vector<8x128xi32>
    %cst_121 = arith.constant dense<0xFF800000> : vector<8xf32>
    %370 = vector.multi_reduction <maximumf>, %364, %cst_121 [1] : vector<8x128xf32> to vector<8xf32>
    %371 = vector.shape_cast %370 : vector<8xf32> to vector<8x1xf32>
    %372 = vector.broadcast %371 : vector<8x1xf32> to vector<8x128xf32>
    %373 = arith.cmpf oeq, %364, %372 : vector<8x128xf32>
    %c128_i32_122 = arith.constant 128 : i32
    %374 = vector.broadcast %c128_i32_122 : i32 to vector<8x128xi32>
    %375 = arith.select %373, %369, %374 : vector<8x128xi1>, vector<8x128xi32>
    %cst_123 = arith.constant dense<2147483647> : vector<8xi32>
    %376 = vector.multi_reduction <minsi>, %375, %cst_123 [1] : vector<8x128xi32> to vector<8xi32>
    %377 = vector.shape_cast %376 : vector<8xi32> to vector<8x1xi32>
    %378 = vector.broadcast %377 : vector<8x1xi32> to vector<8x128xi32>
    %379 = arith.cmpi eq, %369, %378 : vector<8x128xi32>
    %380 = arith.extui %379 : vector<8x128xi1> to vector<8x128xi32>
    %381 = arith.sitofp %380 : vector<8x128xi32> to vector<8x128xf32>
    %cst_124 = arith.constant dense<0.000000e+00> : vector<8x128xf32>
    %382 = tpu.matmul %381, %3, %cst_124 {dimension_numbers = #tpu.dot_dimension_numbers<[1], [0], [0], [1], [0, 0, 1, 1], [], []>} : vector<8x128xf32>, vector<128x128xf32>, vector<8x128xf32> -> vector<8x128xf32>
    %383 = arith.index_cast %c6_i32 : i32 to index
    %c0_125 = arith.constant 0 : index
    %c0_126 = arith.constant 0 : index
    %384 = vector.load %arg2[%383, %c0_125, %c0_126] : memref<8x1x128xf32, #tpu.memory_space<vmem>>, vector<1x1x128xf32>
    %385 = vector.shape_cast %384 : vector<1x1x128xf32> to vector<1x128xf32>
    %386 = vector.broadcast %385 : vector<1x128xf32> to vector<8x128xf32>
    %387 = arith.mulf %382, %386 : vector<8x128xf32>
    %388 = arith.subf %334, %387 : vector<8x128xf32>
    %c7_i32 = arith.constant 7 : i32
    %cst_127 = arith.constant dense<0.000000e+00> : vector<8xf32>
    %389 = vector.multi_reduction <add>, %388, %cst_127 [1] : vector<8x128xf32> to vector<8xf32>
    %390 = vector.shape_cast %389 : vector<8xf32> to vector<8x1xf32>
    %cst_128 = arith.constant 3.125000e-02 : f32
    %391 = vector.broadcast %cst_128 : f32 to vector<8x1xf32>
    %392 = arith.mulf %390, %391 : vector<8x1xf32>
    %393 = arith.mulf %388, %388 : vector<8x128xf32>
    %cst_129 = arith.constant dense<0.000000e+00> : vector<8xf32>
    %394 = vector.multi_reduction <add>, %393, %cst_129 [1] : vector<8x128xf32> to vector<8xf32>
    %395 = vector.shape_cast %394 : vector<8xf32> to vector<8x1xf32>
    %cst_130 = arith.constant 3.125000e-02 : f32
    %396 = vector.broadcast %cst_130 : f32 to vector<8x1xf32>
    %397 = arith.mulf %395, %396 : vector<8x1xf32>
    %398 = arith.mulf %392, %392 : vector<8x1xf32>
    %399 = arith.subf %397, %398 : vector<8x1xf32>
    %400 = vector.broadcast %392 : vector<8x1xf32> to vector<8x128xf32>
    %401 = arith.subf %388, %400 : vector<8x128xf32>
    %cst_131 = arith.constant 9.99999974E-6 : f32
    %402 = vector.broadcast %cst_131 : f32 to vector<8x1xf32>
    %403 = arith.addf %399, %402 : vector<8x1xf32>
    %404 = math.rsqrt %403 : vector<8x1xf32>
    %405 = vector.broadcast %404 : vector<8x1xf32> to vector<8x128xf32>
    %406 = arith.mulf %401, %405 : vector<8x128xf32>
    %407 = vector.broadcast %8 : vector<1x128xf32> to vector<8x128xf32>
    %408 = arith.mulf %406, %407 : vector<8x128xf32>
    %409 = vector.broadcast %9 : vector<1x128xf32> to vector<8x128xf32>
    %410 = arith.addf %408, %409 : vector<8x128xf32>
    %cst_132 = arith.constant dense<0.000000e+00> : vector<8x128xf32>
    %411 = tpu.matmul %410, %4, %cst_132 {dimension_numbers = #tpu.dot_dimension_numbers<[1], [0], [0], [1], [0, 0, 1, 1], [], []>} : vector<8x128xf32>, vector<128x128xf32>, vector<8x128xf32> -> vector<8x128xf32>
    %412 = vector.broadcast %5 : vector<1x128xf32> to vector<8x128xf32>
    %413 = arith.addf %411, %412 : vector<8x128xf32>
    %cst_133 = arith.constant 0.000000e+00 : f32
    %414 = vector.broadcast %cst_133 : f32 to vector<8x128xf32>
    %415 = arith.maximumf %413, %414 : vector<8x128xf32>
    %cst_134 = arith.constant dense<0.000000e+00> : vector<8x128xf32>
    %416 = tpu.matmul %415, %6, %cst_134 {dimension_numbers = #tpu.dot_dimension_numbers<[1], [0], [0], [1], [0, 0, 1, 1], [], []>} : vector<8x128xf32>, vector<128x128xf32>, vector<8x128xf32> -> vector<8x128xf32>
    %417 = vector.broadcast %7 : vector<1x128xf32> to vector<8x128xf32>
    %418 = arith.addf %416, %417 : vector<8x128xf32>
    %419 = arith.index_cast %c7_i32 : i32 to index
    %c0_135 = arith.constant 0 : index
    %c0_136 = arith.constant 0 : index
    %420 = vector.load %arg10[%419, %c0_135, %c0_136] : memref<8x8x128xf32, #tpu.memory_space<vmem>>, vector<1x8x128xf32>
    %421 = vector.shape_cast %420 : vector<1x8x128xf32> to vector<8x128xf32>
    %422 = vector.shape_cast %418 : vector<8x128xf32> to vector<1x8x128xf32>
    tpu.vector_store %arg10[%419, %c0_135, %c0_136], %422 {strides = array<i32>} : memref<8x8x128xf32, #tpu.memory_space<vmem>>, vector<1x8x128xf32>,
    %423 = tpu.iota {dimensions = array<i32: 1>} : vector<8x128xi32>
    %cst_137 = arith.constant dense<0xFF800000> : vector<8xf32>
    %424 = vector.multi_reduction <maximumf>, %418, %cst_137 [1] : vector<8x128xf32> to vector<8xf32>
    %425 = vector.shape_cast %424 : vector<8xf32> to vector<8x1xf32>
    %426 = vector.broadcast %425 : vector<8x1xf32> to vector<8x128xf32>
    %427 = arith.cmpf oeq, %418, %426 : vector<8x128xf32>
    %c128_i32_138 = arith.constant 128 : i32
    %428 = vector.broadcast %c128_i32_138 : i32 to vector<8x128xi32>
    %429 = arith.select %427, %423, %428 : vector<8x128xi1>, vector<8x128xi32>
    %cst_139 = arith.constant dense<2147483647> : vector<8xi32>
    %430 = vector.multi_reduction <minsi>, %429, %cst_139 [1] : vector<8x128xi32> to vector<8xi32>
    %431 = vector.shape_cast %430 : vector<8xi32> to vector<8x1xi32>
    %432 = vector.broadcast %431 : vector<8x1xi32> to vector<8x128xi32>
    %433 = arith.cmpi eq, %423, %432 : vector<8x128xi32>
    %434 = arith.extui %433 : vector<8x128xi1> to vector<8x128xi32>
    %435 = arith.sitofp %434 : vector<8x128xi32> to vector<8x128xf32>
    %cst_140 = arith.constant dense<0.000000e+00> : vector<8x128xf32>
    %436 = tpu.matmul %435, %3, %cst_140 {dimension_numbers = #tpu.dot_dimension_numbers<[1], [0], [0], [1], [0, 0, 1, 1], [], []>} : vector<8x128xf32>, vector<128x128xf32>, vector<8x128xf32> -> vector<8x128xf32>
    %437 = arith.index_cast %c7_i32 : i32 to index
    %c0_141 = arith.constant 0 : index
    %c0_142 = arith.constant 0 : index
    %438 = vector.load %arg2[%437, %c0_141, %c0_142] : memref<8x1x128xf32, #tpu.memory_space<vmem>>, vector<1x1x128xf32>
    %439 = vector.shape_cast %438 : vector<1x1x128xf32> to vector<1x128xf32>
    %440 = vector.broadcast %439 : vector<1x128xf32> to vector<8x128xf32>
    %441 = arith.mulf %436, %440 : vector<8x128xf32>
    %442 = arith.subf %388, %441 : vector<8x128xf32>
    %c8_i32 = arith.constant 8 : i32
    %c0_143 = arith.constant 0 : index
    %c0_144 = arith.constant 0 : index
    %443 = vector.load %arg11[%c0_143, %c0_144] : memref<8x128xf32, #tpu.memory_space<vmem>>, vector<8x128xf32>
    tpu.vector_store %arg11[%c0_143, %c0_144], %442 {strides = array<i32>} : memref<8x128xf32, #tpu.memory_space<vmem>>, vector<8x128xf32>,
    return
  }
  func.func @transform_0(%arg0: i32) -> (i32, i32) {
    %c0_i32 = arith.constant 0 : i32
    %c0_i32_0 = arith.constant 0 : i32
    %c0_i32_1 = arith.constant 0 : i32
    return %c0_i32, %c0_i32_0 : i32, i32
  }
  func.func @transform_1(%arg0: i32) -> (i32, i32, i32) {
    %c0_i32 = arith.constant 0 : i32
    %c0_i32_0 = arith.constant 0 : i32
    %c0_i32_1 = arith.constant 0 : i32
    return %arg0, %c0_i32, %c0_i32_0 : i32, i32, i32
  }
  func.func @transform_2(%arg0: i32) -> (i32, i32) {
    %c0_i32 = arith.constant 0 : i32
    %c0_i32_0 = arith.constant 0 : i32
    %c0_i32_1 = arith.constant 0 : i32
    return %c0_i32, %c0_i32_0 : i32, i32
  }
  func.func @transform_3(%arg0: i32) -> (i32, i32) {
    %c0_i32 = arith.constant 0 : i32
    %c0_i32_0 = arith.constant 0 : i32
    %c0_i32_1 = arith.constant 0 : i32
    return %c0_i32, %c0_i32_0 : i32, i32
  }
  func.func @transform_4(%arg0: i32) -> (i32, i32) {
    %c0_i32 = arith.constant 0 : i32
    %c0_i32_0 = arith.constant 0 : i32
    %c0_i32_1 = arith.constant 0 : i32
    return %c0_i32, %c0_i32_0 : i32, i32
  }
  func.func @transform_5(%arg0: i32) -> (i32, i32) {
    %c0_i32 = arith.constant 0 : i32
    %c0_i32_0 = arith.constant 0 : i32
    %c0_i32_1 = arith.constant 0 : i32
    return %c0_i32, %c0_i32_0 : i32, i32
  }
  func.func @transform_6(%arg0: i32) -> (i32, i32) {
    %c0_i32 = arith.constant 0 : i32
    %c0_i32_0 = arith.constant 0 : i32
    %c0_i32_1 = arith.constant 0 : i32
    return %c0_i32, %c0_i32_0 : i32, i32
  }
  func.func @transform_7(%arg0: i32) -> (i32, i32) {
    %c0_i32 = arith.constant 0 : i32
    %c0_i32_0 = arith.constant 0 : i32
    %c0_i32_1 = arith.constant 0 : i32
    return %c0_i32, %c0_i32_0 : i32, i32
  }
  func.func @transform_8(%arg0: i32) -> (i32, i32) {
    %c0_i32 = arith.constant 0 : i32
    %c0_i32_0 = arith.constant 0 : i32
    %c0_i32_1 = arith.constant 0 : i32
    return %c0_i32, %c0_i32_0 : i32, i32
  }
  func.func @transform_9(%arg0: i32) -> (i32, i32, i32) {
    %c0_i32 = arith.constant 0 : i32
    %c0_i32_0 = arith.constant 0 : i32
    %c0_i32_1 = arith.constant 0 : i32
    return %arg0, %c0_i32, %c0_i32_0 : i32, i32, i32
  }
}

module attributes {stable_mosaic.version = 11 : i64} {
  func.func @_godel_decoder_kernel(%arg0: i32, %arg1: memref<8x128xf32, #tpu.memory_space<vmem>>, %arg2: memref<8x1x128xf32, #tpu.memory_space<vmem>>, %arg3: memref<128x128xf32, #tpu.memory_space<vmem>>, %arg4: memref<128x128xf32, #tpu.memory_space<vmem>>, %arg5: memref<1x128xf32, #tpu.memory_space<vmem>>, %arg6: memref<128x128xf32, #tpu.memory_space<vmem>>, %arg7: memref<1x128xf32, #tpu.memory_space<vmem>>, %arg8: memref<1x128xf32, #tpu.memory_space<vmem>>, %arg9: memref<1x128xf32, #tpu.memory_space<vmem>>, %arg10: memref<8x8x128xf32, #tpu.memory_space<vmem>>, %arg11: memref<8x128xf32, #tpu.memory_space<vmem>>) attributes {dimension_semantics = [#tpu.dimension_semantics<arbitrary>], iteration_bounds = array<i64: 1>, scalar_prefetch = 0 : i64, scratch_operands = 1 : i64, tpu.core_type = #tpu.core_type<tc>, window_params = [{pipeline_mode = #tpu.pipeline_mode<synchronous>, transform_indices = @transform_0, window_bounds = array<i64: 8, 128>}, {transform_indices = @transform_1, window_bounds = array<i64: 8, 1, 128>}, {pipeline_mode = #tpu.pipeline_mode<synchronous>, transform_indices = @transform_2, window_bounds = array<i64: 128, 128>}, {pipeline_mode = #tpu.pipeline_mode<synchronous>, transform_indices = @transform_3, window_bounds = array<i64: 128, 128>}, {pipeline_mode = #tpu.pipeline_mode<synchronous>, transform_indices = @transform_4, window_bounds = array<i64: 1, 128>}, {pipeline_mode = #tpu.pipeline_mode<synchronous>, transform_indices = @transform_5, window_bounds = array<i64: 128, 128>}, {pipeline_mode = #tpu.pipeline_mode<synchronous>, transform_indices = @transform_6, window_bounds = array<i64: 1, 128>}, {pipeline_mode = #tpu.pipeline_mode<synchronous>, transform_indices = @transform_7, window_bounds = array<i64: 1, 128>}, {pipeline_mode = #tpu.pipeline_mode<synchronous>, transform_indices = @transform_8, window_bounds = array<i64: 1, 128>}, {transform_indices = @transform_9, window_bounds = array<i64: 8, 8, 128>}]} {
    %c0_i32 = arith.constant 0 : i32
    %0 = arith.cmpi eq, %arg0, %c0_i32 : i32
    %1 = arith.extui %0 : i1 to i32
    %c0_i32_0 = arith.constant 0 : i32
    %2 = arith.cmpi ne, %1, %c0_i32_0 : i32
    scf.if %2 {
      %c0_145 = arith.constant 0 : index
      %c0_146 = arith.constant 0 : index
      %444 = vector.load %arg1[%c0_145, %c0_146] : memref<8x128xf32, #tpu.memory_space<vmem>>, vector<8x128xf32>
      %c0_147 = arith.constant 0 : index
      %c0_148 = arith.constant 0 : index
      %445 = vector.load %arg11[%c0_147, %c0_148] : memref<8x128xf32, #tpu.memory_space<vmem>>, vector<8x128xf32>
      tpu.vector_store %arg11[%c0_147, %c0_148], %444 {strides = array<i32>} : memref<8x128xf32, #tpu.memory_space<vmem>>, vector<8x128xf32>,
    } else {
    }
    %c0 = arith.constant 0 : index
    %c0_1 = arith.constant 0 : index
    %3 = vector.load %arg3[%c0, %c0_1] : memref<128x128xf32, #tpu.memory_space<vmem>>, vector<128x128xf32>
    %c0_2 = arith.constant 0 : index
    %c0_3 = arith.constant 0 : index
    %4 = vector.load %arg4[%c0_2, %c0_3] : memref<128x128xf32, #tpu.memory_space<vmem>>, vector<128x128xf32>
    %c0_4 = arith.constant 0 : index
    %c0_5 = arith.constant 0 : index
    %5 = vector.load %arg5[%c0_4, %c0_5] : memref<1x128xf32, #tpu.memory_space<vmem>>, vector<1x128xf32>
    %c0_6 = arith.constant 0 : index
    %c0_7 = arith.constant 0 : index
    %6 = vector.load %arg6[%c0_6, %c0_7] : memref<128x128xf32, #tpu.memory_space<vmem>>, vector<128x128xf32>
    %c0_8 = arith.constant 0 : index
    %c0_9 = arith.constant 0 : index
    %7 = vector.load %arg7[%c0_8, %c0_9] : memref<1x128xf32, #tpu.memory_space<vmem>>, vector<1x128xf32>
    %c0_10 = arith.constant 0 : index
    %c0_11 = arith.constant 0 : index
    %8 = vector.load %arg8[%c0_10, %c0_11] : memref<1x128xf32, #tpu.memory_space<vmem>>, vector<1x128xf32>
    %c0_12 = arith.constant 0 : index
    %c0_13 = arith.constant 0 : index
    %9 = vector.load %arg9[%c0_12, %c0_13] : memref<1x128xf32, #tpu.memory_space<vmem>>, vector<1x128xf32>
    %c0_14 = arith.constant 0 : index
    %c0_15 = arith.constant 0 : index
    %10 = vector.load %arg11[%c0_14, %c0_15] : memref<8x128xf32, #tpu.memory_space<vmem>>, vector<8x128xf32>
    %c0_i32_16 = arith.constant 0 : i32
    %cst = arith.constant dense<0.000000e+00> : vector<8xf32>
    %11 = vector.multi_reduction <add>, %10, %cst [1] : vector<8x128xf32> to vector<8xf32>
    %12 = vector.shape_cast %11 : vector<8xf32> to vector<8x1xf32>
    %cst_17 = arith.constant 3.125000e-02 : f32
    %13 = vector.broadcast %cst_17 : f32 to vector<8x1xf32>
    %14 = arith.mulf %12, %13 : vector<8x1xf32>
    %15 = arith.mulf %10, %10 : vector<8x128xf32>
    %cst_18 = arith.constant dense<0.000000e+00> : vector<8xf32>
    %16 = vector.multi_reduction <add>, %15, %cst_18 [1] : vector<8x128xf32> to vector<8xf32>
    %17 = vector.shape_cast %16 : vector<8xf32> to vector<8x1xf32>
    %cst_19 = arith.constant 3.125000e-02 : f32
    %18 = vector.broadcast %cst_19 : f32 to vector<8x1xf32>
    %19 = arith.mulf %17, %18 : vector<8x1xf32>
    %20 = arith.mulf %14, %14 : vector<8x1xf32>
    %21 = arith.subf %19, %20 : vector<8x1xf32>
    %22 = vector.broadcast %14 : vector<8x1xf32> to vector<8x128xf32>
    %23 = arith.subf %10, %22 : vector<8x128xf32>
    %cst_20 = arith.constant 9.99999974E-6 : f32
    %24 = vector.broadcast %cst_20 : f32 to vector<8x1xf32>
    %25 = arith.addf %21, %24 : vector<8x1xf32>
    %26 = math.rsqrt %25 : vector<8x1xf32>
    %27 = vector.broadcast %26 : vector<8x1xf32> to vector<8x128xf32>
    %28 = arith.mulf %23, %27 : vector<8x128xf32>
    %29 = vector.broadcast %8 : vector<1x128xf32> to vector<8x128xf32>
    %30 = arith.mulf %28, %29 : vector<8x128xf32>
    %31 = vector.broadcast %9 : vector<1x128xf32> to vector<8x128xf32>
    %32 = arith.addf %30, %31 : vector<8x128xf32>
    %cst_21 = arith.constant dense<0.000000e+00> : vector<8x128xf32>
    %33 = tpu.matmul %32, %4, %cst_21 {dimension_numbers = #tpu.dot_dimension_numbers<[1], [0], [0], [1], [0, 0, 1, 1], [], []>} : vector<8x128xf32>, vector<128x128xf32>, vector<8x128xf32> -> vector<8x128xf32>
    %34 = vector.broadcast %5 : vector<1x128xf32> to vector<8x128xf32>
    %35 = arith.addf %33, %34 : vector<8x128xf32>
    %cst_22 = arith.constant 0.000000e+00 : f32
    %36 = vector.broadcast %cst_22 : f32 to vector<8x128xf32>
    %37 = arith.maximumf %35, %36 : vector<8x128xf32>
    %cst_23 = arith.constant dense<0.000000e+00> : vector<8x128xf32>
    %38 = tpu.matmul %37, %6, %cst_23 {dimension_numbers = #tpu.dot_dimension_numbers<[1], [0], [0], [1], [0, 0, 1, 1], [], []>} : vector<8x128xf32>, vector<128x128xf32>, vector<8x128xf32> -> vector<8x128xf32>
    %39 = vector.broadcast %7 : vector<1x128xf32> to vector<8x128xf32>
    %40 = arith.addf %38, %39 : vector<8x128xf32>
    %41 = arith.index_cast %c0_i32_16 : i32 to index
    %c0_24 = arith.constant 0 : index
    %c0_25 = arith.constant 0 : index
    %42 = vector.load %arg10[%41, %c0_24, %c0_25] : memref<8x8x128xf32, #tpu.memory_space<vmem>>, vector<1x8x128xf32>
    %43 = vector.shape_cast %42 : vector<1x8x128xf32> to vector<8x128xf32>
    %44 = vector.shape_cast %40 : vector<8x128xf32> to vector<1x8x128xf32>
    tpu.vector_store %arg10[%41, %c0_24, %c0_25], %44 {strides = array<i32>} : memref<8x8x128xf32, #tpu.memory_space<vmem>>, vector<1x8x128xf32>,
    %45 = tpu.iota {dimensions = array<i32: 1>} : vector<8x128xi32>
    %cst_26 = arith.constant dense<0xFF800000> : vector<8xf32>
    %46 = vector.multi_reduction <maximumf>, %40, %cst_26 [1] : vector<8x128xf32> to vector<8xf32>
    %47 = vector.shape_cast %46 : vector<8xf32> to vector<8x1xf32>
    %48 = vector.broadcast %47 : vector<8x1xf32> to vector<8x128xf32>
    %49 = arith.cmpf oeq, %40, %48 : vector<8x128xf32>
    %c128_i32 = arith.constant 128 : i32
    %50 = vector.broadcast %c128_i32 : i32 to vector<8x128xi32>
    %51 = arith.select %49, %45, %50 : vector<8x128xi1>, vector<8x128xi32>
    %cst_27 = arith.constant dense<2147483647> : vector<8xi32>
    %52 = vector.multi_reduction <minsi>, %51, %cst_27 [1] : vector<8x128xi32> to vector<8xi32>
    %53 = vector.shape_cast %52 : vector<8xi32> to vector<8x1xi32>
    %54 = vector.broadcast %53 : vector<8x1xi32> to vector<8x128xi32>
    %55 = arith.cmpi eq, %45, %54 : vector<8x128xi32>
    %56 = arith.extui %55 : vector<8x128xi1> to vector<8x128xi32>
    %57 = arith.sitofp %56 : vector<8x128xi32> to vector<8x128xf32>
    %cst_28 = arith.constant dense<0.000000e+00> : vector<8x128xf32>
    %58 = tpu.matmul %57, %3, %cst_28 {dimension_numbers = #tpu.dot_dimension_numbers<[1], [0], [0], [1], [0, 0, 1, 1], [], []>} : vector<8x128xf32>, vector<128x128xf32>, vector<8x128xf32> -> vector<8x128xf32>
    %59 = arith.index_cast %c0_i32_16 : i32 to index
    %c0_29 = arith.constant 0 : index
    %c0_30 = arith.constant 0 : index
    %60 = vector.load %arg2[%59, %c0_29, %c0_30] : memref<8x1x128xf32, #tpu.memory_space<vmem>>, vector<1x1x128xf32>
    %61 = vector.shape_cast %60 : vector<1x1x128xf32> to vector<1x128xf32>
    %62 = vector.broadcast %61 : vector<1x128xf32> to vector<8x128xf32>
    %63 = arith.mulf %58, %62 : vector<8x128xf32>
    %64 = arith.subf %10, %63 : vector<8x128xf32>
    %c1_i32 = arith.constant 1 : i32
    %cst_31 = arith.constant dense<0.000000e+00> : vector<8xf32>
    %65 = vector.multi_reduction <add>, %64, %cst_31 [1] : vector<8x128xf32> to vector<8xf32>
    %66 = vector.shape_cast %65 : vector<8xf32> to vector<8x1xf32>
    %cst_32 = arith.constant 3.125000e-02 : f32
    %67 = vector.broadcast %cst_32 : f32 to vector<8x1xf32>
    %68 = arith.mulf %66, %67 : vector<8x1xf32>
    %69 = arith.mulf %64, %64 : vector<8x128xf32>
    %cst_33 = arith.constant dense<0.000000e+00> : vector<8xf32>
    %70 = vector.multi_reduction <add>, %69, %cst_33 [1] : vector<8x128xf32> to vector<8xf32>
    %71 = vector.shape_cast %70 : vector<8xf32> to vector<8x1xf32>
    %cst_34 = arith.constant 3.125000e-02 : f32
    %72 = vector.broadcast %cst_34 : f32 to vector<8x1xf32>
    %73 = arith.mulf %71, %72 : vector<8x1xf32>
    %74 = arith.mulf %68, %68 : vector<8x1xf32>
    %75 = arith.subf %73, %74 : vector<8x1xf32>
    %76 = vector.broadcast %68 : vector<8x1xf32> to vector<8x128xf32>
    %77 = arith.subf %64, %76 : vector<8x128xf32>
    %cst_35 = arith.constant 9.99999974E-6 : f32
    %78 = vector.broadcast %cst_35 : f32 to vector<8x1xf32>
    %79 = arith.addf %75, %78 : vector<8x1xf32>
    %80 = math.rsqrt %79 : vector<8x1xf32>
    %81 = vector.broadcast %80 : vector<8x1xf32> to vector<8x128xf32>
    %82 = arith.mulf %77, %81 : vector<8x128xf32>
    %83 = vector.broadcast %8 : vector<1x128xf32> to vector<8x128xf32>
    %84 = arith.mulf %82, %83 : vector<8x128xf32>
    %85 = vector.broadcast %9 : vector<1x128xf32> to vector<8x128xf32>
    %86 = arith.addf %84, %85 : vector<8x128xf32>
    %cst_36 = arith.constant dense<0.000000e+00> : vector<8x128xf32>
    %87 = tpu.matmul %86, %4, %cst_36 {dimension_numbers = #tpu.dot_dimension_numbers<[1], [0], [0], [1], [0, 0, 1, 1], [], []>} : vector<8x128xf32>, vector<128x128xf32>, vector<8x128xf32> -> vector<8x128xf32>
    %88 = vector.broadcast %5 : vector<1x128xf32> to vector<8x128xf32>
    %89 = arith.addf %87, %88 : vector<8x128xf32>
    %cst_37 = arith.constant 0.000000e+00 : f32
    %90 = vector.broadcast %cst_37 : f32 to vector<8x128xf32>
    %91 = arith.maximumf %89, %90 : vector<8x128xf32>
    %cst_38 = arith.constant dense<0.000000e+00> : vector<8x128xf32>
    %92 = tpu.matmul %91, %6, %cst_38 {dimension_numbers = #tpu.dot_dimension_numbers<[1], [0], [0], [1], [0, 0, 1, 1], [], []>} : vector<8x128xf32>, vector<128x128xf32>, vector<8x128xf32> -> vector<8x128xf32>
    %93 = vector.broadcast %7 : vector<1x128xf32> to vector<8x128xf32>
    %94 = arith.addf %92, %93 : vector<8x128xf32>
    %95 = arith.index_cast %c1_i32 : i32 to index
    %c0_39 = arith.constant 0 : index
    %c0_40 = arith.constant 0 : index
    %96 = vector.load %arg10[%95, %c0_39, %c0_40] : memref<8x8x128xf32, #tpu.memory_space<vmem>>, vector<1x8x128xf32>
    %97 = vector.shape_cast %96 : vector<1x8x128xf32> to vector<8x128xf32>
    %98 = vector.shape_cast %94 : vector<8x128xf32> to vector<1x8x128xf32>
    tpu.vector_store %arg10[%95, %c0_39, %c0_40], %98 {strides = array<i32>} : memref<8x8x128xf32, #tpu.memory_space<vmem>>, vector<1x8x128xf32>,
    %99 = tpu.iota {dimensions = array<i32: 1>} : vector<8x128xi32>
    %cst_41 = arith.constant dense<0xFF800000> : vector<8xf32>
    %100 = vector.multi_reduction <maximumf>, %94, %cst_41 [1] : vector<8x128xf32> to vector<8xf32>
    %101 = vector.shape_cast %100 : vector<8xf32> to vector<8x1xf32>
    %102 = vector.broadcast %101 : vector<8x1xf32> to vector<8x128xf32>
    %103 = arith.cmpf oeq, %94, %102 : vector<8x128xf32>
    %c128_i32_42 = arith.constant 128 : i32
    %104 = vector.broadcast %c128_i32_42 : i32 to vector<8x128xi32>
    %105 = arith.select %103, %99, %104 : vector<8x128xi1>, vector<8x128xi32>
    %cst_43 = arith.constant dense<2147483647> : vector<8xi32>
    %106 = vector.multi_reduction <minsi>, %105, %cst_43 [1] : vector<8x128xi32> to vector<8xi32>
    %107 = vector.shape_cast %106 : vector<8xi32> to vector<8x1xi32>
    %108 = vector.broadcast %107 : vector<8x1xi32> to vector<8x128xi32>
    %109 = arith.cmpi eq, %99, %108 : vector<8x128xi32>
    %110 = arith.extui %109 : vector<8x128xi1> to vector<8x128xi32>
    %111 = arith.sitofp %110 : vector<8x128xi32> to vector<8x128xf32>
    %cst_44 = arith.constant dense<0.000000e+00> : vector<8x128xf32>
    %112 = tpu.matmul %111, %3, %cst_44 {dimension_numbers = #tpu.dot_dimension_numbers<[1], [0], [0], [1], [0, 0, 1, 1], [], []>} : vector<8x128xf32>, vector<128x128xf32>, vector<8x128xf32> -> vector<8x128xf32>
    %113 = arith.index_cast %c1_i32 : i32 to index
    %c0_45 = arith.constant 0 : index
    %c0_46 = arith.constant 0 : index
    %114 = vector.load %arg2[%113, %c0_45, %c0_46] : memref<8x1x128xf32, #tpu.memory_space<vmem>>, vector<1x1x128xf32>
    %115 = vector.shape_cast %114 : vector<1x1x128xf32> to vector<1x128xf32>
    %116 = vector.broadcast %115 : vector<1x128xf32> to vector<8x128xf32>
    %117 = arith.mulf %112, %116 : vector<8x128xf32>
    %118 = arith.subf %64, %117 : vector<8x128xf32>
    %c2_i32 = arith.constant 2 : i32
    %cst_47 = arith.constant dense<0.000000e+00> : vector<8xf32>
    %119 = vector.multi_reduction <add>, %118, %cst_47 [1] : vector<8x128xf32> to vector<8xf32>
    %120 = vector.shape_cast %119 : vector<8xf32> to vector<8x1xf32>
    %cst_48 = arith.constant 3.125000e-02 : f32
    %121 = vector.broadcast %cst_48 : f32 to vector<8x1xf32>
    %122 = arith.mulf %120, %121 : vector<8x1xf32>
    %123 = arith.mulf %118, %118 : vector<8x128xf32>
    %cst_49 = arith.constant dense<0.000000e+00> : vector<8xf32>
    %124 = vector.multi_reduction <add>, %123, %cst_49 [1] : vector<8x128xf32> to vector<8xf32>
    %125 = vector.shape_cast %124 : vector<8xf32> to vector<8x1xf32>
    %cst_50 = arith.constant 3.125000e-02 : f32
    %126 = vector.broadcast %cst_50 : f32 to vector<8x1xf32>
    %127 = arith.mulf %125, %126 : vector<8x1xf32>
    %128 = arith.mulf %122, %122 : vector<8x1xf32>
    %129 = arith.subf %127, %128 : vector<8x1xf32>
    %130 = vector.broadcast %122 : vector<8x1xf32> to vector<8x128xf32>
    %131 = arith.subf %118, %130 : vector<8x128xf32>
    %cst_51 = arith.constant 9.99999974E-6 : f32
    %132 = vector.broadcast %cst_51 : f32 to vector<8x1xf32>
    %133 = arith.addf %129, %132 : vector<8x1xf32>
    %134 = math.rsqrt %133 : vector<8x1xf32>
    %135 = vector.broadcast %134 : vector<8x1xf32> to vector<8x128xf32>
    %136 = arith.mulf %131, %135 : vector<8x128xf32>
    %137 = vector.broadcast %8 : vector<1x128xf32> to vector<8x128xf32>
    %138 = arith.mulf %136, %137 : vector<8x128xf32>
    %139 = vector.broadcast %9 : vector<1x128xf32> to vector<8x128xf32>
    %140 = arith.addf %138, %139 : vector<8x128xf32>
    %cst_52 = arith.constant dense<0.000000e+00> : vector<8x128xf32>
    %141 = tpu.matmul %140, %4, %cst_52 {dimension_numbers = #tpu.dot_dimension_numbers<[1], [0], [0], [1], [0, 0, 1, 1], [], []>} : vector<8x128xf32>, vector<128x128xf32>, vector<8x128xf32> -> vector<8x128xf32>
    %142 = vector.broadcast %5 : vector<1x128xf32> to vector<8x128xf32>
    %143 = arith.addf %141, %142 : vector<8x128xf32>
    %cst_53 = arith.constant 0.000000e+00 : f32
    %144 = vector.broadcast %cst_53 : f32 to vector<8x128xf32>
    %145 = arith.maximumf %143, %144 : vector<8x128xf32>
    %cst_54 = arith.constant dense<0.000000e+00> : vector<8x128xf32>
    %146 = tpu.matmul %145, %6, %cst_54 {dimension_numbers = #tpu.dot_dimension_numbers<[1], [0], [0], [1], [0, 0, 1, 1], [], []>} : vector<8x128xf32>, vector<128x128xf32>, vector<8x128xf32> -> vector<8x128xf32>
    %147 = vector.broadcast %7 : vector<1x128xf32> to vector<8x128xf32>
    %148 = arith.addf %146, %147 : vector<8x128xf32>
    %149 = arith.index_cast %c2_i32 : i32 to index
    %c0_55 = arith.constant 0 : index
    %c0_56 = arith.constant 0 : index
    %150 = vector.load %arg10[%149, %c0_55, %c0_56] : memref<8x8x128xf32, #tpu.memory_space<vmem>>, vector<1x8x128xf32>
    %151 = vector.shape_cast %150 : vector<1x8x128xf32> to vector<8x128xf32>
    %152 = vector.shape_cast %148 : vector<8x128xf32> to vector<1x8x128xf32>
    tpu.vector_store %arg10[%149, %c0_55, %c0_56], %152 {strides = array<i32>} : memref<8x8x128xf32, #tpu.memory_space<vmem>>, vector<1x8x128xf32>,
    %153 = tpu.iota {dimensions = array<i32: 1>} : vector<8x128xi32>
    %cst_57 = arith.constant dense<0xFF800000> : vector<8xf32>
    %154 = vector.multi_reduction <maximumf>, %148, %cst_57 [1] : vector<8x128xf32> to vector<8xf32>
    %155 = vector.shape_cast %154 : vector<8xf32> to vector<8x1xf32>
    %156 = vector.broadcast %155 : vector<8x1xf32> to vector<8x128xf32>
    %157 = arith.cmpf oeq, %148, %156 : vector<8x128xf32>
    %c128_i32_58 = arith.constant 128 : i32
    %158 = vector.broadcast %c128_i32_58 : i32 to vector<8x128xi32>
    %159 = arith.select %157, %153, %158 : vector<8x128xi1>, vector<8x128xi32>
    %cst_59 = arith.constant dense<2147483647> : vector<8xi32>
    %160 = vector.multi_reduction <minsi>, %159, %cst_59 [1] : vector<8x128xi32> to vector<8xi32>
    %161 = vector.shape_cast %160 : vector<8xi32> to vector<8x1xi32>
    %162 = vector.broadcast %161 : vector<8x1xi32> to vector<8x128xi32>
    %163 = arith.cmpi eq, %153, %162 : vector<8x128xi32>
    %164 = arith.extui %163 : vector<8x128xi1> to vector<8x128xi32>
    %165 = arith.sitofp %164 : vector<8x128xi32> to vector<8x128xf32>
    %cst_60 = arith.constant dense<0.000000e+00> : vector<8x128xf32>
    %166 = tpu.matmul %165, %3, %cst_60 {dimension_numbers = #tpu.dot_dimension_numbers<[1], [0], [0], [1], [0, 0, 1, 1], [], []>} : vector<8x128xf32>, vector<128x128xf32>, vector<8x128xf32> -> vector<8x128xf32>
    %167 = arith.index_cast %c2_i32 : i32 to index
    %c0_61 = arith.constant 0 : index
    %c0_62 = arith.constant 0 : index
    %168 = vector.load %arg2[%167, %c0_61, %c0_62] : memref<8x1x128xf32, #tpu.memory_space<vmem>>, vector<1x1x128xf32>
    %169 = vector.shape_cast %168 : vector<1x1x128xf32> to vector<1x128xf32>
    %170 = vector.broadcast %169 : vector<1x128xf32> to vector<8x128xf32>
    %171 = arith.mulf %166, %170 : vector<8x128xf32>
    %172 = arith.subf %118, %171 : vector<8x128xf32>
    %c3_i32 = arith.constant 3 : i32
    %cst_63 = arith.constant dense<0.000000e+00> : vector<8xf32>
    %173 = vector.multi_reduction <add>, %172, %cst_63 [1] : vector<8x128xf32> to vector<8xf32>
    %174 = vector.shape_cast %173 : vector<8xf32> to vector<8x1xf32>
    %cst_64 = arith.constant 3.125000e-02 : f32
    %175 = vector.broadcast %cst_64 : f32 to vector<8x1xf32>
    %176 = arith.mulf %174, %175 : vector<8x1xf32>
    %177 = arith.mulf %172, %172 : vector<8x128xf32>
    %cst_65 = arith.constant dense<0.000000e+00> : vector<8xf32>
    %178 = vector.multi_reduction <add>, %177, %cst_65 [1] : vector<8x128xf32> to vector<8xf32>
    %179 = vector.shape_cast %178 : vector<8xf32> to vector<8x1xf32>
    %cst_66 = arith.constant 3.125000e-02 : f32
    %180 = vector.broadcast %cst_66 : f32 to vector<8x1xf32>
    %181 = arith.mulf %179, %180 : vector<8x1xf32>
    %182 = arith.mulf %176, %176 : vector<8x1xf32>
    %183 = arith.subf %181, %182 : vector<8x1xf32>
    %184 = vector.broadcast %176 : vector<8x1xf32> to vector<8x128xf32>
    %185 = arith.subf %172, %184 : vector<8x128xf32>
    %cst_67 = arith.constant 9.99999974E-6 : f32
    %186 = vector.broadcast %cst_67 : f32 to vector<8x1xf32>
    %187 = arith.addf %183, %186 : vector<8x1xf32>
    %188 = math.rsqrt %187 : vector<8x1xf32>
    %189 = vector.broadcast %188 : vector<8x1xf32> to vector<8x128xf32>
    %190 = arith.mulf %185, %189 : vector<8x128xf32>
    %191 = vector.broadcast %8 : vector<1x128xf32> to vector<8x128xf32>
    %192 = arith.mulf %190, %191 : vector<8x128xf32>
    %193 = vector.broadcast %9 : vector<1x128xf32> to vector<8x128xf32>
    %194 = arith.addf %192, %193 : vector<8x128xf32>
    %cst_68 = arith.constant dense<0.000000e+00> : vector<8x128xf32>
    %195 = tpu.matmul %194, %4, %cst_68 {dimension_numbers = #tpu.dot_dimension_numbers<[1], [0], [0], [1], [0, 0, 1, 1], [], []>} : vector<8x128xf32>, vector<128x128xf32>, vector<8x128xf32> -> vector<8x128xf32>
    %196 = vector.broadcast %5 : vector<1x128xf32> to vector<8x128xf32>
    %197 = arith.addf %195, %196 : vector<8x128xf32>
    %cst_69 = arith.constant 0.000000e+00 : f32
    %198 = vector.broadcast %cst_69 : f32 to vector<8x128xf32>
    %199 = arith.maximumf %197, %198 : vector<8x128xf32>
    %cst_70 = arith.constant dense<0.000000e+00> : vector<8x128xf32>
    %200 = tpu.matmul %199, %6, %cst_70 {dimension_numbers = #tpu.dot_dimension_numbers<[1], [0], [0], [1], [0, 0, 1, 1], [], []>} : vector<8x128xf32>, vector<128x128xf32>, vector<8x128xf32> -> vector<8x128xf32>
    %201 = vector.broadcast %7 : vector<1x128xf32> to vector<8x128xf32>
    %202 = arith.addf %200, %201 : vector<8x128xf32>
    %203 = arith.index_cast %c3_i32 : i32 to index
    %c0_71 = arith.constant 0 : index
    %c0_72 = arith.constant 0 : index
    %204 = vector.load %arg10[%203, %c0_71, %c0_72] : memref<8x8x128xf32, #tpu.memory_space<vmem>>, vector<1x8x128xf32>
    %205 = vector.shape_cast %204 : vector<1x8x128xf32> to vector<8x128xf32>
    %206 = vector.shape_cast %202 : vector<8x128xf32> to vector<1x8x128xf32>
    tpu.vector_store %arg10[%203, %c0_71, %c0_72], %206 {strides = array<i32>} : memref<8x8x128xf32, #tpu.memory_space<vmem>>, vector<1x8x128xf32>,
    %207 = tpu.iota {dimensions = array<i32: 1>} : vector<8x128xi32>
    %cst_73 = arith.constant dense<0xFF800000> : vector<8xf32>
    %208 = vector.multi_reduction <maximumf>, %202, %cst_73 [1] : vector<8x128xf32> to vector<8xf32>
    %209 = vector.shape_cast %208 : vector<8xf32> to vector<8x1xf32>
    %210 = vector.broadcast %209 : vector<8x1xf32> to vector<8x128xf32>
    %211 = arith.cmpf oeq, %202, %210 : vector<8x128xf32>
    %c128_i32_74 = arith.constant 128 : i32
    %212 = vector.broadcast %c128_i32_74 : i32 to vector<8x128xi32>
    %213 = arith.select %211, %207, %212 : vector<8x128xi1>, vector<8x128xi32>
    %cst_75 = arith.constant dense<2147483647> : vector<8xi32>
    %214 = vector.multi_reduction <minsi>, %213, %cst_75 [1] : vector<8x128xi32> to vector<8xi32>
    %215 = vector.shape_cast %214 : vector<8xi32> to vector<8x1xi32>
    %216 = vector.broadcast %215 : vector<8x1xi32> to vector<8x128xi32>
    %217 = arith.cmpi eq, %207, %216 : vector<8x128xi32>
    %218 = arith.extui %217 : vector<8x128xi1> to vector<8x128xi32>
    %219 = arith.sitofp %218 : vector<8x128xi32> to vector<8x128xf32>
    %cst_76 = arith.constant dense<0.000000e+00> : vector<8x128xf32>
    %220 = tpu.matmul %219, %3, %cst_76 {dimension_numbers = #tpu.dot_dimension_numbers<[1], [0], [0], [1], [0, 0, 1, 1], [], []>} : vector<8x128xf32>, vector<128x128xf32>, vector<8x128xf32> -> vector<8x128xf32>
    %221 = arith.index_cast %c3_i32 : i32 to index
    %c0_77 = arith.constant 0 : index
    %c0_78 = arith.constant 0 : index
    %222 = vector.load %arg2[%221, %c0_77, %c0_78] : memref<8x1x128xf32, #tpu.memory_space<vmem>>, vector<1x1x128xf32>
    %223 = vector.shape_cast %222 : vector<1x1x128xf32> to vector<1x128xf32>
    %224 = vector.broadcast %223 : vector<1x128xf32> to vector<8x128xf32>
    %225 = arith.mulf %220, %224 : vector<8x128xf32>
    %226 = arith.subf %172, %225 : vector<8x128xf32>
    %c4_i32 = arith.constant 4 : i32
    %cst_79 = arith.constant dense<0.000000e+00> : vector<8xf32>
    %227 = vector.multi_reduction <add>, %226, %cst_79 [1] : vector<8x128xf32> to vector<8xf32>
    %228 = vector.shape_cast %227 : vector<8xf32> to vector<8x1xf32>
    %cst_80 = arith.constant 3.125000e-02 : f32
    %229 = vector.broadcast %cst_80 : f32 to vector<8x1xf32>
    %230 = arith.mulf %228, %229 : vector<8x1xf32>
    %231 = arith.mulf %226, %226 : vector<8x128xf32>
    %cst_81 = arith.constant dense<0.000000e+00> : vector<8xf32>
    %232 = vector.multi_reduction <add>, %231, %cst_81 [1] : vector<8x128xf32> to vector<8xf32>
    %233 = vector.shape_cast %232 : vector<8xf32> to vector<8x1xf32>
    %cst_82 = arith.constant 3.125000e-02 : f32
    %234 = vector.broadcast %cst_82 : f32 to vector<8x1xf32>
    %235 = arith.mulf %233, %234 : vector<8x1xf32>
    %236 = arith.mulf %230, %230 : vector<8x1xf32>
    %237 = arith.subf %235, %236 : vector<8x1xf32>
    %238 = vector.broadcast %230 : vector<8x1xf32> to vector<8x128xf32>
    %239 = arith.subf %226, %238 : vector<8x128xf32>
    %cst_83 = arith.constant 9.99999974E-6 : f32
    %240 = vector.broadcast %cst_83 : f32 to vector<8x1xf32>
    %241 = arith.addf %237, %240 : vector<8x1xf32>
    %242 = math.rsqrt %241 : vector<8x1xf32>
    %243 = vector.broadcast %242 : vector<8x1xf32> to vector<8x128xf32>
    %244 = arith.mulf %239, %243 : vector<8x128xf32>
    %245 = vector.broadcast %8 : vector<1x128xf32> to vector<8x128xf32>
    %246 = arith.mulf %244, %245 : vector<8x128xf32>
    %247 = vector.broadcast %9 : vector<1x128xf32> to vector<8x128xf32>
    %248 = arith.addf %246, %247 : vector<8x128xf32>
    %cst_84 = arith.constant dense<0.000000e+00> : vector<8x128xf32>
    %249 = tpu.matmul %248, %4, %cst_84 {dimension_numbers = #tpu.dot_dimension_numbers<[1], [0], [0], [1], [0, 0, 1, 1], [], []>} : vector<8x128xf32>, vector<128x128xf32>, vector<8x128xf32> -> vector<8x128xf32>
    %250 = vector.broadcast %5 : vector<1x128xf32> to vector<8x128xf32>
    %251 = arith.addf %249, %250 : vector<8x128xf32>
    %cst_85 = arith.constant 0.000000e+00 : f32
    %252 = vector.broadcast %cst_85 : f32 to vector<8x128xf32>
    %253 = arith.maximumf %251, %252 : vector<8x128xf32>
    %cst_86 = arith.constant dense<0.000000e+00> : vector<8x128xf32>
    %254 = tpu.matmul %253, %6, %cst_86 {dimension_numbers = #tpu.dot_dimension_numbers<[1], [0], [0], [1], [0, 0, 1, 1], [], []>} : vector<8x128xf32>, vector<128x128xf32>, vector<8x128xf32> -> vector<8x128xf32>
    %255 = vector.broadcast %7 : vector<1x128xf32> to vector<8x128xf32>
    %256 = arith.addf %254, %255 : vector<8x128xf32>
    %257 = arith.index_cast %c4_i32 : i32 to index
    %c0_87 = arith.constant 0 : index
    %c0_88 = arith.constant 0 : index
    %258 = vector.load %arg10[%257, %c0_87, %c0_88] : memref<8x8x128xf32, #tpu.memory_space<vmem>>, vector<1x8x128xf32>
    %259 = vector.shape_cast %258 : vector<1x8x128xf32> to vector<8x128xf32>
    %260 = vector.shape_cast %256 : vector<8x128xf32> to vector<1x8x128xf32>
    tpu.vector_store %arg10[%257, %c0_87, %c0_88], %260 {strides = array<i32>} : memref<8x8x128xf32, #tpu.memory_space<vmem>>, vector<1x8x128xf32>,
    %261 = tpu.iota {dimensions = array<i32: 1>} : vector<8x128xi32>
    %cst_89 = arith.constant dense<0xFF800000> : vector<8xf32>
    %262 = vector.multi_reduction <maximumf>, %256, %cst_89 [1] : vector<8x128xf32> to vector<8xf32>
    %263 = vector.shape_cast %262 : vector<8xf32> to vector<8x1xf32>
    %264 = vector.broadcast %263 : vector<8x1xf32> to vector<8x128xf32>
    %265 = arith.cmpf oeq, %256, %264 : vector<8x128xf32>
    %c128_i32_90 = arith.constant 128 : i32
    %266 = vector.broadcast %c128_i32_90 : i32 to vector<8x128xi32>
    %267 = arith.select %265, %261, %266 : vector<8x128xi1>, vector<8x128xi32>
    %cst_91 = arith.constant dense<2147483647> : vector<8xi32>
    %268 = vector.multi_reduction <minsi>, %267, %cst_91 [1] : vector<8x128xi32> to vector<8xi32>
    %269 = vector.shape_cast %268 : vector<8xi32> to vector<8x1xi32>
    %270 = vector.broadcast %269 : vector<8x1xi32> to vector<8x128xi32>
    %271 = arith.cmpi eq, %261, %270 : vector<8x128xi32>
    %272 = arith.extui %271 : vector<8x128xi1> to vector<8x128xi32>
    %273 = arith.sitofp %272 : vector<8x128xi32> to vector<8x128xf32>
    %cst_92 = arith.constant dense<0.000000e+00> : vector<8x128xf32>
    %274 = tpu.matmul %273, %3, %cst_92 {dimension_numbers = #tpu.dot_dimension_numbers<[1], [0], [0], [1], [0, 0, 1, 1], [], []>} : vector<8x128xf32>, vector<128x128xf32>, vector<8x128xf32> -> vector<8x128xf32>
    %275 = arith.index_cast %c4_i32 : i32 to index
    %c0_93 = arith.constant 0 : index
    %c0_94 = arith.constant 0 : index
    %276 = vector.load %arg2[%275, %c0_93, %c0_94] : memref<8x1x128xf32, #tpu.memory_space<vmem>>, vector<1x1x128xf32>
    %277 = vector.shape_cast %276 : vector<1x1x128xf32> to vector<1x128xf32>
    %278 = vector.broadcast %277 : vector<1x128xf32> to vector<8x128xf32>
    %279 = arith.mulf %274, %278 : vector<8x128xf32>
    %280 = arith.subf %226, %279 : vector<8x128xf32>
    %c5_i32 = arith.constant 5 : i32
    %cst_95 = arith.constant dense<0.000000e+00> : vector<8xf32>
    %281 = vector.multi_reduction <add>, %280, %cst_95 [1] : vector<8x128xf32> to vector<8xf32>
    %282 = vector.shape_cast %281 : vector<8xf32> to vector<8x1xf32>
    %cst_96 = arith.constant 3.125000e-02 : f32
    %283 = vector.broadcast %cst_96 : f32 to vector<8x1xf32>
    %284 = arith.mulf %282, %283 : vector<8x1xf32>
    %285 = arith.mulf %280, %280 : vector<8x128xf32>
    %cst_97 = arith.constant dense<0.000000e+00> : vector<8xf32>
    %286 = vector.multi_reduction <add>, %285, %cst_97 [1] : vector<8x128xf32> to vector<8xf32>
    %287 = vector.shape_cast %286 : vector<8xf32> to vector<8x1xf32>
    %cst_98 = arith.constant 3.125000e-02 : f32
    %288 = vector.broadcast %cst_98 : f32 to vector<8x1xf32>
    %289 = arith.mulf %287, %288 : vector<8x1xf32>
    %290 = arith.mulf %284, %284 : vector<8x1xf32>
    %291 = arith.subf %289, %290 : vector<8x1xf32>
    %292 = vector.broadcast %284 : vector<8x1xf32> to vector<8x128xf32>
    %293 = arith.subf %280, %292 : vector<8x128xf32>
    %cst_99 = arith.constant 9.99999974E-6 : f32
    %294 = vector.broadcast %cst_99 : f32 to vector<8x1xf32>
    %295 = arith.addf %291, %294 : vector<8x1xf32>
    %296 = math.rsqrt %295 : vector<8x1xf32>
    %297 = vector.broadcast %296 : vector<8x1xf32> to vector<8x128xf32>
    %298 = arith.mulf %293, %297 : vector<8x128xf32>
    %299 = vector.broadcast %8 : vector<1x128xf32> to vector<8x128xf32>
    %300 = arith.mulf %298, %299 : vector<8x128xf32>
    %301 = vector.broadcast %9 : vector<1x128xf32> to vector<8x128xf32>
    %302 = arith.addf %300, %301 : vector<8x128xf32>
    %cst_100 = arith.constant dense<0.000000e+00> : vector<8x128xf32>
    %303 = tpu.matmul %302, %4, %cst_100 {dimension_numbers = #tpu.dot_dimension_numbers<[1], [0], [0], [1], [0, 0, 1, 1], [], []>} : vector<8x128xf32>, vector<128x128xf32>, vector<8x128xf32> -> vector<8x128xf32>
    %304 = vector.broadcast %5 : vector<1x128xf32> to vector<8x128xf32>
    %305 = arith.addf %303, %304 : vector<8x128xf32>
    %cst_101 = arith.constant 0.000000e+00 : f32
    %306 = vector.broadcast %cst_101 : f32 to vector<8x128xf32>
    %307 = arith.maximumf %305, %306 : vector<8x128xf32>
    %cst_102 = arith.constant dense<0.000000e+00> : vector<8x128xf32>
    %308 = tpu.matmul %307, %6, %cst_102 {dimension_numbers = #tpu.dot_dimension_numbers<[1], [0], [0], [1], [0, 0, 1, 1], [], []>} : vector<8x128xf32>, vector<128x128xf32>, vector<8x128xf32> -> vector<8x128xf32>
    %309 = vector.broadcast %7 : vector<1x128xf32> to vector<8x128xf32>
    %310 = arith.addf %308, %309 : vector<8x128xf32>
    %311 = arith.index_cast %c5_i32 : i32 to index
    %c0_103 = arith.constant 0 : index
    %c0_104 = arith.constant 0 : index
    %312 = vector.load %arg10[%311, %c0_103, %c0_104] : memref<8x8x128xf32, #tpu.memory_space<vmem>>, vector<1x8x128xf32>
    %313 = vector.shape_cast %312 : vector<1x8x128xf32> to vector<8x128xf32>
    %314 = vector.shape_cast %310 : vector<8x128xf32> to vector<1x8x128xf32>
    tpu.vector_store %arg10[%311, %c0_103, %c0_104], %314 {strides = array<i32>} : memref<8x8x128xf32, #tpu.memory_space<vmem>>, vector<1x8x128xf32>,
    %315 = tpu.iota {dimensions = array<i32: 1>} : vector<8x128xi32>
    %cst_105 = arith.constant dense<0xFF800000> : vector<8xf32>
    %316 = vector.multi_reduction <maximumf>, %310, %cst_105 [1] : vector<8x128xf32> to vector<8xf32>
    %317 = vector.shape_cast %316 : vector<8xf32> to vector<8x1xf32>
    %318 = vector.broadcast %317 : vector<8x1xf32> to vector<8x128xf32>
    %319 = arith.cmpf oeq, %310, %318 : vector<8x128xf32>
    %c128_i32_106 = arith.constant 128 : i32
    %320 = vector.broadcast %c128_i32_106 : i32 to vector<8x128xi32>
    %321 = arith.select %319, %315, %320 : vector<8x128xi1>, vector<8x128xi32>
    %cst_107 = arith.constant dense<2147483647> : vector<8xi32>
    %322 = vector.multi_reduction <minsi>, %321, %cst_107 [1] : vector<8x128xi32> to vector<8xi32>
    %323 = vector.shape_cast %322 : vector<8xi32> to vector<8x1xi32>
    %324 = vector.broadcast %323 : vector<8x1xi32> to vector<8x128xi32>
    %325 = arith.cmpi eq, %315, %324 : vector<8x128xi32>
    %326 = arith.extui %325 : vector<8x128xi1> to vector<8x128xi32>
    %327 = arith.sitofp %326 : vector<8x128xi32> to vector<8x128xf32>
    %cst_108 = arith.constant dense<0.000000e+00> : vector<8x128xf32>
    %328 = tpu.matmul %327, %3, %cst_108 {dimension_numbers = #tpu.dot_dimension_numbers<[1], [0], [0], [1], [0, 0, 1, 1], [], []>} : vector<8x128xf32>, vector<128x128xf32>, vector<8x128xf32> -> vector<8x128xf32>
    %329 = arith.index_cast %c5_i32 : i32 to index
    %c0_109 = arith.constant 0 : index
    %c0_110 = arith.constant 0 : index
    %330 = vector.load %arg2[%329, %c0_109, %c0_110] : memref<8x1x128xf32, #tpu.memory_space<vmem>>, vector<1x1x128xf32>
    %331 = vector.shape_cast %330 : vector<1x1x128xf32> to vector<1x128xf32>
    %332 = vector.broadcast %331 : vector<1x128xf32> to vector<8x128xf32>
    %333 = arith.mulf %328, %332 : vector<8x128xf32>
    %334 = arith.subf %280, %333 : vector<8x128xf32>
    %c6_i32 = arith.constant 6 : i32
    %cst_111 = arith.constant dense<0.000000e+00> : vector<8xf32>
    %335 = vector.multi_reduction <add>, %334, %cst_111 [1] : vector<8x128xf32> to vector<8xf32>
    %336 = vector.shape_cast %335 : vector<8xf32> to vector<8x1xf32>
    %cst_112 = arith.constant 3.125000e-02 : f32
    %337 = vector.broadcast %cst_112 : f32 to vector<8x1xf32>
    %338 = arith.mulf %336, %337 : vector<8x1xf32>
    %339 = arith.mulf %334, %334 : vector<8x128xf32>
    %cst_113 = arith.constant dense<0.000000e+00> : vector<8xf32>
    %340 = vector.multi_reduction <add>, %339, %cst_113 [1] : vector<8x128xf32> to vector<8xf32>
    %341 = vector.shape_cast %340 : vector<8xf32> to vector<8x1xf32>
    %cst_114 = arith.constant 3.125000e-02 : f32
    %342 = vector.broadcast %cst_114 : f32 to vector<8x1xf32>
    %343 = arith.mulf %341, %342 : vector<8x1xf32>
    %344 = arith.mulf %338, %338 : vector<8x1xf32>
    %345 = arith.subf %343, %344 : vector<8x1xf32>
    %346 = vector.broadcast %338 : vector<8x1xf32> to vector<8x128xf32>
    %347 = arith.subf %334, %346 : vector<8x128xf32>
    %cst_115 = arith.constant 9.99999974E-6 : f32
    %348 = vector.broadcast %cst_115 : f32 to vector<8x1xf32>
    %349 = arith.addf %345, %348 : vector<8x1xf32>
    %350 = math.rsqrt %349 : vector<8x1xf32>
    %351 = vector.broadcast %350 : vector<8x1xf32> to vector<8x128xf32>
    %352 = arith.mulf %347, %351 : vector<8x128xf32>
    %353 = vector.broadcast %8 : vector<1x128xf32> to vector<8x128xf32>
    %354 = arith.mulf %352, %353 : vector<8x128xf32>
    %355 = vector.broadcast %9 : vector<1x128xf32> to vector<8x128xf32>
    %356 = arith.addf %354, %355 : vector<8x128xf32>
    %cst_116 = arith.constant dense<0.000000e+00> : vector<8x128xf32>
    %357 = tpu.matmul %356, %4, %cst_116 {dimension_numbers = #tpu.dot_dimension_numbers<[1], [0], [0], [1], [0, 0, 1, 1], [], []>} : vector<8x128xf32>, vector<128x128xf32>, vector<8x128xf32> -> vector<8x128xf32>
    %358 = vector.broadcast %5 : vector<1x128xf32> to vector<8x128xf32>
    %359 = arith.addf %357, %358 : vector<8x128xf32>
    %cst_117 = arith.constant 0.000000e+00 : f32
    %360 = vector.broadcast %cst_117 : f32 to vector<8x128xf32>
    %361 = arith.maximumf %359, %360 : vector<8x128xf32>
    %cst_118 = arith.constant dense<0.000000e+00> : vector<8x128xf32>
    %362 = tpu.matmul %361, %6, %cst_118 {dimension_numbers = #tpu.dot_dimension_numbers<[1], [0], [0], [1], [0, 0, 1, 1], [], []>} : vector<8x128xf32>, vector<128x128xf32>, vector<8x128xf32> -> vector<8x128xf32>
    %363 = vector.broadcast %7 : vector<1x128xf32> to vector<8x128xf32>
    %364 = arith.addf %362, %363 : vector<8x128xf32>
    %365 = arith.index_cast %c6_i32 : i32 to index
    %c0_119 = arith.constant 0 : index
    %c0_120 = arith.constant 0 : index
    %366 = vector.load %arg10[%365, %c0_119, %c0_120] : memref<8x8x128xf32, #tpu.memory_space<vmem>>, vector<1x8x128xf32>
    %367 = vector.shape_cast %366 : vector<1x8x128xf32> to vector<8x128xf32>
    %368 = vector.shape_cast %364 : vector<8x128xf32> to vector<1x8x128xf32>
    tpu.vector_store %arg10[%365, %c0_119, %c0_120], %368 {strides = array<i32>} : memref<8x8x128xf32, #tpu.memory_space<vmem>>, vector<1x8x128xf32>,
    %369 = tpu.iota {dimensions = array<i32: 1>} : vector<8x128xi32>
    %cst_121 = arith.constant dense<0xFF800000> : vector<8xf32>
    %370 = vector.multi_reduction <maximumf>, %364, %cst_121 [1] : vector<8x128xf32> to vector<8xf32>
    %371 = vector.shape_cast %370 : vector<8xf32> to vector<8x1xf32>
    %372 = vector.broadcast %371 : vector<8x1xf32> to vector<8x128xf32>
    %373 = arith.cmpf oeq, %364, %372 : vector<8x128xf32>
    %c128_i32_122 = arith.constant 128 : i32
    %374 = vector.broadcast %c128_i32_122 : i32 to vector<8x128xi32>
    %375 = arith.select %373, %369, %374 : vector<8x128xi1>, vector<8x128xi32>
    %cst_123 = arith.constant dense<2147483647> : vector<8xi32>
    %376 = vector.multi_reduction <minsi>, %375, %cst_123 [1] : vector<8x128xi32> to vector<8xi32>
    %377 = vector.shape_cast %376 : vector<8xi32> to vector<8x1xi32>
    %378 = vector.broadcast %377 : vector<8x1xi32> to vector<8x128xi32>
    %379 = arith.cmpi eq, %369, %378 : vector<8x128xi32>
    %380 = arith.extui %379 : vector<8x128xi1> to vector<8x128xi32>
    %381 = arith.sitofp %380 : vector<8x128xi32> to vector<8x128xf32>
    %cst_124 = arith.constant dense<0.000000e+00> : vector<8x128xf32>
    %382 = tpu.matmul %381, %3, %cst_124 {dimension_numbers = #tpu.dot_dimension_numbers<[1], [0], [0], [1], [0, 0, 1, 1], [], []>} : vector<8x128xf32>, vector<128x128xf32>, vector<8x128xf32> -> vector<8x128xf32>
    %383 = arith.index_cast %c6_i32 : i32 to index
    %c0_125 = arith.constant 0 : index
    %c0_126 = arith.constant 0 : index
    %384 = vector.load %arg2[%383, %c0_125, %c0_126] : memref<8x1x128xf32, #tpu.memory_space<vmem>>, vector<1x1x128xf32>
    %385 = vector.shape_cast %384 : vector<1x1x128xf32> to vector<1x128xf32>
    %386 = vector.broadcast %385 : vector<1x128xf32> to vector<8x128xf32>
    %387 = arith.mulf %382, %386 : vector<8x128xf32>
    %388 = arith.subf %334, %387 : vector<8x128xf32>
    %c7_i32 = arith.constant 7 : i32
    %cst_127 = arith.constant dense<0.000000e+00> : vector<8xf32>
    %389 = vector.multi_reduction <add>, %388, %cst_127 [1] : vector<8x128xf32> to vector<8xf32>
    %390 = vector.shape_cast %389 : vector<8xf32> to vector<8x1xf32>
    %cst_128 = arith.constant 3.125000e-02 : f32
    %391 = vector.broadcast %cst_128 : f32 to vector<8x1xf32>
    %392 = arith.mulf %390, %391 : vector<8x1xf32>
    %393 = arith.mulf %388, %388 : vector<8x128xf32>
    %cst_129 = arith.constant dense<0.000000e+00> : vector<8xf32>
    %394 = vector.multi_reduction <add>, %393, %cst_129 [1] : vector<8x128xf32> to vector<8xf32>
    %395 = vector.shape_cast %394 : vector<8xf32> to vector<8x1xf32>
    %cst_130 = arith.constant 3.125000e-02 : f32
    %396 = vector.broadcast %cst_130 : f32 to vector<8x1xf32>
    %397 = arith.mulf %395, %396 : vector<8x1xf32>
    %398 = arith.mulf %392, %392 : vector<8x1xf32>
    %399 = arith.subf %397, %398 : vector<8x1xf32>
    %400 = vector.broadcast %392 : vector<8x1xf32> to vector<8x128xf32>
    %401 = arith.subf %388, %400 : vector<8x128xf32>
    %cst_131 = arith.constant 9.99999974E-6 : f32
    %402 = vector.broadcast %cst_131 : f32 to vector<8x1xf32>
    %403 = arith.addf %399, %402 : vector<8x1xf32>
    %404 = math.rsqrt %403 : vector<8x1xf32>
    %405 = vector.broadcast %404 : vector<8x1xf32> to vector<8x128xf32>
    %406 = arith.mulf %401, %405 : vector<8x128xf32>
    %407 = vector.broadcast %8 : vector<1x128xf32> to vector<8x128xf32>
    %408 = arith.mulf %406, %407 : vector<8x128xf32>
    %409 = vector.broadcast %9 : vector<1x128xf32> to vector<8x128xf32>
    %410 = arith.addf %408, %409 : vector<8x128xf32>
    %cst_132 = arith.constant dense<0.000000e+00> : vector<8x128xf32>
    %411 = tpu.matmul %410, %4, %cst_132 {dimension_numbers = #tpu.dot_dimension_numbers<[1], [0], [0], [1], [0, 0, 1, 1], [], []>} : vector<8x128xf32>, vector<128x128xf32>, vector<8x128xf32> -> vector<8x128xf32>
    %412 = vector.broadcast %5 : vector<1x128xf32> to vector<8x128xf32>
    %413 = arith.addf %411, %412 : vector<8x128xf32>
    %cst_133 = arith.constant 0.000000e+00 : f32
    %414 = vector.broadcast %cst_133 : f32 to vector<8x128xf32>
    %415 = arith.maximumf %413, %414 : vector<8x128xf32>
    %cst_134 = arith.constant dense<0.000000e+00> : vector<8x128xf32>
    %416 = tpu.matmul %415, %6, %cst_134 {dimension_numbers = #tpu.dot_dimension_numbers<[1], [0], [0], [1], [0, 0, 1, 1], [], []>} : vector<8x128xf32>, vector<128x128xf32>, vector<8x128xf32> -> vector<8x128xf32>
    %417 = vector.broadcast %7 : vector<1x128xf32> to vector<8x128xf32>
    %418 = arith.addf %416, %417 : vector<8x128xf32>
    %419 = arith.index_cast %c7_i32 : i32 to index
    %c0_135 = arith.constant 0 : index
    %c0_136 = arith.constant 0 : index
    %420 = vector.load %arg10[%419, %c0_135, %c0_136] : memref<8x8x128xf32, #tpu.memory_space<vmem>>, vector<1x8x128xf32>
    %421 = vector.shape_cast %420 : vector<1x8x128xf32> to vector<8x128xf32>
    %422 = vector.shape_cast %418 : vector<8x128xf32> to vector<1x8x128xf32>
    tpu.vector_store %arg10[%419, %c0_135, %c0_136], %422 {strides = array<i32>} : memref<8x8x128xf32, #tpu.memory_space<vmem>>, vector<1x8x128xf32>,
    %423 = tpu.iota {dimensions = array<i32: 1>} : vector<8x128xi32>
    %cst_137 = arith.constant dense<0xFF800000> : vector<8xf32>
    %424 = vector.multi_reduction <maximumf>, %418, %cst_137 [1] : vector<8x128xf32> to vector<8xf32>
    %425 = vector.shape_cast %424 : vector<8xf32> to vector<8x1xf32>
    %426 = vector.broadcast %425 : vector<8x1xf32> to vector<8x128xf32>
    %427 = arith.cmpf oeq, %418, %426 : vector<8x128xf32>
    %c128_i32_138 = arith.constant 128 : i32
    %428 = vector.broadcast %c128_i32_138 : i32 to vector<8x128xi32>
    %429 = arith.select %427, %423, %428 : vector<8x128xi1>, vector<8x128xi32>
    %cst_139 = arith.constant dense<2147483647> : vector<8xi32>
    %430 = vector.multi_reduction <minsi>, %429, %cst_139 [1] : vector<8x128xi32> to vector<8xi32>
    %431 = vector.shape_cast %430 : vector<8xi32> to vector<8x1xi32>
    %432 = vector.broadcast %431 : vector<8x1xi32> to vector<8x128xi32>
    %433 = arith.cmpi eq, %423, %432 : vector<8x128xi32>
    %434 = arith.extui %433 : vector<8x128xi1> to vector<8x128xi32>
    %435 = arith.sitofp %434 : vector<8x128xi32> to vector<8x128xf32>
    %cst_140 = arith.constant dense<0.000000e+00> : vector<8x128xf32>
    %436 = tpu.matmul %435, %3, %cst_140 {dimension_numbers = #tpu.dot_dimension_numbers<[1], [0], [0], [1], [0, 0, 1, 1], [], []>} : vector<8x128xf32>, vector<128x128xf32>, vector<8x128xf32> -> vector<8x128xf32>
    %437 = arith.index_cast %c7_i32 : i32 to index
    %c0_141 = arith.constant 0 : index
    %c0_142 = arith.constant 0 : index
    %438 = vector.load %arg2[%437, %c0_141, %c0_142] : memref<8x1x128xf32, #tpu.memory_space<vmem>>, vector<1x1x128xf32>
    %439 = vector.shape_cast %438 : vector<1x1x128xf32> to vector<1x128xf32>
    %440 = vector.broadcast %439 : vector<1x128xf32> to vector<8x128xf32>
    %441 = arith.mulf %436, %440 : vector<8x128xf32>
    %442 = arith.subf %388, %441 : vector<8x128xf32>
    %c8_i32 = arith.constant 8 : i32
    %c0_143 = arith.constant 0 : index
    %c0_144 = arith.constant 0 : index
    %443 = vector.load %arg11[%c0_143, %c0_144] : memref<8x128xf32, #tpu.memory_space<vmem>>, vector<8x128xf32>
    tpu.vector_store %arg11[%c0_143, %c0_144], %442 {strides = array<i32>} : memref<8x128xf32, #tpu.memory_space<vmem>>, vector<8x128xf32>,
    return
  }
  func.func @transform_0(%arg0: i32) -> (i32, i32) {
    %c0_i32 = arith.constant 0 : i32
    %c0_i32_0 = arith.constant 0 : i32
    %c0_i32_1 = arith.constant 0 : i32
    return %c0_i32, %c0_i32_0 : i32, i32
  }
  func.func @transform_1(%arg0: i32) -> (i32, i32, i32) {
    %c0_i32 = arith.constant 0 : i32
    %c0_i32_0 = arith.constant 0 : i32
    %c0_i32_1 = arith.constant 0 : i32
    return %arg0, %c0_i32, %c0_i32_0 : i32, i32, i32
  }
  func.func @transform_2(%arg0: i32) -> (i32, i32) {
    %c0_i32 = arith.constant 0 : i32
    %c0_i32_0 = arith.constant 0 : i32
    %c0_i32_1 = arith.constant 0 : i32
    return %c0_i32, %c0_i32_0 : i32, i32
  }
  func.func @transform_3(%arg0: i32) -> (i32, i32) {
    %c0_i32 = arith.constant 0 : i32
    %c0_i32_0 = arith.constant 0 : i32
    %c0_i32_1 = arith.constant 0 : i32
    return %c0_i32, %c0_i32_0 : i32, i32
  }
  func.func @transform_4(%arg0: i32) -> (i32, i32) {
    %c0_i32 = arith.constant 0 : i32
    %c0_i32_0 = arith.constant 0 : i32
    %c0_i32_1 = arith.constant 0 : i32
    return %c0_i32, %c0_i32_0 : i32, i32
  }
  func.func @transform_5(%arg0: i32) -> (i32, i32) {
    %c0_i32 = arith.constant 0 : i32
    %c0_i32_0 = arith.constant 0 : i32
    %c0_i32_1 = arith.constant 0 : i32
    return %c0_i32, %c0_i32_0 : i32, i32
  }
  func.func @transform_6(%arg0: i32) -> (i32, i32) {
    %c0_i32 = arith.constant 0 : i32
    %c0_i32_0 = arith.constant 0 : i32
    %c0_i32_1 = arith.constant 0 : i32
    return %c0_i32, %c0_i32_0 : i32, i32
  }
  func.func @transform_7(%arg0: i32) -> (i32, i32) {
    %c0_i32 = arith.constant 0 : i32
    %c0_i32_0 = arith.constant 0 : i32
    %c0_i32_1 = arith.constant 0 : i32
    return %c0_i32, %c0_i32_0 : i32, i32
  }
  func.func @transform_8(%arg0: i32) -> (i32, i32) {
    %c0_i32 = arith.constant 0 : i32
    %c0_i32_0 = arith.constant 0 : i32
    %c0_i32_1 = arith.constant 0 : i32
    return %c0_i32, %c0_i32_0 : i32, i32
  }
  func.func @transform_9(%arg0: i32) -> (i32, i32, i32) {
    %c0_i32 = arith.constant 0 : i32
    %c0_i32_0 = arith.constant 0 : i32
    %c0_i32_1 = arith.constant 0 : i32
    return %arg0, %c0_i32, %c0_i32_0 : i32, i32, i32
  }
}

</mosaic_0001>

<bundles_post_ra>
// kernel: tpu_custom_call.1
= control target key start
LH: loop header
LB: loop body
LE: loop exit
PB: predicated region body
PF: predicated region fallthrough
CT: control target
= control target key end

     0   :  { %14 = vsyncpa [#allocation4], 0  ;;  %s5007_s0 = inlined_call_operand.hbm [shape: f32[8,128], index: 0, kind: input, shape index: {}]   ;;  %s5008_s1 = inlined_call_operand.hbm [shape: f32[8,1,128], index: 1, kind: input, shape index: {}]   ;;  %s5009_s2 = inlined_call_operand.hbm [shape: f32[128,128], index: 2, kind: input, shape index: {}]   ;;  %s5010_s3 = inlined_call_operand.hbm [shape: f32[128,128], index: 3, kind: input, shape index: {}]   ;;  %s5011_s4 = inlined_call_operand.vmem [shape: f32[1,128], index: 4, kind: input, shape index: {}]   ;;  %s5012_s5 = inlined_call_operand.hbm [shape: f32[128,128], index: 5, kind: input, shape index: {}]   ;;  %s5013_s6 = inlined_call_operand.vmem [shape: f32[1,128], index: 6, kind: input, shape index: {}]   ;;  %s5014_s7 = inlined_call_operand.vmem [shape: f32[1,128], index: 7, kind: input, shape index: {}]   ;;  %s5015_s8 = inlined_call_operand.vmem [shape: f32[1,128], index: 8, kind: input, shape index: {}]   ;;  %s5016_s9 = inlined_call_operand.hbm [shape: f32[8,8,128], index: 9, kind: output, shape index: {}]  }
   0x1   :  { %15 = vsyncpa [#allocation7], 0 }
   0x2   :  { %16 = vsyncpa [#allocation10], 0 }
   0x3   :  { %17 = vsyncpa [#allocation5], 0  ;;  %s3759_s30 = smov [#allocation6]  }
   0x4   :  { %s33_s10 = sshll.u32 %s3759_s30, 4  ;;  %s34_s10 = int_to_ptr.vmem [resolvable:$true] %s33_s10 }
   0x5   :  { %s3639_s11 = scalar_lea.vmem %s34_s10, 128  ;;  %p3644_p1 = scmp.lt.s32.totalorder %s34_s10, %s34_s10 }
   0x6   :  { %p3640_p0 = scmp.ne.s32.totalorder %s34_s10, %s3639_s11  ;;  %p3645_p2 = scmp.lt.s32.totalorder %s3639_s11, %s3639_s11 }
   0x8   :  { %p3646_p3 = por %p3645_p2, %p3644_p1 }
   0xa   :  { %p3647_p4 = pnand %p3646_p3, %p3640_p0 }
   0xc   :  { %3650 = shalt.err (!%p3647_p4)
}
   0xd   :  { %s3760_s12 = smov 16   ;;  %s3761_s13 = smov 1  }
   0xe   :  { %39 = dma.hbm_to_vmem [thread:$0]  %s5008_s1, 128, %s34_s10, [#allocation7], %s3760_s12, %s3760_s12, %s3761_s13  }
   0xf   :  { %s3762_s16 = smov [#allocation9]   ;;  %s3763_s18 = smov [#allocation3]  }
  0x10   :  { %s57_s17 = sshll.u32 %s3762_s16, 4  ;;  %s24_s19 = sshll.u32 %s3763_s18, 4  ;;  %s58_s17 = int_to_ptr.vmem [resolvable:$true] %s57_s17  ;;  %s25_s19 = int_to_ptr.vmem [resolvable:$true] %s24_s19 }
  0x11   :  { %s3659_s20 = scalar_lea.vmem %s58_s17, 2048  ;;  %p3664_p6 = scmp.lt.s32.totalorder %s58_s17, %s58_s17 }
  0x12   :  { %p3660_p5 = scmp.ne.s32.totalorder %s58_s17, %s3659_s20  ;;  %p3665_p7 = scmp.lt.s32.totalorder %s3659_s20, %s3659_s20 }
  0x14   :  { %p3666_p8 = por %p3665_p7, %p3664_p6 }
  0x16   :  { %p3667_p9 = pnand %p3666_p8, %p3660_p5 }
  0x18   :  { %3670 = shalt.err (!%p3667_p9)
}
  0x19   :  { %s3764_s21 = smov 128   ;;  %s3765_s22 = smov 8  }
  0x1a   :  { %63 = dma.hbm_to_vmem [thread:$0]  %s5010_s3, 2048, %s58_s17, [#allocation10], %s3764_s21, %s3764_s21, %s3765_s22  }
  0x1b   :  { %s3679_s1 = scalar_lea.vmem %s25_s19, 128  ;;  %p3684_p11 = scmp.lt.s32.totalorder %s25_s19, %s25_s19 }
  0x1c   :  { %p3680_p10 = scmp.ne.s32.totalorder %s25_s19, %s3679_s1  ;;  %p3685_p12 = scmp.lt.s32.totalorder %s3679_s1, %s3679_s1 }
  0x1e   :  { %p3686_p13 = por %p3685_p12, %p3684_p11 }
  0x20   :  { %p3687_p0 = pnand %p3686_p13, %p3680_p10 }
  0x22   :  { %3690 = shalt.err (!%p3687_p0)
}
  0x23   :  { %27 = dma.hbm_to_vmem [thread:$0]  %s5007_s0, 128, %s25_s19, [#allocation4]  }
  0x24   :  { %s3766_s27 = smov [#allocation8]   ;;  %s3767_s29 = smov [#allocation11]  }
  0x25   :  { %s45_s28 = sshll.u32 %s3766_s27, 4  ;;  %s71_s30 = sshll.u32 %s3767_s29, 4  ;;  %s46_s28 = int_to_ptr.vmem [resolvable:$true] %s45_s28  ;;  %s72_s30 = int_to_ptr.vmem [resolvable:$true] %s71_s30 }
  0x26   :  { %s3699_s10 = scalar_lea.vmem %s46_s28, 2048  ;;  %p3704_p2 = scmp.lt.s32.totalorder %s46_s28, %s46_s28 }
  0x27   :  { %p3700_p1 = scmp.ne.s32.totalorder %s46_s28, %s3699_s10  ;;  %p3705_p3 = scmp.lt.s32.totalorder %s3699_s10, %s3699_s10 }
  0x29   :  { %p3706_p4 = por %p3705_p3, %p3704_p2 }
  0x2b   :  { %p3707_p5 = pnand %p3706_p4, %p3700_p1 }
  0x2d   :  { %3710 = shalt.err (!%p3707_p5)
}
  0x2e   :  { %51 = dma.hbm_to_vmem [thread:$0]  %s5009_s2, 2048, %s46_s28, [#allocation7], %s3764_s21, %s3764_s21, %s3765_s22  }
  0x2f   :  { %s3719_s0 = scalar_lea.vmem %s72_s30, 2048  ;;  %p3724_p7 = scmp.lt.s32.totalorder %s72_s30, %s72_s30 }
  0x30   :  { %p3720_p6 = scmp.ne.s32.totalorder %s72_s30, %s3719_s0  ;;  %p3725_p8 = scmp.lt.s32.totalorder %s3719_s0, %s3719_s0 }
  0x32   :  { %p3726_p9 = por %p3725_p8, %p3724_p7 }
  0x34   :  { %p3727_p10 = pnand %p3726_p9, %p3720_p6 }
  0x36   :  { %3730 = shalt.err (!%p3727_p10)
}
  0x37   :  { %77 = dma.hbm_to_vmem [thread:$0]  %s5012_s5, 2048, %s72_s30, [#allocation10], %s3764_s21, %s3764_s21, %s3765_s22  }
  0x38   :  { %3751 = dma.done.wait [#allocation4], 128  }
  0x39   :  { %3752 = vsyncadd [#allocation4], 4294967168 }
  0x3a   :  { %3753 = dma.done.wait [#allocation7], 2176  }
  0x3b   :  { %3754 = vsyncadd [#allocation7], 4294965120 }
  0x3c   :  { %3755 = dma.done.wait [#allocation10], 4096  }
  0x3d   :  { %3756 = vsyncadd [#allocation10], 4294963200  ;;  %v5025_v0 = vmov 0.0   ;;  %v3848_v1 = vld [vmem:[#allocation3] sm:$0xff]  ;;  %v3850_v2 = vld [vmem:[#allocation9 + $0x78] sm:$0xff]  ;;  %vm3769_vm0 = vmmov 0   ;;  %v339_v58 = vlaneseq }
  0x3e   :  { %2710 = vmatprep.subr.mxu0 %v5025_v0  ;;  %2745 = vmatprep.subr.mxu1 %v5025_v0  ;;  %v161_v3 = vmul.f32 %v3848_v1, %v3848_v1  ;;  %v3857_v4 = vld [vmem:[#allocation9 + $0x70] sm:$0xff]  ;;  %v3861_v5 = vld [vmem:[#allocation9 + $0x68] sm:$0xff]  ;;  %v3865_v6 = vld [vmem:[#allocation9 + $0x60] sm:$0xff] }
  0x3f   :  { %158 = vadd.xlane.f32.xlu0 %v3848_v1  ;;  %2711 = vmatpush3.msra.mxu0 %v3850_v2  ;;  %v3869_v7 = vld [vmem:[#allocation9 + $0x58] sm:$0xff]  ;;  %v3873_v8 = vld [vmem:[#allocation9 + $0x50] sm:$0xff]  ;;  %v3877_v9 = vld [vmem:[#allocation9 + $0x48] sm:$0xff]  ;;  %v4046_v59 = vand.u32 127, %v339_v58 }
  0x40   :  { %2712 = vmatprep.subr.mxu0 %v5025_v0  ;;  %v3879_v10 = vld [vmem:[#allocation9 + $0x40] sm:$0xff]  ;;  %2742 = vmatprep.mubr.msk.f32.mxu0 %vm3769_vm0, %v5025_v0  ;;  %v3885_v11 = vld [vmem:[#allocation9 + $0x38] sm:$0xff]  ;;  %v3891_v12 = vld [vmem:[#allocation9 + $0x30] sm:$0xff] }
  0x41   :  { %2713 = vmatpush3.msra.mxu0 %v3857_v4  ;;  %2777 = vmatprep.mubr.msk.f32.mxu1 %vm3769_vm0, %v5025_v0  ;;  %v3895_v13 = vld [vmem:[#allocation9 + $0x28] sm:$0xff]  ;;  %v3899_v14 = vld [vmem:[#allocation9 + $0x20] sm:$0xff]  ;;  %v3903_v15 = vld [vmem:[#allocation9 + $0x18] sm:$0xff] }
  0x42   :  { %2714 = vmatprep.subr.mxu0 %v5025_v0  ;;  %v3907_v16 = vld [vmem:[#allocation9 + $0x10] sm:$0xff]  ;;  %v3911_v17 = vld [vmem:[#allocation9 + $0x8] sm:$0xff]  ;;  %v3915_v18 = vld [vmem:[#allocation9] sm:$0xff] }
  0x43   :  { %162 = vadd.xlane.f32.xlu0 %v161_v3  ;;  %2715 = vmatpush3.msra.mxu0 %v3861_v5  ;;  %5043 = vst [vmem:[#allocation17_spill] sm:$0xff] %v3911_v17  ;;  %5044 = vst [vmem:[#allocation18_spill] sm:$0xff] %v3915_v18  ;;  %v3920_v19 = vld [vmem:[#allocation11 + $0x78] sm:$0xff]  ;;  %v3922_v20 = vld [vmem:[#allocation11 + $0x70] sm:$0xff] }
  0x44   :  { %2716 = vmatprep.subr.mxu0 %v5025_v0  ;;  %2746 = vmatpush3.msra.mxu1 %v3920_v19  ;;  %v3927_v21 = vld [vmem:[#allocation11 + $0x68] sm:$0xff]  ;;  %v3931_v22 = vld [vmem:[#allocation11 + $0x60] sm:$0xff]  ;;  %v3935_v23 = vld [vmem:[#allocation11 + $0x58] sm:$0xff] }
  0x45   :  { %2717 = vmatpush3.msra.mxu0 %v3865_v6  ;;  %2747 = vmatprep.subr.mxu1 %v5025_v0  ;;  %v3939_v24 = vld [vmem:[#allocation11 + $0x50] sm:$0xff]  ;;  %v3943_v25 = vld [vmem:[#allocation11 + $0x48] sm:$0xff]  ;;  %v3947_v26 = vld [vmem:[#allocation11 + $0x40] sm:$0xff] }
  0x46   :  { %2718 = vmatprep.subr.mxu0 %v5025_v0  ;;  %2748 = vmatpush3.msra.mxu1 %v3922_v20  ;;  %v3951_v27 = vld [vmem:[#allocation11 + $0x38] sm:$0xff]  ;;  %v3955_v28 = vld [vmem:[#allocation11 + $0x30] sm:$0xff]  ;;  %v3959_v29 = vld [vmem:[#allocation11 + $0x28] sm:$0xff] }
  0x47   :  { %2719 = vmatpush3.msra.mxu0 %v3869_v7  ;;  %2749 = vmatprep.subr.mxu1 %v5025_v0  ;;  %v3963_v30 = vld [vmem:[#allocation11 + $0x20] sm:$0xff]  ;;  %v3967_v31 = vld [vmem:[#allocation11 + $0x18] sm:$0xff]  ;;  %v3977_v41 = vld [vmem:[%s5014_s7] ss:$0 sm:$0xff] }
  0x48   :  { %2720 = vmatprep.subr.mxu0 %v5025_v0  ;;  %2750 = vmatpush3.msra.mxu1 %v3927_v21  ;;  %v3982_v43 = vld [vmem:[%s5015_s8] ss:$0 sm:$0xff]  ;;  %v3992_v47 = vld [vmem:[#allocation11 + $0x8] sm:$0xff]  ;;  %v3996_v48 = vld [vmem:[#allocation11] sm:$0xff] }
  0x49   :  { %2721 = vmatpush3.msra.mxu0 %v3873_v8  ;;  %2751 = vmatprep.subr.mxu1 %v5025_v0  ;;  %v3988_v46 = vld [vmem:[#allocation11 + $0x10] sm:$0xff]  ;;  %5046 = vst [vmem:[#allocation20_spill] sm:$0xff] %v3992_v47  ;;  %5047 = vst [vmem:[#allocation21_spill] sm:$0xff] %v3996_v48  ;;  %v4049_v3 = vld [vmem:[#allocation8 + $0x78] sm:$0xff] }
  0x4a   :  { %2722 = vmatprep.subr.mxu0 %v5025_v0  ;;  %2752 = vmatpush3.msra.mxu1 %v3931_v22  ;;  %5045 = vst [vmem:[#allocation19_spill] sm:$0xff] %v3988_v46  ;;  %v4003_v49 = vld [vmem:[%s5011_s4] ss:$0 sm:$0xff] }
  0x4b   :  { %2723 = vmatpush3.msra.mxu0 %v3877_v9  ;;  %2753 = vmatprep.subr.mxu1 %v5025_v0  ;;  %v4043_v54 = vld [vmem:[%s5013_s6] ss:$0 sm:$0xff] }
  0x4c   :  { %2724 = vmatprep.subr.mxu0 %v5025_v0  ;;  %2754 = vmatpush3.msra.mxu1 %v3935_v23  ;;  %5048 = vst [vmem:[#allocation22_spill] sm:$0xff] %v4043_v54 }
  0x4d   :  { %2725 = vmatpush3.msra.mxu0 %v3879_v10  ;;  %2755 = vmatprep.subr.mxu1 %v5025_v0 }
  0x4e   :  { %2726 = vmatprep.subr.mxu0 %v5025_v0  ;;  %2756 = vmatpush3.msra.mxu1 %v3939_v24 }
  0x4f   :  { %2727 = vmatpush3.msra.mxu0 %v3885_v11  ;;  %2757 = vmatprep.subr.mxu1 %v5025_v0 }
  0x50   :  { %2728 = vmatprep.subr.mxu0 %v5025_v0  ;;  %2758 = vmatpush3.msra.mxu1 %v3943_v25 }
  0x51   :  { %2729 = vmatpush3.msra.mxu0 %v3891_v12  ;;  %2759 = vmatprep.subr.mxu1 %v5025_v0 }
  0x52   :  { %2730 = vmatprep.subr.mxu0 %v5025_v0  ;;  %2760 = vmatpush3.msra.mxu1 %v3947_v26 }
  0x53   :  { %2731 = vmatpush3.msra.mxu0 %v3895_v13  ;;  %2761 = vmatprep.subr.mxu1 %v5025_v0 }
  0x54   :  { %2732 = vmatprep.subr.mxu0 %v5025_v0  ;;  %2762 = vmatpush3.msra.mxu1 %v3951_v27 }
  0x55   :  { %2733 = vmatpush3.msra.mxu0 %v3899_v14  ;;  %2763 = vmatprep.subr.mxu1 %v5025_v0 }
  0x56   :  { %2734 = vmatprep.subr.mxu0 %v5025_v0  ;;  %2764 = vmatpush3.msra.mxu1 %v3955_v28 }
  0x57   :  { %2735 = vmatpush3.msra.mxu0 %v3903_v15  ;;  %2765 = vmatprep.subr.mxu1 %v5025_v0 }
  0x58   :  { %2736 = vmatprep.subr.mxu0 %v5025_v0  ;;  %2766 = vmatpush3.msra.mxu1 %v3959_v29 }
  0x59   :  { %2737 = vmatpush3.msra.mxu0 %v3907_v16  ;;  %2767 = vmatprep.subr.mxu1 %v5025_v0 }
  0x5a   :  { %2738 = vmatprep.subr.mxu0 %v5025_v0  ;;  %2768 = vmatpush3.msra.mxu1 %v3963_v30 }
  0x5b   :  { %2739 = vmatpush3.msra.mxu0 %v3911_v17  ;;  %2769 = vmatprep.subr.mxu1 %v5025_v0 }
  0x5c   :  { %2740 = vmatprep.subr.mxu0 %v5025_v0  ;;  %2770 = vmatpush3.msra.mxu1 %v3967_v31 }
  0x5d   :  { %2741 = vmatpush3.msra.mxu0 %v3915_v18  ;;  %2771 = vmatprep.subr.mxu1 %v5025_v0 }
  0x5e   :  { %2780 = vmatprep.subr.mxu0 %v5025_v0  ;;  %2772 = vmatpush3.msra.mxu1 %v3988_v46 }
  0x5f   :  { %2773 = vmatprep.subr.mxu1 %v5025_v0 }
  0x60   :  { %2774 = vmatpush3.msra.mxu1 %v3992_v47 }
  0x61   :  { %2775 = vmatprep.subr.mxu1 %v5025_v0 }
  0x62   :  { %2776 = vmatpush3.msra.mxu1 %v3996_v48 }
  0x63   :  { %2815 = vmatprep.subr.mxu1 %v5025_v0 }
  0xc8   :  { %v159_v32 = vpop.xlane.xlu0 %158 }
  0xc9   :  { %v160_v33 = vmul.f32 0.03125, %v159_v32  ;;  %v4051_v32 = vld [vmem:[#allocation8 + $0x70] sm:$0xff] }
  0xcb   :  { %v165_v35 = vmul.f32 %v160_v33, %v160_v33  ;;  %v167_v39 = vsub.f32 %v3848_v1, %v160_v33  ;;  %v4055_v33 = vld [vmem:[#allocation8 + $0x68] sm:$0xff] }
  0xcc   :  { %v163_v34 = vpop.xlane.xlu0 %162 }
  0xcd   :  { %v164_v36 = vmul.f32 0.03125, %v163_v34  ;;  %v4059_v34 = vld [vmem:[#allocation8 + $0x60] sm:$0xff] }
  0xcf   :  { %v166_v37 = vsub.f32 %v164_v36, %v165_v35  ;;  %v4063_v35 = vld [vmem:[#allocation8 + $0x58] sm:$0xff]  ;;  %v4067_v36 = vld [vmem:[#allocation8 + $0x50] sm:$0xff] }
  0xd1   :  { %v168_v38 = vadd.f32 1e-05, %v166_v37  ;;  %v4071_v37 = vld [vmem:[#allocation8 + $0x48] sm:$0xff] }
  0xd3   :  { %3563 = vrsqrt.f32 %v168_v38  ;;  %v4075_v38 = vld [vmem:[#allocation8 + $0x40] sm:$0xff] }
  0xe0   :  { %v3564_v40 = vpop.eup %3563 }
  0xe1   :  { %v170_v42 = vmul.f32 %v3564_v40, %v167_v39  ;;  %v4079_v39 = vld [vmem:[#allocation8 + $0x38] sm:$0xff]  ;;  %v4083_v40 = vld [vmem:[#allocation8 + $0x30] sm:$0xff] }
  0xe3   :  { %v177_v44 = vmul.f32 %v3977_v41, %v170_v42  ;;  %v4087_v42 = vld [vmem:[#allocation8 + $0x28] sm:$0xff] }
  0xe5   :  { %v184_v45 = vadd.f32 %v3982_v43, %v177_v44  ;;  %v4091_v44 = vld [vmem:[#allocation8 + $0x20] sm:$0xff] }
  0xe7   :  { %2743 = vmatmul.mubr.f32.vlgmr.msra.gmra.mxu0 %v184_v45  ;;  %v4095_v45 = vld [vmem:[#allocation8 + $0x18] sm:$0xff] }
  0xe8   :  { %2812 = vmatprep.mubr.msk.f32.mxu0 %vm3769_vm0, %v5025_v0  ;;  %2781 = vmatpush3.msra.mxu0 %v4049_v3 }
  0xe9   :  { %2782 = vmatprep.subr.mxu0 %v5025_v0 }
  0xea   :  { %2783 = vmatpush3.msra.mxu0 %v4051_v32 }
  0xeb   :  { %2784 = vmatprep.subr.mxu0 %v5025_v0 }
  0xec   :  { %2785 = vmatpush3.msra.mxu0 %v4055_v33 }
  0xed   :  { %2786 = vmatprep.subr.mxu0 %v5025_v0 }
  0xee   :  { %2787 = vmatpush3.msra.mxu0 %v4059_v34 }
  0xef   :  { %2788 = vmatprep.subr.mxu0 %v5025_v0 }
  0xf0   :  { %2789 = vmatpush3.msra.mxu0 %v4063_v35 }
  0xf1   :  { %2790 = vmatprep.subr.mxu0 %v5025_v0 }
  0xf2   :  { %2791 = vmatpush3.msra.mxu0 %v4067_v36 }
  0xf3   :  { %2792 = vmatprep.subr.mxu0 %v5025_v0 }
  0xf4   :  { %2793 = vmatpush3.msra.mxu0 %v4071_v37 }
  0xf5   :  { %2794 = vmatprep.subr.mxu0 %v5025_v0 }
  0xf6   :  { %2795 = vmatpush3.msra.mxu0 %v4075_v38 }
  0xf7   :  { %2796 = vmatprep.subr.mxu0 %v5025_v0 }
  0xf8   :  { %2797 = vmatpush3.msra.mxu0 %v4079_v39 }
  0xf9   :  { %2798 = vmatprep.subr.mxu0 %v5025_v0 }
  0xfa   :  { %2799 = vmatpush3.msra.mxu0 %v4083_v40 }
  0xfb   :  { %2800 = vmatprep.subr.mxu0 %v5025_v0 }
  0xfc   :  { %2801 = vmatpush3.msra.mxu0 %v4087_v42 }
  0xfd   :  { %2802 = vmatprep.subr.mxu0 %v5025_v0 }
  0xfe   :  { %2803 = vmatpush3.msra.mxu0 %v4091_v44 }
  0xff   :  { %2804 = vmatprep.subr.mxu0 %v5025_v0 }
 0x100   :  { %2805 = vmatpush3.msra.mxu0 %v4095_v45 }
 0x101   :  { %2806 = vmatprep.subr.mxu0 %v5025_v0 }
 0x1a7   :  { %v257_v50 = vpop.f32.mrf.mxu0 }
 0x1a8   :  { %v258_v51 = vadd.f32 %v4003_v49, %v257_v50 }
 0x1a9   :  { %v2744_v52 = vpop.f32.mrf.mxu0 }
 0x1aa   :  { %v261_v53 = vmax.f32 %v258_v51, 0.0 }
 0x1ac   :  { %2778 = vmatmul.mubr.f32.vlgmr.msra.gmra.mxu1 %v261_v53 }
 0x1ad   :  { %2816 = vmatpush3.msra.mxu1 %v3850_v2  ;;  %2847 = vmatprep.mubr.msk.f32.mxu1 %vm3769_vm0, %v5025_v0 }
 0x1ae   :  { %2817 = vmatprep.subr.mxu1 %v5025_v0 }
 0x1af   :  { %2818 = vmatpush3.msra.mxu1 %v3857_v4 }
 0x1b0   :  { %2819 = vmatprep.subr.mxu1 %v5025_v0 }
 0x1b1   :  { %2820 = vmatpush3.msra.mxu1 %v3861_v5 }
 0x1b2   :  { %2821 = vmatprep.subr.mxu1 %v5025_v0 }
 0x1b3   :  { %2822 = vmatpush3.msra.mxu1 %v3865_v6 }
 0x1b4   :  { %2823 = vmatprep.subr.mxu1 %v5025_v0 }
 0x1b5   :  { %2824 = vmatpush3.msra.mxu1 %v3869_v7 }
 0x1b6   :  { %2825 = vmatprep.subr.mxu1 %v5025_v0 }
 0x1b7   :  { %2826 = vmatpush3.msra.mxu1 %v3873_v8 }
 0x1b8   :  { %2827 = vmatprep.subr.mxu1 %v5025_v0 }
 0x1b9   :  { %2828 = vmatpush3.msra.mxu1 %v3877_v9 }
 0x1ba   :  { %2829 = vmatprep.subr.mxu1 %v5025_v0 }
 0x1bb   :  { %2830 = vmatpush3.msra.mxu1 %v3879_v10 }
 0x1bc   :  { %2831 = vmatprep.subr.mxu1 %v5025_v0 }
 0x1bd   :  { %2832 = vmatpush3.msra.mxu1 %v3885_v11 }
 0x1be   :  { %2833 = vmatprep.subr.mxu1 %v5025_v0 }
 0x1bf   :  { %2834 = vmatpush3.msra.mxu1 %v3891_v12 }
 0x1c0   :  { %2835 = vmatprep.subr.mxu1 %v5025_v0 }
 0x1c1   :  { %2836 = vmatpush3.msra.mxu1 %v3895_v13 }
 0x1c2   :  { %2837 = vmatprep.subr.mxu1 %v5025_v0 }
 0x1c3   :  { %2838 = vmatpush3.msra.mxu1 %v3899_v14 }
 0x1c4   :  { %2839 = vmatprep.subr.mxu1 %v5025_v0 }
 0x1c5   :  { %2840 = vmatpush3.msra.mxu1 %v3903_v15 }
 0x1c6   :  { %2841 = vmatprep.subr.mxu1 %v5025_v0 }
 0x1c7   :  { %2842 = vmatpush3.msra.mxu1 %v3907_v16 }
 0x1c8   :  { %2843 = vmatprep.subr.mxu1 %v5025_v0 }
 0x1c9   :  { %2844 = vmatpush3.msra.mxu1 %v3911_v17 }
 0x1ca   :  { %2845 = vmatprep.subr.mxu1 %v5025_v0 }
 0x1cb   :  { %2846 = vmatpush3.msra.mxu1 %v3915_v18 }
 0x1cc   :  { %2885 = vmatprep.subr.mxu1 %v5025_v0 }
 0x26c   :  { %v334_v55 = vpop.f32.mrf.mxu1 }
 0x26d   :  { %v335_v56 = vadd.f32 %v4043_v54, %v334_v55  ;;  %v4101_v55 = vld [vmem:[#allocation8 + $0x10] sm:$0xff] }
 0x26e   :  { %v2779_v57 = vpop.f32.mrf.mxu1  ;;  %2807 = vmatpush3.msra.mxu0 %v4101_v55 }
 0x26f   :  { %338 = vst [vmem:[#allocation12] sm:$0xff] %v335_v56  ;;  %341 = vmax.xlane.f32.xlu1 %v335_v56  ;;  %2808 = vmatprep.subr.mxu0 %v5025_v0  ;;  %v4109_v57 = vld [vmem:[#allocation8] sm:$0xff] }
 0x2f8   :  { %v342_v60 = vpop.xlane.xlu1 %341 }
 0x2f9   :  { %vm343_vm1 = vcmp.eq.f32.partialorder %v335_v56, %v342_v60  ;;  %v4105_v56 = vld [vmem:[#allocation8 + $0x8] sm:$0xff] }
 0x2fa   :  { %v344_v61 = vsel %vm343_vm1, %v4046_v59, 128  ;;  %2809 = vmatpush3.msra.mxu0 %v4105_v56 }
 0x2fb   :  { %v346_v62 = vshra.s32 %v344_v61, 16  ;;  %v345_v50 = vand.u32 65535, %v344_v61  ;;  %2810 = vmatprep.subr.mxu0 %v5025_v0 }
 0x2fc   :  { %2811 = vmatpush3.msra.mxu0 %v4109_v57 }
 0x2fd   :  { %v348_v63 = vcvt.s32.f32 %v346_v62  ;;  %v347_v52 = vcvt.s32.f32 %v345_v50  ;;  %2850 = vmatprep.subr.mxu0 %v5025_v0  ;;  %v5017_v50 = vmov 1.0  }
 0x2ff   :  { %349 = vmin.xlane.f32.xlu1 %v348_v63 }
 0x388   :  { %v350_v51 = vpop.xlane.xlu1 %349 }
 0x389   :  { %vm351_vm2 = vcmp.eq.f32.partialorder %v348_v63, %v350_v51  ;;  %v356_v58 = vcvt.f32.s32 %v350_v51  ;;  %v2280_v51 = vld [vmem:[#allocation6] ss:$0 sm:$0xff] }
 0x38a   :  { %v352_v53 = vsel %vm351_vm2, %v347_v52, inf }
 0x38b   :  { %353 = vmin.xlane.f32.xlu0 %v352_v53  ;;  %v357_v61 = vshll.u32 %v356_v58, 16 }
 0x414   :  { %v354_v60 = vpop.xlane.xlu0 %353 }
 0x415   :  { %v355_v62 = vcvt.f32.s32 %v354_v60 }
 0x417   :  { %v358_v63 = vadd.s32 %v357_v61, %v355_v62 }
 0x419   :  { %vm359_vm3 = vcmp.eq.s32.totalorder %v4046_v59, %v358_v63 }
 0x41a   :  { %2813 = vmatmul.mubr.msk.f32.vlgmr.msra.gmra.mxu0 %vm359_vm3, %v5017_v50 }
 0x41b   :  { %2851 = vmatpush3.msra.mxu0 %v3920_v19  ;;  %2882 = vmatprep.mubr.msk.f32.mxu0 %vm3769_vm0, %v5025_v0 }
 0x41c   :  { %2852 = vmatprep.subr.mxu0 %v5025_v0 }
 0x41d   :  { %2853 = vmatpush3.msra.mxu0 %v3922_v20 }
 0x41e   :  { %2854 = vmatprep.subr.mxu0 %v5025_v0 }
 0x41f   :  { %2855 = vmatpush3.msra.mxu0 %v3927_v21 }
 0x420   :  { %2856 = vmatprep.subr.mxu0 %v5025_v0 }
 0x421   :  { %2857 = vmatpush3.msra.mxu0 %v3931_v22 }
 0x422   :  { %2858 = vmatprep.subr.mxu0 %v5025_v0 }
 0x423   :  { %2859 = vmatpush3.msra.mxu0 %v3935_v23 }
 0x424   :  { %2860 = vmatprep.subr.mxu0 %v5025_v0 }
 0x425   :  { %2861 = vmatpush3.msra.mxu0 %v3939_v24 }
 0x426   :  { %2862 = vmatprep.subr.mxu0 %v5025_v0 }
 0x427   :  { %2863 = vmatpush3.msra.mxu0 %v3943_v25 }
 0x428   :  { %2864 = vmatprep.subr.mxu0 %v5025_v0 }
 0x429   :  { %2865 = vmatpush3.msra.mxu0 %v3947_v26 }
 0x42a   :  { %2866 = vmatprep.subr.mxu0 %v5025_v0 }
 0x42b   :  { %2867 = vmatpush3.msra.mxu0 %v3951_v27 }
 0x42c   :  { %2868 = vmatprep.subr.mxu0 %v5025_v0 }
 0x42d   :  { %2869 = vmatpush3.msra.mxu0 %v3955_v28 }
 0x42e   :  { %2870 = vmatprep.subr.mxu0 %v5025_v0 }
 0x42f   :  { %2871 = vmatpush3.msra.mxu0 %v3959_v29 }
 0x430   :  { %2872 = vmatprep.subr.mxu0 %v5025_v0 }
 0x431   :  { %2873 = vmatpush3.msra.mxu0 %v3963_v30 }
 0x432   :  { %2874 = vmatprep.subr.mxu0 %v5025_v0 }
 0x433   :  { %2875 = vmatpush3.msra.mxu0 %v3967_v31 }
 0x434   :  { %2876 = vmatprep.subr.mxu0 %v5025_v0 }
 0x435   :  { %2877 = vmatpush3.msra.mxu0 %v3988_v46 }
 0x436   :  { %2878 = vmatprep.subr.mxu0 %v5025_v0 }
 0x437   :  { %2879 = vmatpush3.msra.mxu0 %v3992_v47 }
 0x438   :  { %2880 = vmatprep.subr.mxu0 %v5025_v0 }
 0x439   :  { %2881 = vmatpush3.msra.mxu0 %v3996_v48 }
 0x43a   :  { %2920 = vmatprep.subr.mxu0 %v5025_v0 }
 0x4da   :  { %v428_v52 = vpop.f32.mrf.mxu0 }
 0x4db   :  { %v439_v53 = vmul.f32 %v2280_v51, %v428_v52 }
 0x4dc   :  { %v2814_v58 = vpop.f32.mrf.mxu0 }
 0x4dd   :  { %v4150_v60 = vsub.f32 %v3848_v1, %v439_v53 }
 0x4df   :  { %441 = vadd.xlane.f32.xlu1 %v4150_v60  ;;  %v444_v61 = vmul.f32 %v4150_v60, %v4150_v60 }
 0x4e1   :  { %445 = vadd.xlane.f32.xlu0 %v444_v61  ;;  %v5049_v61 = vmov 0.0  }
 0x568   :  { %v442_v62 = vpop.xlane.xlu1 %441 }
 0x569   :  { %v443_v63 = vmul.f32 0.03125, %v442_v62 }
 0x56a   :  { %v446_v50 = vpop.xlane.xlu0 %445 }
 0x56b   :  { %v448_v47 = vmul.f32 %v443_v63, %v443_v63  ;;  %v447_v48 = vmul.f32 0.03125, %v446_v50  ;;  %v450_v51 = vsub.f32 %v4150_v60, %v443_v63 }
 0x56d   :  { %v449_v46 = vsub.f32 %v447_v48, %v448_v47 }
 0x56f   :  { %v451_v0 = vadd.f32 1e-05, %v449_v46 }
 0x571   :  { %3565 = vrsqrt.f32 %v451_v0 }
 0x57e   :  { %v3566_v52 = vpop.eup %3565 }
 0x57f   :  { %v453_v58 = vmul.f32 %v3566_v52, %v450_v51 }
 0x581   :  { %v454_v1 = vmul.f32 %v3977_v41, %v453_v58 }
 0x583   :  { %v455_v53 = vadd.f32 %v3982_v43, %v454_v1 }
 0x585   :  { %2848 = vmatmul.mubr.f32.vlgmr.msra.gmra.mxu1 %v455_v53 }
 0x586   :  { %2886 = vmatpush3.msra.mxu1 %v4049_v3  ;;  %2917 = vmatprep.mubr.msk.f32.mxu1 %vm3769_vm0, %v5049_v61 }
 0x587   :  { %2887 = vmatprep.subr.mxu1 %v5049_v61 }
 0x588   :  { %2888 = vmatpush3.msra.mxu1 %v4051_v32 }
 0x589   :  { %2889 = vmatprep.subr.mxu1 %v5049_v61 }
 0x58a   :  { %2890 = vmatpush3.msra.mxu1 %v4055_v33 }
 0x58b   :  { %2891 = vmatprep.subr.mxu1 %v5049_v61 }
 0x58c   :  { %2892 = vmatpush3.msra.mxu1 %v4059_v34 }
 0x58d   :  { %2893 = vmatprep.subr.mxu1 %v5049_v61 }
 0x58e   :  { %2894 = vmatpush3.msra.mxu1 %v4063_v35 }
 0x58f   :  { %2895 = vmatprep.subr.mxu1 %v5049_v61 }
 0x590   :  { %2896 = vmatpush3.msra.mxu1 %v4067_v36 }
 0x591   :  { %2897 = vmatprep.subr.mxu1 %v5049_v61 }
 0x592   :  { %2898 = vmatpush3.msra.mxu1 %v4071_v37 }
 0x593   :  { %2899 = vmatprep.subr.mxu1 %v5049_v61 }
 0x594   :  { %2900 = vmatpush3.msra.mxu1 %v4075_v38 }
 0x595   :  { %2901 = vmatprep.subr.mxu1 %v5049_v61 }
 0x596   :  { %2902 = vmatpush3.msra.mxu1 %v4079_v39 }
 0x597   :  { %2903 = vmatprep.subr.mxu1 %v5049_v61 }
 0x598   :  { %2904 = vmatpush3.msra.mxu1 %v4083_v40 }
 0x599   :  { %2905 = vmatprep.subr.mxu1 %v5049_v61 }
 0x59a   :  { %2906 = vmatpush3.msra.mxu1 %v4087_v42 }
 0x59b   :  { %2907 = vmatprep.subr.mxu1 %v5049_v61 }
 0x59c   :  { %2908 = vmatpush3.msra.mxu1 %v4091_v44 }
 0x59d   :  { %2909 = vmatprep.subr.mxu1 %v5049_v61 }
 0x59e   :  { %2910 = vmatpush3.msra.mxu1 %v4095_v45 }
 0x59f   :  { %2911 = vmatprep.subr.mxu1 %v5049_v61 }
 0x5a0   :  { %2912 = vmatpush3.msra.mxu1 %v4101_v55 }
 0x5a1   :  { %2913 = vmatprep.subr.mxu1 %v5049_v61 }
 0x5a2   :  { %2914 = vmatpush3.msra.mxu1 %v4105_v56 }
 0x5a3   :  { %2915 = vmatprep.subr.mxu1 %v5049_v61 }
 0x5a4   :  { %2916 = vmatpush3.msra.mxu1 %v4109_v57 }
 0x5a5   :  { %2955 = vmatprep.subr.mxu1 %v5049_v61 }
 0x645   :  { %v522_v0 = vpop.f32.mrf.mxu1 }
 0x646   :  { %v523_v46 = vadd.f32 %v4003_v49, %v522_v0 }
 0x647   :  { %v2849_v47 = vpop.f32.mrf.mxu1 }
 0x648   :  { %v526_v48 = vmax.f32 %v523_v46, 0.0 }
 0x64a   :  { %2883 = vmatmul.mubr.f32.vlgmr.msra.gmra.mxu0 %v526_v48 }
 0x64b   :  { %2921 = vmatpush3.msra.mxu0 %v3850_v2  ;;  %2952 = vmatprep.mubr.msk.f32.mxu0 %vm3769_vm0, %v5049_v61 }
 0x64c   :  { %2922 = vmatprep.subr.mxu0 %v5049_v61 }
 0x64d   :  { %2923 = vmatpush3.msra.mxu0 %v3857_v4 }
 0x64e   :  { %2924 = vmatprep.subr.mxu0 %v5049_v61 }
 0x64f   :  { %2925 = vmatpush3.msra.mxu0 %v3861_v5 }
 0x650   :  { %2926 = vmatprep.subr.mxu0 %v5049_v61 }
 0x651   :  { %2927 = vmatpush3.msra.mxu0 %v3865_v6 }
 0x652   :  { %2928 = vmatprep.subr.mxu0 %v5049_v61 }
 0x653   :  { %2929 = vmatpush3.msra.mxu0 %v3869_v7 }
 0x654   :  { %2930 = vmatprep.subr.mxu0 %v5049_v61 }
 0x655   :  { %2931 = vmatpush3.msra.mxu0 %v3873_v8 }
 0x656   :  { %2932 = vmatprep.subr.mxu0 %v5049_v61 }
 0x657   :  { %2933 = vmatpush3.msra.mxu0 %v3877_v9 }
 0x658   :  { %2934 = vmatprep.subr.mxu0 %v5049_v61 }
 0x659   :  { %2935 = vmatpush3.msra.mxu0 %v3879_v10 }
 0x65a   :  { %2936 = vmatprep.subr.mxu0 %v5049_v61 }
 0x65b   :  { %2937 = vmatpush3.msra.mxu0 %v3885_v11 }
 0x65c   :  { %2938 = vmatprep.subr.mxu0 %v5049_v61 }
 0x65d   :  { %2939 = vmatpush3.msra.mxu0 %v3891_v12 }
 0x65e   :  { %2940 = vmatprep.subr.mxu0 %v5049_v61 }
 0x65f   :  { %2941 = vmatpush3.msra.mxu0 %v3895_v13 }
 0x660   :  { %2942 = vmatprep.subr.mxu0 %v5049_v61 }
 0x661   :  { %2943 = vmatpush3.msra.mxu0 %v3899_v14 }
 0x662   :  { %2944 = vmatprep.subr.mxu0 %v5049_v61 }
 0x663   :  { %2945 = vmatpush3.msra.mxu0 %v3903_v15 }
 0x664   :  { %2946 = vmatprep.subr.mxu0 %v5049_v61 }
 0x665   :  { %2947 = vmatpush3.msra.mxu0 %v3907_v16 }
 0x666   :  { %2948 = vmatprep.subr.mxu0 %v5049_v61 }
 0x667   :  { %2949 = vmatpush3.msra.mxu0 %v3911_v17 }
 0x668   :  { %2950 = vmatprep.subr.mxu0 %v5049_v61 }
 0x669   :  { %2951 = vmatpush3.msra.mxu0 %v3915_v18 }
 0x66a   :  { %2990 = vmatprep.subr.mxu0 %v5049_v61 }
 0x70a   :  { %v593_v50 = vpop.f32.mrf.mxu0 }
 0x70b   :  { %v594_v62 = vadd.f32 %v4043_v54, %v593_v50  ;;  %v5050_v54 = vmov 1.0  }
 0x70c   :  { %v2884_v63 = vpop.f32.mrf.mxu0 }
 0x70d   :  { %598 = vst [vmem:[#allocation12 + $0x8] sm:$0xff] %v594_v62  ;;  %599 = vmax.xlane.f32.xlu1 %v594_v62 }
 0x796   :  { %v600_v51 = vpop.xlane.xlu1 %599 }
 0x797   :  { %vm601_vm4 = vcmp.eq.f32.partialorder %v594_v62, %v600_v51  ;;  %v5053_v62 = vld [vmem:[#allocation21_spill] sm:$0xff]  ;;  %v2283_v51 = vld [vmem:[#allocation6 + $0x1] ss:$0 sm:$0xff] }
 0x798   :  { %v602_v52 = vsel %vm601_vm4, %v4046_v59, 128 }
 0x799   :  { %v604_v58 = vshra.s32 %v602_v52, 16  ;;  %v603_v53 = vand.u32 65535, %v602_v52 }
 0x79b   :  { %v606_v1 = vcvt.s32.f32 %v604_v58  ;;  %v605_v46 = vcvt.s32.f32 %v603_v53 }
 0x79d   :  { %607 = vmin.xlane.f32.xlu0 %v606_v1 }
 0x826   :  { %v608_v0 = vpop.xlane.xlu0 %607 }
 0x827   :  { %vm609_vm5 = vcmp.eq.f32.partialorder %v606_v1, %v608_v0  ;;  %v614_v48 = vcvt.f32.s32 %v608_v0 }
 0x828   :  { %v610_v47 = vsel %vm609_vm5, %v605_v46, inf }
 0x829   :  { %611 = vmin.xlane.f32.xlu1 %v610_v47  ;;  %v615_v17 = vshll.u32 %v614_v48, 16 }
 0x8b2   :  { %v612_v18 = vpop.xlane.xlu1 %611 }
 0x8b3   :  { %v613_v50 = vcvt.f32.s32 %v612_v18  ;;  %v5052_v18 = vld [vmem:[#allocation20_spill] sm:$0xff] }
 0x8b5   :  { %v616_v63 = vadd.s32 %v615_v17, %v613_v50  ;;  %v5051_v17 = vld [vmem:[#allocation19_spill] sm:$0xff] }
 0x8b7   :  { %vm617_vm6 = vcmp.eq.s32.totalorder %v4046_v59, %v616_v63 }
 0x8b8   :  { %2918 = vmatmul.mubr.msk.f32.vlgmr.msra.gmra.mxu1 %vm617_vm6, %v5050_v54 }
 0x8b9   :  { %2956 = vmatpush3.msra.mxu1 %v3920_v19  ;;  %2987 = vmatprep.mubr.msk.f32.mxu1 %vm3769_vm0, %v5049_v61 }
 0x8ba   :  { %2957 = vmatprep.subr.mxu1 %v5049_v61 }
 0x8bb   :  { %2958 = vmatpush3.msra.mxu1 %v3922_v20 }
 0x8bc   :  { %2959 = vmatprep.subr.mxu1 %v5049_v61 }
 0x8bd   :  { %2960 = vmatpush3.msra.mxu1 %v3927_v21 }
 0x8be   :  { %2961 = vmatprep.subr.mxu1 %v5049_v61 }
 0x8bf   :  { %2962 = vmatpush3.msra.mxu1 %v3931_v22 }
 0x8c0   :  { %2963 = vmatprep.subr.mxu1 %v5049_v61 }
 0x8c1   :  { %2964 = vmatpush3.msra.mxu1 %v3935_v23 }
 0x8c2   :  { %2965 = vmatprep.subr.mxu1 %v5049_v61 }
 0x8c3   :  { %2966 = vmatpush3.msra.mxu1 %v3939_v24 }
 0x8c4   :  { %2967 = vmatprep.subr.mxu1 %v5049_v61 }
 0x8c5   :  { %2968 = vmatpush3.msra.mxu1 %v3943_v25 }
 0x8c6   :  { %2969 = vmatprep.subr.mxu1 %v5049_v61 }
 0x8c7   :  { %2970 = vmatpush3.msra.mxu1 %v3947_v26 }
 0x8c8   :  { %2971 = vmatprep.subr.mxu1 %v5049_v61 }
 0x8c9   :  { %2972 = vmatpush3.msra.mxu1 %v3951_v27 }
 0x8ca   :  { %2973 = vmatprep.subr.mxu1 %v5049_v61 }
 0x8cb   :  { %2974 = vmatpush3.msra.mxu1 %v3955_v28 }
 0x8cc   :  { %2975 = vmatprep.subr.mxu1 %v5049_v61 }
 0x8cd   :  { %2976 = vmatpush3.msra.mxu1 %v3959_v29 }
 0x8ce   :  { %2977 = vmatprep.subr.mxu1 %v5049_v61 }
 0x8cf   :  { %2978 = vmatpush3.msra.mxu1 %v3963_v30 }
 0x8d0   :  { %2979 = vmatprep.subr.mxu1 %v5049_v61 }
 0x8d1   :  { %2980 = vmatpush3.msra.mxu1 %v3967_v31 }
 0x8d2   :  { %2981 = vmatprep.subr.mxu1 %v5049_v61 }
 0x8d3   :  { %2982 = vmatpush3.msra.mxu1 %v5051_v17 }
 0x8d4   :  { %2983 = vmatprep.subr.mxu1 %v5049_v61 }
 0x8d5   :  { %2984 = vmatpush3.msra.mxu1 %v5052_v18 }
 0x8d6   :  { %2985 = vmatprep.subr.mxu1 %v5049_v61 }
 0x8d7   :  { %2986 = vmatpush3.msra.mxu1 %v5053_v62 }
 0x8d8   :  { %3025 = vmatprep.subr.mxu1 %v5049_v61 }
 0x978   :  { %v686_v52 = vpop.f32.mrf.mxu1 }
 0x979   :  { %v698_v58 = vmul.f32 %v2283_v51, %v686_v52 }
 0x97a   :  { %v2919_v1 = vpop.f32.mrf.mxu1 }
 0x97b   :  { %v4266_v53 = vsub.f32 %v4150_v60, %v698_v58 }
 0x97d   :  { %700 = vadd.xlane.f32.xlu0 %v4266_v53  ;;  %v703_v0 = vmul.f32 %v4266_v53, %v4266_v53 }
 0x97f   :  { %704 = vadd.xlane.f32.xlu1 %v703_v0 }
 0xa06   :  { %v701_v46 = vpop.xlane.xlu0 %700 }
 0xa07   :  { %v702_v47 = vmul.f32 0.03125, %v701_v46 }
 0xa08   :  { %v705_v48 = vpop.xlane.xlu1 %704 }
 0xa09   :  { %v707_v50 = vmul.f32 %v702_v47, %v702_v47  ;;  %v706_v63 = vmul.f32 0.03125, %v705_v48  ;;  %v709_v51 = vsub.f32 %v4266_v53, %v702_v47 }
 0xa0b   :  { %v708_v62 = vsub.f32 %v706_v63, %v707_v50 }
 0xa0d   :  { %v710_v18 = vadd.f32 1e-05, %v708_v62 }
 0xa0f   :  { %3567 = vrsqrt.f32 %v710_v18 }
 0xa1c   :  { %v3568_v52 = vpop.eup %3567 }
 0xa1d   :  { %v712_v1 = vmul.f32 %v3568_v52, %v709_v51 }
 0xa1f   :  { %v713_v60 = vmul.f32 %v3977_v41, %v712_v1 }
 0xa21   :  { %v714_v58 = vadd.f32 %v3982_v43, %v713_v60 }
 0xa23   :  { %2953 = vmatmul.mubr.f32.vlgmr.msra.gmra.mxu0 %v714_v58 }
 0xa24   :  { %2991 = vmatpush3.msra.mxu0 %v4049_v3  ;;  %3022 = vmatprep.mubr.msk.f32.mxu0 %vm3769_vm0, %v5049_v61 }
 0xa25   :  { %2992 = vmatprep.subr.mxu0 %v5049_v61 }
 0xa26   :  { %2993 = vmatpush3.msra.mxu0 %v4051_v32 }
 0xa27   :  { %2994 = vmatprep.subr.mxu0 %v5049_v61 }
 0xa28   :  { %2995 = vmatpush3.msra.mxu0 %v4055_v33 }
 0xa29   :  { %2996 = vmatprep.subr.mxu0 %v5049_v61 }
 0xa2a   :  { %2997 = vmatpush3.msra.mxu0 %v4059_v34 }
 0xa2b   :  { %2998 = vmatprep.subr.mxu0 %v5049_v61 }
 0xa2c   :  { %2999 = vmatpush3.msra.mxu0 %v4063_v35 }
 0xa2d   :  { %3000 = vmatprep.subr.mxu0 %v5049_v61 }
 0xa2e   :  { %3001 = vmatpush3.msra.mxu0 %v4067_v36 }
 0xa2f   :  { %3002 = vmatprep.subr.mxu0 %v5049_v61 }
 0xa30   :  { %3003 = vmatpush3.msra.mxu0 %v4071_v37 }
 0xa31   :  { %3004 = vmatprep.subr.mxu0 %v5049_v61 }
 0xa32   :  { %3005 = vmatpush3.msra.mxu0 %v4075_v38 }
 0xa33   :  { %3006 = vmatprep.subr.mxu0 %v5049_v61 }
 0xa34   :  { %3007 = vmatpush3.msra.mxu0 %v4079_v39 }
 0xa35   :  { %3008 = vmatprep.subr.mxu0 %v5049_v61 }
 0xa36   :  { %3009 = vmatpush3.msra.mxu0 %v4083_v40 }
 0xa37   :  { %3010 = vmatprep.subr.mxu0 %v5049_v61 }
 0xa38   :  { %3011 = vmatpush3.msra.mxu0 %v4087_v42 }
 0xa39   :  { %3012 = vmatprep.subr.mxu0 %v5049_v61 }
 0xa3a   :  { %3013 = vmatpush3.msra.mxu0 %v4091_v44 }
 0xa3b   :  { %3014 = vmatprep.subr.mxu0 %v5049_v61 }
 0xa3c   :  { %3015 = vmatpush3.msra.mxu0 %v4095_v45 }
 0xa3d   :  { %3016 = vmatprep.subr.mxu0 %v5049_v61 }
 0xa3e   :  { %3017 = vmatpush3.msra.mxu0 %v4101_v55 }
 0xa3f   :  { %3018 = vmatprep.subr.mxu0 %v5049_v61 }
 0xa40   :  { %3019 = vmatpush3.msra.mxu0 %v4105_v56 }
 0xa41   :  { %3020 = vmatprep.subr.mxu0 %v5049_v61 }
 0xa42   :  { %3021 = vmatpush3.msra.mxu0 %v4109_v57 }
 0xa43   :  { %3060 = vmatprep.subr.mxu0 %v5049_v61 }
 0xae3   :  { %v781_v18 = vpop.f32.mrf.mxu0 }
 0xae4   :  { %v782_v62 = vadd.f32 %v4003_v49, %v781_v18 }
 0xae5   :  { %v2954_v0 = vpop.f32.mrf.mxu0 }
 0xae6   :  { %v785_v46 = vmax.f32 %v782_v62, 0.0  ;;  %v4487_v62 = vld [vmem:[#allocation9] sm:$0xff] }
 0xae8   :  { %2988 = vmatmul.mubr.f32.vlgmr.msra.gmra.mxu1 %v785_v46 }
 0xae9   :  { %3026 = vmatpush3.msra.mxu1 %v3850_v2  ;;  %3057 = vmatprep.mubr.msk.f32.mxu1 %vm3769_vm0, %v5049_v61  ;;  %v5054_v2 = vld [vmem:[#allocation17_spill] sm:$0xff] }
 0xaea   :  { %3027 = vmatprep.subr.mxu1 %v5049_v61 }
 0xaeb   :  { %3028 = vmatpush3.msra.mxu1 %v3857_v4  ;;  %v5055_v4 = vld [vmem:[#allocation18_spill] sm:$0xff] }
 0xaec   :  { %3029 = vmatprep.subr.mxu1 %v5049_v61 }
 0xaed   :  { %3030 = vmatpush3.msra.mxu1 %v3861_v5 }
 0xaee   :  { %3031 = vmatprep.subr.mxu1 %v5049_v61 }
 0xaef   :  { %3032 = vmatpush3.msra.mxu1 %v3865_v6  ;;  %v5056_v6 = vld [vmem:[#allocation22_spill] sm:$0xff] }
 0xaf0   :  { %3033 = vmatprep.subr.mxu1 %v5049_v61 }
 0xaf1   :  { %3034 = vmatpush3.msra.mxu1 %v3869_v7 }
 0xaf2   :  { %3035 = vmatprep.subr.mxu1 %v5049_v61 }
 0xaf3   :  { %3036 = vmatpush3.msra.mxu1 %v3873_v8 }
 0xaf4   :  { %3037 = vmatprep.subr.mxu1 %v5049_v61 }
 0xaf5   :  { %3038 = vmatpush3.msra.mxu1 %v3877_v9 }
 0xaf6   :  { %3039 = vmatprep.subr.mxu1 %v5049_v61 }
 0xaf7   :  { %3040 = vmatpush3.msra.mxu1 %v3879_v10 }
 0xaf8   :  { %3041 = vmatprep.subr.mxu1 %v5049_v61 }
 0xaf9   :  { %3042 = vmatpush3.msra.mxu1 %v3885_v11 }
 0xafa   :  { %3043 = vmatprep.subr.mxu1 %v5049_v61 }
 0xafb   :  { %3044 = vmatpush3.msra.mxu1 %v3891_v12 }
 0xafc   :  { %3045 = vmatprep.subr.mxu1 %v5049_v61 }
 0xafd   :  { %3046 = vmatpush3.msra.mxu1 %v3895_v13 }
 0xafe   :  { %3047 = vmatprep.subr.mxu1 %v5049_v61 }
 0xaff   :  { %3048 = vmatpush3.msra.mxu1 %v3899_v14 }
 0xb00   :  { %3049 = vmatprep.subr.mxu1 %v5049_v61 }
 0xb01   :  { %3050 = vmatpush3.msra.mxu1 %v3903_v15 }
 0xb02   :  { %3051 = vmatprep.subr.mxu1 %v5049_v61 }
 0xb03   :  { %3052 = vmatpush3.msra.mxu1 %v3907_v16 }
 0xb04   :  { %3053 = vmatprep.subr.mxu1 %v5049_v61 }
 0xb05   :  { %3054 = vmatpush3.msra.mxu1 %v5054_v2 }
 0xb06   :  { %3055 = vmatprep.subr.mxu1 %v5049_v61 }
 0xb07   :  { %3056 = vmatpush3.msra.mxu1 %v5055_v4 }
 0xb08   :  { %3095 = vmatprep.subr.mxu1 %v5049_v61 }
 0xba8   :  { %v852_v5 = vpop.f32.mrf.mxu1 }
 0xba9   :  { %v853_v7 = vadd.f32 %v5056_v6, %v852_v5 }
 0xbaa   :  { %v2989_v8 = vpop.f32.mrf.mxu1 }
 0xbab   :  { %857 = vst [vmem:[#allocation12 + $0x10] sm:$0xff] %v853_v7  ;;  %858 = vmax.xlane.f32.xlu0 %v853_v7 }
 0xc34   :  { %v859_v9 = vpop.xlane.xlu0 %858 }
 0xc35   :  { %vm860_vm7 = vcmp.eq.f32.partialorder %v853_v7, %v859_v9 }
 0xc36   :  { %v861_v10 = vsel %vm860_vm7, %v4046_v59, 128 }
 0xc37   :  { %v863_v11 = vshra.s32 %v861_v10, 16  ;;  %v862_v13 = vand.u32 65535, %v861_v10 }
 0xc39   :  { %v865_v12 = vcvt.s32.f32 %v863_v11  ;;  %v864_v15 = vcvt.s32.f32 %v862_v13 }
 0xc3b   :  { %866 = vmin.xlane.f32.xlu1 %v865_v12 }
 0xcc4   :  { %v867_v14 = vpop.xlane.xlu1 %866 }
 0xcc5   :  { %vm868_vm8 = vcmp.eq.f32.partialorder %v865_v12, %v867_v14  ;;  %v873_v47 = vcvt.f32.s32 %v867_v14 }
 0xcc6   :  { %v869_v16 = vsel %vm868_vm8, %v864_v15, inf }
 0xcc7   :  { %870 = vmin.xlane.f32.xlu0 %v869_v16  ;;  %v874_v50 = vshll.u32 %v873_v47, 16  ;;  %v4495_v47 = vld [vmem:[#allocation11 + $0x78] sm:$0xff] }
 0xd50   :  { %v871_v48 = vpop.xlane.xlu0 %870 }
 0xd51   :  { %v872_v63 = vcvt.f32.s32 %v871_v48  ;;  %v4501_v48 = vld [vmem:[#allocation11 + $0x70] sm:$0xff] }
 0xd53   :  { %v875_v51 = vadd.s32 %v874_v50, %v872_v63  ;;  %v4505_v50 = vld [vmem:[#allocation11 + $0x68] sm:$0xff]  ;;  %v4509_v63 = vld [vmem:[#allocation11 + $0x60] sm:$0xff] }
 0xd55   :  { %vm876_vm9 = vcmp.eq.s32.totalorder %v4046_v59, %v875_v51  ;;  %v4513_v51 = vld [vmem:[#allocation11 + $0x58] sm:$0xff] }
 0xd56   :  { %3023 = vmatmul.mubr.msk.f32.vlgmr.msra.gmra.mxu0 %vm876_vm9, %v5050_v54 }
 0xd57   :  { %3061 = vmatpush3.msra.mxu0 %v3920_v19  ;;  %3092 = vmatprep.mubr.msk.f32.mxu0 %vm3769_vm0, %v5049_v61  ;;  %v5057_v19 = vld [vmem:[#allocation20_spill] sm:$0xff] }
 0xd58   :  { %3062 = vmatprep.subr.mxu0 %v5049_v61 }
 0xd59   :  { %3063 = vmatpush3.msra.mxu0 %v3922_v20  ;;  %v5058_v20 = vld [vmem:[#allocation21_spill] sm:$0xff] }
 0xd5a   :  { %3064 = vmatprep.subr.mxu0 %v5049_v61  ;;  %5064 = vst [vmem:[#allocation21_spill] sm:$0xff] %v4487_v62 }
 0xd5b   :  { %3065 = vmatpush3.msra.mxu0 %v3927_v21  ;;  %v2286_v21 = vld [vmem:[#allocation6 + $0x2] ss:$0 sm:$0xff] }
 0xd5c   :  { %3066 = vmatprep.subr.mxu0 %v5049_v61 }
 0xd5d   :  { %3067 = vmatpush3.msra.mxu0 %v3931_v22 }
 0xd5e   :  { %3068 = vmatprep.subr.mxu0 %v5049_v61 }
 0xd5f   :  { %3069 = vmatpush3.msra.mxu0 %v3935_v23 }
 0xd60   :  { %3070 = vmatprep.subr.mxu0 %v5049_v61 }
 0xd61   :  { %3071 = vmatpush3.msra.mxu0 %v3939_v24 }
 0xd62   :  { %3072 = vmatprep.subr.mxu0 %v5049_v61 }
 0xd63   :  { %3073 = vmatpush3.msra.mxu0 %v3943_v25 }
 0xd64   :  { %3074 = vmatprep.subr.mxu0 %v5049_v61 }
 0xd65   :  { %3075 = vmatpush3.msra.mxu0 %v3947_v26 }
 0xd66   :  { %3076 = vmatprep.subr.mxu0 %v5049_v61 }
 0xd67   :  { %3077 = vmatpush3.msra.mxu0 %v3951_v27 }
 0xd68   :  { %3078 = vmatprep.subr.mxu0 %v5049_v61 }
 0xd69   :  { %3079 = vmatpush3.msra.mxu0 %v3955_v28 }
 0xd6a   :  { %3080 = vmatprep.subr.mxu0 %v5049_v61 }
 0xd6b   :  { %3081 = vmatpush3.msra.mxu0 %v3959_v29 }
 0xd6c   :  { %3082 = vmatprep.subr.mxu0 %v5049_v61 }
 0xd6d   :  { %3083 = vmatpush3.msra.mxu0 %v3963_v30 }
 0xd6e   :  { %3084 = vmatprep.subr.mxu0 %v5049_v61 }
 0xd6f   :  { %3085 = vmatpush3.msra.mxu0 %v3967_v31 }
 0xd70   :  { %3086 = vmatprep.subr.mxu0 %v5049_v61 }
 0xd71   :  { %3087 = vmatpush3.msra.mxu0 %v5051_v17 }
 0xd72   :  { %3088 = vmatprep.subr.mxu0 %v5049_v61 }
 0xd73   :  { %3089 = vmatpush3.msra.mxu0 %v5057_v19  ;;  %v4517_v19 = vld [vmem:[#allocation11 + $0x50] sm:$0xff] }
 0xd74   :  { %3090 = vmatprep.subr.mxu0 %v5049_v61 }
 0xd75   :  { %3091 = vmatpush3.msra.mxu0 %v5058_v20  ;;  %v4521_v20 = vld [vmem:[#allocation11 + $0x48] sm:$0xff] }
 0xd76   :  { %3130 = vmatprep.subr.mxu0 %v5049_v61 }
 0xe16   :  { %v945_v22 = vpop.f32.mrf.mxu0 }
 0xe17   :  { %v957_v23 = vmul.f32 %v2286_v21, %v945_v22  ;;  %v4525_v21 = vld [vmem:[#allocation11 + $0x40] sm:$0xff]  ;;  %v4529_v22 = vld [vmem:[#allocation11 + $0x38] sm:$0xff] }
 0xe18   :  { %v3024_v24 = vpop.f32.mrf.mxu0 }
 0xe19   :  { %v4382_v25 = vsub.f32 %v4266_v53, %v957_v23  ;;  %v4533_v23 = vld [vmem:[#allocation11 + $0x30] sm:$0xff]  ;;  %v4537_v24 = vld [vmem:[#allocation11 + $0x28] sm:$0xff] }
 0xe1b   :  { %959 = vadd.xlane.f32.xlu1 %v4382_v25  ;;  %v962_v26 = vmul.f32 %v4382_v25, %v4382_v25 }
 0xe1d   :  { %963 = vadd.xlane.f32.xlu0 %v962_v26  ;;  %v4541_v26 = vld [vmem:[#allocation11 + $0x20] sm:$0xff] }
 0xea4   :  { %v960_v27 = vpop.xlane.xlu1 %959 }
 0xea5   :  { %v961_v28 = vmul.f32 0.03125, %v960_v27  ;;  %v4545_v27 = vld [vmem:[#allocation11 + $0x18] sm:$0xff] }
 0xea6   :  { %v964_v29 = vpop.xlane.xlu0 %963 }
 0xea7   :  { %v966_v30 = vmul.f32 %v961_v28, %v961_v28  ;;  %v965_v31 = vmul.f32 0.03125, %v964_v29  ;;  %v968_v1 = vsub.f32 %v4382_v25, %v961_v28  ;;  %v4549_v28 = vld [vmem:[#allocation11 + $0x10] sm:$0xff]  ;;  %v4553_v29 = vld [vmem:[#allocation11 + $0x8] sm:$0xff] }
 0xea9   :  { %v967_v17 = vsub.f32 %v965_v31, %v966_v30  ;;  %v4557_v30 = vld [vmem:[#allocation11] sm:$0xff]  ;;  %v2289_v31 = vld [vmem:[#allocation6 + $0x3] ss:$0 sm:$0xff] }
 0xeab   :  { %v969_v52 = vadd.f32 1e-05, %v967_v17 }
 0xead   :  { %3569 = vrsqrt.f32 %v969_v52 }
 0xeba   :  { %v3570_v60 = vpop.eup %3569 }
 0xebb   :  { %v971_v58 = vmul.f32 %v3570_v60, %v968_v1 }
 0xebd   :  { %v972_v53 = vmul.f32 %v3977_v41, %v971_v58 }
 0xebf   :  { %v973_v18 = vadd.f32 %v3982_v43, %v972_v53 }
 0xec1   :  { %3058 = vmatmul.mubr.f32.vlgmr.msra.gmra.mxu1 %v973_v18 }
 0xec2   :  { %3096 = vmatpush3.msra.mxu1 %v4049_v3  ;;  %3127 = vmatprep.mubr.msk.f32.mxu1 %vm3769_vm0, %v5049_v61 }
 0xec3   :  { %3097 = vmatprep.subr.mxu1 %v5049_v61 }
 0xec4   :  { %3098 = vmatpush3.msra.mxu1 %v4051_v32 }
 0xec5   :  { %3099 = vmatprep.subr.mxu1 %v5049_v61 }
 0xec6   :  { %3100 = vmatpush3.msra.mxu1 %v4055_v33  ;;  %v4425_v33 = vld [vmem:[#allocation9 + $0x78] sm:$0xff] }
 0xec7   :  { %3101 = vmatprep.subr.mxu1 %v5049_v61 }
 0xec8   :  { %3102 = vmatpush3.msra.mxu1 %v4059_v34  ;;  %v4431_v34 = vld [vmem:[#allocation9 + $0x70] sm:$0xff] }
 0xec9   :  { %3103 = vmatprep.subr.mxu1 %v5049_v61 }
 0xeca   :  { %3104 = vmatpush3.msra.mxu1 %v4063_v35  ;;  %v4435_v35 = vld [vmem:[#allocation9 + $0x68] sm:$0xff] }
 0xecb   :  { %3105 = vmatprep.subr.mxu1 %v5049_v61 }
 0xecc   :  { %3106 = vmatpush3.msra.mxu1 %v4067_v36  ;;  %v4443_v36 = vld [vmem:[#allocation9 + $0x58] sm:$0xff] }
 0xecd   :  { %3107 = vmatprep.subr.mxu1 %v5049_v61 }
 0xece   :  { %3108 = vmatpush3.msra.mxu1 %v4071_v37  ;;  %v4447_v37 = vld [vmem:[#allocation9 + $0x50] sm:$0xff] }
 0xecf   :  { %3109 = vmatprep.subr.mxu1 %v5049_v61 }
 0xed0   :  { %3110 = vmatpush3.msra.mxu1 %v4075_v38  ;;  %v4451_v38 = vld [vmem:[#allocation9 + $0x48] sm:$0xff] }
 0xed1   :  { %3111 = vmatprep.subr.mxu1 %v5049_v61 }
 0xed2   :  { %3112 = vmatpush3.msra.mxu1 %v4079_v39  ;;  %v4455_v39 = vld [vmem:[#allocation9 + $0x40] sm:$0xff] }
 0xed3   :  { %3113 = vmatprep.subr.mxu1 %v5049_v61 }
 0xed4   :  { %3114 = vmatpush3.msra.mxu1 %v4083_v40  ;;  %v4459_v40 = vld [vmem:[#allocation9 + $0x38] sm:$0xff] }
 0xed5   :  { %3115 = vmatprep.subr.mxu1 %v5049_v61 }
 0xed6   :  { %3116 = vmatpush3.msra.mxu1 %v4087_v42  ;;  %v4463_v42 = vld [vmem:[#allocation9 + $0x30] sm:$0xff] }
 0xed7   :  { %3117 = vmatprep.subr.mxu1 %v5049_v61 }
 0xed8   :  { %3118 = vmatpush3.msra.mxu1 %v4091_v44  ;;  %v4467_v44 = vld [vmem:[#allocation9 + $0x28] sm:$0xff] }
 0xed9   :  { %3119 = vmatprep.subr.mxu1 %v5049_v61  ;;  %5059 = vst [vmem:[#allocation19_spill] sm:$0xff] %v4467_v44 }
 0xeda   :  { %3120 = vmatpush3.msra.mxu1 %v4095_v45  ;;  %v4471_v45 = vld [vmem:[#allocation9 + $0x20] sm:$0xff] }
 0xedb   :  { %3121 = vmatprep.subr.mxu1 %v5049_v61  ;;  %5060 = vst [vmem:[#allocation17_spill] sm:$0xff] %v4471_v45 }
 0xedc   :  { %3122 = vmatpush3.msra.mxu1 %v4101_v55  ;;  %v4475_v55 = vld [vmem:[#allocation9 + $0x18] sm:$0xff] }
 0xedd   :  { %3123 = vmatprep.subr.mxu1 %v5049_v61  ;;  %5061 = vst [vmem:[#allocation18_spill] sm:$0xff] %v4475_v55 }
 0xede   :  { %3124 = vmatpush3.msra.mxu1 %v4105_v56  ;;  %v4479_v56 = vld [vmem:[#allocation9 + $0x10] sm:$0xff] }
 0xedf   :  { %3125 = vmatprep.subr.mxu1 %v5049_v61  ;;  %5062 = vst [vmem:[#allocation22_spill] sm:$0xff] %v4479_v56 }
 0xee0   :  { %3126 = vmatpush3.msra.mxu1 %v4109_v57  ;;  %v4483_v57 = vld [vmem:[#allocation9 + $0x8] sm:$0xff] }
 0xee1   :  { %3165 = vmatprep.subr.mxu1 %v5049_v61  ;;  %5063 = vst [vmem:[#allocation20_spill] sm:$0xff] %v4483_v57 }
 0xf81   :  { %v1040_v41 = vpop.f32.mrf.mxu1 }
 0xf82   :  { %v1041_v43 = vadd.f32 %v4003_v49, %v1040_v41  ;;  %v4439_v49 = vld [vmem:[#allocation9 + $0x60] sm:$0xff] }
 0xf83   :  { %v3059_v3 = vpop.f32.mrf.mxu1 }
 0xf84   :  { %v1044_v32 = vmax.f32 %v1041_v43, 0.0 }
 0xf86   :  { %3093 = vmatmul.mubr.f32.vlgmr.msra.gmra.mxu0 %v1044_v32 }
 0xf87   :  { %3131 = vmatpush3.msra.mxu0 %v4425_v33  ;;  %3162 = vmatprep.mubr.msk.f32.mxu0 %vm3769_vm0, %v5049_v61 }
 0xf88   :  { %3132 = vmatprep.subr.mxu0 %v5049_v61 }
 0xf89   :  { %3133 = vmatpush3.msra.mxu0 %v4431_v34 }
 0xf8a   :  { %3134 = vmatprep.subr.mxu0 %v5049_v61 }
 0xf8b   :  { %3135 = vmatpush3.msra.mxu0 %v4435_v35 }
 0xf8c   :  { %3136 = vmatprep.subr.mxu0 %v5049_v61 }
 0xf8d   :  { %3137 = vmatpush3.msra.mxu0 %v4439_v49 }
 0xf8e   :  { %3138 = vmatprep.subr.mxu0 %v5049_v61 }
 0xf8f   :  { %3139 = vmatpush3.msra.mxu0 %v4443_v36 }
 0xf90   :  { %3140 = vmatprep.subr.mxu0 %v5049_v61 }
 0xf91   :  { %3141 = vmatpush3.msra.mxu0 %v4447_v37 }
 0xf92   :  { %3142 = vmatprep.subr.mxu0 %v5049_v61 }
 0xf93   :  { %3143 = vmatpush3.msra.mxu0 %v4451_v38 }
 0xf94   :  { %3144 = vmatprep.subr.mxu0 %v5049_v61 }
 0xf95   :  { %3145 = vmatpush3.msra.mxu0 %v4455_v39 }
 0xf96   :  { %3146 = vmatprep.subr.mxu0 %v5049_v61 }
 0xf97   :  { %3147 = vmatpush3.msra.mxu0 %v4459_v40 }
 0xf98   :  { %3148 = vmatprep.subr.mxu0 %v5049_v61 }
 0xf99   :  { %3149 = vmatpush3.msra.mxu0 %v4463_v42 }
 0xf9a   :  { %3150 = vmatprep.subr.mxu0 %v5049_v61 }
 0xf9b   :  { %3151 = vmatpush3.msra.mxu0 %v4467_v44 }
 0xf9c   :  { %3152 = vmatprep.subr.mxu0 %v5049_v61 }
 0xf9d   :  { %3153 = vmatpush3.msra.mxu0 %v4471_v45 }
 0xf9e   :  { %3154 = vmatprep.subr.mxu0 %v5049_v61 }
 0xf9f   :  { %3155 = vmatpush3.msra.mxu0 %v4475_v55 }
 0xfa0   :  { %3156 = vmatprep.subr.mxu0 %v5049_v61 }
 0xfa1   :  { %3157 = vmatpush3.msra.mxu0 %v4479_v56 }
 0xfa2   :  { %3158 = vmatprep.subr.mxu0 %v5049_v61 }
 0xfa3   :  { %3159 = vmatpush3.msra.mxu0 %v4483_v57 }
 0xfa4   :  { %3160 = vmatprep.subr.mxu0 %v5049_v61 }
 0xfa5   :  { %3161 = vmatpush3.msra.mxu0 %v4487_v62 }
 0xfa6   :  { %3200 = vmatprep.subr.mxu0 %v5049_v61 }
0x1046   :  { %v1111_v0 = vpop.f32.mrf.mxu0 }
0x1047   :  { %v1112_v46 = vadd.f32 %v5056_v6, %v1111_v0 }
0x1048   :  { %v3094_v2 = vpop.f32.mrf.mxu0 }
0x1049   :  { %1116 = vst [vmem:[#allocation12 + $0x18] sm:$0xff] %v1112_v46  ;;  %1117 = vmax.xlane.f32.xlu1 %v1112_v46 }
0x10d2   :  { %v1118_v4 = vpop.xlane.xlu1 %1117 }
0x10d3   :  { %vm1119_vm10 = vcmp.eq.f32.partialorder %v1112_v46, %v1118_v4 }
0x10d4   :  { %v1120_v5 = vsel %vm1119_vm10, %v4046_v59, 128 }
0x10d5   :  { %v1122_v7 = vshra.s32 %v1120_v5, 16  ;;  %v1121_v9 = vand.u32 65535, %v1120_v5 }
0x10d7   :  { %v1124_v8 = vcvt.s32.f32 %v1122_v7  ;;  %v1123_v11 = vcvt.s32.f32 %v1121_v9  ;;  %v4577_v7 = vld [vmem:[%s5015_s8] ss:$0 sm:$0xff]  ;;  %v4580_v9 = vld [vmem:[#allocation8 + $0x78] sm:$0xff] }
0x10d9   :  { %1125 = vmin.xlane.f32.xlu0 %v1124_v8 }
0x1162   :  { %v1126_v10 = vpop.xlane.xlu0 %1125 }
0x1163   :  { %vm1127_vm11 = vcmp.eq.f32.partialorder %v1124_v8, %v1126_v10  ;;  %v1132_v13 = vcvt.f32.s32 %v1126_v10  ;;  %v4586_v10 = vld [vmem:[#allocation8 + $0x70] sm:$0xff] }
0x1164   :  { %v1128_v12 = vsel %vm1127_vm11, %v1123_v11, inf  ;;  %v4590_v11 = vld [vmem:[#allocation8 + $0x68] sm:$0xff] }
0x1165   :  { %1129 = vmin.xlane.f32.xlu1 %v1128_v12  ;;  %v1133_v15 = vshll.u32 %v1132_v13, 16  ;;  %v4594_v12 = vld [vmem:[#allocation8 + $0x60] sm:$0xff]  ;;  %v4598_v13 = vld [vmem:[#allocation8 + $0x58] sm:$0xff] }
0x11ee   :  { %v1130_v14 = vpop.xlane.xlu1 %1129 }
0x11ef   :  { %v1131_v6 = vcvt.f32.s32 %v1130_v14  ;;  %v4602_v14 = vld [vmem:[#allocation8 + $0x50] sm:$0xff] }
0x11f1   :  { %v1134_v16 = vadd.s32 %v1133_v15, %v1131_v6  ;;  %v4606_v15 = vld [vmem:[#allocation8 + $0x48] sm:$0xff]  ;;  %v4610_v6 = vld [vmem:[#allocation8 + $0x40] sm:$0xff] }
0x11f3   :  { %vm1135_vm12 = vcmp.eq.s32.totalorder %v4046_v59, %v1134_v16  ;;  %v4614_v16 = vld [vmem:[#allocation8 + $0x38] sm:$0xff] }
0x11f4   :  { %3128 = vmatmul.mubr.msk.f32.vlgmr.msra.gmra.mxu1 %vm1135_vm12, %v5050_v54 }
0x11f5   :  { %3166 = vmatpush3.msra.mxu1 %v4495_v47  ;;  %3197 = vmatprep.mubr.msk.f32.mxu1 %vm3769_vm0, %v5049_v61 }
0x11f6   :  { %3167 = vmatprep.subr.mxu1 %v5049_v61 }
0x11f7   :  { %3168 = vmatpush3.msra.mxu1 %v4501_v48 }
0x11f8   :  { %3169 = vmatprep.subr.mxu1 %v5049_v61 }
0x11f9   :  { %3170 = vmatpush3.msra.mxu1 %v4505_v50 }
0x11fa   :  { %3171 = vmatprep.subr.mxu1 %v5049_v61 }
0x11fb   :  { %3172 = vmatpush3.msra.mxu1 %v4509_v63 }
0x11fc   :  { %3173 = vmatprep.subr.mxu1 %v5049_v61 }
0x11fd   :  { %3174 = vmatpush3.msra.mxu1 %v4513_v51 }
0x11fe   :  { %3175 = vmatprep.subr.mxu1 %v5049_v61 }
0x11ff   :  { %3176 = vmatpush3.msra.mxu1 %v4517_v19 }
0x1200   :  { %3177 = vmatprep.subr.mxu1 %v5049_v61 }
0x1201   :  { %3178 = vmatpush3.msra.mxu1 %v4521_v20 }
0x1202   :  { %3179 = vmatprep.subr.mxu1 %v5049_v61 }
0x1203   :  { %3180 = vmatpush3.msra.mxu1 %v4525_v21 }
0x1204   :  { %3181 = vmatprep.subr.mxu1 %v5049_v61 }
0x1205   :  { %3182 = vmatpush3.msra.mxu1 %v4529_v22 }
0x1206   :  { %3183 = vmatprep.subr.mxu1 %v5049_v61 }
0x1207   :  { %3184 = vmatpush3.msra.mxu1 %v4533_v23 }
0x1208   :  { %3185 = vmatprep.subr.mxu1 %v5049_v61 }
0x1209   :  { %3186 = vmatpush3.msra.mxu1 %v4537_v24 }
0x120a   :  { %3187 = vmatprep.subr.mxu1 %v5049_v61 }
0x120b   :  { %3188 = vmatpush3.msra.mxu1 %v4541_v26 }
0x120c   :  { %3189 = vmatprep.subr.mxu1 %v5049_v61 }
0x120d   :  { %3190 = vmatpush3.msra.mxu1 %v4545_v27 }
0x120e   :  { %3191 = vmatprep.subr.mxu1 %v5049_v61 }
0x120f   :  { %3192 = vmatpush3.msra.mxu1 %v4549_v28 }
0x1210   :  { %3193 = vmatprep.subr.mxu1 %v5049_v61 }
0x1211   :  { %3194 = vmatpush3.msra.mxu1 %v4553_v29 }
0x1212   :  { %3195 = vmatprep.subr.mxu1 %v5049_v61 }
0x1213   :  { %3196 = vmatpush3.msra.mxu1 %v4557_v30 }
0x1214   :  { %3235 = vmatprep.subr.mxu1 %v5049_v61 }
0x12b4   :  { %v1204_v17 = vpop.f32.mrf.mxu1 }
0x12b5   :  { %v1216_v52 = vmul.f32 %v2289_v31, %v1204_v17  ;;  %v4618_v31 = vld [vmem:[#allocation8 + $0x30] sm:$0xff]  ;;  %v4622_v17 = vld [vmem:[#allocation8 + $0x28] sm:$0xff] }
0x12b6   :  { %v3129_v1 = vpop.f32.mrf.mxu1 }
0x12b7   :  { %v4562_v60 = vsub.f32 %v4382_v25, %v1216_v52  ;;  %v4571_v25 = vld [vmem:[%s5014_s7] ss:$0 sm:$0xff]  ;;  %v4626_v52 = vld [vmem:[#allocation8 + $0x20] sm:$0xff]  ;;  %v4630_v1 = vld [vmem:[#allocation8 + $0x18] sm:$0xff] }
0x12b9   :  { %1218 = vadd.xlane.f32.xlu0 %v4562_v60  ;;  %v1221_v58 = vmul.f32 %v4562_v60, %v4562_v60 }
0x12bb   :  { %1222 = vadd.xlane.f32.xlu1 %v1221_v58  ;;  %v4634_v58 = vld [vmem:[#allocation8 + $0x10] sm:$0xff] }
0x1342   :  { %v1219_v53 = vpop.xlane.xlu0 %1218 }
0x1343   :  { %v1220_v18 = vmul.f32 0.03125, %v1219_v53  ;;  %v4638_v53 = vld [vmem:[#allocation8 + $0x8] sm:$0xff] }
0x1344   :  { %v1223_v41 = vpop.xlane.xlu1 %1222 }
0x1345   :  { %v1225_v43 = vmul.f32 %v1220_v18, %v1220_v18  ;;  %v1224_v3 = vmul.f32 0.03125, %v1223_v41  ;;  %v1227_v46 = vsub.f32 %v4562_v60, %v1220_v18  ;;  %v4642_v18 = vld [vmem:[#allocation8] sm:$0xff] }
0x1347   :  { %v1226_v32 = vsub.f32 %v1224_v3, %v1225_v43  ;;  %v4649_v43 = vld [vmem:[%s5011_s4] ss:$0 sm:$0xff] }
0x1349   :  { %v1228_v0 = vadd.f32 1e-05, %v1226_v32 }
0x134b   :  { %3571 = vrsqrt.f32 %v1228_v0 }
0x1358   :  { %v3572_v2 = vpop.eup %3571 }
0x1359   :  { %v1230_v4 = vmul.f32 %v3572_v2, %v1227_v46  ;;  %v4689_v2 = vld [vmem:[%s5013_s6] ss:$0 sm:$0xff]  ;;  %s3771_s6 = smov [#allocation12]  }
0x135a   :  { %s2260_s26 = sshll.u32 %s3771_s6, 4  ;;  %s2261_s26 = int_to_ptr.vmem [resolvable:$true] %s2260_s26 }
0x135b   :  { %v1231_v5 = vmul.f32 %v4571_v25, %v1230_v4  ;;  %s3731_s27 = scalar_lea.vmem %s2261_s26, 1024  ;;  %p3736_p12 = scmp.lt.s32.totalorder %s2261_s26, %s2261_s26 }
0x135c   :  { %p3732_p11 = scmp.ne.s32.totalorder %s2261_s26, %s3731_s27  ;;  %p3737_p13 = scmp.lt.s32.totalorder %s3731_s27, %s3731_s27 }
0x135d   :  { %v1232_v8 = vadd.f32 %v4577_v7, %v1231_v5 }
0x135e   :  { %p3738_p0 = por %p3737_p13, %p3736_p12 }
0x135f   :  { %3163 = vmatmul.mubr.f32.vlgmr.msra.gmra.mxu0 %v1232_v8 }
0x1360   :  { %3201 = vmatpush3.msra.mxu0 %v4580_v9  ;;  %3232 = vmatprep.mubr.msk.f32.mxu0 %vm3769_vm0, %v5049_v61  ;;  %p3739_p1 = pnand %p3738_p0, %p3732_p11 }
0x1361   :  { %3202 = vmatprep.subr.mxu0 %v5049_v61 }
0x1362   :  { %3203 = vmatpush3.msra.mxu0 %v4586_v10 }
0x1363   :  { %3204 = vmatprep.subr.mxu0 %v5049_v61 }
0x1364   :  { %3205 = vmatpush3.msra.mxu0 %v4590_v11 }
0x1365   :  { %3206 = vmatprep.subr.mxu0 %v5049_v61 }
0x1366   :  { %3207 = vmatpush3.msra.mxu0 %v4594_v12 }
0x1367   :  { %3208 = vmatprep.subr.mxu0 %v5049_v61 }
0x1368   :  { %3209 = vmatpush3.msra.mxu0 %v4598_v13 }
0x1369   :  { %3210 = vmatprep.subr.mxu0 %v5049_v61 }
0x136a   :  { %3211 = vmatpush3.msra.mxu0 %v4602_v14 }
0x136b   :  { %3212 = vmatprep.subr.mxu0 %v5049_v61 }
0x136c   :  { %3213 = vmatpush3.msra.mxu0 %v4606_v15 }
0x136d   :  { %3214 = vmatprep.subr.mxu0 %v5049_v61 }
0x136e   :  { %3215 = vmatpush3.msra.mxu0 %v4610_v6 }
0x136f   :  { %3216 = vmatprep.subr.mxu0 %v5049_v61 }
0x1370   :  { %3217 = vmatpush3.msra.mxu0 %v4614_v16 }
0x1371   :  { %3218 = vmatprep.subr.mxu0 %v5049_v61 }
0x1372   :  { %3219 = vmatpush3.msra.mxu0 %v4618_v31 }
0x1373   :  { %3220 = vmatprep.subr.mxu0 %v5049_v61 }
0x1374   :  { %3221 = vmatpush3.msra.mxu0 %v4622_v17 }
0x1375   :  { %3222 = vmatprep.subr.mxu0 %v5049_v61 }
0x1376   :  { %3223 = vmatpush3.msra.mxu0 %v4626_v52 }
0x1377   :  { %3224 = vmatprep.subr.mxu0 %v5049_v61 }
0x1378   :  { %3225 = vmatpush3.msra.mxu0 %v4630_v1 }
0x1379   :  { %3226 = vmatprep.subr.mxu0 %v5049_v61 }
0x137a   :  { %3227 = vmatpush3.msra.mxu0 %v4634_v58 }
0x137b   :  { %3228 = vmatprep.subr.mxu0 %v5049_v61 }
0x137c   :  { %3229 = vmatpush3.msra.mxu0 %v4638_v53 }
0x137d   :  { %3230 = vmatprep.subr.mxu0 %v5049_v61 }
0x137e   :  { %3231 = vmatpush3.msra.mxu0 %v4642_v18 }
0x137f   :  { %3270 = vmatprep.subr.mxu0 %v5049_v61 }
0x141f   :  { %v1299_v41 = vpop.f32.mrf.mxu0 }
0x1420   :  { %v1300_v3 = vadd.f32 %v4649_v43, %v1299_v41 }
0x1421   :  { %v3164_v32 = vpop.f32.mrf.mxu0 }
0x1422   :  { %v1303_v0 = vmax.f32 %v1300_v3, 0.0 }
0x1424   :  { %3198 = vmatmul.mubr.f32.vlgmr.msra.gmra.mxu1 %v1303_v0 }
0x1425   :  { %3236 = vmatpush3.msra.mxu1 %v4425_v33  ;;  %3267 = vmatprep.mubr.msk.f32.mxu1 %vm3769_vm0, %v5049_v61 }
0x1426   :  { %3237 = vmatprep.subr.mxu1 %v5049_v61 }
0x1427   :  { %3238 = vmatpush3.msra.mxu1 %v4431_v34 }
0x1428   :  { %3239 = vmatprep.subr.mxu1 %v5049_v61 }
0x1429   :  { %3240 = vmatpush3.msra.mxu1 %v4435_v35 }
0x142a   :  { %3241 = vmatprep.subr.mxu1 %v5049_v61 }
0x142b   :  { %3242 = vmatpush3.msra.mxu1 %v4439_v49 }
0x142c   :  { %3243 = vmatprep.subr.mxu1 %v5049_v61 }
0x142d   :  { %3244 = vmatpush3.msra.mxu1 %v4443_v36 }
0x142e   :  { %3245 = vmatprep.subr.mxu1 %v5049_v61 }
0x142f   :  { %3246 = vmatpush3.msra.mxu1 %v4447_v37 }
0x1430   :  { %3247 = vmatprep.subr.mxu1 %v5049_v61 }
0x1431   :  { %3248 = vmatpush3.msra.mxu1 %v4451_v38 }
0x1432   :  { %3249 = vmatprep.subr.mxu1 %v5049_v61 }
0x1433   :  { %3250 = vmatpush3.msra.mxu1 %v4455_v39 }
0x1434   :  { %3251 = vmatprep.subr.mxu1 %v5049_v61 }
0x1435   :  { %3252 = vmatpush3.msra.mxu1 %v4459_v40 }
0x1436   :  { %3253 = vmatprep.subr.mxu1 %v5049_v61 }
0x1437   :  { %3254 = vmatpush3.msra.mxu1 %v4463_v42 }
0x1438   :  { %3255 = vmatprep.subr.mxu1 %v5049_v61 }
0x1439   :  { %3256 = vmatpush3.msra.mxu1 %v4467_v44 }
0x143a   :  { %3257 = vmatprep.subr.mxu1 %v5049_v61 }
0x143b   :  { %3258 = vmatpush3.msra.mxu1 %v4471_v45 }
0x143c   :  { %3259 = vmatprep.subr.mxu1 %v5049_v61 }
0x143d   :  { %3260 = vmatpush3.msra.mxu1 %v4475_v55 }
0x143e   :  { %3261 = vmatprep.subr.mxu1 %v5049_v61 }
0x143f   :  { %3262 = vmatpush3.msra.mxu1 %v4479_v56 }
0x1440   :  { %3263 = vmatprep.subr.mxu1 %v5049_v61 }
0x1441   :  { %3264 = vmatpush3.msra.mxu1 %v4483_v57 }
0x1442   :  { %3265 = vmatprep.subr.mxu1 %v5049_v61 }
0x1443   :  { %3266 = vmatpush3.msra.mxu1 %v4487_v62 }
0x1444   :  { %3305 = vmatprep.subr.mxu1 %v5049_v61 }
0x14e4   :  { %v1370_v46 = vpop.f32.mrf.mxu1 }
0x14e5   :  { %v1371_v4 = vadd.f32 %v4689_v2, %v1370_v46 }
0x14e6   :  { %v3199_v5 = vpop.f32.mrf.mxu1 }
0x14e7   :  { %1375 = vst [vmem:[#allocation12 + $0x20] sm:$0xff] %v1371_v4  ;;  %1376 = vmax.xlane.f32.xlu0 %v1371_v4 }
0x1570   :  { %v1377_v8 = vpop.xlane.xlu0 %1376 }
0x1571   :  { %vm1378_vm13 = vcmp.eq.f32.partialorder %v1371_v4, %v1377_v8 }
0x1572   :  { %v1379_v41 = vsel %vm1378_vm13, %v4046_v59, 128 }
0x1573   :  { %v1381_v3 = vshra.s32 %v1379_v41, 16  ;;  %v1380_v0 = vand.u32 65535, %v1379_v41 }
0x1575   :  { %v1383_v32 = vcvt.s32.f32 %v1381_v3  ;;  %v1382_v57 = vcvt.s32.f32 %v1380_v0 }
0x1577   :  { %1384 = vmin.xlane.f32.xlu1 %v1383_v32 }
0x1600   :  { %v1385_v62 = vpop.xlane.xlu1 %1384 }
0x1601   :  { %vm1386_vm14 = vcmp.eq.f32.partialorder %v1383_v32, %v1385_v62  ;;  %v1391_v55 = vcvt.f32.s32 %v1385_v62 }
0x1602   :  { %v1387_v56 = vsel %vm1386_vm14, %v1382_v57, inf }
0x1603   :  { %1388 = vmin.xlane.f32.xlu0 %v1387_v56  ;;  %v1392_v44 = vshll.u32 %v1391_v55, 16 }
0x168c   :  { %v1389_v45 = vpop.xlane.xlu0 %1388 }
0x168d   :  { %v1390_v46 = vcvt.f32.s32 %v1389_v45 }
0x168f   :  { %v1393_v5 = vadd.s32 %v1392_v44, %v1390_v46  ;;  %v2292_v44 = vld [vmem:[#allocation6 + $0x4] ss:$0 sm:$0xff] }
0x1691   :  { %vm1394_vm15 = vcmp.eq.s32.totalorder %v4046_v59, %v1393_v5 }
0x1692   :  { %3233 = vmatmul.mubr.msk.f32.vlgmr.msra.gmra.mxu0 %vm1394_vm15, %v5050_v54 }
0x1693   :  { %3271 = vmatpush3.msra.mxu0 %v4495_v47  ;;  %3302 = vmatprep.mubr.msk.f32.mxu0 %vm3769_vm0, %v5049_v61 }
0x1694   :  { %3272 = vmatprep.subr.mxu0 %v5049_v61 }
0x1695   :  { %3273 = vmatpush3.msra.mxu0 %v4501_v48 }
0x1696   :  { %3274 = vmatprep.subr.mxu0 %v5049_v61 }
0x1697   :  { %3275 = vmatpush3.msra.mxu0 %v4505_v50 }
0x1698   :  { %3276 = vmatprep.subr.mxu0 %v5049_v61 }
0x1699   :  { %3277 = vmatpush3.msra.mxu0 %v4509_v63 }
0x169a   :  { %3278 = vmatprep.subr.mxu0 %v5049_v61 }
0x169b   :  { %3279 = vmatpush3.msra.mxu0 %v4513_v51 }
0x169c   :  { %3280 = vmatprep.subr.mxu0 %v5049_v61 }
0x169d   :  { %3281 = vmatpush3.msra.mxu0 %v4517_v19 }
0x169e   :  { %3282 = vmatprep.subr.mxu0 %v5049_v61 }
0x169f   :  { %3283 = vmatpush3.msra.mxu0 %v4521_v20 }
0x16a0   :  { %3284 = vmatprep.subr.mxu0 %v5049_v61 }
0x16a1   :  { %3285 = vmatpush3.msra.mxu0 %v4525_v21 }
0x16a2   :  { %3286 = vmatprep.subr.mxu0 %v5049_v61 }
0x16a3   :  { %3287 = vmatpush3.msra.mxu0 %v4529_v22 }
0x16a4   :  { %3288 = vmatprep.subr.mxu0 %v5049_v61 }
0x16a5   :  { %3289 = vmatpush3.msra.mxu0 %v4533_v23 }
0x16a6   :  { %3290 = vmatprep.subr.mxu0 %v5049_v61 }
0x16a7   :  { %3291 = vmatpush3.msra.mxu0 %v4537_v24 }
0x16a8   :  { %3292 = vmatprep.subr.mxu0 %v5049_v61 }
0x16a9   :  { %3293 = vmatpush3.msra.mxu0 %v4541_v26 }
0x16aa   :  { %3294 = vmatprep.subr.mxu0 %v5049_v61 }
0x16ab   :  { %3295 = vmatpush3.msra.mxu0 %v4545_v27 }
0x16ac   :  { %3296 = vmatprep.subr.mxu0 %v5049_v61 }
0x16ad   :  { %3297 = vmatpush3.msra.mxu0 %v4549_v28 }
0x16ae   :  { %3298 = vmatprep.subr.mxu0 %v5049_v61 }
0x16af   :  { %3299 = vmatpush3.msra.mxu0 %v4553_v29 }
0x16b0   :  { %3300 = vmatprep.subr.mxu0 %v5049_v61 }
0x16b1   :  { %3301 = vmatpush3.msra.mxu0 %v4557_v30 }
0x16b2   :  { %3340 = vmatprep.subr.mxu0 %v5049_v61 }
0x1752   :  { %v1463_v45 = vpop.f32.mrf.mxu0 }
0x1753   :  { %v1475_v55 = vmul.f32 %v2292_v44, %v1463_v45 }
0x1754   :  { %v3234_v56 = vpop.f32.mrf.mxu0 }
0x1755   :  { %v4730_v57 = vsub.f32 %v4562_v60, %v1475_v55 }
0x1757   :  { %1477 = vadd.xlane.f32.xlu1 %v4730_v57  ;;  %v1480_v62 = vmul.f32 %v4730_v57, %v4730_v57 }
0x1759   :  { %1481 = vadd.xlane.f32.xlu0 %v1480_v62 }
0x17e0   :  { %v1478_v4 = vpop.xlane.xlu1 %1477 }
0x17e1   :  { %v1479_v8 = vmul.f32 0.03125, %v1478_v4 }
0x17e2   :  { %v1482_v41 = vpop.xlane.xlu0 %1481 }
0x17e3   :  { %v1484_v3 = vmul.f32 %v1479_v8, %v1479_v8  ;;  %v1483_v32 = vmul.f32 0.03125, %v1482_v41  ;;  %v1486_v5 = vsub.f32 %v4730_v57, %v1479_v8  ;;  %v5065_v41 = vld [vmem:[#allocation19_spill] sm:$0xff] }
0x17e5   :  { %v1485_v0 = vsub.f32 %v1483_v32, %v1484_v3  ;;  %v5066_v3 = vld [vmem:[#allocation17_spill] sm:$0xff]  ;;  %v5067_v32 = vld [vmem:[#allocation18_spill] sm:$0xff] }
0x17e7   :  { %v1487_v46 = vadd.f32 1e-05, %v1485_v0  ;;  %v5068_v0 = vld [vmem:[#allocation22_spill] sm:$0xff] }
0x17e9   :  { %3573 = vrsqrt.f32 %v1487_v46  ;;  %v5069_v46 = vld [vmem:[#allocation20_spill] sm:$0xff] }
0x17f6   :  { %v3574_v44 = vpop.eup %3573 }
0x17f7   :  { %v1489_v45 = vmul.f32 %v3574_v44, %v1486_v5  ;;  %v5070_v5 = vld [vmem:[#allocation21_spill] sm:$0xff] }
0x17f9   :  { %v1490_v60 = vmul.f32 %v4571_v25, %v1489_v45 }
0x17fb   :  { %v1491_v55 = vadd.f32 %v4577_v7, %v1490_v60 }
0x17fd   :  { %3268 = vmatmul.mubr.f32.vlgmr.msra.gmra.mxu1 %v1491_v55 }
0x17fe   :  { %3306 = vmatpush3.msra.mxu1 %v4580_v9  ;;  %3337 = vmatprep.mubr.msk.f32.mxu1 %vm3769_vm0, %v5049_v61 }
0x17ff   :  { %3307 = vmatprep.subr.mxu1 %v5049_v61 }
0x1800   :  { %3308 = vmatpush3.msra.mxu1 %v4586_v10 }
0x1801   :  { %3309 = vmatprep.subr.mxu1 %v5049_v61 }
0x1802   :  { %3310 = vmatpush3.msra.mxu1 %v4590_v11 }
0x1803   :  { %3311 = vmatprep.subr.mxu1 %v5049_v61 }
0x1804   :  { %3312 = vmatpush3.msra.mxu1 %v4594_v12 }
0x1805   :  { %3313 = vmatprep.subr.mxu1 %v5049_v61 }
0x1806   :  { %3314 = vmatpush3.msra.mxu1 %v4598_v13 }
0x1807   :  { %3315 = vmatprep.subr.mxu1 %v5049_v61 }
0x1808   :  { %3316 = vmatpush3.msra.mxu1 %v4602_v14 }
0x1809   :  { %3317 = vmatprep.subr.mxu1 %v5049_v61 }
0x180a   :  { %3318 = vmatpush3.msra.mxu1 %v4606_v15 }
0x180b   :  { %3319 = vmatprep.subr.mxu1 %v5049_v61 }
0x180c   :  { %3320 = vmatpush3.msra.mxu1 %v4610_v6 }
0x180d   :  { %3321 = vmatprep.subr.mxu1 %v5049_v61 }
0x180e   :  { %3322 = vmatpush3.msra.mxu1 %v4614_v16 }
0x180f   :  { %3323 = vmatprep.subr.mxu1 %v5049_v61 }
0x1810   :  { %3324 = vmatpush3.msra.mxu1 %v4618_v31 }
0x1811   :  { %3325 = vmatprep.subr.mxu1 %v5049_v61 }
0x1812   :  { %3326 = vmatpush3.msra.mxu1 %v4622_v17 }
0x1813   :  { %3327 = vmatprep.subr.mxu1 %v5049_v61 }
0x1814   :  { %3328 = vmatpush3.msra.mxu1 %v4626_v52 }
0x1815   :  { %3329 = vmatprep.subr.mxu1 %v5049_v61 }
0x1816   :  { %3330 = vmatpush3.msra.mxu1 %v4630_v1 }
0x1817   :  { %3331 = vmatprep.subr.mxu1 %v5049_v61 }
0x1818   :  { %3332 = vmatpush3.msra.mxu1 %v4634_v58 }
0x1819   :  { %3333 = vmatprep.subr.mxu1 %v5049_v61 }
0x181a   :  { %3334 = vmatpush3.msra.mxu1 %v4638_v53 }
0x181b   :  { %3335 = vmatprep.subr.mxu1 %v5049_v61 }
0x181c   :  { %3336 = vmatpush3.msra.mxu1 %v4642_v18 }
0x181d   :  { %3375 = vmatprep.subr.mxu1 %v5049_v61 }
0x18bd   :  { %v1558_v56 = vpop.f32.mrf.mxu1 }
0x18be   :  { %v1559_v62 = vadd.f32 %v4649_v43, %v1558_v56 }
0x18bf   :  { %v3269_v4 = vpop.f32.mrf.mxu1 }
0x18c0   :  { %v1562_v8 = vmax.f32 %v1559_v62, 0.0 }
0x18c2   :  { %3303 = vmatmul.mubr.f32.vlgmr.msra.gmra.mxu0 %v1562_v8 }
0x18c3   :  { %3341 = vmatpush3.msra.mxu0 %v4425_v33  ;;  %3372 = vmatprep.mubr.msk.f32.mxu0 %vm3769_vm0, %v5049_v61 }
0x18c4   :  { %3342 = vmatprep.subr.mxu0 %v5049_v61 }
0x18c5   :  { %3343 = vmatpush3.msra.mxu0 %v4431_v34 }
0x18c6   :  { %3344 = vmatprep.subr.mxu0 %v5049_v61 }
0x18c7   :  { %3345 = vmatpush3.msra.mxu0 %v4435_v35 }
0x18c8   :  { %3346 = vmatprep.subr.mxu0 %v5049_v61 }
0x18c9   :  { %3347 = vmatpush3.msra.mxu0 %v4439_v49 }
0x18ca   :  { %3348 = vmatprep.subr.mxu0 %v5049_v61 }
0x18cb   :  { %3349 = vmatpush3.msra.mxu0 %v4443_v36 }
0x18cc   :  { %3350 = vmatprep.subr.mxu0 %v5049_v61 }
0x18cd   :  { %3351 = vmatpush3.msra.mxu0 %v4447_v37 }
0x18ce   :  { %3352 = vmatprep.subr.mxu0 %v5049_v61 }
0x18cf   :  { %3353 = vmatpush3.msra.mxu0 %v4451_v38 }
0x18d0   :  { %3354 = vmatprep.subr.mxu0 %v5049_v61 }
0x18d1   :  { %3355 = vmatpush3.msra.mxu0 %v4455_v39 }
0x18d2   :  { %3356 = vmatprep.subr.mxu0 %v5049_v61 }
0x18d3   :  { %3357 = vmatpush3.msra.mxu0 %v4459_v40 }
0x18d4   :  { %3358 = vmatprep.subr.mxu0 %v5049_v61 }
0x18d5   :  { %3359 = vmatpush3.msra.mxu0 %v4463_v42 }
0x18d6   :  { %3360 = vmatprep.subr.mxu0 %v5049_v61 }
0x18d7   :  { %3361 = vmatpush3.msra.mxu0 %v5065_v41 }
0x18d8   :  { %3362 = vmatprep.subr.mxu0 %v5049_v61 }
0x18d9   :  { %3363 = vmatpush3.msra.mxu0 %v5066_v3 }
0x18da   :  { %3364 = vmatprep.subr.mxu0 %v5049_v61 }
0x18db   :  { %3365 = vmatpush3.msra.mxu0 %v5067_v32 }
0x18dc   :  { %3366 = vmatprep.subr.mxu0 %v5049_v61 }
0x18dd   :  { %3367 = vmatpush3.msra.mxu0 %v5068_v0 }
0x18de   :  { %3368 = vmatprep.subr.mxu0 %v5049_v61 }
0x18df   :  { %3369 = vmatpush3.msra.mxu0 %v5069_v46 }
0x18e0   :  { %3370 = vmatprep.subr.mxu0 %v5049_v61 }
0x18e1   :  { %3371 = vmatpush3.msra.mxu0 %v5070_v5 }
0x18e2   :  { %3410 = vmatprep.subr.mxu0 %v5049_v61 }
0x1982   :  { %v1629_v44 = vpop.f32.mrf.mxu0 }
0x1983   :  { %v1630_v45 = vadd.f32 %v4689_v2, %v1629_v44 }
0x1984   :  { %v3304_v60 = vpop.f32.mrf.mxu0 }
0x1985   :  { %1634 = vst [vmem:[#allocation12 + $0x28] sm:$0xff] %v1630_v45  ;;  %1635 = vmax.xlane.f32.xlu1 %v1630_v45 }
0x1a0e   :  { %v1636_v55 = vpop.xlane.xlu1 %1635 }
0x1a0f   :  { %vm1637_vm1 = vcmp.eq.f32.partialorder %v1630_v45, %v1636_v55 }
0x1a10   :  { %v1638_v56 = vsel %vm1637_vm1, %v4046_v59, 128 }
0x1a11   :  { %v1640_v62 = vshra.s32 %v1638_v56, 16  ;;  %v1639_v8 = vand.u32 65535, %v1638_v56 }
0x1a13   :  { %v1642_v4 = vcvt.s32.f32 %v1640_v62  ;;  %v1641_v0 = vcvt.s32.f32 %v1639_v8 }
0x1a15   :  { %1643 = vmin.xlane.f32.xlu0 %v1642_v4 }
0x1a9e   :  { %v1644_v46 = vpop.xlane.xlu0 %1643 }
0x1a9f   :  { %vm1645_vm2 = vcmp.eq.f32.partialorder %v1642_v4, %v1644_v46  ;;  %v1650_v32 = vcvt.f32.s32 %v1644_v46 }
0x1aa0   :  { %v1646_v5 = vsel %vm1645_vm2, %v1641_v0, inf }
0x1aa1   :  { %1647 = vmin.xlane.f32.xlu1 %v1646_v5  ;;  %v1651_v41 = vshll.u32 %v1650_v32, 16 }
0x1b2a   :  { %v1648_v3 = vpop.xlane.xlu1 %1647 }
0x1b2b   :  { %v1649_v44 = vcvt.f32.s32 %v1648_v3 }
0x1b2d   :  { %v1652_v60 = vadd.s32 %v1651_v41, %v1649_v44  ;;  %v2295_v41 = vld [vmem:[#allocation6 + $0x5] ss:$0 sm:$0xff] }
0x1b2f   :  { %vm1653_vm3 = vcmp.eq.s32.totalorder %v4046_v59, %v1652_v60 }
0x1b30   :  { %3338 = vmatmul.mubr.msk.f32.vlgmr.msra.gmra.mxu1 %vm1653_vm3, %v5050_v54 }
0x1b31   :  { %3376 = vmatpush3.msra.mxu1 %v4495_v47  ;;  %3407 = vmatprep.mubr.msk.f32.mxu1 %vm3769_vm0, %v5049_v61 }
0x1b32   :  { %3377 = vmatprep.subr.mxu1 %v5049_v61 }
0x1b33   :  { %3378 = vmatpush3.msra.mxu1 %v4501_v48 }
0x1b34   :  { %3379 = vmatprep.subr.mxu1 %v5049_v61 }
0x1b35   :  { %3380 = vmatpush3.msra.mxu1 %v4505_v50 }
0x1b36   :  { %3381 = vmatprep.subr.mxu1 %v5049_v61 }
0x1b37   :  { %3382 = vmatpush3.msra.mxu1 %v4509_v63 }
0x1b38   :  { %3383 = vmatprep.subr.mxu1 %v5049_v61 }
0x1b39   :  { %3384 = vmatpush3.msra.mxu1 %v4513_v51 }
0x1b3a   :  { %3385 = vmatprep.subr.mxu1 %v5049_v61 }
0x1b3b   :  { %3386 = vmatpush3.msra.mxu1 %v4517_v19 }
0x1b3c   :  { %3387 = vmatprep.subr.mxu1 %v5049_v61 }
0x1b3d   :  { %3388 = vmatpush3.msra.mxu1 %v4521_v20 }
0x1b3e   :  { %3389 = vmatprep.subr.mxu1 %v5049_v61 }
0x1b3f   :  { %3390 = vmatpush3.msra.mxu1 %v4525_v21 }
0x1b40   :  { %3391 = vmatprep.subr.mxu1 %v5049_v61 }
0x1b41   :  { %3392 = vmatpush3.msra.mxu1 %v4529_v22 }
0x1b42   :  { %3393 = vmatprep.subr.mxu1 %v5049_v61 }
0x1b43   :  { %3394 = vmatpush3.msra.mxu1 %v4533_v23 }
0x1b44   :  { %3395 = vmatprep.subr.mxu1 %v5049_v61 }
0x1b45   :  { %3396 = vmatpush3.msra.mxu1 %v4537_v24 }
0x1b46   :  { %3397 = vmatprep.subr.mxu1 %v5049_v61 }
0x1b47   :  { %3398 = vmatpush3.msra.mxu1 %v4541_v26 }
0x1b48   :  { %3399 = vmatprep.subr.mxu1 %v5049_v61 }
0x1b49   :  { %3400 = vmatpush3.msra.mxu1 %v4545_v27 }
0x1b4a   :  { %3401 = vmatprep.subr.mxu1 %v5049_v61 }
0x1b4b   :  { %3402 = vmatpush3.msra.mxu1 %v4549_v28 }
0x1b4c   :  { %3403 = vmatprep.subr.mxu1 %v5049_v61 }
0x1b4d   :  { %3404 = vmatpush3.msra.mxu1 %v4553_v29 }
0x1b4e   :  { %3405 = vmatprep.subr.mxu1 %v5049_v61 }
0x1b4f   :  { %3406 = vmatpush3.msra.mxu1 %v4557_v30 }
0x1b50   :  { %3445 = vmatprep.subr.mxu1 %v5049_v61 }
0x1bf0   :  { %v1722_v3 = vpop.f32.mrf.mxu1 }
0x1bf1   :  { %v1734_v32 = vmul.f32 %v2295_v41, %v1722_v3 }
0x1bf2   :  { %v3339_v0 = vpop.f32.mrf.mxu1 }
0x1bf3   :  { %v4846_v46 = vsub.f32 %v4730_v57, %v1734_v32 }
0x1bf5   :  { %1736 = vadd.xlane.f32.xlu0 %v4846_v46  ;;  %v1739_v5 = vmul.f32 %v4846_v46, %v4846_v46 }
0x1bf7   :  { %1740 = vadd.xlane.f32.xlu1 %v1739_v5 }
0x1c7e   :  { %v1737_v45 = vpop.xlane.xlu0 %1736 }
0x1c7f   :  { %v1738_v55 = vmul.f32 0.03125, %v1737_v45 }
0x1c80   :  { %v1741_v56 = vpop.xlane.xlu1 %1740 }
0x1c81   :  { %v1743_v62 = vmul.f32 %v1738_v55, %v1738_v55  ;;  %v1742_v4 = vmul.f32 0.03125, %v1741_v56  ;;  %v1745_v60 = vsub.f32 %v4846_v46, %v1738_v55 }
0x1c83   :  { %v1744_v8 = vsub.f32 %v1742_v4, %v1743_v62 }
0x1c85   :  { %v1746_v44 = vadd.f32 1e-05, %v1744_v8 }
0x1c87   :  { %3575 = vrsqrt.f32 %v1746_v44 }
0x1c94   :  { %v3576_v41 = vpop.eup %3575 }
0x1c95   :  { %v1748_v3 = vmul.f32 %v3576_v41, %v1745_v60 }
0x1c97   :  { %v1749_v57 = vmul.f32 %v4571_v25, %v1748_v3 }
0x1c99   :  { %v1750_v32 = vadd.f32 %v4577_v7, %v1749_v57 }
0x1c9b   :  { %3373 = vmatmul.mubr.f32.vlgmr.msra.gmra.mxu0 %v1750_v32 }
0x1c9c   :  { %3411 = vmatpush3.msra.mxu0 %v4580_v9  ;;  %3442 = vmatprep.mubr.msk.f32.mxu0 %vm3769_vm0, %v5049_v61 }
0x1c9d   :  { %3412 = vmatprep.subr.mxu0 %v5049_v61 }
0x1c9e   :  { %3413 = vmatpush3.msra.mxu0 %v4586_v10 }
0x1c9f   :  { %3414 = vmatprep.subr.mxu0 %v5049_v61 }
0x1ca0   :  { %3415 = vmatpush3.msra.mxu0 %v4590_v11 }
0x1ca1   :  { %3416 = vmatprep.subr.mxu0 %v5049_v61 }
0x1ca2   :  { %3417 = vmatpush3.msra.mxu0 %v4594_v12 }
0x1ca3   :  { %3418 = vmatprep.subr.mxu0 %v5049_v61 }
0x1ca4   :  { %3419 = vmatpush3.msra.mxu0 %v4598_v13 }
0x1ca5   :  { %3420 = vmatprep.subr.mxu0 %v5049_v61 }
0x1ca6   :  { %3421 = vmatpush3.msra.mxu0 %v4602_v14 }
0x1ca7   :  { %3422 = vmatprep.subr.mxu0 %v5049_v61 }
0x1ca8   :  { %3423 = vmatpush3.msra.mxu0 %v4606_v15 }
0x1ca9   :  { %3424 = vmatprep.subr.mxu0 %v5049_v61 }
0x1caa   :  { %3425 = vmatpush3.msra.mxu0 %v4610_v6 }
0x1cab   :  { %3426 = vmatprep.subr.mxu0 %v5049_v61 }
0x1cac   :  { %3427 = vmatpush3.msra.mxu0 %v4614_v16 }
0x1cad   :  { %3428 = vmatprep.subr.mxu0 %v5049_v61 }
0x1cae   :  { %3429 = vmatpush3.msra.mxu0 %v4618_v31 }
0x1caf   :  { %3430 = vmatprep.subr.mxu0 %v5049_v61 }
0x1cb0   :  { %3431 = vmatpush3.msra.mxu0 %v4622_v17 }
0x1cb1   :  { %3432 = vmatprep.subr.mxu0 %v5049_v61 }
0x1cb2   :  { %3433 = vmatpush3.msra.mxu0 %v4626_v52 }
0x1cb3   :  { %3434 = vmatprep.subr.mxu0 %v5049_v61 }
0x1cb4   :  { %3435 = vmatpush3.msra.mxu0 %v4630_v1 }
0x1cb5   :  { %3436 = vmatprep.subr.mxu0 %v5049_v61 }
0x1cb6   :  { %3437 = vmatpush3.msra.mxu0 %v4634_v58 }
0x1cb7   :  { %3438 = vmatprep.subr.mxu0 %v5049_v61 }
0x1cb8   :  { %3439 = vmatpush3.msra.mxu0 %v4638_v53 }
0x1cb9   :  { %3440 = vmatprep.subr.mxu0 %v5049_v61 }
0x1cba   :  { %3441 = vmatpush3.msra.mxu0 %v4642_v18 }
0x1cbb   :  { %3480 = vmatprep.subr.mxu0 %v5049_v61 }
0x1d5b   :  { %v1817_v0 = vpop.f32.mrf.mxu0 }
0x1d5c   :  { %v1818_v5 = vadd.f32 %v4649_v43, %v1817_v0 }
0x1d5d   :  { %v3374_v45 = vpop.f32.mrf.mxu0 }
0x1d5e   :  { %v1821_v55 = vmax.f32 %v1818_v5, 0.0 }
0x1d60   :  { %3408 = vmatmul.mubr.f32.vlgmr.msra.gmra.mxu1 %v1821_v55 }
0x1d61   :  { %3446 = vmatpush3.msra.mxu1 %v4425_v33  ;;  %3477 = vmatprep.mubr.msk.f32.mxu1 %vm3769_vm0, %v5049_v61  ;;  %v5071_v33 = vld [vmem:[#allocation19_spill] sm:$0xff] }
0x1d62   :  { %3447 = vmatprep.subr.mxu1 %v5049_v61 }
0x1d63   :  { %3448 = vmatpush3.msra.mxu1 %v4431_v34  ;;  %v5072_v34 = vld [vmem:[#allocation17_spill] sm:$0xff] }
0x1d64   :  { %3449 = vmatprep.subr.mxu1 %v5049_v61 }
0x1d65   :  { %3450 = vmatpush3.msra.mxu1 %v4435_v35  ;;  %v5073_v35 = vld [vmem:[#allocation18_spill] sm:$0xff] }
0x1d66   :  { %3451 = vmatprep.subr.mxu1 %v5049_v61 }
0x1d67   :  { %3452 = vmatpush3.msra.mxu1 %v4439_v49  ;;  %v5074_v49 = vld [vmem:[#allocation22_spill] sm:$0xff] }
0x1d68   :  { %3453 = vmatprep.subr.mxu1 %v5049_v61 }
0x1d69   :  { %3454 = vmatpush3.msra.mxu1 %v4443_v36  ;;  %v5075_v36 = vld [vmem:[#allocation20_spill] sm:$0xff] }
0x1d6a   :  { %3455 = vmatprep.subr.mxu1 %v5049_v61 }
0x1d6b   :  { %3456 = vmatpush3.msra.mxu1 %v4447_v37  ;;  %v5076_v37 = vld [vmem:[#allocation21_spill] sm:$0xff] }
0x1d6c   :  { %3457 = vmatprep.subr.mxu1 %v5049_v61 }
0x1d6d   :  { %3458 = vmatpush3.msra.mxu1 %v4451_v38 }
0x1d6e   :  { %3459 = vmatprep.subr.mxu1 %v5049_v61 }
0x1d6f   :  { %3460 = vmatpush3.msra.mxu1 %v4455_v39 }
0x1d70   :  { %3461 = vmatprep.subr.mxu1 %v5049_v61 }
0x1d71   :  { %3462 = vmatpush3.msra.mxu1 %v4459_v40 }
0x1d72   :  { %3463 = vmatprep.subr.mxu1 %v5049_v61 }
0x1d73   :  { %3464 = vmatpush3.msra.mxu1 %v4463_v42 }
0x1d74   :  { %3465 = vmatprep.subr.mxu1 %v5049_v61 }
0x1d75   :  { %3466 = vmatpush3.msra.mxu1 %v5071_v33 }
0x1d76   :  { %3467 = vmatprep.subr.mxu1 %v5049_v61 }
0x1d77   :  { %3468 = vmatpush3.msra.mxu1 %v5072_v34 }
0x1d78   :  { %3469 = vmatprep.subr.mxu1 %v5049_v61 }
0x1d79   :  { %3470 = vmatpush3.msra.mxu1 %v5073_v35 }
0x1d7a   :  { %3471 = vmatprep.subr.mxu1 %v5049_v61 }
0x1d7b   :  { %3472 = vmatpush3.msra.mxu1 %v5074_v49 }
0x1d7c   :  { %3473 = vmatprep.subr.mxu1 %v5049_v61 }
0x1d7d   :  { %3474 = vmatpush3.msra.mxu1 %v5075_v36 }
0x1d7e   :  { %3475 = vmatprep.subr.mxu1 %v5049_v61 }
0x1d7f   :  { %3476 = vmatpush3.msra.mxu1 %v5076_v37 }
0x1d80   :  { %3515 = vmatprep.subr.mxu1 %v5049_v61 }
0x1e20   :  { %v1888_v38 = vpop.f32.mrf.mxu1 }
0x1e21   :  { %v1889_v39 = vadd.f32 %v4689_v2, %v1888_v38 }
0x1e22   :  { %v3409_v40 = vpop.f32.mrf.mxu1 }
0x1e23   :  { %1893 = vst [vmem:[#allocation12 + $0x30] sm:$0xff] %v1889_v39  ;;  %1894 = vmax.xlane.f32.xlu0 %v1889_v39 }
0x1eac   :  { %v1895_v42 = vpop.xlane.xlu0 %1894 }
0x1ead   :  { %vm1896_vm4 = vcmp.eq.f32.partialorder %v1889_v39, %v1895_v42 }
0x1eae   :  { %v1897_v56 = vsel %vm1896_vm4, %v4046_v59, 128 }
0x1eaf   :  { %v1899_v62 = vshra.s32 %v1897_v56, 16  ;;  %v1898_v8 = vand.u32 65535, %v1897_v56 }
0x1eb1   :  { %v1901_v4 = vcvt.s32.f32 %v1899_v62  ;;  %v1900_v60 = vcvt.s32.f32 %v1898_v8 }
0x1eb3   :  { %1902 = vmin.xlane.f32.xlu1 %v1901_v4 }
0x1f3c   :  { %v1903_v44 = vpop.xlane.xlu1 %1902 }
0x1f3d   :  { %vm1904_vm5 = vcmp.eq.f32.partialorder %v1901_v4, %v1903_v44  ;;  %v1909_v3 = vcvt.f32.s32 %v1903_v44 }
0x1f3e   :  { %v1905_v41 = vsel %vm1904_vm5, %v1900_v60, inf }
0x1f3f   :  { %1906 = vmin.xlane.f32.xlu0 %v1905_v41  ;;  %v1910_v32 = vshll.u32 %v1909_v3, 16 }
0x1fc8   :  { %v1907_v57 = vpop.xlane.xlu0 %1906 }
0x1fc9   :  { %v1908_v0 = vcvt.f32.s32 %v1907_v57 }
0x1fcb   :  { %v1911_v5 = vadd.s32 %v1910_v32, %v1908_v0 }
0x1fcd   :  { %vm1912_vm6 = vcmp.eq.s32.totalorder %v4046_v59, %v1911_v5 }
0x1fce   :  { %3443 = vmatmul.mubr.msk.f32.vlgmr.msra.gmra.mxu0 %vm1912_vm6, %v5050_v54 }
0x1fcf   :  { %3481 = vmatpush3.msra.mxu0 %v4495_v47  ;;  %3512 = vmatprep.mubr.msk.f32.mxu0 %vm3769_vm0, %v5049_v61  ;;  %v2298_v47 = vld [vmem:[#allocation6 + $0x6] ss:$0 sm:$0xff] }
0x1fd0   :  { %3482 = vmatprep.subr.mxu0 %v5049_v61 }
0x1fd1   :  { %3483 = vmatpush3.msra.mxu0 %v4501_v48 }
0x1fd2   :  { %3484 = vmatprep.subr.mxu0 %v5049_v61 }
0x1fd3   :  { %3485 = vmatpush3.msra.mxu0 %v4505_v50 }
0x1fd4   :  { %3486 = vmatprep.subr.mxu0 %v5049_v61 }
0x1fd5   :  { %3487 = vmatpush3.msra.mxu0 %v4509_v63 }
0x1fd6   :  { %3488 = vmatprep.subr.mxu0 %v5049_v61 }
0x1fd7   :  { %3489 = vmatpush3.msra.mxu0 %v4513_v51 }
0x1fd8   :  { %3490 = vmatprep.subr.mxu0 %v5049_v61 }
0x1fd9   :  { %3491 = vmatpush3.msra.mxu0 %v4517_v19 }
0x1fda   :  { %3492 = vmatprep.subr.mxu0 %v5049_v61 }
0x1fdb   :  { %3493 = vmatpush3.msra.mxu0 %v4521_v20 }
0x1fdc   :  { %3494 = vmatprep.subr.mxu0 %v5049_v61 }
0x1fdd   :  { %3495 = vmatpush3.msra.mxu0 %v4525_v21 }
0x1fde   :  { %3496 = vmatprep.subr.mxu0 %v5049_v61 }
0x1fdf   :  { %3497 = vmatpush3.msra.mxu0 %v4529_v22 }
0x1fe0   :  { %3498 = vmatprep.subr.mxu0 %v5049_v61 }
0x1fe1   :  { %3499 = vmatpush3.msra.mxu0 %v4533_v23 }
0x1fe2   :  { %3500 = vmatprep.subr.mxu0 %v5049_v61 }
0x1fe3   :  { %3501 = vmatpush3.msra.mxu0 %v4537_v24 }
0x1fe4   :  { %3502 = vmatprep.subr.mxu0 %v5049_v61 }
0x1fe5   :  { %3503 = vmatpush3.msra.mxu0 %v4541_v26 }
0x1fe6   :  { %3504 = vmatprep.subr.mxu0 %v5049_v61 }
0x1fe7   :  { %3505 = vmatpush3.msra.mxu0 %v4545_v27 }
0x1fe8   :  { %3506 = vmatprep.subr.mxu0 %v5049_v61 }
0x1fe9   :  { %3507 = vmatpush3.msra.mxu0 %v4549_v28 }
0x1fea   :  { %3508 = vmatprep.subr.mxu0 %v5049_v61 }
0x1feb   :  { %3509 = vmatpush3.msra.mxu0 %v4553_v29 }
0x1fec   :  { %3510 = vmatprep.subr.mxu0 %v5049_v61 }
0x1fed   :  { %3511 = vmatpush3.msra.mxu0 %v4557_v30 }
0x208e   :  { %v1981_v48 = vpop.f32.mrf.mxu0 }
0x208f   :  { %v1993_v50 = vmul.f32 %v2298_v47, %v1981_v48 }
0x2090   :  { %v3444_v63 = vpop.f32.mrf.mxu0 }
0x2091   :  { %v1994_v51 = vsub.f32 %v4846_v46, %v1993_v50 }
0x2093   :  { %1995 = vadd.xlane.f32.xlu1 %v1994_v51  ;;  %v1998_v19 = vmul.f32 %v1994_v51, %v1994_v51 }
0x2095   :  { %1999 = vadd.xlane.f32.xlu0 %v1998_v19 }
0x211c   :  { %v1996_v20 = vpop.xlane.xlu1 %1995 }
0x211d   :  { %v1997_v21 = vmul.f32 0.03125, %v1996_v20 }
0x211e   :  { %v2000_v22 = vpop.xlane.xlu0 %1999 }
0x211f   :  { %v2002_v23 = vmul.f32 %v1997_v21, %v1997_v21  ;;  %v2001_v24 = vmul.f32 0.03125, %v2000_v22  ;;  %v2004_v28 = vsub.f32 %v1994_v51, %v1997_v21 }
0x2121   :  { %v2003_v26 = vsub.f32 %v2001_v24, %v2002_v23 }
0x2123   :  { %v2005_v27 = vadd.f32 1e-05, %v2003_v26 }
0x2125   :  { %3577 = vrsqrt.f32 %v2005_v27 }
0x2132   :  { %v3578_v29 = vpop.eup %3577 }
0x2133   :  { %v2007_v30 = vmul.f32 %v3578_v29, %v2004_v28 }
0x2135   :  { %v2008_v45 = vmul.f32 %v4571_v25, %v2007_v30 }
0x2137   :  { %v2009_v55 = vadd.f32 %v4577_v7, %v2008_v45 }
0x2139   :  { %3478 = vmatmul.mubr.f32.vlgmr.msra.gmra.mxu1 %v2009_v55 }
0x213a   :  { %3516 = vmatpush3.msra.mxu1 %v4580_v9  ;;  %3547 = vmatprep.mubr.msk.f32.mxu1 %vm3769_vm0, %v5049_v61 }
0x213b   :  { %3517 = vmatprep.subr.mxu1 %v5049_v61 }
0x213c   :  { %3518 = vmatpush3.msra.mxu1 %v4586_v10 }
0x213d   :  { %3519 = vmatprep.subr.mxu1 %v5049_v61 }
0x213e   :  { %3520 = vmatpush3.msra.mxu1 %v4590_v11 }
0x213f   :  { %3521 = vmatprep.subr.mxu1 %v5049_v61 }
0x2140   :  { %3522 = vmatpush3.msra.mxu1 %v4594_v12 }
0x2141   :  { %3523 = vmatprep.subr.mxu1 %v5049_v61 }
0x2142   :  { %3524 = vmatpush3.msra.mxu1 %v4598_v13 }
0x2143   :  { %3525 = vmatprep.subr.mxu1 %v5049_v61 }
0x2144   :  { %3526 = vmatpush3.msra.mxu1 %v4602_v14 }
0x2145   :  { %3527 = vmatprep.subr.mxu1 %v5049_v61 }
0x2146   :  { %3528 = vmatpush3.msra.mxu1 %v4606_v15 }
0x2147   :  { %3529 = vmatprep.subr.mxu1 %v5049_v61 }
0x2148   :  { %3530 = vmatpush3.msra.mxu1 %v4610_v6 }
0x2149   :  { %3531 = vmatprep.subr.mxu1 %v5049_v61 }
0x214a   :  { %3532 = vmatpush3.msra.mxu1 %v4614_v16 }
0x214b   :  { %3533 = vmatprep.subr.mxu1 %v5049_v61 }
0x214c   :  { %3534 = vmatpush3.msra.mxu1 %v4618_v31 }
0x214d   :  { %3535 = vmatprep.subr.mxu1 %v5049_v61 }
0x214e   :  { %3536 = vmatpush3.msra.mxu1 %v4622_v17 }
0x214f   :  { %3537 = vmatprep.subr.mxu1 %v5049_v61 }
0x2150   :  { %3538 = vmatpush3.msra.mxu1 %v4626_v52 }
0x2151   :  { %3539 = vmatprep.subr.mxu1 %v5049_v61 }
0x2152   :  { %3540 = vmatpush3.msra.mxu1 %v4630_v1 }
0x2153   :  { %3541 = vmatprep.subr.mxu1 %v5049_v61 }
0x2154   :  { %3542 = vmatpush3.msra.mxu1 %v4634_v58 }
0x2155   :  { %3543 = vmatprep.subr.mxu1 %v5049_v61 }
0x2156   :  { %3544 = vmatpush3.msra.mxu1 %v4638_v53 }
0x2157   :  { %3545 = vmatprep.subr.mxu1 %v5049_v61 }
0x2158   :  { %3546 = vmatpush3.msra.mxu1 %v4642_v18 }
0x21f9   :  { %v2076_v25 = vpop.f32.mrf.mxu1 }
0x21fa   :  { %v2077_v7 = vadd.f32 %v4649_v43, %v2076_v25 }
0x21fb   :  { %v3479_v9 = vpop.f32.mrf.mxu1 }
0x21fc   :  { %v2080_v10 = vmax.f32 %v2077_v7, 0.0 }
0x21fe   :  { %3513 = vmatmul.mubr.f32.vlgmr.msra.gmra.mxu0 %v2080_v10 }
0x22be   :  { %v2147_v11 = vpop.f32.mrf.mxu0 }
0x22bf   :  { %v2148_v12 = vadd.f32 %v4689_v2, %v2147_v11 }
0x22c0   :  { %v3514_v13 = vpop.f32.mrf.mxu0 }
0x22c1   :  { %2152 = vst [vmem:[#allocation12 + $0x38] sm:$0xff] %v2148_v12  ;;  %2153 = vmax.xlane.f32.xlu1 %v2148_v12 }
0x234a   :  { %v2154_v14 = vpop.xlane.xlu1 %2153 }
0x234b   :  { %vm2155_vm0 = vcmp.eq.f32.partialorder %v2148_v12, %v2154_v14 }
0x234c   :  { %v2156_v15 = vsel %vm2155_vm0, %v4046_v59, 128 }
0x234d   :  { %v2158_v6 = vshra.s32 %v2156_v15, 16  ;;  %v2157_v16 = vand.u32 65535, %v2156_v15 }
0x234f   :  { %v2160_v61 = vcvt.s32.f32 %v2158_v6  ;;  %v2159_v17 = vcvt.s32.f32 %v2157_v16 }
0x2351   :  { %2161 = vmin.xlane.f32.xlu0 %v2160_v61 }
0x23da   :  { %v2162_v31 = vpop.xlane.xlu0 %2161 }
0x23db   :  { %vm2163_vm7 = vcmp.eq.f32.partialorder %v2160_v61, %v2162_v31  ;;  %v2168_v1 = vcvt.f32.s32 %v2162_v31 }
0x23dc   :  { %v2164_v52 = vsel %vm2163_vm7, %v2159_v17, inf }
0x23dd   :  { %2165 = vmin.xlane.f32.xlu1 %v2164_v52  ;;  %v2169_v53 = vshll.u32 %v2168_v1, 16 }
0x2466   :  { %v2166_v58 = vpop.xlane.xlu1 %2165 }
0x2467   :  { %v2167_v18 = vcvt.f32.s32 %v2166_v58 }
0x2469   :  { %v2170_v43 = vadd.s32 %v2169_v53, %v2167_v18 }
0x246b   :  { %vm2171_vm8 = vcmp.eq.s32.totalorder %v4046_v59, %v2170_v43 }
0x246c   :  { %3548 = vmatmul.mubr.msk.f32.vlgmr.msra.gmra.mxu1 %vm2171_vm8, %v5050_v54 }
0x246d   :  { %3742 = shalt.err (!%p3739_p1)
}
0x246e   :  { %2266 = dma.vmem_to_hbm [thread:$0]  %s2261_s26, 1024, %s5016_s9, [#allocation5], %s3764_s21, %s3764_s21, %s3765_s22  }
0x252c   :  { %v2240_v59 = vpop.f32.mrf.mxu1 }
0x252e   :  { %v3549_v2 = vpop.f32.mrf.mxu1 }
0x252f   :  { %3757 = dma.done.wait [#allocation5], 1024  }
0x2530   :  { %3758 = vsyncadd [#allocation5], 4294966272 }
0x2531   :  { %2270 = vsyncpa [#allocation4], 1 }
0x2532   :  { %2271 = vsyncpa [#allocation7], 1 }
0x2533   :  { %2272 = vsyncpa [#allocation10], 1 }
0x2534   :  { %2273 = vsyncpa [#allocation5], 1 }

// kernel: tpu_custom_call.1
= control target key start
LH: loop header
LB: loop body
LE: loop exit
PB: predicated region body
PF: predicated region fallthrough
CT: control target
= control target key end

     0   :  { %14 = vsyncpa [#allocation4], 0  ;;  %s5007_s0 = inlined_call_operand.hbm [shape: f32[8,128], index: 0, kind: input, shape index: {}]   ;;  %s5008_s1 = inlined_call_operand.hbm [shape: f32[8,1,128], index: 1, kind: input, shape index: {}]   ;;  %s5009_s2 = inlined_call_operand.hbm [shape: f32[128,128], index: 2, kind: input, shape index: {}]   ;;  %s5010_s3 = inlined_call_operand.hbm [shape: f32[128,128], index: 3, kind: input, shape index: {}]   ;;  %s5011_s4 = inlined_call_operand.vmem [shape: f32[1,128], index: 4, kind: input, shape index: {}]   ;;  %s5012_s5 = inlined_call_operand.hbm [shape: f32[128,128], index: 5, kind: input, shape index: {}]   ;;  %s5013_s6 = inlined_call_operand.vmem [shape: f32[1,128], index: 6, kind: input, shape index: {}]   ;;  %s5014_s7 = inlined_call_operand.vmem [shape: f32[1,128], index: 7, kind: input, shape index: {}]   ;;  %s5015_s8 = inlined_call_operand.vmem [shape: f32[1,128], index: 8, kind: input, shape index: {}]   ;;  %s5016_s9 = inlined_call_operand.hbm [shape: f32[8,8,128], index: 9, kind: output, shape index: {}]  }
   0x1   :  { %15 = vsyncpa [#allocation7], 0 }
   0x2   :  { %16 = vsyncpa [#allocation10], 0 }
   0x3   :  { %17 = vsyncpa [#allocation5], 0  ;;  %s3759_s30 = smov [#allocation6]  }
   0x4   :  { %s33_s10 = sshll.u32 %s3759_s30, 4  ;;  %s34_s10 = int_to_ptr.vmem [resolvable:$true] %s33_s10 }
   0x5   :  { %s3639_s11 = scalar_lea.vmem %s34_s10, 128  ;;  %p3644_p1 = scmp.lt.s32.totalorder %s34_s10, %s34_s10 }
   0x6   :  { %p3640_p0 = scmp.ne.s32.totalorder %s34_s10, %s3639_s11  ;;  %p3645_p2 = scmp.lt.s32.totalorder %s3639_s11, %s3639_s11 }
   0x8   :  { %p3646_p3 = por %p3645_p2, %p3644_p1 }
   0xa   :  { %p3647_p4 = pnand %p3646_p3, %p3640_p0 }
   0xc   :  { %3650 = shalt.err (!%p3647_p4)
}
   0xd   :  { %s3760_s12 = smov 16   ;;  %s3761_s13 = smov 1  }
   0xe   :  { %39 = dma.hbm_to_vmem [thread:$0]  %s5008_s1, 128, %s34_s10, [#allocation7], %s3760_s12, %s3760_s12, %s3761_s13  }
   0xf   :  { %s3762_s16 = smov [#allocation9]   ;;  %s3763_s18 = smov [#allocation3]  }
  0x10   :  { %s57_s17 = sshll.u32 %s3762_s16, 4  ;;  %s24_s19 = sshll.u32 %s3763_s18, 4  ;;  %s58_s17 = int_to_ptr.vmem [resolvable:$true] %s57_s17  ;;  %s25_s19 = int_to_ptr.vmem [resolvable:$true] %s24_s19 }
  0x11   :  { %s3659_s20 = scalar_lea.vmem %s58_s17, 2048  ;;  %p3664_p6 = scmp.lt.s32.totalorder %s58_s17, %s58_s17 }
  0x12   :  { %p3660_p5 = scmp.ne.s32.totalorder %s58_s17, %s3659_s20  ;;  %p3665_p7 = scmp.lt.s32.totalorder %s3659_s20, %s3659_s20 }
  0x14   :  { %p3666_p8 = por %p3665_p7, %p3664_p6 }
  0x16   :  { %p3667_p9 = pnand %p3666_p8, %p3660_p5 }
  0x18   :  { %3670 = shalt.err (!%p3667_p9)
}
  0x19   :  { %s3764_s21 = smov 128   ;;  %s3765_s22 = smov 8  }
  0x1a   :  { %63 = dma.hbm_to_vmem [thread:$0]  %s5010_s3, 2048, %s58_s17, [#allocation10], %s3764_s21, %s3764_s21, %s3765_s22  }
  0x1b   :  { %s3679_s1 = scalar_lea.vmem %s25_s19, 128  ;;  %p3684_p11 = scmp.lt.s32.totalorder %s25_s19, %s25_s19 }
  0x1c   :  { %p3680_p10 = scmp.ne.s32.totalorder %s25_s19, %s3679_s1  ;;  %p3685_p12 = scmp.lt.s32.totalorder %s3679_s1, %s3679_s1 }
  0x1e   :  { %p3686_p13 = por %p3685_p12, %p3684_p11 }
  0x20   :  { %p3687_p0 = pnand %p3686_p13, %p3680_p10 }
  0x22   :  { %3690 = shalt.err (!%p3687_p0)
}
  0x23   :  { %27 = dma.hbm_to_vmem [thread:$0]  %s5007_s0, 128, %s25_s19, [#allocation4]  }
  0x24   :  { %s3766_s27 = smov [#allocation8]   ;;  %s3767_s29 = smov [#allocation11]  }
  0x25   :  { %s45_s28 = sshll.u32 %s3766_s27, 4  ;;  %s71_s30 = sshll.u32 %s3767_s29, 4  ;;  %s46_s28 = int_to_ptr.vmem [resolvable:$true] %s45_s28  ;;  %s72_s30 = int_to_ptr.vmem [resolvable:$true] %s71_s30 }
  0x26   :  { %s3699_s10 = scalar_lea.vmem %s46_s28, 2048  ;;  %p3704_p2 = scmp.lt.s32.totalorder %s46_s28, %s46_s28 }
  0x27   :  { %p3700_p1 = scmp.ne.s32.totalorder %s46_s28, %s3699_s10  ;;  %p3705_p3 = scmp.lt.s32.totalorder %s3699_s10, %s3699_s10 }
  0x29   :  { %p3706_p4 = por %p3705_p3, %p3704_p2 }
  0x2b   :  { %p3707_p5 = pnand %p3706_p4, %p3700_p1 }
  0x2d   :  { %3710 = shalt.err (!%p3707_p5)
}
  0x2e   :  { %51 = dma.hbm_to_vmem [thread:$0]  %s5009_s2, 2048, %s46_s28, [#allocation7], %s3764_s21, %s3764_s21, %s3765_s22  }
  0x2f   :  { %s3719_s0 = scalar_lea.vmem %s72_s30, 2048  ;;  %p3724_p7 = scmp.lt.s32.totalorder %s72_s30, %s72_s30 }
  0x30   :  { %p3720_p6 = scmp.ne.s32.totalorder %s72_s30, %s3719_s0  ;;  %p3725_p8 = scmp.lt.s32.totalorder %s3719_s0, %s3719_s0 }
  0x32   :  { %p3726_p9 = por %p3725_p8, %p3724_p7 }
  0x34   :  { %p3727_p10 = pnand %p3726_p9, %p3720_p6 }
  0x36   :  { %3730 = shalt.err (!%p3727_p10)
}
  0x37   :  { %77 = dma.hbm_to_vmem [thread:$0]  %s5012_s5, 2048, %s72_s30, [#allocation10], %s3764_s21, %s3764_s21, %s3765_s22  }
  0x38   :  { %3751 = dma.done.wait [#allocation4], 128  }
  0x39   :  { %3752 = vsyncadd [#allocation4], 4294967168 }
  0x3a   :  { %3753 = dma.done.wait [#allocation7], 2176  }
  0x3b   :  { %3754 = vsyncadd [#allocation7], 4294965120 }
  0x3c   :  { %3755 = dma.done.wait [#allocation10], 4096  }
  0x3d   :  { %3756 = vsyncadd [#allocation10], 4294963200  ;;  %v5025_v0 = vmov 0.0   ;;  %v3848_v1 = vld [vmem:[#allocation3] sm:$0xff]  ;;  %v3850_v2 = vld [vmem:[#allocation9 + $0x78] sm:$0xff]  ;;  %vm3769_vm0 = vmmov 0   ;;  %v339_v58 = vlaneseq }
  0x3e   :  { %2710 = vmatprep.subr.mxu0 %v5025_v0  ;;  %2745 = vmatprep.subr.mxu1 %v5025_v0  ;;  %v161_v3 = vmul.f32 %v3848_v1, %v3848_v1  ;;  %v3857_v4 = vld [vmem:[#allocation9 + $0x70] sm:$0xff]  ;;  %v3861_v5 = vld [vmem:[#allocation9 + $0x68] sm:$0xff]  ;;  %v3865_v6 = vld [vmem:[#allocation9 + $0x60] sm:$0xff] }
  0x3f   :  { %158 = vadd.xlane.f32.xlu0 %v3848_v1  ;;  %2711 = vmatpush3.msra.mxu0 %v3850_v2  ;;  %v3869_v7 = vld [vmem:[#allocation9 + $0x58] sm:$0xff]  ;;  %v3873_v8 = vld [vmem:[#allocation9 + $0x50] sm:$0xff]  ;;  %v3877_v9 = vld [vmem:[#allocation9 + $0x48] sm:$0xff]  ;;  %v4046_v59 = vand.u32 127, %v339_v58 }
  0x40   :  { %2712 = vmatprep.subr.mxu0 %v5025_v0  ;;  %v3879_v10 = vld [vmem:[#allocation9 + $0x40] sm:$0xff]  ;;  %2742 = vmatprep.mubr.msk.f32.mxu0 %vm3769_vm0, %v5025_v0  ;;  %v3885_v11 = vld [vmem:[#allocation9 + $0x38] sm:$0xff]  ;;  %v3891_v12 = vld [vmem:[#allocation9 + $0x30] sm:$0xff] }
  0x41   :  { %2713 = vmatpush3.msra.mxu0 %v3857_v4  ;;  %2777 = vmatprep.mubr.msk.f32.mxu1 %vm3769_vm0, %v5025_v0  ;;  %v3895_v13 = vld [vmem:[#allocation9 + $0x28] sm:$0xff]  ;;  %v3899_v14 = vld [vmem:[#allocation9 + $0x20] sm:$0xff]  ;;  %v3903_v15 = vld [vmem:[#allocation9 + $0x18] sm:$0xff] }
  0x42   :  { %2714 = vmatprep.subr.mxu0 %v5025_v0  ;;  %v3907_v16 = vld [vmem:[#allocation9 + $0x10] sm:$0xff]  ;;  %v3911_v17 = vld [vmem:[#allocation9 + $0x8] sm:$0xff]  ;;  %v3915_v18 = vld [vmem:[#allocation9] sm:$0xff] }
  0x43   :  { %162 = vadd.xlane.f32.xlu0 %v161_v3  ;;  %2715 = vmatpush3.msra.mxu0 %v3861_v5  ;;  %5043 = vst [vmem:[#allocation17_spill] sm:$0xff] %v3911_v17  ;;  %5044 = vst [vmem:[#allocation18_spill] sm:$0xff] %v3915_v18  ;;  %v3920_v19 = vld [vmem:[#allocation11 + $0x78] sm:$0xff]  ;;  %v3922_v20 = vld [vmem:[#allocation11 + $0x70] sm:$0xff] }
  0x44   :  { %2716 = vmatprep.subr.mxu0 %v5025_v0  ;;  %2746 = vmatpush3.msra.mxu1 %v3920_v19  ;;  %v3927_v21 = vld [vmem:[#allocation11 + $0x68] sm:$0xff]  ;;  %v3931_v22 = vld [vmem:[#allocation11 + $0x60] sm:$0xff]  ;;  %v3935_v23 = vld [vmem:[#allocation11 + $0x58] sm:$0xff] }
  0x45   :  { %2717 = vmatpush3.msra.mxu0 %v3865_v6  ;;  %2747 = vmatprep.subr.mxu1 %v5025_v0  ;;  %v3939_v24 = vld [vmem:[#allocation11 + $0x50] sm:$0xff]  ;;  %v3943_v25 = vld [vmem:[#allocation11 + $0x48] sm:$0xff]  ;;  %v3947_v26 = vld [vmem:[#allocation11 + $0x40] sm:$0xff] }
  0x46   :  { %2718 = vmatprep.subr.mxu0 %v5025_v0  ;;  %2748 = vmatpush3.msra.mxu1 %v3922_v20  ;;  %v3951_v27 = vld [vmem:[#allocation11 + $0x38] sm:$0xff]  ;;  %v3955_v28 = vld [vmem:[#allocation11 + $0x30] sm:$0xff]  ;;  %v3959_v29 = vld [vmem:[#allocation11 + $0x28] sm:$0xff] }
  0x47   :  { %2719 = vmatpush3.msra.mxu0 %v3869_v7  ;;  %2749 = vmatprep.subr.mxu1 %v5025_v0  ;;  %v3963_v30 = vld [vmem:[#allocation11 + $0x20] sm:$0xff]  ;;  %v3967_v31 = vld [vmem:[#allocation11 + $0x18] sm:$0xff]  ;;  %v3977_v41 = vld [vmem:[%s5014_s7] ss:$0 sm:$0xff] }
  0x48   :  { %2720 = vmatprep.subr.mxu0 %v5025_v0  ;;  %2750 = vmatpush3.msra.mxu1 %v3927_v21  ;;  %v3982_v43 = vld [vmem:[%s5015_s8] ss:$0 sm:$0xff]  ;;  %v3992_v47 = vld [vmem:[#allocation11 + $0x8] sm:$0xff]  ;;  %v3996_v48 = vld [vmem:[#allocation11] sm:$0xff] }
  0x49   :  { %2721 = vmatpush3.msra.mxu0 %v3873_v8  ;;  %2751 = vmatprep.subr.mxu1 %v5025_v0  ;;  %v3988_v46 = vld [vmem:[#allocation11 + $0x10] sm:$0xff]  ;;  %5046 = vst [vmem:[#allocation20_spill] sm:$0xff] %v3992_v47  ;;  %5047 = vst [vmem:[#allocation21_spill] sm:$0xff] %v3996_v48  ;;  %v4049_v3 = vld [vmem:[#allocation8 + $0x78] sm:$0xff] }
  0x4a   :  { %2722 = vmatprep.subr.mxu0 %v5025_v0  ;;  %2752 = vmatpush3.msra.mxu1 %v3931_v22  ;;  %5045 = vst [vmem:[#allocation19_spill] sm:$0xff] %v3988_v46  ;;  %v4003_v49 = vld [vmem:[%s5011_s4] ss:$0 sm:$0xff] }
  0x4b   :  { %2723 = vmatpush3.msra.mxu0 %v3877_v9  ;;  %2753 = vmatprep.subr.mxu1 %v5025_v0  ;;  %v4043_v54 = vld [vmem:[%s5013_s6] ss:$0 sm:$0xff] }
  0x4c   :  { %2724 = vmatprep.subr.mxu0 %v5025_v0  ;;  %2754 = vmatpush3.msra.mxu1 %v3935_v23  ;;  %5048 = vst [vmem:[#allocation22_spill] sm:$0xff] %v4043_v54 }
  0x4d   :  { %2725 = vmatpush3.msra.mxu0 %v3879_v10  ;;  %2755 = vmatprep.subr.mxu1 %v5025_v0 }
  0x4e   :  { %2726 = vmatprep.subr.mxu0 %v5025_v0  ;;  %2756 = vmatpush3.msra.mxu1 %v3939_v24 }
  0x4f   :  { %2727 = vmatpush3.msra.mxu0 %v3885_v11  ;;  %2757 = vmatprep.subr.mxu1 %v5025_v0 }
  0x50   :  { %2728 = vmatprep.subr.mxu0 %v5025_v0  ;;  %2758 = vmatpush3.msra.mxu1 %v3943_v25 }
  0x51   :  { %2729 = vmatpush3.msra.mxu0 %v3891_v12  ;;  %2759 = vmatprep.subr.mxu1 %v5025_v0 }
  0x52   :  { %2730 = vmatprep.subr.mxu0 %v5025_v0  ;;  %2760 = vmatpush3.msra.mxu1 %v3947_v26 }
  0x53   :  { %2731 = vmatpush3.msra.mxu0 %v3895_v13  ;;  %2761 = vmatprep.subr.mxu1 %v5025_v0 }
  0x54   :  { %2732 = vmatprep.subr.mxu0 %v5025_v0  ;;  %2762 = vmatpush3.msra.mxu1 %v3951_v27 }
  0x55   :  { %2733 = vmatpush3.msra.mxu0 %v3899_v14  ;;  %2763 = vmatprep.subr.mxu1 %v5025_v0 }
  0x56   :  { %2734 = vmatprep.subr.mxu0 %v5025_v0  ;;  %2764 = vmatpush3.msra.mxu1 %v3955_v28 }
  0x57   :  { %2735 = vmatpush3.msra.mxu0 %v3903_v15  ;;  %2765 = vmatprep.subr.mxu1 %v5025_v0 }
  0x58   :  { %2736 = vmatprep.subr.mxu0 %v5025_v0  ;;  %2766 = vmatpush3.msra.mxu1 %v3959_v29 }
  0x59   :  { %2737 = vmatpush3.msra.mxu0 %v3907_v16  ;;  %2767 = vmatprep.subr.mxu1 %v5025_v0 }
  0x5a   :  { %2738 = vmatprep.subr.mxu0 %v5025_v0  ;;  %2768 = vmatpush3.msra.mxu1 %v3963_v30 }
  0x5b   :  { %2739 = vmatpush3.msra.mxu0 %v3911_v17  ;;  %2769 = vmatprep.subr.mxu1 %v5025_v0 }
  0x5c   :  { %2740 = vmatprep.subr.mxu0 %v5025_v0  ;;  %2770 = vmatpush3.msra.mxu1 %v3967_v31 }
  0x5d   :  { %2741 = vmatpush3.msra.mxu0 %v3915_v18  ;;  %2771 = vmatprep.subr.mxu1 %v5025_v0 }
  0x5e   :  { %2780 = vmatprep.subr.mxu0 %v5025_v0  ;;  %2772 = vmatpush3.msra.mxu1 %v3988_v46 }
  0x5f   :  { %2773 = vmatprep.subr.mxu1 %v5025_v0 }
  0x60   :  { %2774 = vmatpush3.msra.mxu1 %v3992_v47 }
  0x61   :  { %2775 = vmatprep.subr.mxu1 %v5025_v0 }
  0x62   :  { %2776 = vmatpush3.msra.mxu1 %v3996_v48 }
  0x63   :  { %2815 = vmatprep.subr.mxu1 %v5025_v0 }
  0xc8   :  { %v159_v32 = vpop.xlane.xlu0 %158 }
  0xc9   :  { %v160_v33 = vmul.f32 0.03125, %v159_v32  ;;  %v4051_v32 = vld [vmem:[#allocation8 + $0x70] sm:$0xff] }
  0xcb   :  { %v165_v35 = vmul.f32 %v160_v33, %v160_v33  ;;  %v167_v39 = vsub.f32 %v3848_v1, %v160_v33  ;;  %v4055_v33 = vld [vmem:[#allocation8 + $0x68] sm:$0xff] }
  0xcc   :  { %v163_v34 = vpop.xlane.xlu0 %162 }
  0xcd   :  { %v164_v36 = vmul.f32 0.03125, %v163_v34  ;;  %v4059_v34 = vld [vmem:[#allocation8 + $0x60] sm:$0xff] }
  0xcf   :  { %v166_v37 = vsub.f32 %v164_v36, %v165_v35  ;;  %v4063_v35 = vld [vmem:[#allocation8 + $0x58] sm:$0xff]  ;;  %v4067_v36 = vld [vmem:[#allocation8 + $0x50] sm:$0xff] }
  0xd1   :  { %v168_v38 = vadd.f32 1e-05, %v166_v37  ;;  %v4071_v37 = vld [vmem:[#allocation8 + $0x48] sm:$0xff] }
  0xd3   :  { %3563 = vrsqrt.f32 %v168_v38  ;;  %v4075_v38 = vld [vmem:[#allocation8 + $0x40] sm:$0xff] }
  0xe0   :  { %v3564_v40 = vpop.eup %3563 }
  0xe1   :  { %v170_v42 = vmul.f32 %v3564_v40, %v167_v39  ;;  %v4079_v39 = vld [vmem:[#allocation8 + $0x38] sm:$0xff]  ;;  %v4083_v40 = vld [vmem:[#allocation8 + $0x30] sm:$0xff] }
  0xe3   :  { %v177_v44 = vmul.f32 %v3977_v41, %v170_v42  ;;  %v4087_v42 = vld [vmem:[#allocation8 + $0x28] sm:$0xff] }
  0xe5   :  { %v184_v45 = vadd.f32 %v3982_v43, %v177_v44  ;;  %v4091_v44 = vld [vmem:[#allocation8 + $0x20] sm:$0xff] }
  0xe7   :  { %2743 = vmatmul.mubr.f32.vlgmr.msra.gmra.mxu0 %v184_v45  ;;  %v4095_v45 = vld [vmem:[#allocation8 + $0x18] sm:$0xff] }
  0xe8   :  { %2812 = vmatprep.mubr.msk.f32.mxu0 %vm3769_vm0, %v5025_v0  ;;  %2781 = vmatpush3.msra.mxu0 %v4049_v3 }
  0xe9   :  { %2782 = vmatprep.subr.mxu0 %v5025_v0 }
  0xea   :  { %2783 = vmatpush3.msra.mxu0 %v4051_v32 }
  0xeb   :  { %2784 = vmatprep.subr.mxu0 %v5025_v0 }
  0xec   :  { %2785 = vmatpush3.msra.mxu0 %v4055_v33 }
  0xed   :  { %2786 = vmatprep.subr.mxu0 %v5025_v0 }
  0xee   :  { %2787 = vmatpush3.msra.mxu0 %v4059_v34 }
  0xef   :  { %2788 = vmatprep.subr.mxu0 %v5025_v0 }
  0xf0   :  { %2789 = vmatpush3.msra.mxu0 %v4063_v35 }
  0xf1   :  { %2790 = vmatprep.subr.mxu0 %v5025_v0 }
  0xf2   :  { %2791 = vmatpush3.msra.mxu0 %v4067_v36 }
  0xf3   :  { %2792 = vmatprep.subr.mxu0 %v5025_v0 }
  0xf4   :  { %2793 = vmatpush3.msra.mxu0 %v4071_v37 }
  0xf5   :  { %2794 = vmatprep.subr.mxu0 %v5025_v0 }
  0xf6   :  { %2795 = vmatpush3.msra.mxu0 %v4075_v38 }
  0xf7   :  { %2796 = vmatprep.subr.mxu0 %v5025_v0 }
  0xf8   :  { %2797 = vmatpush3.msra.mxu0 %v4079_v39 }
  0xf9   :  { %2798 = vmatprep.subr.mxu0 %v5025_v0 }
  0xfa   :  { %2799 = vmatpush3.msra.mxu0 %v4083_v40 }
  0xfb   :  { %2800 = vmatprep.subr.mxu0 %v5025_v0 }
  0xfc   :  { %2801 = vmatpush3.msra.mxu0 %v4087_v42 }
  0xfd   :  { %2802 = vmatprep.subr.mxu0 %v5025_v0 }
  0xfe   :  { %2803 = vmatpush3.msra.mxu0 %v4091_v44 }
  0xff   :  { %2804 = vmatprep.subr.mxu0 %v5025_v0 }
 0x100   :  { %2805 = vmatpush3.msra.mxu0 %v4095_v45 }
 0x101   :  { %2806 = vmatprep.subr.mxu0 %v5025_v0 }
 0x1a7   :  { %v257_v50 = vpop.f32.mrf.mxu0 }
 0x1a8   :  { %v258_v51 = vadd.f32 %v4003_v49, %v257_v50 }
 0x1a9   :  { %v2744_v52 = vpop.f32.mrf.mxu0 }
 0x1aa   :  { %v261_v53 = vmax.f32 %v258_v51, 0.0 }
 0x1ac   :  { %2778 = vmatmul.mubr.f32.vlgmr.msra.gmra.mxu1 %v261_v53 }
 0x1ad   :  { %2816 = vmatpush3.msra.mxu1 %v3850_v2  ;;  %2847 = vmatprep.mubr.msk.f32.mxu1 %vm3769_vm0, %v5025_v0 }
 0x1ae   :  { %2817 = vmatprep.subr.mxu1 %v5025_v0 }
 0x1af   :  { %2818 = vmatpush3.msra.mxu1 %v3857_v4 }
 0x1b0   :  { %2819 = vmatprep.subr.mxu1 %v5025_v0 }
 0x1b1   :  { %2820 = vmatpush3.msra.mxu1 %v3861_v5 }
 0x1b2   :  { %2821 = vmatprep.subr.mxu1 %v5025_v0 }
 0x1b3   :  { %2822 = vmatpush3.msra.mxu1 %v3865_v6 }
 0x1b4   :  { %2823 = vmatprep.subr.mxu1 %v5025_v0 }
 0x1b5   :  { %2824 = vmatpush3.msra.mxu1 %v3869_v7 }
 0x1b6   :  { %2825 = vmatprep.subr.mxu1 %v5025_v0 }
 0x1b7   :  { %2826 = vmatpush3.msra.mxu1 %v3873_v8 }
 0x1b8   :  { %2827 = vmatprep.subr.mxu1 %v5025_v0 }
 0x1b9   :  { %2828 = vmatpush3.msra.mxu1 %v3877_v9 }
 0x1ba   :  { %2829 = vmatprep.subr.mxu1 %v5025_v0 }
 0x1bb   :  { %2830 = vmatpush3.msra.mxu1 %v3879_v10 }
 0x1bc   :  { %2831 = vmatprep.subr.mxu1 %v5025_v0 }
 0x1bd   :  { %2832 = vmatpush3.msra.mxu1 %v3885_v11 }
 0x1be   :  { %2833 = vmatprep.subr.mxu1 %v5025_v0 }
 0x1bf   :  { %2834 = vmatpush3.msra.mxu1 %v3891_v12 }
 0x1c0   :  { %2835 = vmatprep.subr.mxu1 %v5025_v0 }
 0x1c1   :  { %2836 = vmatpush3.msra.mxu1 %v3895_v13 }
 0x1c2   :  { %2837 = vmatprep.subr.mxu1 %v5025_v0 }
 0x1c3   :  { %2838 = vmatpush3.msra.mxu1 %v3899_v14 }
 0x1c4   :  { %2839 = vmatprep.subr.mxu1 %v5025_v0 }
 0x1c5   :  { %2840 = vmatpush3.msra.mxu1 %v3903_v15 }
 0x1c6   :  { %2841 = vmatprep.subr.mxu1 %v5025_v0 }
 0x1c7   :  { %2842 = vmatpush3.msra.mxu1 %v3907_v16 }
 0x1c8   :  { %2843 = vmatprep.subr.mxu1 %v5025_v0 }
 0x1c9   :  { %2844 = vmatpush3.msra.mxu1 %v3911_v17 }
 0x1ca   :  { %2845 = vmatprep.subr.mxu1 %v5025_v0 }
 0x1cb   :  { %2846 = vmatpush3.msra.mxu1 %v3915_v18 }
 0x1cc   :  { %2885 = vmatprep.subr.mxu1 %v5025_v0 }
 0x26c   :  { %v334_v55 = vpop.f32.mrf.mxu1 }
 0x26d   :  { %v335_v56 = vadd.f32 %v4043_v54, %v334_v55  ;;  %v4101_v55 = vld [vmem:[#allocation8 + $0x10] sm:$0xff] }
 0x26e   :  { %v2779_v57 = vpop.f32.mrf.mxu1  ;;  %2807 = vmatpush3.msra.mxu0 %v4101_v55 }
 0x26f   :  { %338 = vst [vmem:[#allocation12] sm:$0xff] %v335_v56  ;;  %341 = vmax.xlane.f32.xlu1 %v335_v56  ;;  %2808 = vmatprep.subr.mxu0 %v5025_v0  ;;  %v4109_v57 = vld [vmem:[#allocation8] sm:$0xff] }
 0x2f8   :  { %v342_v60 = vpop.xlane.xlu1 %341 }
 0x2f9   :  { %vm343_vm1 = vcmp.eq.f32.partialorder %v335_v56, %v342_v60  ;;  %v4105_v56 = vld [vmem:[#allocation8 + $0x8] sm:$0xff] }
 0x2fa   :  { %v344_v61 = vsel %vm343_vm1, %v4046_v59, 128  ;;  %2809 = vmatpush3.msra.mxu0 %v4105_v56 }
 0x2fb   :  { %v346_v62 = vshra.s32 %v344_v61, 16  ;;  %v345_v50 = vand.u32 65535, %v344_v61  ;;  %2810 = vmatprep.subr.mxu0 %v5025_v0 }
 0x2fc   :  { %2811 = vmatpush3.msra.mxu0 %v4109_v57 }
 0x2fd   :  { %v348_v63 = vcvt.s32.f32 %v346_v62  ;;  %v347_v52 = vcvt.s32.f32 %v345_v50  ;;  %2850 = vmatprep.subr.mxu0 %v5025_v0  ;;  %v5017_v50 = vmov 1.0  }
 0x2ff   :  { %349 = vmin.xlane.f32.xlu1 %v348_v63 }
 0x388   :  { %v350_v51 = vpop.xlane.xlu1 %349 }
 0x389   :  { %vm351_vm2 = vcmp.eq.f32.partialorder %v348_v63, %v350_v51  ;;  %v356_v58 = vcvt.f32.s32 %v350_v51  ;;  %v2280_v51 = vld [vmem:[#allocation6] ss:$0 sm:$0xff] }
 0x38a   :  { %v352_v53 = vsel %vm351_vm2, %v347_v52, inf }
 0x38b   :  { %353 = vmin.xlane.f32.xlu0 %v352_v53  ;;  %v357_v61 = vshll.u32 %v356_v58, 16 }
 0x414   :  { %v354_v60 = vpop.xlane.xlu0 %353 }
 0x415   :  { %v355_v62 = vcvt.f32.s32 %v354_v60 }
 0x417   :  { %v358_v63 = vadd.s32 %v357_v61, %v355_v62 }
 0x419   :  { %vm359_vm3 = vcmp.eq.s32.totalorder %v4046_v59, %v358_v63 }
 0x41a   :  { %2813 = vmatmul.mubr.msk.f32.vlgmr.msra.gmra.mxu0 %vm359_vm3, %v5017_v50 }
 0x41b   :  { %2851 = vmatpush3.msra.mxu0 %v3920_v19  ;;  %2882 = vmatprep.mubr.msk.f32.mxu0 %vm3769_vm0, %v5025_v0 }
 0x41c   :  { %2852 = vmatprep.subr.mxu0 %v5025_v0 }
 0x41d   :  { %2853 = vmatpush3.msra.mxu0 %v3922_v20 }
 0x41e   :  { %2854 = vmatprep.subr.mxu0 %v5025_v0 }
 0x41f   :  { %2855 = vmatpush3.msra.mxu0 %v3927_v21 }
 0x420   :  { %2856 = vmatprep.subr.mxu0 %v5025_v0 }
 0x421   :  { %2857 = vmatpush3.msra.mxu0 %v3931_v22 }
 0x422   :  { %2858 = vmatprep.subr.mxu0 %v5025_v0 }
 0x423   :  { %2859 = vmatpush3.msra.mxu0 %v3935_v23 }
 0x424   :  { %2860 = vmatprep.subr.mxu0 %v5025_v0 }
 0x425   :  { %2861 = vmatpush3.msra.mxu0 %v3939_v24 }
 0x426   :  { %2862 = vmatprep.subr.mxu0 %v5025_v0 }
 0x427   :  { %2863 = vmatpush3.msra.mxu0 %v3943_v25 }
 0x428   :  { %2864 = vmatprep.subr.mxu0 %v5025_v0 }
 0x429   :  { %2865 = vmatpush3.msra.mxu0 %v3947_v26 }
 0x42a   :  { %2866 = vmatprep.subr.mxu0 %v5025_v0 }
 0x42b   :  { %2867 = vmatpush3.msra.mxu0 %v3951_v27 }
 0x42c   :  { %2868 = vmatprep.subr.mxu0 %v5025_v0 }
 0x42d   :  { %2869 = vmatpush3.msra.mxu0 %v3955_v28 }
 0x42e   :  { %2870 = vmatprep.subr.mxu0 %v5025_v0 }
 0x42f   :  { %2871 = vmatpush3.msra.mxu0 %v3959_v29 }
 0x430   :  { %2872 = vmatprep.subr.mxu0 %v5025_v0 }
 0x431   :  { %2873 = vmatpush3.msra.mxu0 %v3963_v30 }
 0x432   :  { %2874 = vmatprep.subr.mxu0 %v5025_v0 }
 0x433   :  { %2875 = vmatpush3.msra.mxu0 %v3967_v31 }
 0x434   :  { %2876 = vmatprep.subr.mxu0 %v5025_v0 }
 0x435   :  { %2877 = vmatpush3.msra.mxu0 %v3988_v46 }
 0x436   :  { %2878 = vmatprep.subr.mxu0 %v5025_v0 }
 0x437   :  { %2879 = vmatpush3.msra.mxu0 %v3992_v47 }
 0x438   :  { %2880 = vmatprep.subr.mxu0 %v5025_v0 }
 0x439   :  { %2881 = vmatpush3.msra.mxu0 %v3996_v48 }
 0x43a   :  { %2920 = vmatprep.subr.mxu0 %v5025_v0 }
 0x4da   :  { %v428_v52 = vpop.f32.mrf.mxu0 }
 0x4db   :  { %v439_v53 = vmul.f32 %v2280_v51, %v428_v52 }
 0x4dc   :  { %v2814_v58 = vpop.f32.mrf.mxu0 }
 0x4dd   :  { %v4150_v60 = vsub.f32 %v3848_v1, %v439_v53 }
 0x4df   :  { %441 = vadd.xlane.f32.xlu1 %v4150_v60  ;;  %v444_v61 = vmul.f32 %v4150_v60, %v4150_v60 }
 0x4e1   :  { %445 = vadd.xlane.f32.xlu0 %v444_v61  ;;  %v5049_v61 = vmov 0.0  }
 0x568   :  { %v442_v62 = vpop.xlane.xlu1 %441 }
 0x569   :  { %v443_v63 = vmul.f32 0.03125, %v442_v62 }
 0x56a   :  { %v446_v50 = vpop.xlane.xlu0 %445 }
 0x56b   :  { %v448_v47 = vmul.f32 %v443_v63, %v443_v63  ;;  %v447_v48 = vmul.f32 0.03125, %v446_v50  ;;  %v450_v51 = vsub.f32 %v4150_v60, %v443_v63 }
 0x56d   :  { %v449_v46 = vsub.f32 %v447_v48, %v448_v47 }
 0x56f   :  { %v451_v0 = vadd.f32 1e-05, %v449_v46 }
 0x571   :  { %3565 = vrsqrt.f32 %v451_v0 }
 0x57e   :  { %v3566_v52 = vpop.eup %3565 }
 0x57f   :  { %v453_v58 = vmul.f32 %v3566_v52, %v450_v51 }
 0x581   :  { %v454_v1 = vmul.f32 %v3977_v41, %v453_v58 }
 0x583   :  { %v455_v53 = vadd.f32 %v3982_v43, %v454_v1 }
 0x585   :  { %2848 = vmatmul.mubr.f32.vlgmr.msra.gmra.mxu1 %v455_v53 }
 0x586   :  { %2886 = vmatpush3.msra.mxu1 %v4049_v3  ;;  %2917 = vmatprep.mubr.msk.f32.mxu1 %vm3769_vm0, %v5049_v61 }
 0x587   :  { %2887 = vmatprep.subr.mxu1 %v5049_v61 }
 0x588   :  { %2888 = vmatpush3.msra.mxu1 %v4051_v32 }
 0x589   :  { %2889 = vmatprep.subr.mxu1 %v5049_v61 }
 0x58a   :  { %2890 = vmatpush3.msra.mxu1 %v4055_v33 }
 0x58b   :  { %2891 = vmatprep.subr.mxu1 %v5049_v61 }
 0x58c   :  { %2892 = vmatpush3.msra.mxu1 %v4059_v34 }
 0x58d   :  { %2893 = vmatprep.subr.mxu1 %v5049_v61 }
 0x58e   :  { %2894 = vmatpush3.msra.mxu1 %v4063_v35 }
 0x58f   :  { %2895 = vmatprep.subr.mxu1 %v5049_v61 }
 0x590   :  { %2896 = vmatpush3.msra.mxu1 %v4067_v36 }
 0x591   :  { %2897 = vmatprep.subr.mxu1 %v5049_v61 }
 0x592   :  { %2898 = vmatpush3.msra.mxu1 %v4071_v37 }
 0x593   :  { %2899 = vmatprep.subr.mxu1 %v5049_v61 }
 0x594   :  { %2900 = vmatpush3.msra.mxu1 %v4075_v38 }
 0x595   :  { %2901 = vmatprep.subr.mxu1 %v5049_v61 }
 0x596   :  { %2902 = vmatpush3.msra.mxu1 %v4079_v39 }
 0x597   :  { %2903 = vmatprep.subr.mxu1 %v5049_v61 }
 0x598   :  { %2904 = vmatpush3.msra.mxu1 %v4083_v40 }
 0x599   :  { %2905 = vmatprep.subr.mxu1 %v5049_v61 }
 0x59a   :  { %2906 = vmatpush3.msra.mxu1 %v4087_v42 }
 0x59b   :  { %2907 = vmatprep.subr.mxu1 %v5049_v61 }
 0x59c   :  { %2908 = vmatpush3.msra.mxu1 %v4091_v44 }
 0x59d   :  { %2909 = vmatprep.subr.mxu1 %v5049_v61 }
 0x59e   :  { %2910 = vmatpush3.msra.mxu1 %v4095_v45 }
 0x59f   :  { %2911 = vmatprep.subr.mxu1 %v5049_v61 }
 0x5a0   :  { %2912 = vmatpush3.msra.mxu1 %v4101_v55 }
 0x5a1   :  { %2913 = vmatprep.subr.mxu1 %v5049_v61 }
 0x5a2   :  { %2914 = vmatpush3.msra.mxu1 %v4105_v56 }
 0x5a3   :  { %2915 = vmatprep.subr.mxu1 %v5049_v61 }
 0x5a4   :  { %2916 = vmatpush3.msra.mxu1 %v4109_v57 }
 0x5a5   :  { %2955 = vmatprep.subr.mxu1 %v5049_v61 }
 0x645   :  { %v522_v0 = vpop.f32.mrf.mxu1 }
 0x646   :  { %v523_v46 = vadd.f32 %v4003_v49, %v522_v0 }
 0x647   :  { %v2849_v47 = vpop.f32.mrf.mxu1 }
 0x648   :  { %v526_v48 = vmax.f32 %v523_v46, 0.0 }
 0x64a   :  { %2883 = vmatmul.mubr.f32.vlgmr.msra.gmra.mxu0 %v526_v48 }
 0x64b   :  { %2921 = vmatpush3.msra.mxu0 %v3850_v2  ;;  %2952 = vmatprep.mubr.msk.f32.mxu0 %vm3769_vm0, %v5049_v61 }
 0x64c   :  { %2922 = vmatprep.subr.mxu0 %v5049_v61 }
 0x64d   :  { %2923 = vmatpush3.msra.mxu0 %v3857_v4 }
 0x64e   :  { %2924 = vmatprep.subr.mxu0 %v5049_v61 }
 0x64f   :  { %2925 = vmatpush3.msra.mxu0 %v3861_v5 }
 0x650   :  { %2926 = vmatprep.subr.mxu0 %v5049_v61 }
 0x651   :  { %2927 = vmatpush3.msra.mxu0 %v3865_v6 }
 0x652   :  { %2928 = vmatprep.subr.mxu0 %v5049_v61 }
 0x653   :  { %2929 = vmatpush3.msra.mxu0 %v3869_v7 }
 0x654   :  { %2930 = vmatprep.subr.mxu0 %v5049_v61 }
 0x655   :  { %2931 = vmatpush3.msra.mxu0 %v3873_v8 }
 0x656   :  { %2932 = vmatprep.subr.mxu0 %v5049_v61 }
 0x657   :  { %2933 = vmatpush3.msra.mxu0 %v3877_v9 }
 0x658   :  { %2934 = vmatprep.subr.mxu0 %v5049_v61 }
 0x659   :  { %2935 = vmatpush3.msra.mxu0 %v3879_v10 }
 0x65a   :  { %2936 = vmatprep.subr.mxu0 %v5049_v61 }
 0x65b   :  { %2937 = vmatpush3.msra.mxu0 %v3885_v11 }
 0x65c   :  { %2938 = vmatprep.subr.mxu0 %v5049_v61 }
 0x65d   :  { %2939 = vmatpush3.msra.mxu0 %v3891_v12 }
 0x65e   :  { %2940 = vmatprep.subr.mxu0 %v5049_v61 }
 0x65f   :  { %2941 = vmatpush3.msra.mxu0 %v3895_v13 }
 0x660   :  { %2942 = vmatprep.subr.mxu0 %v5049_v61 }
 0x661   :  { %2943 = vmatpush3.msra.mxu0 %v3899_v14 }
 0x662   :  { %2944 = vmatprep.subr.mxu0 %v5049_v61 }
 0x663   :  { %2945 = vmatpush3.msra.mxu0 %v3903_v15 }
 0x664   :  { %2946 = vmatprep.subr.mxu0 %v5049_v61 }
 0x665   :  { %2947 = vmatpush3.msra.mxu0 %v3907_v16 }
 0x666   :  { %2948 = vmatprep.subr.mxu0 %v5049_v61 }
 0x667   :  { %2949 = vmatpush3.msra.mxu0 %v3911_v17 }
 0x668   :  { %2950 = vmatprep.subr.mxu0 %v5049_v61 }
 0x669   :  { %2951 = vmatpush3.msra.mxu0 %v3915_v18 }
 0x66a   :  { %2990 = vmatprep.subr.mxu0 %v5049_v61 }
 0x70a   :  { %v593_v50 = vpop.f32.mrf.mxu0 }
 0x70b   :  { %v594_v62 = vadd.f32 %v4043_v54, %v593_v50  ;;  %v5050_v54 = vmov 1.0  }
 0x70c   :  { %v2884_v63 = vpop.f32.mrf.mxu0 }
 0x70d   :  { %598 = vst [vmem:[#allocation12 + $0x8] sm:$0xff] %v594_v62  ;;  %599 = vmax.xlane.f32.xlu1 %v594_v62 }
 0x796   :  { %v600_v51 = vpop.xlane.xlu1 %599 }
 0x797   :  { %vm601_vm4 = vcmp.eq.f32.partialorder %v594_v62, %v600_v51  ;;  %v5053_v62 = vld [vmem:[#allocation21_spill] sm:$0xff]  ;;  %v2283_v51 = vld [vmem:[#allocation6 + $0x1] ss:$0 sm:$0xff] }
 0x798   :  { %v602_v52 = vsel %vm601_vm4, %v4046_v59, 128 }
 0x799   :  { %v604_v58 = vshra.s32 %v602_v52, 16  ;;  %v603_v53 = vand.u32 65535, %v602_v52 }
 0x79b   :  { %v606_v1 = vcvt.s32.f32 %v604_v58  ;;  %v605_v46 = vcvt.s32.f32 %v603_v53 }
 0x79d   :  { %607 = vmin.xlane.f32.xlu0 %v606_v1 }
 0x826   :  { %v608_v0 = vpop.xlane.xlu0 %607 }
 0x827   :  { %vm609_vm5 = vcmp.eq.f32.partialorder %v606_v1, %v608_v0  ;;  %v614_v48 = vcvt.f32.s32 %v608_v0 }
 0x828   :  { %v610_v47 = vsel %vm609_vm5, %v605_v46, inf }
 0x829   :  { %611 = vmin.xlane.f32.xlu1 %v610_v47  ;;  %v615_v17 = vshll.u32 %v614_v48, 16 }
 0x8b2   :  { %v612_v18 = vpop.xlane.xlu1 %611 }
 0x8b3   :  { %v613_v50 = vcvt.f32.s32 %v612_v18  ;;  %v5052_v18 = vld [vmem:[#allocation20_spill] sm:$0xff] }
 0x8b5   :  { %v616_v63 = vadd.s32 %v615_v17, %v613_v50  ;;  %v5051_v17 = vld [vmem:[#allocation19_spill] sm:$0xff] }
 0x8b7   :  { %vm617_vm6 = vcmp.eq.s32.totalorder %v4046_v59, %v616_v63 }
 0x8b8   :  { %2918 = vmatmul.mubr.msk.f32.vlgmr.msra.gmra.mxu1 %vm617_vm6, %v5050_v54 }
 0x8b9   :  { %2956 = vmatpush3.msra.mxu1 %v3920_v19  ;;  %2987 = vmatprep.mubr.msk.f32.mxu1 %vm3769_vm0, %v5049_v61 }
 0x8ba   :  { %2957 = vmatprep.subr.mxu1 %v5049_v61 }
 0x8bb   :  { %2958 = vmatpush3.msra.mxu1 %v3922_v20 }
 0x8bc   :  { %2959 = vmatprep.subr.mxu1 %v5049_v61 }
 0x8bd   :  { %2960 = vmatpush3.msra.mxu1 %v3927_v21 }
 0x8be   :  { %2961 = vmatprep.subr.mxu1 %v5049_v61 }
 0x8bf   :  { %2962 = vmatpush3.msra.mxu1 %v3931_v22 }
 0x8c0   :  { %2963 = vmatprep.subr.mxu1 %v5049_v61 }
 0x8c1   :  { %2964 = vmatpush3.msra.mxu1 %v3935_v23 }
 0x8c2   :  { %2965 = vmatprep.subr.mxu1 %v5049_v61 }
 0x8c3   :  { %2966 = vmatpush3.msra.mxu1 %v3939_v24 }
 0x8c4   :  { %2967 = vmatprep.subr.mxu1 %v5049_v61 }
 0x8c5   :  { %2968 = vmatpush3.msra.mxu1 %v3943_v25 }
 0x8c6   :  { %2969 = vmatprep.subr.mxu1 %v5049_v61 }
 0x8c7   :  { %2970 = vmatpush3.msra.mxu1 %v3947_v26 }
 0x8c8   :  { %2971 = vmatprep.subr.mxu1 %v5049_v61 }
 0x8c9   :  { %2972 = vmatpush3.msra.mxu1 %v3951_v27 }
 0x8ca   :  { %2973 = vmatprep.subr.mxu1 %v5049_v61 }
 0x8cb   :  { %2974 = vmatpush3.msra.mxu1 %v3955_v28 }
 0x8cc   :  { %2975 = vmatprep.subr.mxu1 %v5049_v61 }
 0x8cd   :  { %2976 = vmatpush3.msra.mxu1 %v3959_v29 }
 0x8ce   :  { %2977 = vmatprep.subr.mxu1 %v5049_v61 }
 0x8cf   :  { %2978 = vmatpush3.msra.mxu1 %v3963_v30 }
 0x8d0   :  { %2979 = vmatprep.subr.mxu1 %v5049_v61 }
 0x8d1   :  { %2980 = vmatpush3.msra.mxu1 %v3967_v31 }
 0x8d2   :  { %2981 = vmatprep.subr.mxu1 %v5049_v61 }
 0x8d3   :  { %2982 = vmatpush3.msra.mxu1 %v5051_v17 }
 0x8d4   :  { %2983 = vmatprep.subr.mxu1 %v5049_v61 }
 0x8d5   :  { %2984 = vmatpush3.msra.mxu1 %v5052_v18 }
 0x8d6   :  { %2985 = vmatprep.subr.mxu1 %v5049_v61 }
 0x8d7   :  { %2986 = vmatpush3.msra.mxu1 %v5053_v62 }
 0x8d8   :  { %3025 = vmatprep.subr.mxu1 %v5049_v61 }
 0x978   :  { %v686_v52 = vpop.f32.mrf.mxu1 }
 0x979   :  { %v698_v58 = vmul.f32 %v2283_v51, %v686_v52 }
 0x97a   :  { %v2919_v1 = vpop.f32.mrf.mxu1 }
 0x97b   :  { %v4266_v53 = vsub.f32 %v4150_v60, %v698_v58 }
 0x97d   :  { %700 = vadd.xlane.f32.xlu0 %v4266_v53  ;;  %v703_v0 = vmul.f32 %v4266_v53, %v4266_v53 }
 0x97f   :  { %704 = vadd.xlane.f32.xlu1 %v703_v0 }
 0xa06   :  { %v701_v46 = vpop.xlane.xlu0 %700 }
 0xa07   :  { %v702_v47 = vmul.f32 0.03125, %v701_v46 }
 0xa08   :  { %v705_v48 = vpop.xlane.xlu1 %704 }
 0xa09   :  { %v707_v50 = vmul.f32 %v702_v47, %v702_v47  ;;  %v706_v63 = vmul.f32 0.03125, %v705_v48  ;;  %v709_v51 = vsub.f32 %v4266_v53, %v702_v47 }
 0xa0b   :  { %v708_v62 = vsub.f32 %v706_v63, %v707_v50 }
 0xa0d   :  { %v710_v18 = vadd.f32 1e-05, %v708_v62 }
 0xa0f   :  { %3567 = vrsqrt.f32 %v710_v18 }
 0xa1c   :  { %v3568_v52 = vpop.eup %3567 }
 0xa1d   :  { %v712_v1 = vmul.f32 %v3568_v52, %v709_v51 }
 0xa1f   :  { %v713_v60 = vmul.f32 %v3977_v41, %v712_v1 }
 0xa21   :  { %v714_v58 = vadd.f32 %v3982_v43, %v713_v60 }
 0xa23   :  { %2953 = vmatmul.mubr.f32.vlgmr.msra.gmra.mxu0 %v714_v58 }
 0xa24   :  { %2991 = vmatpush3.msra.mxu0 %v4049_v3  ;;  %3022 = vmatprep.mubr.msk.f32.mxu0 %vm3769_vm0, %v5049_v61 }
 0xa25   :  { %2992 = vmatprep.subr.mxu0 %v5049_v61 }
 0xa26   :  { %2993 = vmatpush3.msra.mxu0 %v4051_v32 }
 0xa27   :  { %2994 = vmatprep.subr.mxu0 %v5049_v61 }
 0xa28   :  { %2995 = vmatpush3.msra.mxu0 %v4055_v33 }
 0xa29   :  { %2996 = vmatprep.subr.mxu0 %v5049_v61 }
 0xa2a   :  { %2997 = vmatpush3.msra.mxu0 %v4059_v34 }
 0xa2b   :  { %2998 = vmatprep.subr.mxu0 %v5049_v61 }
 0xa2c   :  { %2999 = vmatpush3.msra.mxu0 %v4063_v35 }
 0xa2d   :  { %3000 = vmatprep.subr.mxu0 %v5049_v61 }
 0xa2e   :  { %3001 = vmatpush3.msra.mxu0 %v4067_v36 }
 0xa2f   :  { %3002 = vmatprep.subr.mxu0 %v5049_v61 }
 0xa30   :  { %3003 = vmatpush3.msra.mxu0 %v4071_v37 }
 0xa31   :  { %3004 = vmatprep.subr.mxu0 %v5049_v61 }
 0xa32   :  { %3005 = vmatpush3.msra.mxu0 %v4075_v38 }
 0xa33   :  { %3006 = vmatprep.subr.mxu0 %v5049_v61 }
 0xa34   :  { %3007 = vmatpush3.msra.mxu0 %v4079_v39 }
 0xa35   :  { %3008 = vmatprep.subr.mxu0 %v5049_v61 }
 0xa36   :  { %3009 = vmatpush3.msra.mxu0 %v4083_v40 }
 0xa37   :  { %3010 = vmatprep.subr.mxu0 %v5049_v61 }
 0xa38   :  { %3011 = vmatpush3.msra.mxu0 %v4087_v42 }
 0xa39   :  { %3012 = vmatprep.subr.mxu0 %v5049_v61 }
 0xa3a   :  { %3013 = vmatpush3.msra.mxu0 %v4091_v44 }
 0xa3b   :  { %3014 = vmatprep.subr.mxu0 %v5049_v61 }
 0xa3c   :  { %3015 = vmatpush3.msra.mxu0 %v4095_v45 }
 0xa3d   :  { %3016 = vmatprep.subr.mxu0 %v5049_v61 }
 0xa3e   :  { %3017 = vmatpush3.msra.mxu0 %v4101_v55 }
 0xa3f   :  { %3018 = vmatprep.subr.mxu0 %v5049_v61 }
 0xa40   :  { %3019 = vmatpush3.msra.mxu0 %v4105_v56 }
 0xa41   :  { %3020 = vmatprep.subr.mxu0 %v5049_v61 }
 0xa42   :  { %3021 = vmatpush3.msra.mxu0 %v4109_v57 }
 0xa43   :  { %3060 = vmatprep.subr.mxu0 %v5049_v61 }
 0xae3   :  { %v781_v18 = vpop.f32.mrf.mxu0 }
 0xae4   :  { %v782_v62 = vadd.f32 %v4003_v49, %v781_v18 }
 0xae5   :  { %v2954_v0 = vpop.f32.mrf.mxu0 }
 0xae6   :  { %v785_v46 = vmax.f32 %v782_v62, 0.0  ;;  %v4487_v62 = vld [vmem:[#allocation9] sm:$0xff] }
 0xae8   :  { %2988 = vmatmul.mubr.f32.vlgmr.msra.gmra.mxu1 %v785_v46 }
 0xae9   :  { %3026 = vmatpush3.msra.mxu1 %v3850_v2  ;;  %3057 = vmatprep.mubr.msk.f32.mxu1 %vm3769_vm0, %v5049_v61  ;;  %v5054_v2 = vld [vmem:[#allocation17_spill] sm:$0xff] }
 0xaea   :  { %3027 = vmatprep.subr.mxu1 %v5049_v61 }
 0xaeb   :  { %3028 = vmatpush3.msra.mxu1 %v3857_v4  ;;  %v5055_v4 = vld [vmem:[#allocation18_spill] sm:$0xff] }
 0xaec   :  { %3029 = vmatprep.subr.mxu1 %v5049_v61 }
 0xaed   :  { %3030 = vmatpush3.msra.mxu1 %v3861_v5 }
 0xaee   :  { %3031 = vmatprep.subr.mxu1 %v5049_v61 }
 0xaef   :  { %3032 = vmatpush3.msra.mxu1 %v3865_v6  ;;  %v5056_v6 = vld [vmem:[#allocation22_spill] sm:$0xff] }
 0xaf0   :  { %3033 = vmatprep.subr.mxu1 %v5049_v61 }
 0xaf1   :  { %3034 = vmatpush3.msra.mxu1 %v3869_v7 }
 0xaf2   :  { %3035 = vmatprep.subr.mxu1 %v5049_v61 }
 0xaf3   :  { %3036 = vmatpush3.msra.mxu1 %v3873_v8 }
 0xaf4   :  { %3037 = vmatprep.subr.mxu1 %v5049_v61 }
 0xaf5   :  { %3038 = vmatpush3.msra.mxu1 %v3877_v9 }
 0xaf6   :  { %3039 = vmatprep.subr.mxu1 %v5049_v61 }
 0xaf7   :  { %3040 = vmatpush3.msra.mxu1 %v3879_v10 }
 0xaf8   :  { %3041 = vmatprep.subr.mxu1 %v5049_v61 }
 0xaf9   :  { %3042 = vmatpush3.msra.mxu1 %v3885_v11 }
 0xafa   :  { %3043 = vmatprep.subr.mxu1 %v5049_v61 }
 0xafb   :  { %3044 = vmatpush3.msra.mxu1 %v3891_v12 }
 0xafc   :  { %3045 = vmatprep.subr.mxu1 %v5049_v61 }
 0xafd   :  { %3046 = vmatpush3.msra.mxu1 %v3895_v13 }
 0xafe   :  { %3047 = vmatprep.subr.mxu1 %v5049_v61 }
 0xaff   :  { %3048 = vmatpush3.msra.mxu1 %v3899_v14 }
 0xb00   :  { %3049 = vmatprep.subr.mxu1 %v5049_v61 }
 0xb01   :  { %3050 = vmatpush3.msra.mxu1 %v3903_v15 }
 0xb02   :  { %3051 = vmatprep.subr.mxu1 %v5049_v61 }
 0xb03   :  { %3052 = vmatpush3.msra.mxu1 %v3907_v16 }
 0xb04   :  { %3053 = vmatprep.subr.mxu1 %v5049_v61 }
 0xb05   :  { %3054 = vmatpush3.msra.mxu1 %v5054_v2 }
 0xb06   :  { %3055 = vmatprep.subr.mxu1 %v5049_v61 }
 0xb07   :  { %3056 = vmatpush3.msra.mxu1 %v5055_v4 }
 0xb08   :  { %3095 = vmatprep.subr.mxu1 %v5049_v61 }
 0xba8   :  { %v852_v5 = vpop.f32.mrf.mxu1 }
 0xba9   :  { %v853_v7 = vadd.f32 %v5056_v6, %v852_v5 }
 0xbaa   :  { %v2989_v8 = vpop.f32.mrf.mxu1 }
 0xbab   :  { %857 = vst [vmem:[#allocation12 + $0x10] sm:$0xff] %v853_v7  ;;  %858 = vmax.xlane.f32.xlu0 %v853_v7 }
 0xc34   :  { %v859_v9 = vpop.xlane.xlu0 %858 }
 0xc35   :  { %vm860_vm7 = vcmp.eq.f32.partialorder %v853_v7, %v859_v9 }
 0xc36   :  { %v861_v10 = vsel %vm860_vm7, %v4046_v59, 128 }
 0xc37   :  { %v863_v11 = vshra.s32 %v861_v10, 16  ;;  %v862_v13 = vand.u32 65535, %v861_v10 }
 0xc39   :  { %v865_v12 = vcvt.s32.f32 %v863_v11  ;;  %v864_v15 = vcvt.s32.f32 %v862_v13 }
 0xc3b   :  { %866 = vmin.xlane.f32.xlu1 %v865_v12 }
 0xcc4   :  { %v867_v14 = vpop.xlane.xlu1 %866 }
 0xcc5   :  { %vm868_vm8 = vcmp.eq.f32.partialorder %v865_v12, %v867_v14  ;;  %v873_v47 = vcvt.f32.s32 %v867_v14 }
 0xcc6   :  { %v869_v16 = vsel %vm868_vm8, %v864_v15, inf }
 0xcc7   :  { %870 = vmin.xlane.f32.xlu0 %v869_v16  ;;  %v874_v50 = vshll.u32 %v873_v47, 16  ;;  %v4495_v47 = vld [vmem:[#allocation11 + $0x78] sm:$0xff] }
 0xd50   :  { %v871_v48 = vpop.xlane.xlu0 %870 }
 0xd51   :  { %v872_v63 = vcvt.f32.s32 %v871_v48  ;;  %v4501_v48 = vld [vmem:[#allocation11 + $0x70] sm:$0xff] }
 0xd53   :  { %v875_v51 = vadd.s32 %v874_v50, %v872_v63  ;;  %v4505_v50 = vld [vmem:[#allocation11 + $0x68] sm:$0xff]  ;;  %v4509_v63 = vld [vmem:[#allocation11 + $0x60] sm:$0xff] }
 0xd55   :  { %vm876_vm9 = vcmp.eq.s32.totalorder %v4046_v59, %v875_v51  ;;  %v4513_v51 = vld [vmem:[#allocation11 + $0x58] sm:$0xff] }
 0xd56   :  { %3023 = vmatmul.mubr.msk.f32.vlgmr.msra.gmra.mxu0 %vm876_vm9, %v5050_v54 }
 0xd57   :  { %3061 = vmatpush3.msra.mxu0 %v3920_v19  ;;  %3092 = vmatprep.mubr.msk.f32.mxu0 %vm3769_vm0, %v5049_v61  ;;  %v5057_v19 = vld [vmem:[#allocation20_spill] sm:$0xff] }
 0xd58   :  { %3062 = vmatprep.subr.mxu0 %v5049_v61 }
 0xd59   :  { %3063 = vmatpush3.msra.mxu0 %v3922_v20  ;;  %v5058_v20 = vld [vmem:[#allocation21_spill] sm:$0xff] }
 0xd5a   :  { %3064 = vmatprep.subr.mxu0 %v5049_v61  ;;  %5064 = vst [vmem:[#allocation21_spill] sm:$0xff] %v4487_v62 }
 0xd5b   :  { %3065 = vmatpush3.msra.mxu0 %v3927_v21  ;;  %v2286_v21 = vld [vmem:[#allocation6 + $0x2] ss:$0 sm:$0xff] }
 0xd5c   :  { %3066 = vmatprep.subr.mxu0 %v5049_v61 }
 0xd5d   :  { %3067 = vmatpush3.msra.mxu0 %v3931_v22 }
 0xd5e   :  { %3068 = vmatprep.subr.mxu0 %v5049_v61 }
 0xd5f   :  { %3069 = vmatpush3.msra.mxu0 %v3935_v23 }
 0xd60   :  { %3070 = vmatprep.subr.mxu0 %v5049_v61 }
 0xd61   :  { %3071 = vmatpush3.msra.mxu0 %v3939_v24 }
 0xd62   :  { %3072 = vmatprep.subr.mxu0 %v5049_v61 }
 0xd63   :  { %3073 = vmatpush3.msra.mxu0 %v3943_v25 }
 0xd64   :  { %3074 = vmatprep.subr.mxu0 %v5049_v61 }
 0xd65   :  { %3075 = vmatpush3.msra.mxu0 %v3947_v26 }
 0xd66   :  { %3076 = vmatprep.subr.mxu0 %v5049_v61 }
 0xd67   :  { %3077 = vmatpush3.msra.mxu0 %v3951_v27 }
 0xd68   :  { %3078 = vmatprep.subr.mxu0 %v5049_v61 }
 0xd69   :  { %3079 = vmatpush3.msra.mxu0 %v3955_v28 }
 0xd6a   :  { %3080 = vmatprep.subr.mxu0 %v5049_v61 }
 0xd6b   :  { %3081 = vmatpush3.msra.mxu0 %v3959_v29 }
 0xd6c   :  { %3082 = vmatprep.subr.mxu0 %v5049_v61 }
 0xd6d   :  { %3083 = vmatpush3.msra.mxu0 %v3963_v30 }
 0xd6e   :  { %3084 = vmatprep.subr.mxu0 %v5049_v61 }
 0xd6f   :  { %3085 = vmatpush3.msra.mxu0 %v3967_v31 }
 0xd70   :  { %3086 = vmatprep.subr.mxu0 %v5049_v61 }
 0xd71   :  { %3087 = vmatpush3.msra.mxu0 %v5051_v17 }
 0xd72   :  { %3088 = vmatprep.subr.mxu0 %v5049_v61 }
 0xd73   :  { %3089 = vmatpush3.msra.mxu0 %v5057_v19  ;;  %v4517_v19 = vld [vmem:[#allocation11 + $0x50] sm:$0xff] }
 0xd74   :  { %3090 = vmatprep.subr.mxu0 %v5049_v61 }
 0xd75   :  { %3091 = vmatpush3.msra.mxu0 %v5058_v20  ;;  %v4521_v20 = vld [vmem:[#allocation11 + $0x48] sm:$0xff] }
 0xd76   :  { %3130 = vmatprep.subr.mxu0 %v5049_v61 }
 0xe16   :  { %v945_v22 = vpop.f32.mrf.mxu0 }
 0xe17   :  { %v957_v23 = vmul.f32 %v2286_v21, %v945_v22  ;;  %v4525_v21 = vld [vmem:[#allocation11 + $0x40] sm:$0xff]  ;;  %v4529_v22 = vld [vmem:[#allocation11 + $0x38] sm:$0xff] }
 0xe18   :  { %v3024_v24 = vpop.f32.mrf.mxu0 }
 0xe19   :  { %v4382_v25 = vsub.f32 %v4266_v53, %v957_v23  ;;  %v4533_v23 = vld [vmem:[#allocation11 + $0x30] sm:$0xff]  ;;  %v4537_v24 = vld [vmem:[#allocation11 + $0x28] sm:$0xff] }
 0xe1b   :  { %959 = vadd.xlane.f32.xlu1 %v4382_v25  ;;  %v962_v26 = vmul.f32 %v4382_v25, %v4382_v25 }
 0xe1d   :  { %963 = vadd.xlane.f32.xlu0 %v962_v26  ;;  %v4541_v26 = vld [vmem:[#allocation11 + $0x20] sm:$0xff] }
 0xea4   :  { %v960_v27 = vpop.xlane.xlu1 %959 }
 0xea5   :  { %v961_v28 = vmul.f32 0.03125, %v960_v27  ;;  %v4545_v27 = vld [vmem:[#allocation11 + $0x18] sm:$0xff] }
 0xea6   :  { %v964_v29 = vpop.xlane.xlu0 %963 }
 0xea7   :  { %v966_v30 = vmul.f32 %v961_v28, %v961_v28  ;;  %v965_v31 = vmul.f32 0.03125, %v964_v29  ;;  %v968_v1 = vsub.f32 %v4382_v25, %v961_v28  ;;  %v4549_v28 = vld [vmem:[#allocation11 + $0x10] sm:$0xff]  ;;  %v4553_v29 = vld [vmem:[#allocation11 + $0x8] sm:$0xff] }
 0xea9   :  { %v967_v17 = vsub.f32 %v965_v31, %v966_v30  ;;  %v4557_v30 = vld [vmem:[#allocation11] sm:$0xff]  ;;  %v2289_v31 = vld [vmem:[#allocation6 + $0x3] ss:$0 sm:$0xff] }
 0xeab   :  { %v969_v52 = vadd.f32 1e-05, %v967_v17 }
 0xead   :  { %3569 = vrsqrt.f32 %v969_v52 }
 0xeba   :  { %v3570_v60 = vpop.eup %3569 }
 0xebb   :  { %v971_v58 = vmul.f32 %v3570_v60, %v968_v1 }
 0xebd   :  { %v972_v53 = vmul.f32 %v3977_v41, %v971_v58 }
 0xebf   :  { %v973_v18 = vadd.f32 %v3982_v43, %v972_v53 }
 0xec1   :  { %3058 = vmatmul.mubr.f32.vlgmr.msra.gmra.mxu1 %v973_v18 }
 0xec2   :  { %3096 = vmatpush3.msra.mxu1 %v4049_v3  ;;  %3127 = vmatprep.mubr.msk.f32.mxu1 %vm3769_vm0, %v5049_v61 }
 0xec3   :  { %3097 = vmatprep.subr.mxu1 %v5049_v61 }
 0xec4   :  { %3098 = vmatpush3.msra.mxu1 %v4051_v32 }
 0xec5   :  { %3099 = vmatprep.subr.mxu1 %v5049_v61 }
 0xec6   :  { %3100 = vmatpush3.msra.mxu1 %v4055_v33  ;;  %v4425_v33 = vld [vmem:[#allocation9 + $0x78] sm:$0xff] }
 0xec7   :  { %3101 = vmatprep.subr.mxu1 %v5049_v61 }
 0xec8   :  { %3102 = vmatpush3.msra.mxu1 %v4059_v34  ;;  %v4431_v34 = vld [vmem:[#allocation9 + $0x70] sm:$0xff] }
 0xec9   :  { %3103 = vmatprep.subr.mxu1 %v5049_v61 }
 0xeca   :  { %3104 = vmatpush3.msra.mxu1 %v4063_v35  ;;  %v4435_v35 = vld [vmem:[#allocation9 + $0x68] sm:$0xff] }
 0xecb   :  { %3105 = vmatprep.subr.mxu1 %v5049_v61 }
 0xecc   :  { %3106 = vmatpush3.msra.mxu1 %v4067_v36  ;;  %v4443_v36 = vld [vmem:[#allocation9 + $0x58] sm:$0xff] }
 0xecd   :  { %3107 = vmatprep.subr.mxu1 %v5049_v61 }
 0xece   :  { %3108 = vmatpush3.msra.mxu1 %v4071_v37  ;;  %v4447_v37 = vld [vmem:[#allocation9 + $0x50] sm:$0xff] }
 0xecf   :  { %3109 = vmatprep.subr.mxu1 %v5049_v61 }
 0xed0   :  { %3110 = vmatpush3.msra.mxu1 %v4075_v38  ;;  %v4451_v38 = vld [vmem:[#allocation9 + $0x48] sm:$0xff] }
 0xed1   :  { %3111 = vmatprep.subr.mxu1 %v5049_v61 }
 0xed2   :  { %3112 = vmatpush3.msra.mxu1 %v4079_v39  ;;  %v4455_v39 = vld [vmem:[#allocation9 + $0x40] sm:$0xff] }
 0xed3   :  { %3113 = vmatprep.subr.mxu1 %v5049_v61 }
 0xed4   :  { %3114 = vmatpush3.msra.mxu1 %v4083_v40  ;;  %v4459_v40 = vld [vmem:[#allocation9 + $0x38] sm:$0xff] }
 0xed5   :  { %3115 = vmatprep.subr.mxu1 %v5049_v61 }
 0xed6   :  { %3116 = vmatpush3.msra.mxu1 %v4087_v42  ;;  %v4463_v42 = vld [vmem:[#allocation9 + $0x30] sm:$0xff] }
 0xed7   :  { %3117 = vmatprep.subr.mxu1 %v5049_v61 }
 0xed8   :  { %3118 = vmatpush3.msra.mxu1 %v4091_v44  ;;  %v4467_v44 = vld [vmem:[#allocation9 + $0x28] sm:$0xff] }
 0xed9   :  { %3119 = vmatprep.subr.mxu1 %v5049_v61  ;;  %5059 = vst [vmem:[#allocation19_spill] sm:$0xff] %v4467_v44 }
 0xeda   :  { %3120 = vmatpush3.msra.mxu1 %v4095_v45  ;;  %v4471_v45 = vld [vmem:[#allocation9 + $0x20] sm:$0xff] }
 0xedb   :  { %3121 = vmatprep.subr.mxu1 %v5049_v61  ;;  %5060 = vst [vmem:[#allocation17_spill] sm:$0xff] %v4471_v45 }
 0xedc   :  { %3122 = vmatpush3.msra.mxu1 %v4101_v55  ;;  %v4475_v55 = vld [vmem:[#allocation9 + $0x18] sm:$0xff] }
 0xedd   :  { %3123 = vmatprep.subr.mxu1 %v5049_v61  ;;  %5061 = vst [vmem:[#allocation18_spill] sm:$0xff] %v4475_v55 }
 0xede   :  { %3124 = vmatpush3.msra.mxu1 %v4105_v56  ;;  %v4479_v56 = vld [vmem:[#allocation9 + $0x10] sm:$0xff] }
 0xedf   :  { %3125 = vmatprep.subr.mxu1 %v5049_v61  ;;  %5062 = vst [vmem:[#allocation22_spill] sm:$0xff] %v4479_v56 }
 0xee0   :  { %3126 = vmatpush3.msra.mxu1 %v4109_v57  ;;  %v4483_v57 = vld [vmem:[#allocation9 + $0x8] sm:$0xff] }
 0xee1   :  { %3165 = vmatprep.subr.mxu1 %v5049_v61  ;;  %5063 = vst [vmem:[#allocation20_spill] sm:$0xff] %v4483_v57 }
 0xf81   :  { %v1040_v41 = vpop.f32.mrf.mxu1 }
 0xf82   :  { %v1041_v43 = vadd.f32 %v4003_v49, %v1040_v41  ;;  %v4439_v49 = vld [vmem:[#allocation9 + $0x60] sm:$0xff] }
 0xf83   :  { %v3059_v3 = vpop.f32.mrf.mxu1 }
 0xf84   :  { %v1044_v32 = vmax.f32 %v1041_v43, 0.0 }
 0xf86   :  { %3093 = vmatmul.mubr.f32.vlgmr.msra.gmra.mxu0 %v1044_v32 }
 0xf87   :  { %3131 = vmatpush3.msra.mxu0 %v4425_v33  ;;  %3162 = vmatprep.mubr.msk.f32.mxu0 %vm3769_vm0, %v5049_v61 }
 0xf88   :  { %3132 = vmatprep.subr.mxu0 %v5049_v61 }
 0xf89   :  { %3133 = vmatpush3.msra.mxu0 %v4431_v34 }
 0xf8a   :  { %3134 = vmatprep.subr.mxu0 %v5049_v61 }
 0xf8b   :  { %3135 = vmatpush3.msra.mxu0 %v4435_v35 }
 0xf8c   :  { %3136 = vmatprep.subr.mxu0 %v5049_v61 }
 0xf8d   :  { %3137 = vmatpush3.msra.mxu0 %v4439_v49 }
 0xf8e   :  { %3138 = vmatprep.subr.mxu0 %v5049_v61 }
 0xf8f   :  { %3139 = vmatpush3.msra.mxu0 %v4443_v36 }
 0xf90   :  { %3140 = vmatprep.subr.mxu0 %v5049_v61 }
 0xf91   :  { %3141 = vmatpush3.msra.mxu0 %v4447_v37 }
 0xf92   :  { %3142 = vmatprep.subr.mxu0 %v5049_v61 }
 0xf93   :  { %3143 = vmatpush3.msra.mxu0 %v4451_v38 }
 0xf94   :  { %3144 = vmatprep.subr.mxu0 %v5049_v61 }
 0xf95   :  { %3145 = vmatpush3.msra.mxu0 %v4455_v39 }
 0xf96   :  { %3146 = vmatprep.subr.mxu0 %v5049_v61 }
 0xf97   :  { %3147 = vmatpush3.msra.mxu0 %v4459_v40 }
 0xf98   :  { %3148 = vmatprep.subr.mxu0 %v5049_v61 }
 0xf99   :  { %3149 = vmatpush3.msra.mxu0 %v4463_v42 }
 0xf9a   :  { %3150 = vmatprep.subr.mxu0 %v5049_v61 }
 0xf9b   :  { %3151 = vmatpush3.msra.mxu0 %v4467_v44 }
 0xf9c   :  { %3152 = vmatprep.subr.mxu0 %v5049_v61 }
 0xf9d   :  { %3153 = vmatpush3.msra.mxu0 %v4471_v45 }
 0xf9e   :  { %3154 = vmatprep.subr.mxu0 %v5049_v61 }
 0xf9f   :  { %3155 = vmatpush3.msra.mxu0 %v4475_v55 }
 0xfa0   :  { %3156 = vmatprep.subr.mxu0 %v5049_v61 }
 0xfa1   :  { %3157 = vmatpush3.msra.mxu0 %v4479_v56 }
 0xfa2   :  { %3158 = vmatprep.subr.mxu0 %v5049_v61 }
 0xfa3   :  { %3159 = vmatpush3.msra.mxu0 %v4483_v57 }
 0xfa4   :  { %3160 = vmatprep.subr.mxu0 %v5049_v61 }
 0xfa5   :  { %3161 = vmatpush3.msra.mxu0 %v4487_v62 }
 0xfa6   :  { %3200 = vmatprep.subr.mxu0 %v5049_v61 }
0x1046   :  { %v1111_v0 = vpop.f32.mrf.mxu0 }
0x1047   :  { %v1112_v46 = vadd.f32 %v5056_v6, %v1111_v0 }
0x1048   :  { %v3094_v2 = vpop.f32.mrf.mxu0 }
0x1049   :  { %1116 = vst [vmem:[#allocation12 + $0x18] sm:$0xff] %v1112_v46  ;;  %1117 = vmax.xlane.f32.xlu1 %v1112_v46 }
0x10d2   :  { %v1118_v4 = vpop.xlane.xlu1 %1117 }
0x10d3   :  { %vm1119_vm10 = vcmp.eq.f32.partialorder %v1112_v46, %v1118_v4 }
0x10d4   :  { %v1120_v5 = vsel %vm1119_vm10, %v4046_v59, 128 }
0x10d5   :  { %v1122_v7 = vshra.s32 %v1120_v5, 16  ;;  %v1121_v9 = vand.u32 65535, %v1120_v5 }
0x10d7   :  { %v1124_v8 = vcvt.s32.f32 %v1122_v7  ;;  %v1123_v11 = vcvt.s32.f32 %v1121_v9  ;;  %v4577_v7 = vld [vmem:[%s5015_s8] ss:$0 sm:$0xff]  ;;  %v4580_v9 = vld [vmem:[#allocation8 + $0x78] sm:$0xff] }
0x10d9   :  { %1125 = vmin.xlane.f32.xlu0 %v1124_v8 }
0x1162   :  { %v1126_v10 = vpop.xlane.xlu0 %1125 }
0x1163   :  { %vm1127_vm11 = vcmp.eq.f32.partialorder %v1124_v8, %v1126_v10  ;;  %v1132_v13 = vcvt.f32.s32 %v1126_v10  ;;  %v4586_v10 = vld [vmem:[#allocation8 + $0x70] sm:$0xff] }
0x1164   :  { %v1128_v12 = vsel %vm1127_vm11, %v1123_v11, inf  ;;  %v4590_v11 = vld [vmem:[#allocation8 + $0x68] sm:$0xff] }
0x1165   :  { %1129 = vmin.xlane.f32.xlu1 %v1128_v12  ;;  %v1133_v15 = vshll.u32 %v1132_v13, 16  ;;  %v4594_v12 = vld [vmem:[#allocation8 + $0x60] sm:$0xff]  ;;  %v4598_v13 = vld [vmem:[#allocation8 + $0x58] sm:$0xff] }
0x11ee   :  { %v1130_v14 = vpop.xlane.xlu1 %1129 }
0x11ef   :  { %v1131_v6 = vcvt.f32.s32 %v1130_v14  ;;  %v4602_v14 = vld [vmem:[#allocation8 + $0x50] sm:$0xff] }
0x11f1   :  { %v1134_v16 = vadd.s32 %v1133_v15, %v1131_v6  ;;  %v4606_v15 = vld [vmem:[#allocation8 + $0x48] sm:$0xff]  ;;  %v4610_v6 = vld [vmem:[#allocation8 + $0x40] sm:$0xff] }
0x11f3   :  { %vm1135_vm12 = vcmp.eq.s32.totalorder %v4046_v59, %v1134_v16  ;;  %v4614_v16 = vld [vmem:[#allocation8 + $0x38] sm:$0xff] }
0x11f4   :  { %3128 = vmatmul.mubr.msk.f32.vlgmr.msra.gmra.mxu1 %vm1135_vm12, %v5050_v54 }
0x11f5   :  { %3166 = vmatpush3.msra.mxu1 %v4495_v47  ;;  %3197 = vmatprep.mubr.msk.f32.mxu1 %vm3769_vm0, %v5049_v61 }
0x11f6   :  { %3167 = vmatprep.subr.mxu1 %v5049_v61 }
0x11f7   :  { %3168 = vmatpush3.msra.mxu1 %v4501_v48 }
0x11f8   :  { %3169 = vmatprep.subr.mxu1 %v5049_v61 }
0x11f9   :  { %3170 = vmatpush3.msra.mxu1 %v4505_v50 }
0x11fa   :  { %3171 = vmatprep.subr.mxu1 %v5049_v61 }
0x11fb   :  { %3172 = vmatpush3.msra.mxu1 %v4509_v63 }
0x11fc   :  { %3173 = vmatprep.subr.mxu1 %v5049_v61 }
0x11fd   :  { %3174 = vmatpush3.msra.mxu1 %v4513_v51 }
0x11fe   :  { %3175 = vmatprep.subr.mxu1 %v5049_v61 }
0x11ff   :  { %3176 = vmatpush3.msra.mxu1 %v4517_v19 }
0x1200   :  { %3177 = vmatprep.subr.mxu1 %v5049_v61 }
0x1201   :  { %3178 = vmatpush3.msra.mxu1 %v4521_v20 }
0x1202   :  { %3179 = vmatprep.subr.mxu1 %v5049_v61 }
0x1203   :  { %3180 = vmatpush3.msra.mxu1 %v4525_v21 }
0x1204   :  { %3181 = vmatprep.subr.mxu1 %v5049_v61 }
0x1205   :  { %3182 = vmatpush3.msra.mxu1 %v4529_v22 }
0x1206   :  { %3183 = vmatprep.subr.mxu1 %v5049_v61 }
0x1207   :  { %3184 = vmatpush3.msra.mxu1 %v4533_v23 }
0x1208   :  { %3185 = vmatprep.subr.mxu1 %v5049_v61 }
0x1209   :  { %3186 = vmatpush3.msra.mxu1 %v4537_v24 }
0x120a   :  { %3187 = vmatprep.subr.mxu1 %v5049_v61 }
0x120b   :  { %3188 = vmatpush3.msra.mxu1 %v4541_v26 }
0x120c   :  { %3189 = vmatprep.subr.mxu1 %v5049_v61 }
0x120d   :  { %3190 = vmatpush3.msra.mxu1 %v4545_v27 }
0x120e   :  { %3191 = vmatprep.subr.mxu1 %v5049_v61 }
0x120f   :  { %3192 = vmatpush3.msra.mxu1 %v4549_v28 }
0x1210   :  { %3193 = vmatprep.subr.mxu1 %v5049_v61 }
0x1211   :  { %3194 = vmatpush3.msra.mxu1 %v4553_v29 }
0x1212   :  { %3195 = vmatprep.subr.mxu1 %v5049_v61 }
0x1213   :  { %3196 = vmatpush3.msra.mxu1 %v4557_v30 }
0x1214   :  { %3235 = vmatprep.subr.mxu1 %v5049_v61 }
0x12b4   :  { %v1204_v17 = vpop.f32.mrf.mxu1 }
0x12b5   :  { %v1216_v52 = vmul.f32 %v2289_v31, %v1204_v17  ;;  %v4618_v31 = vld [vmem:[#allocation8 + $0x30] sm:$0xff]  ;;  %v4622_v17 = vld [vmem:[#allocation8 + $0x28] sm:$0xff] }
0x12b6   :  { %v3129_v1 = vpop.f32.mrf.mxu1 }
0x12b7   :  { %v4562_v60 = vsub.f32 %v4382_v25, %v1216_v52  ;;  %v4571_v25 = vld [vmem:[%s5014_s7] ss:$0 sm:$0xff]  ;;  %v4626_v52 = vld [vmem:[#allocation8 + $0x20] sm:$0xff]  ;;  %v4630_v1 = vld [vmem:[#allocation8 + $0x18] sm:$0xff] }
0x12b9   :  { %1218 = vadd.xlane.f32.xlu0 %v4562_v60  ;;  %v1221_v58 = vmul.f32 %v4562_v60, %v4562_v60 }
0x12bb   :  { %1222 = vadd.xlane.f32.xlu1 %v1221_v58  ;;  %v4634_v58 = vld [vmem:[#allocation8 + $0x10] sm:$0xff] }
0x1342   :  { %v1219_v53 = vpop.xlane.xlu0 %1218 }
0x1343   :  { %v1220_v18 = vmul.f32 0.03125, %v1219_v53  ;;  %v4638_v53 = vld [vmem:[#allocation8 + $0x8] sm:$0xff] }
0x1344   :  { %v1223_v41 = vpop.xlane.xlu1 %1222 }
0x1345   :  { %v1225_v43 = vmul.f32 %v1220_v18, %v1220_v18  ;;  %v1224_v3 = vmul.f32 0.03125, %v1223_v41  ;;  %v1227_v46 = vsub.f32 %v4562_v60, %v1220_v18  ;;  %v4642_v18 = vld [vmem:[#allocation8] sm:$0xff] }
0x1347   :  { %v1226_v32 = vsub.f32 %v1224_v3, %v1225_v43  ;;  %v4649_v43 = vld [vmem:[%s5011_s4] ss:$0 sm:$0xff] }
0x1349   :  { %v1228_v0 = vadd.f32 1e-05, %v1226_v32 }
0x134b   :  { %3571 = vrsqrt.f32 %v1228_v0 }
0x1358   :  { %v3572_v2 = vpop.eup %3571 }
0x1359   :  { %v1230_v4 = vmul.f32 %v3572_v2, %v1227_v46  ;;  %v4689_v2 = vld [vmem:[%s5013_s6] ss:$0 sm:$0xff]  ;;  %s3771_s6 = smov [#allocation12]  }
0x135a   :  { %s2260_s26 = sshll.u32 %s3771_s6, 4  ;;  %s2261_s26 = int_to_ptr.vmem [resolvable:$true] %s2260_s26 }
0x135b   :  { %v1231_v5 = vmul.f32 %v4571_v25, %v1230_v4  ;;  %s3731_s27 = scalar_lea.vmem %s2261_s26, 1024  ;;  %p3736_p12 = scmp.lt.s32.totalorder %s2261_s26, %s2261_s26 }
0x135c   :  { %p3732_p11 = scmp.ne.s32.totalorder %s2261_s26, %s3731_s27  ;;  %p3737_p13 = scmp.lt.s32.totalorder %s3731_s27, %s3731_s27 }
0x135d   :  { %v1232_v8 = vadd.f32 %v4577_v7, %v1231_v5 }
0x135e   :  { %p3738_p0 = por %p3737_p13, %p3736_p12 }
0x135f   :  { %3163 = vmatmul.mubr.f32.vlgmr.msra.gmra.mxu0 %v1232_v8 }
0x1360   :  { %3201 = vmatpush3.msra.mxu0 %v4580_v9  ;;  %3232 = vmatprep.mubr.msk.f32.mxu0 %vm3769_vm0, %v5049_v61  ;;  %p3739_p1 = pnand %p3738_p0, %p3732_p11 }
0x1361   :  { %3202 = vmatprep.subr.mxu0 %v5049_v61 }
0x1362   :  { %3203 = vmatpush3.msra.mxu0 %v4586_v10 }
0x1363   :  { %3204 = vmatprep.subr.mxu0 %v5049_v61 }
0x1364   :  { %3205 = vmatpush3.msra.mxu0 %v4590_v11 }
0x1365   :  { %3206 = vmatprep.subr.mxu0 %v5049_v61 }
0x1366   :  { %3207 = vmatpush3.msra.mxu0 %v4594_v12 }
0x1367   :  { %3208 = vmatprep.subr.mxu0 %v5049_v61 }
0x1368   :  { %3209 = vmatpush3.msra.mxu0 %v4598_v13 }
0x1369   :  { %3210 = vmatprep.subr.mxu0 %v5049_v61 }
0x136a   :  { %3211 = vmatpush3.msra.mxu0 %v4602_v14 }
0x136b   :  { %3212 = vmatprep.subr.mxu0 %v5049_v61 }
0x136c   :  { %3213 = vmatpush3.msra.mxu0 %v4606_v15 }
0x136d   :  { %3214 = vmatprep.subr.mxu0 %v5049_v61 }
0x136e   :  { %3215 = vmatpush3.msra.mxu0 %v4610_v6 }
0x136f   :  { %3216 = vmatprep.subr.mxu0 %v5049_v61 }
0x1370   :  { %3217 = vmatpush3.msra.mxu0 %v4614_v16 }
0x1371   :  { %3218 = vmatprep.subr.mxu0 %v5049_v61 }
0x1372   :  { %3219 = vmatpush3.msra.mxu0 %v4618_v31 }
0x1373   :  { %3220 = vmatprep.subr.mxu0 %v5049_v61 }
0x1374   :  { %3221 = vmatpush3.msra.mxu0 %v4622_v17 }
0x1375   :  { %3222 = vmatprep.subr.mxu0 %v5049_v61 }
0x1376   :  { %3223 = vmatpush3.msra.mxu0 %v4626_v52 }
0x1377   :  { %3224 = vmatprep.subr.mxu0 %v5049_v61 }
0x1378   :  { %3225 = vmatpush3.msra.mxu0 %v4630_v1 }
0x1379   :  { %3226 = vmatprep.subr.mxu0 %v5049_v61 }
0x137a   :  { %3227 = vmatpush3.msra.mxu0 %v4634_v58 }
0x137b   :  { %3228 = vmatprep.subr.mxu0 %v5049_v61 }
0x137c   :  { %3229 = vmatpush3.msra.mxu0 %v4638_v53 }
0x137d   :  { %3230 = vmatprep.subr.mxu0 %v5049_v61 }
0x137e   :  { %3231 = vmatpush3.msra.mxu0 %v4642_v18 }
0x137f   :  { %3270 = vmatprep.subr.mxu0 %v5049_v61 }
0x141f   :  { %v1299_v41 = vpop.f32.mrf.mxu0 }
0x1420   :  { %v1300_v3 = vadd.f32 %v4649_v43, %v1299_v41 }
0x1421   :  { %v3164_v32 = vpop.f32.mrf.mxu0 }
0x1422   :  { %v1303_v0 = vmax.f32 %v1300_v3, 0.0 }
0x1424   :  { %3198 = vmatmul.mubr.f32.vlgmr.msra.gmra.mxu1 %v1303_v0 }
0x1425   :  { %3236 = vmatpush3.msra.mxu1 %v4425_v33  ;;  %3267 = vmatprep.mubr.msk.f32.mxu1 %vm3769_vm0, %v5049_v61 }
0x1426   :  { %3237 = vmatprep.subr.mxu1 %v5049_v61 }
0x1427   :  { %3238 = vmatpush3.msra.mxu1 %v4431_v34 }
0x1428   :  { %3239 = vmatprep.subr.mxu1 %v5049_v61 }
0x1429   :  { %3240 = vmatpush3.msra.mxu1 %v4435_v35 }
0x142a   :  { %3241 = vmatprep.subr.mxu1 %v5049_v61 }
0x142b   :  { %3242 = vmatpush3.msra.mxu1 %v4439_v49 }
0x142c   :  { %3243 = vmatprep.subr.mxu1 %v5049_v61 }
0x142d   :  { %3244 = vmatpush3.msra.mxu1 %v4443_v36 }
0x142e   :  { %3245 = vmatprep.subr.mxu1 %v5049_v61 }
0x142f   :  { %3246 = vmatpush3.msra.mxu1 %v4447_v37 }
0x1430   :  { %3247 = vmatprep.subr.mxu1 %v5049_v61 }
0x1431   :  { %3248 = vmatpush3.msra.mxu1 %v4451_v38 }
0x1432   :  { %3249 = vmatprep.subr.mxu1 %v5049_v61 }
0x1433   :  { %3250 = vmatpush3.msra.mxu1 %v4455_v39 }
0x1434   :  { %3251 = vmatprep.subr.mxu1 %v5049_v61 }
0x1435   :  { %3252 = vmatpush3.msra.mxu1 %v4459_v40 }
0x1436   :  { %3253 = vmatprep.subr.mxu1 %v5049_v61 }
0x1437   :  { %3254 = vmatpush3.msra.mxu1 %v4463_v42 }
0x1438   :  { %3255 = vmatprep.subr.mxu1 %v5049_v61 }
0x1439   :  { %3256 = vmatpush3.msra.mxu1 %v4467_v44 }
0x143a   :  { %3257 = vmatprep.subr.mxu1 %v5049_v61 }
0x143b   :  { %3258 = vmatpush3.msra.mxu1 %v4471_v45 }
0x143c   :  { %3259 = vmatprep.subr.mxu1 %v5049_v61 }
0x143d   :  { %3260 = vmatpush3.msra.mxu1 %v4475_v55 }
0x143e   :  { %3261 = vmatprep.subr.mxu1 %v5049_v61 }
0x143f   :  { %3262 = vmatpush3.msra.mxu1 %v4479_v56 }
0x1440   :  { %3263 = vmatprep.subr.mxu1 %v5049_v61 }
0x1441   :  { %3264 = vmatpush3.msra.mxu1 %v4483_v57 }
0x1442   :  { %3265 = vmatprep.subr.mxu1 %v5049_v61 }
0x1443   :  { %3266 = vmatpush3.msra.mxu1 %v4487_v62 }
0x1444   :  { %3305 = vmatprep.subr.mxu1 %v5049_v61 }
0x14e4   :  { %v1370_v46 = vpop.f32.mrf.mxu1 }
0x14e5   :  { %v1371_v4 = vadd.f32 %v4689_v2, %v1370_v46 }
0x14e6   :  { %v3199_v5 = vpop.f32.mrf.mxu1 }
0x14e7   :  { %1375 = vst [vmem:[#allocation12 + $0x20] sm:$0xff] %v1371_v4  ;;  %1376 = vmax.xlane.f32.xlu0 %v1371_v4 }
0x1570   :  { %v1377_v8 = vpop.xlane.xlu0 %1376 }
0x1571   :  { %vm1378_vm13 = vcmp.eq.f32.partialorder %v1371_v4, %v1377_v8 }
0x1572   :  { %v1379_v41 = vsel %vm1378_vm13, %v4046_v59, 128 }
0x1573   :  { %v1381_v3 = vshra.s32 %v1379_v41, 16  ;;  %v1380_v0 = vand.u32 65535, %v1379_v41 }
0x1575   :  { %v1383_v32 = vcvt.s32.f32 %v1381_v3  ;;  %v1382_v57 = vcvt.s32.f32 %v1380_v0 }
0x1577   :  { %1384 = vmin.xlane.f32.xlu1 %v1383_v32 }
0x1600   :  { %v1385_v62 = vpop.xlane.xlu1 %1384 }
0x1601   :  { %vm1386_vm14 = vcmp.eq.f32.partialorder %v1383_v32, %v1385_v62  ;;  %v1391_v55 = vcvt.f32.s32 %v1385_v62 }
0x1602   :  { %v1387_v56 = vsel %vm1386_vm14, %v1382_v57, inf }
0x1603   :  { %1388 = vmin.xlane.f32.xlu0 %v1387_v56  ;;  %v1392_v44 = vshll.u32 %v1391_v55, 16 }
0x168c   :  { %v1389_v45 = vpop.xlane.xlu0 %1388 }
0x168d   :  { %v1390_v46 = vcvt.f32.s32 %v1389_v45 }
0x168f   :  { %v1393_v5 = vadd.s32 %v1392_v44, %v1390_v46  ;;  %v2292_v44 = vld [vmem:[#allocation6 + $0x4] ss:$0 sm:$0xff] }
0x1691   :  { %vm1394_vm15 = vcmp.eq.s32.totalorder %v4046_v59, %v1393_v5 }
0x1692   :  { %3233 = vmatmul.mubr.msk.f32.vlgmr.msra.gmra.mxu0 %vm1394_vm15, %v5050_v54 }
0x1693   :  { %3271 = vmatpush3.msra.mxu0 %v4495_v47  ;;  %3302 = vmatprep.mubr.msk.f32.mxu0 %vm3769_vm0, %v5049_v61 }
0x1694   :  { %3272 = vmatprep.subr.mxu0 %v5049_v61 }
0x1695   :  { %3273 = vmatpush3.msra.mxu0 %v4501_v48 }
0x1696   :  { %3274 = vmatprep.subr.mxu0 %v5049_v61 }
0x1697   :  { %3275 = vmatpush3.msra.mxu0 %v4505_v50 }
0x1698   :  { %3276 = vmatprep.subr.mxu0 %v5049_v61 }
0x1699   :  { %3277 = vmatpush3.msra.mxu0 %v4509_v63 }
0x169a   :  { %3278 = vmatprep.subr.mxu0 %v5049_v61 }
0x169b   :  { %3279 = vmatpush3.msra.mxu0 %v4513_v51 }
0x169c   :  { %3280 = vmatprep.subr.mxu0 %v5049_v61 }
0x169d   :  { %3281 = vmatpush3.msra.mxu0 %v4517_v19 }
0x169e   :  { %3282 = vmatprep.subr.mxu0 %v5049_v61 }
0x169f   :  { %3283 = vmatpush3.msra.mxu0 %v4521_v20 }
0x16a0   :  { %3284 = vmatprep.subr.mxu0 %v5049_v61 }
0x16a1   :  { %3285 = vmatpush3.msra.mxu0 %v4525_v21 }
0x16a2   :  { %3286 = vmatprep.subr.mxu0 %v5049_v61 }
0x16a3   :  { %3287 = vmatpush3.msra.mxu0 %v4529_v22 }
0x16a4   :  { %3288 = vmatprep.subr.mxu0 %v5049_v61 }
0x16a5   :  { %3289 = vmatpush3.msra.mxu0 %v4533_v23 }
0x16a6   :  { %3290 = vmatprep.subr.mxu0 %v5049_v61 }
0x16a7   :  { %3291 = vmatpush3.msra.mxu0 %v4537_v24 }
0x16a8   :  { %3292 = vmatprep.subr.mxu0 %v5049_v61 }
0x16a9   :  { %3293 = vmatpush3.msra.mxu0 %v4541_v26 }
0x16aa   :  { %3294 = vmatprep.subr.mxu0 %v5049_v61 }
0x16ab   :  { %3295 = vmatpush3.msra.mxu0 %v4545_v27 }
0x16ac   :  { %3296 = vmatprep.subr.mxu0 %v5049_v61 }
0x16ad   :  { %3297 = vmatpush3.msra.mxu0 %v4549_v28 }
0x16ae   :  { %3298 = vmatprep.subr.mxu0 %v5049_v61 }
0x16af   :  { %3299 = vmatpush3.msra.mxu0 %v4553_v29 }
0x16b0   :  { %3300 = vmatprep.subr.mxu0 %v5049_v61 }
0x16b1   :  { %3301 = vmatpush3.msra.mxu0 %v4557_v30 }
0x16b2   :  { %3340 = vmatprep.subr.mxu0 %v5049_v61 }
0x1752   :  { %v1463_v45 = vpop.f32.mrf.mxu0 }
0x1753   :  { %v1475_v55 = vmul.f32 %v2292_v44, %v1463_v45 }
0x1754   :  { %v3234_v56 = vpop.f32.mrf.mxu0 }
0x1755   :  { %v4730_v57 = vsub.f32 %v4562_v60, %v1475_v55 }
0x1757   :  { %1477 = vadd.xlane.f32.xlu1 %v4730_v57  ;;  %v1480_v62 = vmul.f32 %v4730_v57, %v4730_v57 }
0x1759   :  { %1481 = vadd.xlane.f32.xlu0 %v1480_v62 }
0x17e0   :  { %v1478_v4 = vpop.xlane.xlu1 %1477 }
0x17e1   :  { %v1479_v8 = vmul.f32 0.03125, %v1478_v4 }
0x17e2   :  { %v1482_v41 = vpop.xlane.xlu0 %1481 }
0x17e3   :  { %v1484_v3 = vmul.f32 %v1479_v8, %v1479_v8  ;;  %v1483_v32 = vmul.f32 0.03125, %v1482_v41  ;;  %v1486_v5 = vsub.f32 %v4730_v57, %v1479_v8  ;;  %v5065_v41 = vld [vmem:[#allocation19_spill] sm:$0xff] }
0x17e5   :  { %v1485_v0 = vsub.f32 %v1483_v32, %v1484_v3  ;;  %v5066_v3 = vld [vmem:[#allocation17_spill] sm:$0xff]  ;;  %v5067_v32 = vld [vmem:[#allocation18_spill] sm:$0xff] }
0x17e7   :  { %v1487_v46 = vadd.f32 1e-05, %v1485_v0  ;;  %v5068_v0 = vld [vmem:[#allocation22_spill] sm:$0xff] }
0x17e9   :  { %3573 = vrsqrt.f32 %v1487_v46  ;;  %v5069_v46 = vld [vmem:[#allocation20_spill] sm:$0xff] }
0x17f6   :  { %v3574_v44 = vpop.eup %3573 }
0x17f7   :  { %v1489_v45 = vmul.f32 %v3574_v44, %v1486_v5  ;;  %v5070_v5 = vld [vmem:[#allocation21_spill] sm:$0xff] }
0x17f9   :  { %v1490_v60 = vmul.f32 %v4571_v25, %v1489_v45 }
0x17fb   :  { %v1491_v55 = vadd.f32 %v4577_v7, %v1490_v60 }
0x17fd   :  { %3268 = vmatmul.mubr.f32.vlgmr.msra.gmra.mxu1 %v1491_v55 }
0x17fe   :  { %3306 = vmatpush3.msra.mxu1 %v4580_v9  ;;  %3337 = vmatprep.mubr.msk.f32.mxu1 %vm3769_vm0, %v5049_v61 }
0x17ff   :  { %3307 = vmatprep.subr.mxu1 %v5049_v61 }
0x1800   :  { %3308 = vmatpush3.msra.mxu1 %v4586_v10 }
0x1801   :  { %3309 = vmatprep.subr.mxu1 %v5049_v61 }
0x1802   :  { %3310 = vmatpush3.msra.mxu1 %v4590_v11 }
0x1803   :  { %3311 = vmatprep.subr.mxu1 %v5049_v61 }
0x1804   :  { %3312 = vmatpush3.msra.mxu1 %v4594_v12 }
0x1805   :  { %3313 = vmatprep.subr.mxu1 %v5049_v61 }
0x1806   :  { %3314 = vmatpush3.msra.mxu1 %v4598_v13 }
0x1807   :  { %3315 = vmatprep.subr.mxu1 %v5049_v61 }
0x1808   :  { %3316 = vmatpush3.msra.mxu1 %v4602_v14 }
0x1809   :  { %3317 = vmatprep.subr.mxu1 %v5049_v61 }
0x180a   :  { %3318 = vmatpush3.msra.mxu1 %v4606_v15 }
0x180b   :  { %3319 = vmatprep.subr.mxu1 %v5049_v61 }
0x180c   :  { %3320 = vmatpush3.msra.mxu1 %v4610_v6 }
0x180d   :  { %3321 = vmatprep.subr.mxu1 %v5049_v61 }
0x180e   :  { %3322 = vmatpush3.msra.mxu1 %v4614_v16 }
0x180f   :  { %3323 = vmatprep.subr.mxu1 %v5049_v61 }
0x1810   :  { %3324 = vmatpush3.msra.mxu1 %v4618_v31 }
0x1811   :  { %3325 = vmatprep.subr.mxu1 %v5049_v61 }
0x1812   :  { %3326 = vmatpush3.msra.mxu1 %v4622_v17 }
0x1813   :  { %3327 = vmatprep.subr.mxu1 %v5049_v61 }
0x1814   :  { %3328 = vmatpush3.msra.mxu1 %v4626_v52 }
0x1815   :  { %3329 = vmatprep.subr.mxu1 %v5049_v61 }
0x1816   :  { %3330 = vmatpush3.msra.mxu1 %v4630_v1 }
0x1817   :  { %3331 = vmatprep.subr.mxu1 %v5049_v61 }
0x1818   :  { %3332 = vmatpush3.msra.mxu1 %v4634_v58 }
0x1819   :  { %3333 = vmatprep.subr.mxu1 %v5049_v61 }
0x181a   :  { %3334 = vmatpush3.msra.mxu1 %v4638_v53 }
0x181b   :  { %3335 = vmatprep.subr.mxu1 %v5049_v61 }
0x181c   :  { %3336 = vmatpush3.msra.mxu1 %v4642_v18 }
0x181d   :  { %3375 = vmatprep.subr.mxu1 %v5049_v61 }
0x18bd   :  { %v1558_v56 = vpop.f32.mrf.mxu1 }
0x18be   :  { %v1559_v62 = vadd.f32 %v4649_v43, %v1558_v56 }
0x18bf   :  { %v3269_v4 = vpop.f32.mrf.mxu1 }
0x18c0   :  { %v1562_v8 = vmax.f32 %v1559_v62, 0.0 }
0x18c2   :  { %3303 = vmatmul.mubr.f32.vlgmr.msra.gmra.mxu0 %v1562_v8 }
0x18c3   :  { %3341 = vmatpush3.msra.mxu0 %v4425_v33  ;;  %3372 = vmatprep.mubr.msk.f32.mxu0 %vm3769_vm0, %v5049_v61 }
0x18c4   :  { %3342 = vmatprep.subr.mxu0 %v5049_v61 }
0x18c5   :  { %3343 = vmatpush3.msra.mxu0 %v4431_v34 }
0x18c6   :  { %3344 = vmatprep.subr.mxu0 %v5049_v61 }
0x18c7   :  { %3345 = vmatpush3.msra.mxu0 %v4435_v35 }
0x18c8   :  { %3346 = vmatprep.subr.mxu0 %v5049_v61 }
0x18c9   :  { %3347 = vmatpush3.msra.mxu0 %v4439_v49 }
0x18ca   :  { %3348 = vmatprep.subr.mxu0 %v5049_v61 }
0x18cb   :  { %3349 = vmatpush3.msra.mxu0 %v4443_v36 }
0x18cc   :  { %3350 = vmatprep.subr.mxu0 %v5049_v61 }
0x18cd   :  { %3351 = vmatpush3.msra.mxu0 %v4447_v37 }
0x18ce   :  { %3352 = vmatprep.subr.mxu0 %v5049_v61 }
0x18cf   :  { %3353 = vmatpush3.msra.mxu0 %v4451_v38 }
0x18d0   :  { %3354 = vmatprep.subr.mxu0 %v5049_v61 }
0x18d1   :  { %3355 = vmatpush3.msra.mxu0 %v4455_v39 }
0x18d2   :  { %3356 = vmatprep.subr.mxu0 %v5049_v61 }
0x18d3   :  { %3357 = vmatpush3.msra.mxu0 %v4459_v40 }
0x18d4   :  { %3358 = vmatprep.subr.mxu0 %v5049_v61 }
0x18d5   :  { %3359 = vmatpush3.msra.mxu0 %v4463_v42 }
0x18d6   :  { %3360 = vmatprep.subr.mxu0 %v5049_v61 }
0x18d7   :  { %3361 = vmatpush3.msra.mxu0 %v5065_v41 }
0x18d8   :  { %3362 = vmatprep.subr.mxu0 %v5049_v61 }
0x18d9   :  { %3363 = vmatpush3.msra.mxu0 %v5066_v3 }
0x18da   :  { %3364 = vmatprep.subr.mxu0 %v5049_v61 }
0x18db   :  { %3365 = vmatpush3.msra.mxu0 %v5067_v32 }
0x18dc   :  { %3366 = vmatprep.subr.mxu0 %v5049_v61 }
0x18dd   :  { %3367 = vmatpush3.msra.mxu0 %v5068_v0 }
0x18de   :  { %3368 = vmatprep.subr.mxu0 %v5049_v61 }
0x18df   :  { %3369 = vmatpush3.msra.mxu0 %v5069_v46 }
0x18e0   :  { %3370 = vmatprep.subr.mxu0 %v5049_v61 }
0x18e1   :  { %3371 = vmatpush3.msra.mxu0 %v5070_v5 }
0x18e2   :  { %3410 = vmatprep.subr.mxu0 %v5049_v61 }
0x1982   :  { %v1629_v44 = vpop.f32.mrf.mxu0 }
0x1983   :  { %v1630_v45 = vadd.f32 %v4689_v2, %v1629_v44 }
0x1984   :  { %v3304_v60 = vpop.f32.mrf.mxu0 }
0x1985   :  { %1634 = vst [vmem:[#allocation12 + $0x28] sm:$0xff] %v1630_v45  ;;  %1635 = vmax.xlane.f32.xlu1 %v1630_v45 }
0x1a0e   :  { %v1636_v55 = vpop.xlane.xlu1 %1635 }
0x1a0f   :  { %vm1637_vm1 = vcmp.eq.f32.partialorder %v1630_v45, %v1636_v55 }
0x1a10   :  { %v1638_v56 = vsel %vm1637_vm1, %v4046_v59, 128 }
0x1a11   :  { %v1640_v62 = vshra.s32 %v1638_v56, 16  ;;  %v1639_v8 = vand.u32 65535, %v1638_v56 }
0x1a13   :  { %v1642_v4 = vcvt.s32.f32 %v1640_v62  ;;  %v1641_v0 = vcvt.s32.f32 %v1639_v8 }
0x1a15   :  { %1643 = vmin.xlane.f32.xlu0 %v1642_v4 }
0x1a9e   :  { %v1644_v46 = vpop.xlane.xlu0 %1643 }
0x1a9f   :  { %vm1645_vm2 = vcmp.eq.f32.partialorder %v1642_v4, %v1644_v46  ;;  %v1650_v32 = vcvt.f32.s32 %v1644_v46 }
0x1aa0   :  { %v1646_v5 = vsel %vm1645_vm2, %v1641_v0, inf }
0x1aa1   :  { %1647 = vmin.xlane.f32.xlu1 %v1646_v5  ;;  %v1651_v41 = vshll.u32 %v1650_v32, 16 }
0x1b2a   :  { %v1648_v3 = vpop.xlane.xlu1 %1647 }
0x1b2b   :  { %v1649_v44 = vcvt.f32.s32 %v1648_v3 }
0x1b2d   :  { %v1652_v60 = vadd.s32 %v1651_v41, %v1649_v44  ;;  %v2295_v41 = vld [vmem:[#allocation6 + $0x5] ss:$0 sm:$0xff] }
0x1b2f   :  { %vm1653_vm3 = vcmp.eq.s32.totalorder %v4046_v59, %v1652_v60 }
0x1b30   :  { %3338 = vmatmul.mubr.msk.f32.vlgmr.msra.gmra.mxu1 %vm1653_vm3, %v5050_v54 }
0x1b31   :  { %3376 = vmatpush3.msra.mxu1 %v4495_v47  ;;  %3407 = vmatprep.mubr.msk.f32.mxu1 %vm3769_vm0, %v5049_v61 }
0x1b32   :  { %3377 = vmatprep.subr.mxu1 %v5049_v61 }
0x1b33   :  { %3378 = vmatpush3.msra.mxu1 %v4501_v48 }
0x1b34   :  { %3379 = vmatprep.subr.mxu1 %v5049_v61 }
0x1b35   :  { %3380 = vmatpush3.msra.mxu1 %v4505_v50 }
0x1b36   :  { %3381 = vmatprep.subr.mxu1 %v5049_v61 }
0x1b37   :  { %3382 = vmatpush3.msra.mxu1 %v4509_v63 }
0x1b38   :  { %3383 = vmatprep.subr.mxu1 %v5049_v61 }
0x1b39   :  { %3384 = vmatpush3.msra.mxu1 %v4513_v51 }
0x1b3a   :  { %3385 = vmatprep.subr.mxu1 %v5049_v61 }
0x1b3b   :  { %3386 = vmatpush3.msra.mxu1 %v4517_v19 }
0x1b3c   :  { %3387 = vmatprep.subr.mxu1 %v5049_v61 }
0x1b3d   :  { %3388 = vmatpush3.msra.mxu1 %v4521_v20 }
0x1b3e   :  { %3389 = vmatprep.subr.mxu1 %v5049_v61 }
0x1b3f   :  { %3390 = vmatpush3.msra.mxu1 %v4525_v21 }
0x1b40   :  { %3391 = vmatprep.subr.mxu1 %v5049_v61 }
0x1b41   :  { %3392 = vmatpush3.msra.mxu1 %v4529_v22 }
0x1b42   :  { %3393 = vmatprep.subr.mxu1 %v5049_v61 }
0x1b43   :  { %3394 = vmatpush3.msra.mxu1 %v4533_v23 }
0x1b44   :  { %3395 = vmatprep.subr.mxu1 %v5049_v61 }
0x1b45   :  { %3396 = vmatpush3.msra.mxu1 %v4537_v24 }
0x1b46   :  { %3397 = vmatprep.subr.mxu1 %v5049_v61 }
0x1b47   :  { %3398 = vmatpush3.msra.mxu1 %v4541_v26 }
0x1b48   :  { %3399 = vmatprep.subr.mxu1 %v5049_v61 }
0x1b49   :  { %3400 = vmatpush3.msra.mxu1 %v4545_v27 }
0x1b4a   :  { %3401 = vmatprep.subr.mxu1 %v5049_v61 }
0x1b4b   :  { %3402 = vmatpush3.msra.mxu1 %v4549_v28 }
0x1b4c   :  { %3403 = vmatprep.subr.mxu1 %v5049_v61 }
0x1b4d   :  { %3404 = vmatpush3.msra.mxu1 %v4553_v29 }
0x1b4e   :  { %3405 = vmatprep.subr.mxu1 %v5049_v61 }
0x1b4f   :  { %3406 = vmatpush3.msra.mxu1 %v4557_v30 }
0x1b50   :  { %3445 = vmatprep.subr.mxu1 %v5049_v61 }
0x1bf0   :  { %v1722_v3 = vpop.f32.mrf.mxu1 }
0x1bf1   :  { %v1734_v32 = vmul.f32 %v2295_v41, %v1722_v3 }
0x1bf2   :  { %v3339_v0 = vpop.f32.mrf.mxu1 }
0x1bf3   :  { %v4846_v46 = vsub.f32 %v4730_v57, %v1734_v32 }
0x1bf5   :  { %1736 = vadd.xlane.f32.xlu0 %v4846_v46  ;;  %v1739_v5 = vmul.f32 %v4846_v46, %v4846_v46 }
0x1bf7   :  { %1740 = vadd.xlane.f32.xlu1 %v1739_v5 }
0x1c7e   :  { %v1737_v45 = vpop.xlane.xlu0 %1736 }
0x1c7f   :  { %v1738_v55 = vmul.f32 0.03125, %v1737_v45 }
0x1c80   :  { %v1741_v56 = vpop.xlane.xlu1 %1740 }
0x1c81   :  { %v1743_v62 = vmul.f32 %v1738_v55, %v1738_v55  ;;  %v1742_v4 = vmul.f32 0.03125, %v1741_v56  ;;  %v1745_v60 = vsub.f32 %v4846_v46, %v1738_v55 }
0x1c83   :  { %v1744_v8 = vsub.f32 %v1742_v4, %v1743_v62 }
0x1c85   :  { %v1746_v44 = vadd.f32 1e-05, %v1744_v8 }
0x1c87   :  { %3575 = vrsqrt.f32 %v1746_v44 }
0x1c94   :  { %v3576_v41 = vpop.eup %3575 }
0x1c95   :  { %v1748_v3 = vmul.f32 %v3576_v41, %v1745_v60 }
0x1c97   :  { %v1749_v57 = vmul.f32 %v4571_v25, %v1748_v3 }
0x1c99   :  { %v1750_v32 = vadd.f32 %v4577_v7, %v1749_v57 }
0x1c9b   :  { %3373 = vmatmul.mubr.f32.vlgmr.msra.gmra.mxu0 %v1750_v32 }
0x1c9c   :  { %3411 = vmatpush3.msra.mxu0 %v4580_v9  ;;  %3442 = vmatprep.mubr.msk.f32.mxu0 %vm3769_vm0, %v5049_v61 }
0x1c9d   :  { %3412 = vmatprep.subr.mxu0 %v5049_v61 }
0x1c9e   :  { %3413 = vmatpush3.msra.mxu0 %v4586_v10 }
0x1c9f   :  { %3414 = vmatprep.subr.mxu0 %v5049_v61 }
0x1ca0   :  { %3415 = vmatpush3.msra.mxu0 %v4590_v11 }
0x1ca1   :  { %3416 = vmatprep.subr.mxu0 %v5049_v61 }
0x1ca2   :  { %3417 = vmatpush3.msra.mxu0 %v4594_v12 }
0x1ca3   :  { %3418 = vmatprep.subr.mxu0 %v5049_v61 }
0x1ca4   :  { %3419 = vmatpush3.msra.mxu0 %v4598_v13 }
0x1ca5   :  { %3420 = vmatprep.subr.mxu0 %v5049_v61 }
0x1ca6   :  { %3421 = vmatpush3.msra.mxu0 %v4602_v14 }
0x1ca7   :  { %3422 = vmatprep.subr.mxu0 %v5049_v61 }
0x1ca8   :  { %3423 = vmatpush3.msra.mxu0 %v4606_v15 }
0x1ca9   :  { %3424 = vmatprep.subr.mxu0 %v5049_v61 }
0x1caa   :  { %3425 = vmatpush3.msra.mxu0 %v4610_v6 }
0x1cab   :  { %3426 = vmatprep.subr.mxu0 %v5049_v61 }
0x1cac   :  { %3427 = vmatpush3.msra.mxu0 %v4614_v16 }
0x1cad   :  { %3428 = vmatprep.subr.mxu0 %v5049_v61 }
0x1cae   :  { %3429 = vmatpush3.msra.mxu0 %v4618_v31 }
0x1caf   :  { %3430 = vmatprep.subr.mxu0 %v5049_v61 }
0x1cb0   :  { %3431 = vmatpush3.msra.mxu0 %v4622_v17 }
0x1cb1   :  { %3432 = vmatprep.subr.mxu0 %v5049_v61 }
0x1cb2   :  { %3433 = vmatpush3.msra.mxu0 %v4626_v52 }
0x1cb3   :  { %3434 = vmatprep.subr.mxu0 %v5049_v61 }
0x1cb4   :  { %3435 = vmatpush3.msra.mxu0 %v4630_v1 }
0x1cb5   :  { %3436 = vmatprep.subr.mxu0 %v5049_v61 }
0x1cb6   :  { %3437 = vmatpush3.msra.mxu0 %v4634_v58 }
0x1cb7   :  { %3438 = vmatprep.subr.mxu0 %v5049_v61 }
0x1cb8   :  { %3439 = vmatpush3.msra.mxu0 %v4638_v53 }
0x1cb9   :  { %3440 = vmatprep.subr.mxu0 %v5049_v61 }
0x1cba   :  { %3441 = vmatpush3.msra.mxu0 %v4642_v18 }
0x1cbb   :  { %3480 = vmatprep.subr.mxu0 %v5049_v61 }
0x1d5b   :  { %v1817_v0 = vpop.f32.mrf.mxu0 }
0x1d5c   :  { %v1818_v5 = vadd.f32 %v4649_v43, %v1817_v0 }
0x1d5d   :  { %v3374_v45 = vpop.f32.mrf.mxu0 }
0x1d5e   :  { %v1821_v55 = vmax.f32 %v1818_v5, 0.0 }
0x1d60   :  { %3408 = vmatmul.mubr.f32.vlgmr.msra.gmra.mxu1 %v1821_v55 }
0x1d61   :  { %3446 = vmatpush3.msra.mxu1 %v4425_v33  ;;  %3477 = vmatprep.mubr.msk.f32.mxu1 %vm3769_vm0, %v5049_v61  ;;  %v5071_v33 = vld [vmem:[#allocation19_spill] sm:$0xff] }
0x1d62   :  { %3447 = vmatprep.subr.mxu1 %v5049_v61 }
0x1d63   :  { %3448 = vmatpush3.msra.mxu1 %v4431_v34  ;;  %v5072_v34 = vld [vmem:[#allocation17_spill] sm:$0xff] }
0x1d64   :  { %3449 = vmatprep.subr.mxu1 %v5049_v61 }
0x1d65   :  { %3450 = vmatpush3.msra.mxu1 %v4435_v35  ;;  %v5073_v35 = vld [vmem:[#allocation18_spill] sm:$0xff] }
0x1d66   :  { %3451 = vmatprep.subr.mxu1 %v5049_v61 }
0x1d67   :  { %3452 = vmatpush3.msra.mxu1 %v4439_v49  ;;  %v5074_v49 = vld [vmem:[#allocation22_spill] sm:$0xff] }
0x1d68   :  { %3453 = vmatprep.subr.mxu1 %v5049_v61 }
0x1d69   :  { %3454 = vmatpush3.msra.mxu1 %v4443_v36  ;;  %v5075_v36 = vld [vmem:[#allocation20_spill] sm:$0xff] }
0x1d6a   :  { %3455 = vmatprep.subr.mxu1 %v5049_v61 }
0x1d6b   :  { %3456 = vmatpush3.msra.mxu1 %v4447_v37  ;;  %v5076_v37 = vld [vmem:[#allocation21_spill] sm:$0xff] }
0x1d6c   :  { %3457 = vmatprep.subr.mxu1 %v5049_v61 }
0x1d6d   :  { %3458 = vmatpush3.msra.mxu1 %v4451_v38 }
0x1d6e   :  { %3459 = vmatprep.subr.mxu1 %v5049_v61 }
0x1d6f   :  { %3460 = vmatpush3.msra.mxu1 %v4455_v39 }
0x1d70   :  { %3461 = vmatprep.subr.mxu1 %v5049_v61 }
0x1d71   :  { %3462 = vmatpush3.msra.mxu1 %v4459_v40 }
0x1d72   :  { %3463 = vmatprep.subr.mxu1 %v5049_v61 }
0x1d73   :  { %3464 = vmatpush3.msra.mxu1 %v4463_v42 }
0x1d74   :  { %3465 = vmatprep.subr.mxu1 %v5049_v61 }
0x1d75   :  { %3466 = vmatpush3.msra.mxu1 %v5071_v33 }
0x1d76   :  { %3467 = vmatprep.subr.mxu1 %v5049_v61 }
0x1d77   :  { %3468 = vmatpush3.msra.mxu1 %v5072_v34 }
0x1d78   :  { %3469 = vmatprep.subr.mxu1 %v5049_v61 }
0x1d79   :  { %3470 = vmatpush3.msra.mxu1 %v5073_v35 }
0x1d7a   :  { %3471 = vmatprep.subr.mxu1 %v5049_v61 }
0x1d7b   :  { %3472 = vmatpush3.msra.mxu1 %v5074_v49 }
0x1d7c   :  { %3473 = vmatprep.subr.mxu1 %v5049_v61 }
0x1d7d   :  { %3474 = vmatpush3.msra.mxu1 %v5075_v36 }
0x1d7e   :  { %3475 = vmatprep.subr.mxu1 %v5049_v61 }
0x1d7f   :  { %3476 = vmatpush3.msra.mxu1 %v5076_v37 }
0x1d80   :  { %3515 = vmatprep.subr.mxu1 %v5049_v61 }
0x1e20   :  { %v1888_v38 = vpop.f32.mrf.mxu1 }
0x1e21   :  { %v1889_v39 = vadd.f32 %v4689_v2, %v1888_v38 }
0x1e22   :  { %v3409_v40 = vpop.f32.mrf.mxu1 }
0x1e23   :  { %1893 = vst [vmem:[#allocation12 + $0x30] sm:$0xff] %v1889_v39  ;;  %1894 = vmax.xlane.f32.xlu0 %v1889_v39 }
0x1eac   :  { %v1895_v42 = vpop.xlane.xlu0 %1894 }
0x1ead   :  { %vm1896_vm4 = vcmp.eq.f32.partialorder %v1889_v39, %v1895_v42 }
0x1eae   :  { %v1897_v56 = vsel %vm1896_vm4, %v4046_v59, 128 }
0x1eaf   :  { %v1899_v62 = vshra.s32 %v1897_v56, 16  ;;  %v1898_v8 = vand.u32 65535, %v1897_v56 }
0x1eb1   :  { %v1901_v4 = vcvt.s32.f32 %v1899_v62  ;;  %v1900_v60 = vcvt.s32.f32 %v1898_v8 }
0x1eb3   :  { %1902 = vmin.xlane.f32.xlu1 %v1901_v4 }
0x1f3c   :  { %v1903_v44 = vpop.xlane.xlu1 %1902 }
0x1f3d   :  { %vm1904_vm5 = vcmp.eq.f32.partialorder %v1901_v4, %v1903_v44  ;;  %v1909_v3 = vcvt.f32.s32 %v1903_v44 }
0x1f3e   :  { %v1905_v41 = vsel %vm1904_vm5, %v1900_v60, inf }
0x1f3f   :  { %1906 = vmin.xlane.f32.xlu0 %v1905_v41  ;;  %v1910_v32 = vshll.u32 %v1909_v3, 16 }
0x1fc8   :  { %v1907_v57 = vpop.xlane.xlu0 %1906 }
0x1fc9   :  { %v1908_v0 = vcvt.f32.s32 %v1907_v57 }
0x1fcb   :  { %v1911_v5 = vadd.s32 %v1910_v32, %v1908_v0 }
0x1fcd   :  { %vm1912_vm6 = vcmp.eq.s32.totalorder %v4046_v59, %v1911_v5 }
0x1fce   :  { %3443 = vmatmul.mubr.msk.f32.vlgmr.msra.gmra.mxu0 %vm1912_vm6, %v5050_v54 }
0x1fcf   :  { %3481 = vmatpush3.msra.mxu0 %v4495_v47  ;;  %3512 = vmatprep.mubr.msk.f32.mxu0 %vm3769_vm0, %v5049_v61  ;;  %v2298_v47 = vld [vmem:[#allocation6 + $0x6] ss:$0 sm:$0xff] }
0x1fd0   :  { %3482 = vmatprep.subr.mxu0 %v5049_v61 }
0x1fd1   :  { %3483 = vmatpush3.msra.mxu0 %v4501_v48 }
0x1fd2   :  { %3484 = vmatprep.subr.mxu0 %v5049_v61 }
0x1fd3   :  { %3485 = vmatpush3.msra.mxu0 %v4505_v50 }
0x1fd4   :  { %3486 = vmatprep.subr.mxu0 %v5049_v61 }
0x1fd5   :  { %3487 = vmatpush3.msra.mxu0 %v4509_v63 }
0x1fd6   :  { %3488 = vmatprep.subr.mxu0 %v5049_v61 }
0x1fd7   :  { %3489 = vmatpush3.msra.mxu0 %v4513_v51 }
0x1fd8   :  { %3490 = vmatprep.subr.mxu0 %v5049_v61 }
0x1fd9   :  { %3491 = vmatpush3.msra.mxu0 %v4517_v19 }
0x1fda   :  { %3492 = vmatprep.subr.mxu0 %v5049_v61 }
0x1fdb   :  { %3493 = vmatpush3.msra.mxu0 %v4521_v20 }
0x1fdc   :  { %3494 = vmatprep.subr.mxu0 %v5049_v61 }
0x1fdd   :  { %3495 = vmatpush3.msra.mxu0 %v4525_v21 }
0x1fde   :  { %3496 = vmatprep.subr.mxu0 %v5049_v61 }
0x1fdf   :  { %3497 = vmatpush3.msra.mxu0 %v4529_v22 }
0x1fe0   :  { %3498 = vmatprep.subr.mxu0 %v5049_v61 }
0x1fe1   :  { %3499 = vmatpush3.msra.mxu0 %v4533_v23 }
0x1fe2   :  { %3500 = vmatprep.subr.mxu0 %v5049_v61 }
0x1fe3   :  { %3501 = vmatpush3.msra.mxu0 %v4537_v24 }
0x1fe4   :  { %3502 = vmatprep.subr.mxu0 %v5049_v61 }
0x1fe5   :  { %3503 = vmatpush3.msra.mxu0 %v4541_v26 }
0x1fe6   :  { %3504 = vmatprep.subr.mxu0 %v5049_v61 }
0x1fe7   :  { %3505 = vmatpush3.msra.mxu0 %v4545_v27 }
0x1fe8   :  { %3506 = vmatprep.subr.mxu0 %v5049_v61 }
0x1fe9   :  { %3507 = vmatpush3.msra.mxu0 %v4549_v28 }
0x1fea   :  { %3508 = vmatprep.subr.mxu0 %v5049_v61 }
0x1feb   :  { %3509 = vmatpush3.msra.mxu0 %v4553_v29 }
0x1fec   :  { %3510 = vmatprep.subr.mxu0 %v5049_v61 }
0x1fed   :  { %3511 = vmatpush3.msra.mxu0 %v4557_v30 }
0x208e   :  { %v1981_v48 = vpop.f32.mrf.mxu0 }
0x208f   :  { %v1993_v50 = vmul.f32 %v2298_v47, %v1981_v48 }
0x2090   :  { %v3444_v63 = vpop.f32.mrf.mxu0 }
0x2091   :  { %v1994_v51 = vsub.f32 %v4846_v46, %v1993_v50 }
0x2093   :  { %1995 = vadd.xlane.f32.xlu1 %v1994_v51  ;;  %v1998_v19 = vmul.f32 %v1994_v51, %v1994_v51 }
0x2095   :  { %1999 = vadd.xlane.f32.xlu0 %v1998_v19 }
0x211c   :  { %v1996_v20 = vpop.xlane.xlu1 %1995 }
0x211d   :  { %v1997_v21 = vmul.f32 0.03125, %v1996_v20 }
0x211e   :  { %v2000_v22 = vpop.xlane.xlu0 %1999 }
0x211f   :  { %v2002_v23 = vmul.f32 %v1997_v21, %v1997_v21  ;;  %v2001_v24 = vmul.f32 0.03125, %v2000_v22  ;;  %v2004_v28 = vsub.f32 %v1994_v51, %v1997_v21 }
0x2121   :  { %v2003_v26 = vsub.f32 %v2001_v24, %v2002_v23 }
0x2123   :  { %v2005_v27 = vadd.f32 1e-05, %v2003_v26 }
0x2125   :  { %3577 = vrsqrt.f32 %v2005_v27 }
0x2132   :  { %v3578_v29 = vpop.eup %3577 }
0x2133   :  { %v2007_v30 = vmul.f32 %v3578_v29, %v2004_v28 }
0x2135   :  { %v2008_v45 = vmul.f32 %v4571_v25, %v2007_v30 }
0x2137   :  { %v2009_v55 = vadd.f32 %v4577_v7, %v2008_v45 }
0x2139   :  { %3478 = vmatmul.mubr.f32.vlgmr.msra.gmra.mxu1 %v2009_v55 }
0x213a   :  { %3516 = vmatpush3.msra.mxu1 %v4580_v9  ;;  %3547 = vmatprep.mubr.msk.f32.mxu1 %vm3769_vm0, %v5049_v61 }
0x213b   :  { %3517 = vmatprep.subr.mxu1 %v5049_v61 }
0x213c   :  { %3518 = vmatpush3.msra.mxu1 %v4586_v10 }
0x213d   :  { %3519 = vmatprep.subr.mxu1 %v5049_v61 }
0x213e   :  { %3520 = vmatpush3.msra.mxu1 %v4590_v11 }
0x213f   :  { %3521 = vmatprep.subr.mxu1 %v5049_v61 }
0x2140   :  { %3522 = vmatpush3.msra.mxu1 %v4594_v12 }
0x2141   :  { %3523 = vmatprep.subr.mxu1 %v5049_v61 }
0x2142   :  { %3524 = vmatpush3.msra.mxu1 %v4598_v13 }
0x2143   :  { %3525 = vmatprep.subr.mxu1 %v5049_v61 }
0x2144   :  { %3526 = vmatpush3.msra.mxu1 %v4602_v14 }
0x2145   :  { %3527 = vmatprep.subr.mxu1 %v5049_v61 }
0x2146   :  { %3528 = vmatpush3.msra.mxu1 %v4606_v15 }
0x2147   :  { %3529 = vmatprep.subr.mxu1 %v5049_v61 }
0x2148   :  { %3530 = vmatpush3.msra.mxu1 %v4610_v6 }
0x2149   :  { %3531 = vmatprep.subr.mxu1 %v5049_v61 }
0x214a   :  { %3532 = vmatpush3.msra.mxu1 %v4614_v16 }
0x214b   :  { %3533 = vmatprep.subr.mxu1 %v5049_v61 }
0x214c   :  { %3534 = vmatpush3.msra.mxu1 %v4618_v31 }
0x214d   :  { %3535 = vmatprep.subr.mxu1 %v5049_v61 }
0x214e   :  { %3536 = vmatpush3.msra.mxu1 %v4622_v17 }
0x214f   :  { %3537 = vmatprep.subr.mxu1 %v5049_v61 }
0x2150   :  { %3538 = vmatpush3.msra.mxu1 %v4626_v52 }
0x2151   :  { %3539 = vmatprep.subr.mxu1 %v5049_v61 }
0x2152   :  { %3540 = vmatpush3.msra.mxu1 %v4630_v1 }
0x2153   :  { %3541 = vmatprep.subr.mxu1 %v5049_v61 }
0x2154   :  { %3542 = vmatpush3.msra.mxu1 %v4634_v58 }
0x2155   :  { %3543 = vmatprep.subr.mxu1 %v5049_v61 }
0x2156   :  { %3544 = vmatpush3.msra.mxu1 %v4638_v53 }
0x2157   :  { %3545 = vmatprep.subr.mxu1 %v5049_v61 }
0x2158   :  { %3546 = vmatpush3.msra.mxu1 %v4642_v18 }
0x21f9   :  { %v2076_v25 = vpop.f32.mrf.mxu1 }
0x21fa   :  { %v2077_v7 = vadd.f32 %v4649_v43, %v2076_v25 }
0x21fb   :  { %v3479_v9 = vpop.f32.mrf.mxu1 }
0x21fc   :  { %v2080_v10 = vmax.f32 %v2077_v7, 0.0 }
0x21fe   :  { %3513 = vmatmul.mubr.f32.vlgmr.msra.gmra.mxu0 %v2080_v10 }
0x22be   :  { %v2147_v11 = vpop.f32.mrf.mxu0 }
0x22bf   :  { %v2148_v12 = vadd.f32 %v4689_v2, %v2147_v11 }
0x22c0   :  { %v3514_v13 = vpop.f32.mrf.mxu0 }
0x22c1   :  { %2152 = vst [vmem:[#allocation12 + $0x38] sm:$0xff] %v2148_v12  ;;  %2153 = vmax.xlane.f32.xlu1 %v2148_v12 }
0x234a   :  { %v2154_v14 = vpop.xlane.xlu1 %2153 }
0x234b   :  { %vm2155_vm0 = vcmp.eq.f32.partialorder %v2148_v12, %v2154_v14 }
0x234c   :  { %v2156_v15 = vsel %vm2155_vm0, %v4046_v59, 128 }
0x234d   :  { %v2158_v6 = vshra.s32 %v2156_v15, 16  ;;  %v2157_v16 = vand.u32 65535, %v2156_v15 }
0x234f   :  { %v2160_v61 = vcvt.s32.f32 %v2158_v6  ;;  %v2159_v17 = vcvt.s32.f32 %v2157_v16 }
0x2351   :  { %2161 = vmin.xlane.f32.xlu0 %v2160_v61 }
0x23da   :  { %v2162_v31 = vpop.xlane.xlu0 %2161 }
0x23db   :  { %vm2163_vm7 = vcmp.eq.f32.partialorder %v2160_v61, %v2162_v31  ;;  %v2168_v1 = vcvt.f32.s32 %v2162_v31 }
0x23dc   :  { %v2164_v52 = vsel %vm2163_vm7, %v2159_v17, inf }
0x23dd   :  { %2165 = vmin.xlane.f32.xlu1 %v2164_v52  ;;  %v2169_v53 = vshll.u32 %v2168_v1, 16 }
0x2466   :  { %v2166_v58 = vpop.xlane.xlu1 %2165 }
0x2467   :  { %v2167_v18 = vcvt.f32.s32 %v2166_v58 }
0x2469   :  { %v2170_v43 = vadd.s32 %v2169_v53, %v2167_v18 }
0x246b   :  { %vm2171_vm8 = vcmp.eq.s32.totalorder %v4046_v59, %v2170_v43 }
0x246c   :  { %3548 = vmatmul.mubr.msk.f32.vlgmr.msra.gmra.mxu1 %vm2171_vm8, %v5050_v54 }
0x246d   :  { %3742 = shalt.err (!%p3739_p1)
}
0x246e   :  { %2266 = dma.vmem_to_hbm [thread:$0]  %s2261_s26, 1024, %s5016_s9, [#allocation5], %s3764_s21, %s3764_s21, %s3765_s22  }
0x252c   :  { %v2240_v59 = vpop.f32.mrf.mxu1 }
0x252e   :  { %v3549_v2 = vpop.f32.mrf.mxu1 }
0x252f   :  { %3757 = dma.done.wait [#allocation5], 1024  }
0x2530   :  { %3758 = vsyncadd [#allocation5], 4294966272 }
0x2531   :  { %2270 = vsyncpa [#allocation4], 1 }
0x2532   :  { %2271 = vsyncpa [#allocation7], 1 }
0x2533   :  { %2272 = vsyncpa [#allocation10], 1 }
0x2534   :  { %2273 = vsyncpa [#allocation5], 1 }

</bundles_post_ra>
